<compile_context>
chip_gen: v7x
topology: tpu7x:2x2x1
jax: 0.10.0
libtpu: 0.0.40
codegen_flags: <defaults>
</compile_context>

<pallas_src>
import functools

import jax
import jax.numpy as jnp
from jax import lax
from jax.experimental import pallas as pl
from jax.experimental.pallas import tpu as pltpu

EPS = 1e-5
LANE = 128


# ---------------------------------------------------------------------------
# helpers
# ---------------------------------------------------------------------------
def _round_up(n, m):
    return ((n + m - 1) // m) * m


def _pad_last(a, target):
    pad = target - a.shape[-1]
    if pad == 0:
        return a
    return jnp.pad(a, [(0, 0)] * (a.ndim - 1) + [(0, pad)])


def _pad_rows(a, target):
    pad = target - a.shape[0]
    if pad == 0:
        return a
    return jnp.pad(a, [(0, pad)] + [(0, 0)] * (a.ndim - 1))


def _bn_scale_shift(csum, csq, gamma, beta, count):
    """Fold train-mode BN into per-channel scale/shift (single-pass statistics)."""
    mean = csum / count
    var = jnp.maximum(csq / count - mean * mean, 0.0)
    scale = gamma * lax.rsqrt(var + EPS)
    shift = beta - mean * scale
    return scale, shift


# ---------------------------------------------------------------------------
# Pallas kernels
# ---------------------------------------------------------------------------
def _mm_stats_kernel(x_ref, w_ref, z_ref, sum_ref, sq_ref, *, compute_dtype):
    """z = x @ w (store in z_ref.dtype); write per-tile channel sum / sum-sq."""
    z = jnp.dot(x_ref[...].astype(compute_dtype), w_ref[...],
                preferred_element_type=jnp.float32)
    z_ref[...] = z.astype(z_ref.dtype)
    sum_ref[...] = jnp.sum(z, axis=0, keepdims=True).reshape(sum_ref.shape)
    sq_ref[...] = jnp.sum(z * z, axis=0, keepdims=True).reshape(sq_ref.shape)


def _bn_relu_mm_stats_kernel(z_in_ref, sc_ref, sh_ref, w_ref,
                             z_ref, sum_ref, sq_ref, *,
                             compute_dtype, tm, m_valid, mask_tail):
    """y = relu(z_in*scale+shift);  z = y @ w;  per-tile stats of z."""
    y = jnp.maximum(
        z_in_ref[...].astype(jnp.float32) * sc_ref[...] + sh_ref[...], 0.0)
    if mask_tail:  # only traced when M was row-padded (shift makes pad rows != 0)
        row = pl.program_id(0) * tm + lax.broadcasted_iota(jnp.int32, y.shape, 0)
        y = jnp.where(row < m_valid, y, 0.0)
    z = jnp.dot(y.astype(compute_dtype), w_ref[...],
                preferred_element_type=jnp.float32)
    z_ref[...] = z.astype(z_ref.dtype)
    sum_ref[...] = jnp.sum(z, axis=0, keepdims=True).reshape(sum_ref.shape)
    sq_ref[...] = jnp.sum(z * z, axis=0, keepdims=True).reshape(sq_ref.shape)


def _conv3x3x3_fused_kernel(s0_ref, s1_ref, s2_ref, sc_ref, sh_ref, w_ref,
                            z_ref, sum_ref, sq_ref, *, compute_dtype):
    """Fused BN1+ReLU (masked for the zero-padding halo) + 3x3x3 conv + stats.

    Inputs are three overlapping depth slabs (d, d+1, d+2) of the spatially
    padded raw conv1 output, shape (1, 1, H+2, W+2, C) each.  The 3 kw taps are
    concatenated along K so each (kd, kh) pair is one K=3*C matmul (9 total).
    """
    _, _, hp, wp, cp = s0_ref.shape
    h, w = hp - 2, wp - 2
    cout = w_ref.shape[-1]
    d_i = pl.program_id(1)
    d_total = pl.num_programs(1)

    scale = sc_ref[...].reshape(1, 1, cp)
    shift = sh_ref[...].reshape(1, 1, cp)

    # valid (non-padding) H/W positions inside the halo'd slab (hoisted out of kd loop)
    ih = lax.broadcasted_iota(jnp.int32, (hp, wp, cp), 0)
    iw = lax.broadcasted_iota(jnp.int32, (hp, wp, cp), 1)
    hw_ok = (ih >= 1) & (ih <= h) & (iw >= 1) & (iw <= w)

    acc = jnp.zeros((h * w, cout), jnp.float32)
    slabs = (s0_ref, s1_ref, s2_ref)
    for kd in range(3):
        raw = slabs[kd][...].reshape(hp, wp, cp).astype(jnp.float32)
        # padded-depth index is d_i + kd; it is real data iff 1 <= idx <= D
        d_ok = jnp.logical_and(d_i + kd >= 1, d_i + kd <= d_total)
        y = jnp.where(jnp.logical_and(hw_ok, d_ok),
                      jnp.maximum(raw * scale + shift, 0.0),
                      0.0).astype(compute_dtype)
        for kh in range(3):
            ycat = jnp.concatenate(
                [y[kh:kh + h, 0:w, :],
                 y[kh:kh + h, 1:w + 1, :],
                 y[kh:kh + h, 2:w + 2, :]], axis=-1).reshape(h * w, 3 * cp)
            acc = acc + jnp.dot(ycat, w_ref[kd * 3 + kh],
                                preferred_element_type=jnp.float32)

    z_ref[...] = acc.reshape(z_ref.shape).astype(z_ref.dtype)
    sum_ref[...] = jnp.sum(acc, axis=0, keepdims=True).reshape(sum_ref.shape)
    sq_ref[...] = jnp.sum(acc * acc, axis=0, keepdims=True).reshape(sq_ref.shape)


def _bn_add_relu_kernel(z_ref, sc_ref, sh_ref, res_ref, o_ref):
    """out = relu(z*scale + shift + residual)  — one FMA + add + relu per element."""
    o_ref[...] = jnp.maximum(
        z_ref[...].astype(jnp.float32) * sc_ref[...] + sh_ref[...]
        + res_ref[...].astype(jnp.float32), 0.0).astype(o_ref.dtype)


# ---------------------------------------------------------------------------
# pallas_call wrappers
# ---------------------------------------------------------------------------
def _stats_specs(nt, cout):
    specs = [pl.BlockSpec((1, 1, cout), lambda i: (i, 0, 0)),
             pl.BlockSpec((1, 1, cout), lambda i: (i, 0, 0))]
    shapes = [jax.ShapeDtypeStruct((nt, 1, cout), jnp.float32),
              jax.ShapeDtypeStruct((nt, 1, cout), jnp.float32)]
    return specs, shapes


def _matmul_stats(x2d, w_mat, tm, compute_dtype, act_dtype):
    m_pad, k = x2d.shape
    cout = w_mat.shape[1]
    nt = m_pad // tm
    abytes = jnp.dtype(act_dtype).itemsize
    wbytes = jnp.dtype(w_mat.dtype).itemsize
    st_specs, st_shapes = _stats_specs(nt, cout)
    return pl.pallas_call(
        functools.partial(_mm_stats_kernel, compute_dtype=compute_dtype),
        grid=(nt,),
        in_specs=[pl.BlockSpec((tm, k), lambda i: (i, 0)),
                  pl.BlockSpec((k, cout), lambda i: (0, 0))],
        out_specs=[pl.BlockSpec((tm, cout), lambda i: (i, 0))] + st_specs,
        out_shape=[jax.ShapeDtypeStruct((m_pad, cout), act_dtype)] + st_shapes,
        compiler_params=pltpu.CompilerParams(dimension_semantics=("parallel",)),
        cost_estimate=pl.CostEstimate(
            flops=2 * m_pad * k * cout, transcendentals=0,
            bytes_accessed=abytes * (m_pad * k + m_pad * cout) + wbytes * k * cout),
    )(x2d, w_mat)


def _bn_relu_matmul_stats(z_in, scale, shift, w_mat, tm, compute_dtype,
                          act_dtype, m_valid):
    m_pad, k = z_in.shape
    cout = w_mat.shape[1]
    nt = m_pad // tm
    abytes = jnp.dtype(act_dtype).itemsize
    wbytes = jnp.dtype(w_mat.dtype).itemsize
    st_specs, st_shapes = _stats_specs(nt, cout)
    kern = functools.partial(_bn_relu_mm_stats_kernel,
                             compute_dtype=compute_dtype, tm=tm,
                             m_valid=m_valid, mask_tail=(m_pad != m_valid))
    return pl.pallas_call(
        kern,
        grid=(nt,),
        in_specs=[pl.BlockSpec((tm, k), lambda i: (i, 0)),
                  pl.BlockSpec((1, k), lambda i: (0, 0)),
                  pl.BlockSpec((1, k), lambda i: (0, 0)),
                  pl.BlockSpec((k, cout), lambda i: (0, 0))],
        out_specs=[pl.BlockSpec((tm, cout), lambda i: (i, 0))] + st_specs,
        out_shape=[jax.ShapeDtypeStruct((m_pad, cout), act_dtype)] + st_shapes,
        compiler_params=pltpu.CompilerParams(dimension_semantics=("parallel",)),
        cost_estimate=pl.CostEstimate(
            flops=2 * m_pad * k * cout, transcendentals=0,
            bytes_accessed=abytes * (m_pad * k + m_pad * cout) + wbytes * k * cout),
    )(z_in, scale, shift, w_mat)


def _slab_spec(hp, wp, cp, kd):
    def imap(ni, di):
        return (ni, di + kd, 0, 0, 0)
    return pl.BlockSpec((1, 1, hp, wp, cp), imap)


def _conv3x3x3_stage(z_pad, scale, shift, w_flat, compute_dtype, act_dtype):
    n, dpad, hp, wp, cp = z_pad.shape
    d, h, w = dpad - 2, hp - 2, wp - 2
    cout = w_flat.shape[-1]
    abytes = jnp.dtype(act_dtype).itemsize
    wbytes = jnp.dtype(w_flat.dtype).itemsize
    return pl.pallas_call(
        functools.partial(_conv3x3x3_fused_kernel, compute_dtype=compute_dtype),
        grid=(n, d),
        in_specs=[_slab_spec(hp, wp, cp, 0),
                  _slab_spec(hp, wp, cp, 1),
                  _slab_spec(hp, wp, cp, 2),
                  pl.BlockSpec((1, cp), lambda ni, di: (0, 0)),
                  pl.BlockSpec((1, cp), lambda ni, di: (0, 0)),
                  pl.BlockSpec((9, 3 * cp, cout), lambda ni, di: (0, 0, 0))],
        out_specs=[pl.BlockSpec((1, 1, h, w, cout),
                                lambda ni, di: (ni, di, 0, 0, 0)),
                   pl.BlockSpec((1, 1, cout), lambda ni, di: (ni * d + di, 0, 0)),
                   pl.BlockSpec((1, 1, cout), lambda ni, di: (ni * d + di, 0, 0))],
        out_shape=[jax.ShapeDtypeStruct((n, d, h, w, cout), act_dtype),
                   jax.ShapeDtypeStruct((n * d, 1, cout), jnp.float32),
                   jax.ShapeDtypeStruct((n * d, 1, cout), jnp.float32)],
        compiler_params=pltpu.CompilerParams(
            dimension_semantics=("parallel", "parallel")),
        cost_estimate=pl.CostEstimate(
            flops=2 * n * d * h * w * 27 * cp * cout, transcendentals=0,
            bytes_accessed=abytes * (3 * n * dpad * hp * wp * cp
                                     + n * d * h * w * cout)
            + wbytes * 27 * cp * cout),
    )(z_pad, z_pad, z_pad, scale, shift, w_flat)


def _bn_add_relu(z3, scale, shift, res, tm):
    m_pad, c = z3.shape
    nt = m_pad // tm
    return pl.pallas_call(
        _bn_add_relu_kernel,
        grid=(nt,),
        in_specs=[pl.BlockSpec((tm, c), lambda i: (i, 0)),
                  pl.BlockSpec((1, c), lambda i: (0, 0)),
                  pl.BlockSpec((1, c), lambda i: (0, 0)),
                  pl.BlockSpec((tm, c), lambda i: (i, 0))],
        out_specs=pl.BlockSpec((tm, c), lambda i: (i, 0)),
        out_shape=jax.ShapeDtypeStruct((m_pad, c), jnp.float32),
        compiler_params=pltpu.CompilerParams(dimension_semantics=("parallel",)),
    )(z3, scale, shift, res)


# ---------------------------------------------------------------------------
# Bottleneck forward (JAX glue around the Pallas stages)
# ---------------------------------------------------------------------------
def bottleneck_forward(x_ncdhw, params, *, compute_dtype=jnp.bfloat16, tm_max=512):
    """Pallas Bottleneck.forward (stride=1, downsample=None, train-mode BN).

    compute_dtype=bfloat16 (default): MXU operands and HBM intermediates in bf16,
    f32 accumulation / BN math.  compute_dtype=float32: exact/debug path.
    """
    n, cin, d, h, w = x_ncdhw.shape
    planes = params["w1"].shape[0]
    cout = params["w3"].shape[0]
    assert cin == cout, "identity add requires inplanes == planes * expansion"

    f32 = jnp.float32
    act_dtype = jnp.bfloat16 if compute_dtype == jnp.bfloat16 else jnp.float32
    m = n * d * h * w
    cin_p = _round_up(cin, LANE)
    pp = _round_up(planes, LANE)
    cout_p = _round_up(cout, LANE)

    # cdiv-style M tiling: large tile, zero row-padding instead of divisor search
    tm = min(tm_max, _round_up(m, 8))
    m_pad = _round_up(m, tm)

    # ---- pack / zero-pad parameters to lane-dense channel widths
    w1 = params["w1"].reshape(planes, cin).T                       # (Cin, P)
    w1p = jnp.zeros((cin_p, pp), f32).at[:cin, :planes].set(w1).astype(compute_dtype)
    w2 = jnp.transpose(params["w2"], (2, 3, 4, 1, 0))              # (kd,kh,kw,Ci,Co)
    w2p = jnp.zeros((3, 3, 3, pp, pp), f32).at[:, :, :, :planes, :planes].set(w2)
    w2p = w2p.reshape(9, 3 * pp, pp).astype(compute_dtype)         # kw folded into K
    w3 = params["w3"].reshape(cout, planes).T                      # (P, 4P)
    w3p = jnp.zeros((pp, cout_p), f32).at[:planes, :cout].set(w3).astype(compute_dtype)

    g1 = _pad_last(params["g1"].astype(f32), pp).reshape(1, pp)
    b1 = _pad_last(params["b1"].astype(f32), pp).reshape(1, pp)
    g2 = _pad_last(params["g2"].astype(f32), pp).reshape(1, pp)
    b2 = _pad_last(params["b2"].astype(f32), pp).reshape(1, pp)
    g3 = _pad_last(params["g3"].astype(f32), cout_p).reshape(1, cout_p)
    b3 = _pad_last(params["b3"].astype(f32), cout_p).reshape(1, cout_p)

    # ---- NCDHW -> channels-last, spatially flattened, lane + row padded
    x_last = jnp.transpose(x_ncdhw, (0, 2, 3, 4, 1))               # (N,D,H,W,C)
    x2d = _pad_rows(_pad_last(x_last.reshape(m, cin).astype(act_dtype), cin_p),
                    m_pad)                                         # (Mp, Cin_p)

    # stage 1: 1x1x1 conv -> raw z1 + per-tile (sum, sumsq) partials
    z1, s1p, q1p = _matmul_stats(x2d, w1p, tm, compute_dtype, act_dtype)
    sc1, sh1 = _bn_scale_shift(jnp.sum(s1p, axis=0), jnp.sum(q1p, axis=0),
                               g1, b1, m)

    # stage 2: fused BN1+ReLU (masked halo) + 3x3x3 conv (kw folded into K)
    z1_pad = jnp.pad(z1[:m].reshape(n, d, h, w, pp),
                     ((0, 0), (1, 1), (1, 1), (1, 1), (0, 0)))
    z2, s2p, q2p = _conv3x3x3_stage(z1_pad, sc1, sh1, w2p, compute_dtype, act_dtype)
    sc2, sh2 = _bn_scale_shift(jnp.sum(s2p, axis=0), jnp.sum(q2p, axis=0),
                               g2, b2, m)

    # stage 3: fused BN2+ReLU + 1x1x1 conv
    z2_2d = _pad_rows(z2.reshape(m, pp), m_pad)
    z3, s3p, q3p = _bn_relu_matmul_stats(z2_2d, sc2, sh2, w3p, tm,
                                         compute_dtype, act_dtype, m)
    sc3, sh3 = _bn_scale_shift(jnp.sum(s3p, axis=0), jnp.sum(q3p, axis=0),
                               g3, b3, m)

    # final: BN3 + residual add + ReLU
    out2d = _bn_add_relu(z3, sc3, sh3, x2d, tm)

    out = out2d[:m, :cout].reshape(n, d, h, w, cout)
    return jnp.transpose(out, (0, 4, 1, 2, 3))                     # back to NCDHW


# ---------------------------------------------------------------------------
# Pure-JAX reference (mirrors the PyTorch module) for correctness checks
# ---------------------------------------------------------------------------
def ref_bottleneck(x, params, compute_dtype=jnp.float32):
    def conv(a, wgt, pad):
        return lax.conv_general_dilated(
            a.astype(compute_dtype), wgt.astype(compute_dtype), (1, 1, 1),
            [(pad, pad)] * 3, dimension_numbers=("NCDHW", "OIDHW", "NCDHW"),
            preferred_element_type=jnp.float32)

    def bn(a, g, b):
        mu = jnp.mean(a, axis=(0, 2, 3, 4), keepdims=True)
        var = jnp.mean((a - mu) ** 2, axis=(0, 2, 3, 4), keepdims=True)
        return ((a - mu) * lax.rsqrt(var + EPS) * g.reshape(1, -1, 1, 1, 1)
                + b.reshape(1, -1, 1, 1, 1))

    out = jax.nn.relu(bn(conv(x, params["w1"], 0), params["g1"], params["b1"]))
    out = jax.nn.relu(bn(conv(out, params["w2"], 1), params["g2"], params["b2"]))
    out = bn(conv(out, params["w3"], 0), params["g3"], params["b3"])
    return jax.nn.relu(out + x)


if __name__ == "__main__":
    key = jax.random.PRNGKey(0)
    N, D, H, W = 2, 4, 8, 8
    planes = 4
    inplanes = planes * 4  # expansion=4; downsample=None => identity add needs this
    ks = jax.random.split(key, 10)

    x = jax.random.normal(ks[0], (N, inplanes, D, H, W), jnp.float32)
    params = {
        # conv weights in PyTorch layout (O, I, kD, kH, kW), bias=False
        "w1": 0.3 * jax.random.normal(ks[1], (planes, inplanes, 1, 1, 1), jnp.float32),
        "g1": 1.0 + 0.1 * jax.random.normal(ks[2], (planes,), jnp.float32),
        "b1": 0.1 * jax.random.normal(ks[3], (planes,), jnp.float32),
        "w2": 0.1 * jax.random.normal(ks[4], (planes, planes, 3, 3, 3), jnp.float32),
        "g2": 1.0 + 0.1 * jax.random.normal(ks[5], (planes,), jnp.float32),
        "b2": 0.1 * jax.random.normal(ks[6], (planes,), jnp.float32),
        "w3": 0.3 * jax.random.normal(ks[7], (planes * 4, planes, 1, 1, 1), jnp.float32),
        "g3": 1.0 + 0.1 * jax.random.normal(ks[8], (planes * 4,), jnp.float32),
        "b3": 0.1 * jax.random.normal(ks[9], (planes * 4,), jnp.float32),
    }

    # --- f32 path: exact-semantics check against the JAX reference
    fwd_f32 = jax.jit(functools.partial(bottleneck_forward, compute_dtype=jnp.float32))
    out = jax.block_until_ready(fwd_f32(x, params))
    ref = ref_bottleneck(x, params)
    assert out.shape == (N, planes * 4, D, H, W), out.shape
    assert jnp.allclose(out, ref, atol=3e-3, rtol=3e-3), \
        float(jnp.max(jnp.abs(out - ref)))

    # --- bf16 path (default; bf16 MXU operands + bf16 HBM intermediates),
    #     checked vs a bf16-operand reference with loose tolerance
    fwd_bf16 = jax.jit(functools.partial(bottleneck_forward, compute_dtype=jnp.bfloat16))
    out_bf16 = jax.block_until_ready(fwd_bf16(x, params))
    ref_bf16 = ref_bottleneck(x, params, compute_dtype=jnp.bfloat16)
    assert jnp.allclose(out_bf16, ref_bf16, atol=6e-2, rtol=6e-2), \
        float(jnp.max(jnp.abs(out_bf16 - ref_bf16)))

    print("KERNEL_OK")
</pallas_src>

<mosaic_0001>
module attributes {stable_mosaic.version = 11 : i64} {
  func.func @_mm_stats_kernel(%arg0: i32, %arg1: memref<512x128xf32, #tpu.memory_space<vmem>>, %arg2: memref<128x128xf32, #tpu.memory_space<vmem>>, %arg3: memref<512x128xf32, #tpu.memory_space<vmem>>, %arg4: memref<1x1x128xf32, #tpu.memory_space<vmem>>, %arg5: memref<1x1x128xf32, #tpu.memory_space<vmem>>) attributes {dimension_semantics = [#tpu.dimension_semantics<parallel>], iteration_bounds = array<i64: 1>, scalar_prefetch = 0 : i64, scratch_operands = 0 : i64, tpu.core_type = #tpu.core_type<tc>, window_params = [{transform_indices = @transform_0, window_bounds = array<i64: 512, 128>}, {pipeline_mode = #tpu.pipeline_mode<synchronous>, transform_indices = @transform_1, window_bounds = array<i64: 128, 128>}, {transform_indices = @transform_2, window_bounds = array<i64: 512, 128>}, {transform_indices = @transform_3, window_bounds = array<i64: 1, 1, 128>}, {transform_indices = @transform_4, window_bounds = array<i64: 1, 1, 128>}]} {
    %c0 = arith.constant 0 : index
    %c0_0 = arith.constant 0 : index
    %0 = vector.load %arg1[%c0, %c0_0] : memref<512x128xf32, #tpu.memory_space<vmem>>, vector<512x128xf32>
    %c0_1 = arith.constant 0 : index
    %c0_2 = arith.constant 0 : index
    %1 = vector.load %arg2[%c0_1, %c0_2] : memref<128x128xf32, #tpu.memory_space<vmem>>, vector<128x128xf32>
    %cst = arith.constant dense<0.000000e+00> : vector<512x128xf32>
    %2 = tpu.matmul %0, %1, %cst {dimension_numbers = #tpu.dot_dimension_numbers<[1], [0], [0], [1], [0, 0, 1, 1], [], []>} : vector<512x128xf32>, vector<128x128xf32>, vector<512x128xf32> -> vector<512x128xf32>
    %c0_3 = arith.constant 0 : index
    %c0_4 = arith.constant 0 : index
    %3 = vector.load %arg3[%c0_3, %c0_4] : memref<512x128xf32, #tpu.memory_space<vmem>>, vector<512x128xf32>
    tpu.vector_store %arg3[%c0_3, %c0_4], %2 {strides = array<i32>} : memref<512x128xf32, #tpu.memory_space<vmem>>, vector<512x128xf32>,
    %cst_5 = arith.constant dense<0.000000e+00> : vector<128xf32>
    %4 = vector.multi_reduction <add>, %2, %cst_5 [0] : vector<512x128xf32> to vector<128xf32>
    %5 = vector.shape_cast %4 : vector<128xf32> to vector<1x128xf32>
    %6 = vector.shape_cast %5 : vector<1x128xf32> to vector<1x1x128xf32>
    %c0_6 = arith.constant 0 : index
    %c0_7 = arith.constant 0 : index
    %c0_8 = arith.constant 0 : index
    %7 = vector.load %arg4[%c0_6, %c0_7, %c0_8] : memref<1x1x128xf32, #tpu.memory_space<vmem>>, vector<1x1x128xf32>
    tpu.vector_store %arg4[%c0_6, %c0_7, %c0_8], %6 {strides = array<i32>} : memref<1x1x128xf32, #tpu.memory_space<vmem>>, vector<1x1x128xf32>,
    %8 = arith.mulf %2, %2 : vector<512x128xf32>
    %cst_9 = arith.constant dense<0.000000e+00> : vector<128xf32>
    %9 = vector.multi_reduction <add>, %8, %cst_9 [0] : vector<512x128xf32> to vector<128xf32>
    %10 = vector.shape_cast %9 : vector<128xf32> to vector<1x128xf32>
    %11 = vector.shape_cast %10 : vector<1x128xf32> to vector<1x1x128xf32>
    %c0_10 = arith.constant 0 : index
    %c0_11 = arith.constant 0 : index
    %c0_12 = arith.constant 0 : index
    %12 = vector.load %arg5[%c0_10, %c0_11, %c0_12] : memref<1x1x128xf32, #tpu.memory_space<vmem>>, vector<1x1x128xf32>
    tpu.vector_store %arg5[%c0_10, %c0_11, %c0_12], %11 {strides = array<i32>} : memref<1x1x128xf32, #tpu.memory_space<vmem>>, vector<1x1x128xf32>,
    return
  }
  func.func @transform_0(%arg0: i32) -> (i32, i32) {
    %c0_i32 = arith.constant 0 : i32
    %c0_i32_0 = arith.constant 0 : i32
    return %arg0, %c0_i32 : i32, i32
  }
  func.func @transform_1(%arg0: i32) -> (i32, i32) {
    %c0_i32 = arith.constant 0 : i32
    %c0_i32_0 = arith.constant 0 : i32
    %c0_i32_1 = arith.constant 0 : i32
    return %c0_i32, %c0_i32_0 : i32, i32
  }
  func.func @transform_2(%arg0: i32) -> (i32, i32) {
    %c0_i32 = arith.constant 0 : i32
    %c0_i32_0 = arith.constant 0 : i32
    return %arg0, %c0_i32 : i32, i32
  }
  func.func @transform_3(%arg0: i32) -> (i32, i32, i32) {
    %c0_i32 = arith.constant 0 : i32
    %c0_i32_0 = arith.constant 0 : i32
    %c0_i32_1 = arith.constant 0 : i32
    return %arg0, %c0_i32, %c0_i32_0 : i32, i32, i32
  }
  func.func @transform_4(%arg0: i32) -> (i32, i32, i32) {
    %c0_i32 = arith.constant 0 : i32
    %c0_i32_0 = arith.constant 0 : i32
    %c0_i32_1 = arith.constant 0 : i32
    return %arg0, %c0_i32, %c0_i32_0 : i32, i32, i32
  }
}

module attributes {stable_mosaic.version = 11 : i64} {
  func.func @_conv3x3x3_fused_kernel(%arg0: i32, %arg1: i32, %arg2: memref<1x1x10x10x128xf32, #tpu.memory_space<vmem>>, %arg3: memref<1x1x10x10x128xf32, #tpu.memory_space<vmem>>, %arg4: memref<1x1x10x10x128xf32, #tpu.memory_space<vmem>>, %arg5: memref<1x128xf32, #tpu.memory_space<vmem>>, %arg6: memref<1x128xf32, #tpu.memory_space<vmem>>, %arg7: memref<9x384x128xf32, #tpu.memory_space<vmem>>, %arg8: memref<1x1x8x8x128xf32, #tpu.memory_space<vmem>>, %arg9: memref<1x1x128xf32, #tpu.memory_space<vmem>>, %arg10: memref<1x1x128xf32, #tpu.memory_space<vmem>>) attributes {dimension_semantics = [#tpu.dimension_semantics<parallel>, #tpu.dimension_semantics<parallel>], iteration_bounds = array<i64: 2, 4>, scalar_prefetch = 0 : i64, scratch_operands = 0 : i64, tpu.core_type = #tpu.core_type<tc>, window_params = [{transform_indices = @transform_0, window_bounds = array<i64: 1, 1, 10, 10, 128>}, {transform_indices = @transform_1, window_bounds = array<i64: 1, 1, 10, 10, 128>}, {transform_indices = @transform_2, window_bounds = array<i64: 1, 1, 10, 10, 128>}, {pipeline_mode = #tpu.pipeline_mode<synchronous>, transform_indices = @transform_3, window_bounds = array<i64: 1, 128>}, {pipeline_mode = #tpu.pipeline_mode<synchronous>, transform_indices = @transform_4, window_bounds = array<i64: 1, 128>}, {pipeline_mode = #tpu.pipeline_mode<synchronous>, transform_indices = @transform_5, window_bounds = array<i64: 9, 384, 128>}, {transform_indices = @transform_6, window_bounds = array<i64: 1, 1, 8, 8, 128>}, {transform_indices = @transform_7, window_bounds = array<i64: 1, 1, 128>}, {transform_indices = @transform_8, window_bounds = array<i64: 1, 1, 128>}]} {
    %c0 = arith.constant 0 : index
    %c0_0 = arith.constant 0 : index
    %0 = vector.load %arg5[%c0, %c0_0] : memref<1x128xf32, #tpu.memory_space<vmem>>, vector<1x128xf32>
    %1 = vector.shape_cast %0 : vector<1x128xf32> to vector<1x1x128xf32>
    %c0_1 = arith.constant 0 : index
    %c0_2 = arith.constant 0 : index
    %2 = vector.load %arg6[%c0_1, %c0_2] : memref<1x128xf32, #tpu.memory_space<vmem>>, vector<1x128xf32>
    %3 = vector.shape_cast %2 : vector<1x128xf32> to vector<1x1x128xf32>
    %4 = tpu.iota {dimensions = array<i32: 0>} : vector<10x10x128xi32>
    %5 = tpu.iota {dimensions = array<i32: 1>} : vector<10x10x128xi32>
    %c1_i32 = arith.constant 1 : i32
    %6 = vector.broadcast %c1_i32 : i32 to vector<10x10x128xi32>
    %7 = arith.cmpi sge, %4, %6 : vector<10x10x128xi32>
    %c8_i32 = arith.constant 8 : i32
    %8 = vector.broadcast %c8_i32 : i32 to vector<10x10x128xi32>
    %9 = arith.cmpi sle, %4, %8 : vector<10x10x128xi32>
    %10 = arith.andi %7, %9 : vector<10x10x128xi1>
    %c1_i32_3 = arith.constant 1 : i32
    %11 = vector.broadcast %c1_i32_3 : i32 to vector<10x10x128xi32>
    %12 = arith.cmpi sge, %5, %11 : vector<10x10x128xi32>
    %13 = arith.andi %10, %12 : vector<10x10x128xi1>
    %c8_i32_4 = arith.constant 8 : i32
    %14 = vector.broadcast %c8_i32_4 : i32 to vector<10x10x128xi32>
    %15 = arith.cmpi sle, %5, %14 : vector<10x10x128xi32>
    %16 = arith.andi %13, %15 : vector<10x10x128xi1>
    %cst = arith.constant 0.000000e+00 : f32
    %17 = vector.broadcast %cst : f32 to vector<64x128xf32>
    %c0_5 = arith.constant 0 : index
    %c0_6 = arith.constant 0 : index
    %c0_7 = arith.constant 0 : index
    %c0_8 = arith.constant 0 : index
    %c0_9 = arith.constant 0 : index
    %18 = vector.load %arg2[%c0_5, %c0_6, %c0_7, %c0_8, %c0_9] : memref<1x1x10x10x128xf32, #tpu.memory_space<vmem>>, vector<1x1x10x10x128xf32>
    %19 = vector.shape_cast %18 : vector<1x1x10x10x128xf32> to vector<10x10x128xf32>
    %c0_i32 = arith.constant 0 : i32
    %20 = arith.addi %arg1, %c0_i32 : i32
    %c1_i32_10 = arith.constant 1 : i32
    %21 = arith.cmpi sge, %20, %c1_i32_10 : i32
    %c0_i32_11 = arith.constant 0 : i32
    %22 = arith.addi %arg1, %c0_i32_11 : i32
    %c4_i32 = arith.constant 4 : i32
    %23 = arith.cmpi sle, %22, %c4_i32 : i32
    %24 = arith.andi %21, %23 : i1
    %25 = vector.broadcast %24 : i1 to vector<10x10x128xi1>
    %26 = arith.andi %16, %25 : vector<10x10x128xi1>
    %27 = vector.broadcast %1 : vector<1x1x128xf32> to vector<10x10x128xf32>
    %28 = arith.mulf %19, %27 : vector<10x10x128xf32>
    %29 = vector.broadcast %3 : vector<1x1x128xf32> to vector<10x10x128xf32>
    %30 = arith.addf %28, %29 : vector<10x10x128xf32>
    %cst_12 = arith.constant 0.000000e+00 : f32
    %31 = vector.broadcast %cst_12 : f32 to vector<10x10x128xf32>
    %32 = arith.maximumf %30, %31 : vector<10x10x128xf32>
    %cst_13 = arith.constant 0.000000e+00 : f32
    %33 = vector.broadcast %cst_13 : f32 to vector<10x10x128xf32>
    %34 = arith.select %26, %32, %33 : vector<10x10x128xi1>, vector<10x10x128xf32>
    %35 = vector.extract_strided_slice %34 {offsets = [0, 0, 0], sizes = [8, 8, 128], strides = [1, 1, 1]} : vector<10x10x128xf32> to vector<8x8x128xf32>
    %36 = vector.extract_strided_slice %34 {offsets = [0, 1, 0], sizes = [8, 8, 128], strides = [1, 1, 1]} : vector<10x10x128xf32> to vector<8x8x128xf32>
    %37 = vector.extract_strided_slice %34 {offsets = [0, 2, 0], sizes = [8, 8, 128], strides = [1, 1, 1]} : vector<10x10x128xf32> to vector<8x8x128xf32>
    %38 = tpu.concatenate %35, %36, %37 in 2 : vector<8x8x128xf32>, vector<8x8x128xf32>, vector<8x8x128xf32> -> vector<8x8x384xf32>
    %39 = vector.shape_cast %38 : vector<8x8x384xf32> to vector<64x384xf32>
    %c0_14 = arith.constant 0 : index
    %c0_15 = arith.constant 0 : index
    %c0_16 = arith.constant 0 : index
    %40 = vector.load %arg7[%c0_14, %c0_15, %c0_16] : memref<9x384x128xf32, #tpu.memory_space<vmem>>, vector<1x384x128xf32>
    %41 = vector.shape_cast %40 : vector<1x384x128xf32> to vector<384x128xf32>
    %cst_17 = arith.constant dense<0.000000e+00> : vector<64x128xf32>
    %42 = tpu.matmul %39, %41, %cst_17 {dimension_numbers = #tpu.dot_dimension_numbers<[1], [0], [0], [1], [0, 0, 1, 1], [], []>} : vector<64x384xf32>, vector<384x128xf32>, vector<64x128xf32> -> vector<64x128xf32>
    %43 = arith.addf %17, %42 : vector<64x128xf32>
    %44 = vector.extract_strided_slice %34 {offsets = [1, 0, 0], sizes = [8, 8, 128], strides = [1, 1, 1]} : vector<10x10x128xf32> to vector<8x8x128xf32>
    %45 = vector.extract_strided_slice %34 {offsets = [1, 1, 0], sizes = [8, 8, 128], strides = [1, 1, 1]} : vector<10x10x128xf32> to vector<8x8x128xf32>
    %46 = vector.extract_strided_slice %34 {offsets = [1, 2, 0], sizes = [8, 8, 128], strides = [1, 1, 1]} : vector<10x10x128xf32> to vector<8x8x128xf32>
    %47 = tpu.concatenate %44, %45, %46 in 2 : vector<8x8x128xf32>, vector<8x8x128xf32>, vector<8x8x128xf32> -> vector<8x8x384xf32>
    %48 = vector.shape_cast %47 : vector<8x8x384xf32> to vector<64x384xf32>
    %c1 = arith.constant 1 : index
    %c0_18 = arith.constant 0 : index
    %c0_19 = arith.constant 0 : index
    %49 = vector.load %arg7[%c1, %c0_18, %c0_19] : memref<9x384x128xf32, #tpu.memory_space<vmem>>, vector<1x384x128xf32>
    %50 = vector.shape_cast %49 : vector<1x384x128xf32> to vector<384x128xf32>
    %cst_20 = arith.constant dense<0.000000e+00> : vector<64x128xf32>
    %51 = tpu.matmul %48, %50, %cst_20 {dimension_numbers = #tpu.dot_dimension_numbers<[1], [0], [0], [1], [0, 0, 1, 1], [], []>} : vector<64x384xf32>, vector<384x128xf32>, vector<64x128xf32> -> vector<64x128xf32>
    %52 = arith.addf %43, %51 : vector<64x128xf32>
    %53 = vector.extract_strided_slice %34 {offsets = [2, 0, 0], sizes = [8, 8, 128], strides = [1, 1, 1]} : vector<10x10x128xf32> to vector<8x8x128xf32>
    %54 = vector.extract_strided_slice %34 {offsets = [2, 1, 0], sizes = [8, 8, 128], strides = [1, 1, 1]} : vector<10x10x128xf32> to vector<8x8x128xf32>
    %55 = vector.extract_strided_slice %34 {offsets = [2, 2, 0], sizes = [8, 8, 128], strides = [1, 1, 1]} : vector<10x10x128xf32> to vector<8x8x128xf32>
    %56 = tpu.concatenate %53, %54, %55 in 2 : vector<8x8x128xf32>, vector<8x8x128xf32>, vector<8x8x128xf32> -> vector<8x8x384xf32>
    %57 = vector.shape_cast %56 : vector<8x8x384xf32> to vector<64x384xf32>
    %c2 = arith.constant 2 : index
    %c0_21 = arith.constant 0 : index
    %c0_22 = arith.constant 0 : index
    %58 = vector.load %arg7[%c2, %c0_21, %c0_22] : memref<9x384x128xf32, #tpu.memory_space<vmem>>, vector<1x384x128xf32>
    %59 = vector.shape_cast %58 : vector<1x384x128xf32> to vector<384x128xf32>
    %cst_23 = arith.constant dense<0.000000e+00> : vector<64x128xf32>
    %60 = tpu.matmul %57, %59, %cst_23 {dimension_numbers = #tpu.dot_dimension_numbers<[1], [0], [0], [1], [0, 0, 1, 1], [], []>} : vector<64x384xf32>, vector<384x128xf32>, vector<64x128xf32> -> vector<64x128xf32>
    %61 = arith.addf %52, %60 : vector<64x128xf32>
    %c0_24 = arith.constant 0 : index
    %c0_25 = arith.constant 0 : index
    %c0_26 = arith.constant 0 : index
    %c0_27 = arith.constant 0 : index
    %c0_28 = arith.constant 0 : index
    %62 = vector.load %arg3[%c0_24, %c0_25, %c0_26, %c0_27, %c0_28] : memref<1x1x10x10x128xf32, #tpu.memory_space<vmem>>, vector<1x1x10x10x128xf32>
    %63 = vector.shape_cast %62 : vector<1x1x10x10x128xf32> to vector<10x10x128xf32>
    %c1_i32_29 = arith.constant 1 : i32
    %64 = arith.addi %arg1, %c1_i32_29 : i32
    %c1_i32_30 = arith.constant 1 : i32
    %65 = arith.cmpi sge, %64, %c1_i32_30 : i32
    %c1_i32_31 = arith.constant 1 : i32
    %66 = arith.addi %arg1, %c1_i32_31 : i32
    %c4_i32_32 = arith.constant 4 : i32
    %67 = arith.cmpi sle, %66, %c4_i32_32 : i32
    %68 = arith.andi %65, %67 : i1
    %69 = vector.broadcast %68 : i1 to vector<10x10x128xi1>
    %70 = arith.andi %16, %69 : vector<10x10x128xi1>
    %71 = vector.broadcast %1 : vector<1x1x128xf32> to vector<10x10x128xf32>
    %72 = arith.mulf %63, %71 : vector<10x10x128xf32>
    %73 = vector.broadcast %3 : vector<1x1x128xf32> to vector<10x10x128xf32>
    %74 = arith.addf %72, %73 : vector<10x10x128xf32>
    %cst_33 = arith.constant 0.000000e+00 : f32
    %75 = vector.broadcast %cst_33 : f32 to vector<10x10x128xf32>
    %76 = arith.maximumf %74, %75 : vector<10x10x128xf32>
    %cst_34 = arith.constant 0.000000e+00 : f32
    %77 = vector.broadcast %cst_34 : f32 to vector<10x10x128xf32>
    %78 = arith.select %70, %76, %77 : vector<10x10x128xi1>, vector<10x10x128xf32>
    %79 = vector.extract_strided_slice %78 {offsets = [0, 0, 0], sizes = [8, 8, 128], strides = [1, 1, 1]} : vector<10x10x128xf32> to vector<8x8x128xf32>
    %80 = vector.extract_strided_slice %78 {offsets = [0, 1, 0], sizes = [8, 8, 128], strides = [1, 1, 1]} : vector<10x10x128xf32> to vector<8x8x128xf32>
    %81 = vector.extract_strided_slice %78 {offsets = [0, 2, 0], sizes = [8, 8, 128], strides = [1, 1, 1]} : vector<10x10x128xf32> to vector<8x8x128xf32>
    %82 = tpu.concatenate %79, %80, %81 in 2 : vector<8x8x128xf32>, vector<8x8x128xf32>, vector<8x8x128xf32> -> vector<8x8x384xf32>
    %83 = vector.shape_cast %82 : vector<8x8x384xf32> to vector<64x384xf32>
    %c3 = arith.constant 3 : index
    %c0_35 = arith.constant 0 : index
    %c0_36 = arith.constant 0 : index
    %84 = vector.load %arg7[%c3, %c0_35, %c0_36] : memref<9x384x128xf32, #tpu.memory_space<vmem>>, vector<1x384x128xf32>
    %85 = vector.shape_cast %84 : vector<1x384x128xf32> to vector<384x128xf32>
    %cst_37 = arith.constant dense<0.000000e+00> : vector<64x128xf32>
    %86 = tpu.matmul %83, %85, %cst_37 {dimension_numbers = #tpu.dot_dimension_numbers<[1], [0], [0], [1], [0, 0, 1, 1], [], []>} : vector<64x384xf32>, vector<384x128xf32>, vector<64x128xf32> -> vector<64x128xf32>
    %87 = arith.addf %61, %86 : vector<64x128xf32>
    %88 = vector.extract_strided_slice %78 {offsets = [1, 0, 0], sizes = [8, 8, 128], strides = [1, 1, 1]} : vector<10x10x128xf32> to vector<8x8x128xf32>
    %89 = vector.extract_strided_slice %78 {offsets = [1, 1, 0], sizes = [8, 8, 128], strides = [1, 1, 1]} : vector<10x10x128xf32> to vector<8x8x128xf32>
    %90 = vector.extract_strided_slice %78 {offsets = [1, 2, 0], sizes = [8, 8, 128], strides = [1, 1, 1]} : vector<10x10x128xf32> to vector<8x8x128xf32>
    %91 = tpu.concatenate %88, %89, %90 in 2 : vector<8x8x128xf32>, vector<8x8x128xf32>, vector<8x8x128xf32> -> vector<8x8x384xf32>
    %92 = vector.shape_cast %91 : vector<8x8x384xf32> to vector<64x384xf32>
    %c4 = arith.constant 4 : index
    %c0_38 = arith.constant 0 : index
    %c0_39 = arith.constant 0 : index
    %93 = vector.load %arg7[%c4, %c0_38, %c0_39] : memref<9x384x128xf32, #tpu.memory_space<vmem>>, vector<1x384x128xf32>
    %94 = vector.shape_cast %93 : vector<1x384x128xf32> to vector<384x128xf32>
    %cst_40 = arith.constant dense<0.000000e+00> : vector<64x128xf32>
    %95 = tpu.matmul %92, %94, %cst_40 {dimension_numbers = #tpu.dot_dimension_numbers<[1], [0], [0], [1], [0, 0, 1, 1], [], []>} : vector<64x384xf32>, vector<384x128xf32>, vector<64x128xf32> -> vector<64x128xf32>
    %96 = arith.addf %87, %95 : vector<64x128xf32>
    %97 = vector.extract_strided_slice %78 {offsets = [2, 0, 0], sizes = [8, 8, 128], strides = [1, 1, 1]} : vector<10x10x128xf32> to vector<8x8x128xf32>
    %98 = vector.extract_strided_slice %78 {offsets = [2, 1, 0], sizes = [8, 8, 128], strides = [1, 1, 1]} : vector<10x10x128xf32> to vector<8x8x128xf32>
    %99 = vector.extract_strided_slice %78 {offsets = [2, 2, 0], sizes = [8, 8, 128], strides = [1, 1, 1]} : vector<10x10x128xf32> to vector<8x8x128xf32>
    %100 = tpu.concatenate %97, %98, %99 in 2 : vector<8x8x128xf32>, vector<8x8x128xf32>, vector<8x8x128xf32> -> vector<8x8x384xf32>
    %101 = vector.shape_cast %100 : vector<8x8x384xf32> to vector<64x384xf32>
    %c5 = arith.constant 5 : index
    %c0_41 = arith.constant 0 : index
    %c0_42 = arith.constant 0 : index
    %102 = vector.load %arg7[%c5, %c0_41, %c0_42] : memref<9x384x128xf32, #tpu.memory_space<vmem>>, vector<1x384x128xf32>
    %103 = vector.shape_cast %102 : vector<1x384x128xf32> to vector<384x128xf32>
    %cst_43 = arith.constant dense<0.000000e+00> : vector<64x128xf32>
    %104 = tpu.matmul %101, %103, %cst_43 {dimension_numbers = #tpu.dot_dimension_numbers<[1], [0], [0], [1], [0, 0, 1, 1], [], []>} : vector<64x384xf32>, vector<384x128xf32>, vector<64x128xf32> -> vector<64x128xf32>
    %105 = arith.addf %96, %104 : vector<64x128xf32>
    %c0_44 = arith.constant 0 : index
    %c0_45 = arith.constant 0 : index
    %c0_46 = arith.constant 0 : index
    %c0_47 = arith.constant 0 : index
    %c0_48 = arith.constant 0 : index
    %106 = vector.load %arg4[%c0_44, %c0_45, %c0_46, %c0_47, %c0_48] : memref<1x1x10x10x128xf32, #tpu.memory_space<vmem>>, vector<1x1x10x10x128xf32>
    %107 = vector.shape_cast %106 : vector<1x1x10x10x128xf32> to vector<10x10x128xf32>
    %c2_i32 = arith.constant 2 : i32
    %108 = arith.addi %arg1, %c2_i32 : i32
    %c1_i32_49 = arith.constant 1 : i32
    %109 = arith.cmpi sge, %108, %c1_i32_49 : i32
    %c2_i32_50 = arith.constant 2 : i32
    %110 = arith.addi %arg1, %c2_i32_50 : i32
    %c4_i32_51 = arith.constant 4 : i32
    %111 = arith.cmpi sle, %110, %c4_i32_51 : i32
    %112 = arith.andi %109, %111 : i1
    %113 = vector.broadcast %112 : i1 to vector<10x10x128xi1>
    %114 = arith.andi %16, %113 : vector<10x10x128xi1>
    %115 = vector.broadcast %1 : vector<1x1x128xf32> to vector<10x10x128xf32>
    %116 = arith.mulf %107, %115 : vector<10x10x128xf32>
    %117 = vector.broadcast %3 : vector<1x1x128xf32> to vector<10x10x128xf32>
    %118 = arith.addf %116, %117 : vector<10x10x128xf32>
    %cst_52 = arith.constant 0.000000e+00 : f32
    %119 = vector.broadcast %cst_52 : f32 to vector<10x10x128xf32>
    %120 = arith.maximumf %118, %119 : vector<10x10x128xf32>
    %cst_53 = arith.constant 0.000000e+00 : f32
    %121 = vector.broadcast %cst_53 : f32 to vector<10x10x128xf32>
    %122 = arith.select %114, %120, %121 : vector<10x10x128xi1>, vector<10x10x128xf32>
    %123 = vector.extract_strided_slice %122 {offsets = [0, 0, 0], sizes = [8, 8, 128], strides = [1, 1, 1]} : vector<10x10x128xf32> to vector<8x8x128xf32>
    %124 = vector.extract_strided_slice %122 {offsets = [0, 1, 0], sizes = [8, 8, 128], strides = [1, 1, 1]} : vector<10x10x128xf32> to vector<8x8x128xf32>
    %125 = vector.extract_strided_slice %122 {offsets = [0, 2, 0], sizes = [8, 8, 128], strides = [1, 1, 1]} : vector<10x10x128xf32> to vector<8x8x128xf32>
    %126 = tpu.concatenate %123, %124, %125 in 2 : vector<8x8x128xf32>, vector<8x8x128xf32>, vector<8x8x128xf32> -> vector<8x8x384xf32>
    %127 = vector.shape_cast %126 : vector<8x8x384xf32> to vector<64x384xf32>
    %c6 = arith.constant 6 : index
    %c0_54 = arith.constant 0 : index
    %c0_55 = arith.constant 0 : index
    %128 = vector.load %arg7[%c6, %c0_54, %c0_55] : memref<9x384x128xf32, #tpu.memory_space<vmem>>, vector<1x384x128xf32>
    %129 = vector.shape_cast %128 : vector<1x384x128xf32> to vector<384x128xf32>
    %cst_56 = arith.constant dense<0.000000e+00> : vector<64x128xf32>
    %130 = tpu.matmul %127, %129, %cst_56 {dimension_numbers = #tpu.dot_dimension_numbers<[1], [0], [0], [1], [0, 0, 1, 1], [], []>} : vector<64x384xf32>, vector<384x128xf32>, vector<64x128xf32> -> vector<64x128xf32>
    %131 = arith.addf %105, %130 : vector<64x128xf32>
    %132 = vector.extract_strided_slice %122 {offsets = [1, 0, 0], sizes = [8, 8, 128], strides = [1, 1, 1]} : vector<10x10x128xf32> to vector<8x8x128xf32>
    %133 = vector.extract_strided_slice %122 {offsets = [1, 1, 0], sizes = [8, 8, 128], strides = [1, 1, 1]} : vector<10x10x128xf32> to vector<8x8x128xf32>
    %134 = vector.extract_strided_slice %122 {offsets = [1, 2, 0], sizes = [8, 8, 128], strides = [1, 1, 1]} : vector<10x10x128xf32> to vector<8x8x128xf32>
    %135 = tpu.concatenate %132, %133, %134 in 2 : vector<8x8x128xf32>, vector<8x8x128xf32>, vector<8x8x128xf32> -> vector<8x8x384xf32>
    %136 = vector.shape_cast %135 : vector<8x8x384xf32> to vector<64x384xf32>
    %c7 = arith.constant 7 : index
    %c0_57 = arith.constant 0 : index
    %c0_58 = arith.constant 0 : index
    %137 = vector.load %arg7[%c7, %c0_57, %c0_58] : memref<9x384x128xf32, #tpu.memory_space<vmem>>, vector<1x384x128xf32>
    %138 = vector.shape_cast %137 : vector<1x384x128xf32> to vector<384x128xf32>
    %cst_59 = arith.constant dense<0.000000e+00> : vector<64x128xf32>
    %139 = tpu.matmul %136, %138, %cst_59 {dimension_numbers = #tpu.dot_dimension_numbers<[1], [0], [0], [1], [0, 0, 1, 1], [], []>} : vector<64x384xf32>, vector<384x128xf32>, vector<64x128xf32> -> vector<64x128xf32>
    %140 = arith.addf %131, %139 : vector<64x128xf32>
    %141 = vector.extract_strided_slice %122 {offsets = [2, 0, 0], sizes = [8, 8, 128], strides = [1, 1, 1]} : vector<10x10x128xf32> to vector<8x8x128xf32>
    %142 = vector.extract_strided_slice %122 {offsets = [2, 1, 0], sizes = [8, 8, 128], strides = [1, 1, 1]} : vector<10x10x128xf32> to vector<8x8x128xf32>
    %143 = vector.extract_strided_slice %122 {offsets = [2, 2, 0], sizes = [8, 8, 128], strides = [1, 1, 1]} : vector<10x10x128xf32> to vector<8x8x128xf32>
    %144 = tpu.concatenate %141, %142, %143 in 2 : vector<8x8x128xf32>, vector<8x8x128xf32>, vector<8x8x128xf32> -> vector<8x8x384xf32>
    %145 = vector.shape_cast %144 : vector<8x8x384xf32> to vector<64x384xf32>
    %c8 = arith.constant 8 : index
    %c0_60 = arith.constant 0 : index
    %c0_61 = arith.constant 0 : index
    %146 = vector.load %arg7[%c8, %c0_60, %c0_61] : memref<9x384x128xf32, #tpu.memory_space<vmem>>, vector<1x384x128xf32>
    %147 = vector.shape_cast %146 : vector<1x384x128xf32> to vector<384x128xf32>
    %cst_62 = arith.constant dense<0.000000e+00> : vector<64x128xf32>
    %148 = tpu.matmul %145, %147, %cst_62 {dimension_numbers = #tpu.dot_dimension_numbers<[1], [0], [0], [1], [0, 0, 1, 1], [], []>} : vector<64x384xf32>, vector<384x128xf32>, vector<64x128xf32> -> vector<64x128xf32>
    %149 = arith.addf %140, %148 : vector<64x128xf32>
    %150 = vector.shape_cast %149 : vector<64x128xf32> to vector<1x1x8x8x128xf32>
    %c0_63 = arith.constant 0 : index
    %c0_64 = arith.constant 0 : index
    %c0_65 = arith.constant 0 : index
    %c0_66 = arith.constant 0 : index
    %c0_67 = arith.constant 0 : index
    %151 = vector.load %arg8[%c0_63, %c0_64, %c0_65, %c0_66, %c0_67] : memref<1x1x8x8x128xf32, #tpu.memory_space<vmem>>, vector<1x1x8x8x128xf32>
    tpu.vector_store %arg8[%c0_63, %c0_64, %c0_65, %c0_66, %c0_67], %150 {strides = array<i32>} : memref<1x1x8x8x128xf32, #tpu.memory_space<vmem>>, vector<1x1x8x8x128xf32>,
    %cst_68 = arith.constant dense<0.000000e+00> : vector<128xf32>
    %152 = vector.multi_reduction <add>, %149, %cst_68 [0] : vector<64x128xf32> to vector<128xf32>
    %153 = vector.shape_cast %152 : vector<128xf32> to vector<1x128xf32>
    %154 = vector.shape_cast %153 : vector<1x128xf32> to vector<1x1x128xf32>
    %c0_69 = arith.constant 0 : index
    %c0_70 = arith.constant 0 : index
    %c0_71 = arith.constant 0 : index
    %155 = vector.load %arg9[%c0_69, %c0_70, %c0_71] : memref<1x1x128xf32, #tpu.memory_space<vmem>>, vector<1x1x128xf32>
    tpu.vector_store %arg9[%c0_69, %c0_70, %c0_71], %154 {strides = array<i32>} : memref<1x1x128xf32, #tpu.memory_space<vmem>>, vector<1x1x128xf32>,
    %156 = arith.mulf %149, %149 : vector<64x128xf32>
    %cst_72 = arith.constant dense<0.000000e+00> : vector<128xf32>
    %157 = vector.multi_reduction <add>, %156, %cst_72 [0] : vector<64x128xf32> to vector<128xf32>
    %158 = vector.shape_cast %157 : vector<128xf32> to vector<1x128xf32>
    %159 = vector.shape_cast %158 : vector<1x128xf32> to vector<1x1x128xf32>
    %c0_73 = arith.constant 0 : index
    %c0_74 = arith.constant 0 : index
    %c0_75 = arith.constant 0 : index
    %160 = vector.load %arg10[%c0_73, %c0_74, %c0_75] : memref<1x1x128xf32, #tpu.memory_space<vmem>>, vector<1x1x128xf32>
    tpu.vector_store %arg10[%c0_73, %c0_74, %c0_75], %159 {strides = array<i32>} : memref<1x1x128xf32, #tpu.memory_space<vmem>>, vector<1x1x128xf32>,
    return
  }
  func.func @transform_0(%arg0: i32, %arg1: i32) -> (i32, i32, i32, i32, i32) {
    %c0_i32 = arith.constant 0 : i32
    %0 = arith.addi %arg1, %c0_i32 : i32
    %c0_i32_0 = arith.constant 0 : i32
    %c0_i32_1 = arith.constant 0 : i32
    %c0_i32_2 = arith.constant 0 : i32
    %c0_i32_3 = arith.constant 0 : i32
    return %arg0, %0, %c0_i32_0, %c0_i32_1, %c0_i32_2 : i32, i32, i32, i32, i32
  }
  func.func @transform_1(%arg0: i32, %arg1: i32) -> (i32, i32, i32, i32, i32) {
    %c1_i32 = arith.constant 1 : i32
    %0 = arith.addi %arg1, %c1_i32 : i32
    %c0_i32 = arith.constant 0 : i32
    %c0_i32_0 = arith.constant 0 : i32
    %c0_i32_1 = arith.constant 0 : i32
    %c0_i32_2 = arith.constant 0 : i32
    return %arg0, %0, %c0_i32, %c0_i32_0, %c0_i32_1 : i32, i32, i32, i32, i32
  }
  func.func @transform_2(%arg0: i32, %arg1: i32) -> (i32, i32, i32, i32, i32) {
    %c2_i32 = arith.constant 2 : i32
    %0 = arith.addi %arg1, %c2_i32 : i32
    %c0_i32 = arith.constant 0 : i32
    %c0_i32_0 = arith.constant 0 : i32
    %c0_i32_1 = arith.constant 0 : i32
    %c0_i32_2 = arith.constant 0 : i32
    return %arg0, %0, %c0_i32, %c0_i32_0, %c0_i32_1 : i32, i32, i32, i32, i32
  }
  func.func @transform_3(%arg0: i32, %arg1: i32) -> (i32, i32) {
    %c0_i32 = arith.constant 0 : i32
    %c0_i32_0 = arith.constant 0 : i32
    %c0_i32_1 = arith.constant 0 : i32
    return %c0_i32, %c0_i32_0 : i32, i32
  }
  func.func @transform_4(%arg0: i32, %arg1: i32) -> (i32, i32) {
    %c0_i32 = arith.constant 0 : i32
    %c0_i32_0 = arith.constant 0 : i32
    %c0_i32_1 = arith.constant 0 : i32
    return %c0_i32, %c0_i32_0 : i32, i32
  }
  func.func @transform_5(%arg0: i32, %arg1: i32) -> (i32, i32, i32) {
    %c0_i32 = arith.constant 0 : i32
    %c0_i32_0 = arith.constant 0 : i32
    %c0_i32_1 = arith.constant 0 : i32
    %c0_i32_2 = arith.constant 0 : i32
    return %c0_i32, %c0_i32_0, %c0_i32_1 : i32, i32, i32
  }
  func.func @transform_6(%arg0: i32, %arg1: i32) -> (i32, i32, i32, i32, i32) {
    %c0_i32 = arith.constant 0 : i32
    %c0_i32_0 = arith.constant 0 : i32
    %c0_i32_1 = arith.constant 0 : i32
    %c0_i32_2 = arith.constant 0 : i32
    return %arg0, %arg1, %c0_i32, %c0_i32_0, %c0_i32_1 : i32, i32, i32, i32, i32
  }
  func.func @transform_7(%arg0: i32, %arg1: i32) -> (i32, i32, i32) {
    %c4_i32 = arith.constant 4 : i32
    %0 = arith.muli %arg0, %c4_i32 : i32
    %1 = arith.addi %0, %arg1 : i32
    %c0_i32 = arith.constant 0 : i32
    %c0_i32_0 = arith.constant 0 : i32
    %c0_i32_1 = arith.constant 0 : i32
    return %1, %c0_i32, %c0_i32_0 : i32, i32, i32
  }
  func.func @transform_8(%arg0: i32, %arg1: i32) -> (i32, i32, i32) {
    %c4_i32 = arith.constant 4 : i32
    %0 = arith.muli %arg0, %c4_i32 : i32
    %1 = arith.addi %0, %arg1 : i32
    %c0_i32 = arith.constant 0 : i32
    %c0_i32_0 = arith.constant 0 : i32
    %c0_i32_1 = arith.constant 0 : i32
    return %1, %c0_i32, %c0_i32_0 : i32, i32, i32
  }
}

module attributes {stable_mosaic.version = 11 : i64} {
  func.func @_bn_add_relu_kernel(%arg0: i32, %arg1: memref<512x128xf32, #tpu.memory_space<vmem>>, %arg2: memref<1x128xf32, #tpu.memory_space<vmem>>, %arg3: memref<1x128xf32, #tpu.memory_space<vmem>>, %arg4: memref<512x128xf32, #tpu.memory_space<vmem>>, %arg5: memref<512x128xf32, #tpu.memory_space<vmem>>) attributes {dimension_semantics = [#tpu.dimension_semantics<parallel>], iteration_bounds = array<i64: 1>, scalar_prefetch = 0 : i64, scratch_operands = 0 : i64, tpu.core_type = #tpu.core_type<tc>, window_params = [{transform_indices = @transform_0, window_bounds = array<i64: 512, 128>}, {pipeline_mode = #tpu.pipeline_mode<synchronous>, transform_indices = @transform_1, window_bounds = array<i64: 1, 128>}, {pipeline_mode = #tpu.pipeline_mode<synchronous>, transform_indices = @transform_2, window_bounds = array<i64: 1, 128>}, {transform_indices = @transform_3, window_bounds = array<i64: 512, 128>}, {transform_indices = @transform_4, window_bounds = array<i64: 512, 128>}]} {
    %c0 = arith.constant 0 : index
    %c0_0 = arith.constant 0 : index
    %0 = vector.load %arg1[%c0, %c0_0] : memref<512x128xf32, #tpu.memory_space<vmem>>, vector<512x128xf32>
    %c0_1 = arith.constant 0 : index
    %c0_2 = arith.constant 0 : index
    %1 = vector.load %arg2[%c0_1, %c0_2] : memref<1x128xf32, #tpu.memory_space<vmem>>, vector<1x128xf32>
    %2 = vector.broadcast %1 : vector<1x128xf32> to vector<512x128xf32>
    %3 = arith.mulf %0, %2 : vector<512x128xf32>
    %c0_3 = arith.constant 0 : index
    %c0_4 = arith.constant 0 : index
    %4 = vector.load %arg3[%c0_3, %c0_4] : memref<1x128xf32, #tpu.memory_space<vmem>>, vector<1x128xf32>
    %5 = vector.broadcast %4 : vector<1x128xf32> to vector<512x128xf32>
    %6 = arith.addf %3, %5 : vector<512x128xf32>
    %c0_5 = arith.constant 0 : index
    %c0_6 = arith.constant 0 : index
    %7 = vector.load %arg4[%c0_5, %c0_6] : memref<512x128xf32, #tpu.memory_space<vmem>>, vector<512x128xf32>
    %8 = arith.addf %6, %7 : vector<512x128xf32>
    %cst = arith.constant 0.000000e+00 : f32
    %9 = vector.broadcast %cst : f32 to vector<512x128xf32>
    %10 = arith.maximumf %8, %9 : vector<512x128xf32>
    %c0_7 = arith.constant 0 : index
    %c0_8 = arith.constant 0 : index
    %11 = vector.load %arg5[%c0_7, %c0_8] : memref<512x128xf32, #tpu.memory_space<vmem>>, vector<512x128xf32>
    tpu.vector_store %arg5[%c0_7, %c0_8], %10 {strides = array<i32>} : memref<512x128xf32, #tpu.memory_space<vmem>>, vector<512x128xf32>,
    return
  }
  func.func @transform_0(%arg0: i32) -> (i32, i32) {
    %c0_i32 = arith.constant 0 : i32
    %c0_i32_0 = arith.constant 0 : i32
    return %arg0, %c0_i32 : i32, i32
  }
  func.func @transform_1(%arg0: i32) -> (i32, i32) {
    %c0_i32 = arith.constant 0 : i32
    %c0_i32_0 = arith.constant 0 : i32
    %c0_i32_1 = arith.constant 0 : i32
    return %c0_i32, %c0_i32_0 : i32, i32
  }
  func.func @transform_2(%arg0: i32) -> (i32, i32) {
    %c0_i32 = arith.constant 0 : i32
    %c0_i32_0 = arith.constant 0 : i32
    %c0_i32_1 = arith.constant 0 : i32
    return %c0_i32, %c0_i32_0 : i32, i32
  }
  func.func @transform_3(%arg0: i32) -> (i32, i32) {
    %c0_i32 = arith.constant 0 : i32
    %c0_i32_0 = arith.constant 0 : i32
    return %arg0, %c0_i32 : i32, i32
  }
  func.func @transform_4(%arg0: i32) -> (i32, i32) {
    %c0_i32 = arith.constant 0 : i32
    %c0_i32_0 = arith.constant 0 : i32
    return %arg0, %c0_i32 : i32, i32
  }
}

module attributes {stable_mosaic.version = 11 : i64} {
  func.func @_bn_relu_mm_stats_kernel(%arg0: i32, %arg1: memref<512x128xf32, #tpu.memory_space<vmem>>, %arg2: memref<1x128xf32, #tpu.memory_space<vmem>>, %arg3: memref<1x128xf32, #tpu.memory_space<vmem>>, %arg4: memref<128x128xf32, #tpu.memory_space<vmem>>, %arg5: memref<512x128xf32, #tpu.memory_space<vmem>>, %arg6: memref<1x1x128xf32, #tpu.memory_space<vmem>>, %arg7: memref<1x1x128xf32, #tpu.memory_space<vmem>>) attributes {dimension_semantics = [#tpu.dimension_semantics<parallel>], iteration_bounds = array<i64: 1>, scalar_prefetch = 0 : i64, scratch_operands = 0 : i64, tpu.core_type = #tpu.core_type<tc>, window_params = [{transform_indices = @transform_0, window_bounds = array<i64: 512, 128>}, {pipeline_mode = #tpu.pipeline_mode<synchronous>, transform_indices = @transform_1, window_bounds = array<i64: 1, 128>}, {pipeline_mode = #tpu.pipeline_mode<synchronous>, transform_indices = @transform_2, window_bounds = array<i64: 1, 128>}, {pipeline_mode = #tpu.pipeline_mode<synchronous>, transform_indices = @transform_3, window_bounds = array<i64: 128, 128>}, {transform_indices = @transform_4, window_bounds = array<i64: 512, 128>}, {transform_indices = @transform_5, window_bounds = array<i64: 1, 1, 128>}, {transform_indices = @transform_6, window_bounds = array<i64: 1, 1, 128>}]} {
    %c0 = arith.constant 0 : index
    %c0_0 = arith.constant 0 : index
    %0 = vector.load %arg1[%c0, %c0_0] : memref<512x128xf32, #tpu.memory_space<vmem>>, vector<512x128xf32>
    %c0_1 = arith.constant 0 : index
    %c0_2 = arith.constant 0 : index
    %1 = vector.load %arg2[%c0_1, %c0_2] : memref<1x128xf32, #tpu.memory_space<vmem>>, vector<1x128xf32>
    %2 = vector.broadcast %1 : vector<1x128xf32> to vector<512x128xf32>
    %3 = arith.mulf %0, %2 : vector<512x128xf32>
    %c0_3 = arith.constant 0 : index
    %c0_4 = arith.constant 0 : index
    %4 = vector.load %arg3[%c0_3, %c0_4] : memref<1x128xf32, #tpu.memory_space<vmem>>, vector<1x128xf32>
    %5 = vector.broadcast %4 : vector<1x128xf32> to vector<512x128xf32>
    %6 = arith.addf %3, %5 : vector<512x128xf32>
    %cst = arith.constant 0.000000e+00 : f32
    %7 = vector.broadcast %cst : f32 to vector<512x128xf32>
    %8 = arith.maximumf %6, %7 : vector<512x128xf32>
    %c0_5 = arith.constant 0 : index
    %c0_6 = arith.constant 0 : index
    %9 = vector.load %arg4[%c0_5, %c0_6] : memref<128x128xf32, #tpu.memory_space<vmem>>, vector<128x128xf32>
    %cst_7 = arith.constant dense<0.000000e+00> : vector<512x128xf32>
    %10 = tpu.matmul %8, %9, %cst_7 {dimension_numbers = #tpu.dot_dimension_numbers<[1], [0], [0], [1], [0, 0, 1, 1], [], []>} : vector<512x128xf32>, vector<128x128xf32>, vector<512x128xf32> -> vector<512x128xf32>
    %c0_8 = arith.constant 0 : index
    %c0_9 = arith.constant 0 : index
    %11 = vector.load %arg5[%c0_8, %c0_9] : memref<512x128xf32, #tpu.memory_space<vmem>>, vector<512x128xf32>
    tpu.vector_store %arg5[%c0_8, %c0_9], %10 {strides = array<i32>} : memref<512x128xf32, #tpu.memory_space<vmem>>, vector<512x128xf32>,
    %cst_10 = arith.constant dense<0.000000e+00> : vector<128xf32>
    %12 = vector.multi_reduction <add>, %10, %cst_10 [0] : vector<512x128xf32> to vector<128xf32>
    %13 = vector.shape_cast %12 : vector<128xf32> to vector<1x128xf32>
    %14 = vector.shape_cast %13 : vector<1x128xf32> to vector<1x1x128xf32>
    %c0_11 = arith.constant 0 : index
    %c0_12 = arith.constant 0 : index
    %c0_13 = arith.constant 0 : index
    %15 = vector.load %arg6[%c0_11, %c0_12, %c0_13] : memref<1x1x128xf32, #tpu.memory_space<vmem>>, vector<1x1x128xf32>
    tpu.vector_store %arg6[%c0_11, %c0_12, %c0_13], %14 {strides = array<i32>} : memref<1x1x128xf32, #tpu.memory_space<vmem>>, vector<1x1x128xf32>,
    %16 = arith.mulf %10, %10 : vector<512x128xf32>
    %cst_14 = arith.constant dense<0.000000e+00> : vector<128xf32>
    %17 = vector.multi_reduction <add>, %16, %cst_14 [0] : vector<512x128xf32> to vector<128xf32>
    %18 = vector.shape_cast %17 : vector<128xf32> to vector<1x128xf32>
    %19 = vector.shape_cast %18 : vector<1x128xf32> to vector<1x1x128xf32>
    %c0_15 = arith.constant 0 : index
    %c0_16 = arith.constant 0 : index
    %c0_17 = arith.constant 0 : index
    %20 = vector.load %arg7[%c0_15, %c0_16, %c0_17] : memref<1x1x128xf32, #tpu.memory_space<vmem>>, vector<1x1x128xf32>
    tpu.vector_store %arg7[%c0_15, %c0_16, %c0_17], %19 {strides = array<i32>} : memref<1x1x128xf32, #tpu.memory_space<vmem>>, vector<1x1x128xf32>,
    return
  }
  func.func @transform_0(%arg0: i32) -> (i32, i32) {
    %c0_i32 = arith.constant 0 : i32
    %c0_i32_0 = arith.constant 0 : i32
    return %arg0, %c0_i32 : i32, i32
  }
  func.func @transform_1(%arg0: i32) -> (i32, i32) {
    %c0_i32 = arith.constant 0 : i32
    %c0_i32_0 = arith.constant 0 : i32
    %c0_i32_1 = arith.constant 0 : i32
    return %c0_i32, %c0_i32_0 : i32, i32
  }
  func.func @transform_2(%arg0: i32) -> (i32, i32) {
    %c0_i32 = arith.constant 0 : i32
    %c0_i32_0 = arith.constant 0 : i32
    %c0_i32_1 = arith.constant 0 : i32
    return %c0_i32, %c0_i32_0 : i32, i32
  }
  func.func @transform_3(%arg0: i32) -> (i32, i32) {
    %c0_i32 = arith.constant 0 : i32
    %c0_i32_0 = arith.constant 0 : i32
    %c0_i32_1 = arith.constant 0 : i32
    return %c0_i32, %c0_i32_0 : i32, i32
  }
  func.func @transform_4(%arg0: i32) -> (i32, i32) {
    %c0_i32 = arith.constant 0 : i32
    %c0_i32_0 = arith.constant 0 : i32
    return %arg0, %c0_i32 : i32, i32
  }
  func.func @transform_5(%arg0: i32) -> (i32, i32, i32) {
    %c0_i32 = arith.constant 0 : i32
    %c0_i32_0 = arith.constant 0 : i32
    %c0_i32_1 = arith.constant 0 : i32
    return %arg0, %c0_i32, %c0_i32_0 : i32, i32, i32
  }
  func.func @transform_6(%arg0: i32) -> (i32, i32, i32) {
    %c0_i32 = arith.constant 0 : i32
    %c0_i32_0 = arith.constant 0 : i32
    %c0_i32_1 = arith.constant 0 : i32
    return %arg0, %c0_i32, %c0_i32_0 : i32, i32, i32
  }
}

</mosaic_0001>

<bundles_post_ra>
// kernel: bottleneck_forward.4
= control target key start
LH: loop header
LB: loop body
LE: loop exit
PB: predicated region body
PF: predicated region fallthrough
CT: control target
= control target key end

     0   :  { %s1670_s1 = inlined_call_operand.vmem [shape: f32[128,128], index: 1, kind: input, shape index: {}]   ;;  %s1671_s0 = inlined_call_operand.vmem [shape: f32[512,128], index: 0, kind: input, shape index: {}]   ;;  %s1672_s2 = inlined_call_operand.vmem [shape: f32[512,128], index: 2, kind: output, shape index: {0}]   ;;  %s1673_s3 = inlined_call_operand.vmem [shape: f32[1,1,128], index: 3, kind: output, shape index: {1}]   ;;  %s1674_s4 = inlined_call_operand.vmem [shape: f32[1,1,128], index: 4, kind: output, shape index: {2}]  }
   0x1   :  { %v78_v0 = vld [vmem:[%s1670_s1] sm:$0xff]  ;;  %v79_v1 = vld [vmem:[%s1670_s1 + $0x8] sm:$0xff]  ;;  %v80_v2 = vld [vmem:[%s1670_s1 + $0x10] sm:$0xff] }
   0x2   :  { %v967_v3 = vpack.c.bf16 %v79_v1, %v78_v0  ;;  %v81_v4 = vld [vmem:[%s1670_s1 + $0x18] sm:$0xff]  ;;  %v82_v6 = vld [vmem:[%s1670_s1 + $0x20] sm:$0xff]  ;;  %v83_v7 = vld [vmem:[%s1670_s1 + $0x28] sm:$0xff] }
   0x3   :  { %v971_v5 = vpack.c.bf16 %v81_v4, %v80_v2  ;;  %v975_v8 = vpack.c.bf16 %v83_v7, %v82_v6  ;;  %v14_v9 = vld [vmem:[%s1671_s0] sm:$0xff]  ;;  %v84_v10 = vld [vmem:[%s1670_s1 + $0x30] sm:$0xff]  ;;  %v85_v11 = vld [vmem:[%s1670_s1 + $0x38] sm:$0xff] }
   0x4   :  { %968 = vmatprep.subr.bf16.mxu0 %v967_v3  ;;  %999 = vmatprep.subr.bf16.mxu1 %v967_v3  ;;  %v979_v12 = vpack.c.bf16 %v85_v11, %v84_v10  ;;  %v86_v13 = vld [vmem:[%s1670_s1 + $0x40] sm:$0xff]  ;;  %v87_v14 = vld [vmem:[%s1670_s1 + $0x48] sm:$0xff]  ;;  %v88_v16 = vld [vmem:[%s1670_s1 + $0x50] sm:$0xff] }
   0x5   :  { %970 = vmatpush3.bf16.msra.mxu0 %v967_v3  ;;  %1007 = vmatpush3.bf16.msra.mxu1 %v967_v3  ;;  %v983_v15 = vpack.c.bf16 %v87_v14, %v86_v13  ;;  %v89_v17 = vld [vmem:[%s1670_s1 + $0x58] sm:$0xff]  ;;  %v46_v18 = vld [vmem:[%s1671_s0 + $0x100] sm:$0xff]  ;;  %v91_v21 = vld [vmem:[%s1670_s1 + $0x68] sm:$0xff] }
   0x6   :  { %972 = vmatprep.subr.bf16.mxu0 %v971_v5  ;;  %1000 = vmatprep.subr.bf16.mxu1 %v971_v5  ;;  %v987_v19 = vpack.c.bf16 %v89_v17, %v88_v16  ;;  %v90_v20 = vld [vmem:[%s1670_s1 + $0x60] sm:$0xff]  ;;  %v92_v23 = vld [vmem:[%s1670_s1 + $0x70] sm:$0xff]  ;;  %v93_v24 = vld [vmem:[%s1670_s1 + $0x78] sm:$0xff] }
   0x7   :  { %871 = vmatprep.mubr.f32.mxu0 %v14_v9  ;;  %919 = vmatprep.mubr.f32.mxu1 %v46_v18  ;;  %v991_v22 = vpack.c.bf16 %v91_v21, %v90_v20  ;;  %v995_v25 = vpack.c.bf16 %v93_v24, %v92_v23  ;;  %v15_v26 = vld [vmem:[%s1671_s0 + $0x8] sm:$0xff]  ;;  %v16_v28 = vld [vmem:[%s1671_s0 + $0x10] sm:$0xff]  ;;  %v17_v30 = vld [vmem:[%s1671_s0 + $0x18] sm:$0xff] }
   0x8   :  { %v47_v27 = vld [vmem:[%s1671_s0 + $0x108] sm:$0xff]  ;;  %v48_v29 = vld [vmem:[%s1671_s0 + $0x110] sm:$0xff]  ;;  %v49_v31 = vld [vmem:[%s1671_s0 + $0x118] sm:$0xff] }
   0x9   :  { %974 = vmatpush3.bf16.msra.mxu0 %v971_v5  ;;  %1008 = vmatpush3.bf16.msra.mxu1 %v971_v5  ;;  %v18_v32 = vld [vmem:[%s1671_s0 + $0x20] sm:$0xff]  ;;  %v19_v34 = vld [vmem:[%s1671_s0 + $0x28] sm:$0xff]  ;;  %v20_v36 = vld [vmem:[%s1671_s0 + $0x30] sm:$0xff] }
   0xa   :  { %976 = vmatprep.subr.bf16.mxu0 %v975_v8  ;;  %1001 = vmatprep.subr.bf16.mxu1 %v975_v8  ;;  %v50_v33 = vld [vmem:[%s1671_s0 + $0x120] sm:$0xff]  ;;  %v51_v35 = vld [vmem:[%s1671_s0 + $0x128] sm:$0xff]  ;;  %v52_v37 = vld [vmem:[%s1671_s0 + $0x130] sm:$0xff] }
   0xb   :  { %v21_v38 = vld [vmem:[%s1671_s0 + $0x38] sm:$0xff]  ;;  %v22_v40 = vld [vmem:[%s1671_s0 + $0x40] sm:$0xff]  ;;  %v23_v42 = vld [vmem:[%s1671_s0 + $0x48] sm:$0xff] }
   0xc   :  { %v53_v39 = vld [vmem:[%s1671_s0 + $0x138] sm:$0xff]  ;;  %v54_v41 = vld [vmem:[%s1671_s0 + $0x140] sm:$0xff]  ;;  %v55_v43 = vld [vmem:[%s1671_s0 + $0x148] sm:$0xff] }
   0xd   :  { %978 = vmatpush3.bf16.msra.mxu0 %v975_v8  ;;  %1009 = vmatpush3.bf16.msra.mxu1 %v975_v8  ;;  %v24_v44 = vld [vmem:[%s1671_s0 + $0x50] sm:$0xff]  ;;  %v25_v46 = vld [vmem:[%s1671_s0 + $0x58] sm:$0xff]  ;;  %v26_v48 = vld [vmem:[%s1671_s0 + $0x60] sm:$0xff] }
   0xe   :  { %980 = vmatprep.subr.bf16.mxu0 %v979_v12  ;;  %1002 = vmatprep.subr.bf16.mxu1 %v979_v12  ;;  %v56_v45 = vld [vmem:[%s1671_s0 + $0x150] sm:$0xff]  ;;  %v57_v47 = vld [vmem:[%s1671_s0 + $0x158] sm:$0xff]  ;;  %v58_v49 = vld [vmem:[%s1671_s0 + $0x160] sm:$0xff] }
   0xf   :  { %v27_v50 = vld [vmem:[%s1671_s0 + $0x68] sm:$0xff]  ;;  %v28_v52 = vld [vmem:[%s1671_s0 + $0x70] sm:$0xff]  ;;  %v29_v54 = vld [vmem:[%s1671_s0 + $0x78] sm:$0xff] }
  0x10   :  { %v59_v51 = vld [vmem:[%s1671_s0 + $0x168] sm:$0xff]  ;;  %v60_v53 = vld [vmem:[%s1671_s0 + $0x170] sm:$0xff]  ;;  %v61_v55 = vld [vmem:[%s1671_s0 + $0x178] sm:$0xff] }
  0x11   :  { %982 = vmatpush3.bf16.msra.mxu0 %v979_v12  ;;  %1010 = vmatpush3.bf16.msra.mxu1 %v979_v12  ;;  %v30_v56 = vld [vmem:[%s1671_s0 + $0x80] sm:$0xff]  ;;  %v31_v58 = vld [vmem:[%s1671_s0 + $0x88] sm:$0xff]  ;;  %v32_v60 = vld [vmem:[%s1671_s0 + $0x90] sm:$0xff] }
  0x12   :  { %984 = vmatprep.subr.bf16.mxu0 %v983_v15  ;;  %1003 = vmatprep.subr.bf16.mxu1 %v983_v15  ;;  %v62_v57 = vld [vmem:[%s1671_s0 + $0x180] sm:$0xff]  ;;  %v63_v59 = vld [vmem:[%s1671_s0 + $0x188] sm:$0xff]  ;;  %v64_v61 = vld [vmem:[%s1671_s0 + $0x190] sm:$0xff] }
  0x13   :  { %v33_v62 = vld [vmem:[%s1671_s0 + $0x98] sm:$0xff]  ;;  %v34_v0 = vld [vmem:[%s1671_s0 + $0xa0] sm:$0xff]  ;;  %v35_v2 = vld [vmem:[%s1671_s0 + $0xa8] sm:$0xff] }
  0x14   :  { %v65_v63 = vld [vmem:[%s1671_s0 + $0x198] sm:$0xff]  ;;  %v66_v1 = vld [vmem:[%s1671_s0 + $0x1a0] sm:$0xff]  ;;  %v67_v3 = vld [vmem:[%s1671_s0 + $0x1a8] sm:$0xff] }
  0x15   :  { %986 = vmatpush3.bf16.msra.mxu0 %v983_v15  ;;  %1011 = vmatpush3.bf16.msra.mxu1 %v983_v15  ;;  %v36_v4 = vld [vmem:[%s1671_s0 + $0xb0] sm:$0xff]  ;;  %v37_v6 = vld [vmem:[%s1671_s0 + $0xb8] sm:$0xff]  ;;  %v38_v8 = vld [vmem:[%s1671_s0 + $0xc0] sm:$0xff] }
  0x16   :  { %988 = vmatprep.subr.bf16.mxu0 %v987_v19  ;;  %1004 = vmatprep.subr.bf16.mxu1 %v987_v19  ;;  %v68_v5 = vld [vmem:[%s1671_s0 + $0x1b0] sm:$0xff]  ;;  %v69_v7 = vld [vmem:[%s1671_s0 + $0x1b8] sm:$0xff]  ;;  %v70_v9 = vld [vmem:[%s1671_s0 + $0x1c0] sm:$0xff] }
  0x17   :  { %v39_v10 = vld [vmem:[%s1671_s0 + $0xc8] sm:$0xff]  ;;  %v40_v12 = vld [vmem:[%s1671_s0 + $0xd0] sm:$0xff]  ;;  %v41_v14 = vld [vmem:[%s1671_s0 + $0xd8] sm:$0xff] }
  0x18   :  { %v71_v11 = vld [vmem:[%s1671_s0 + $0x1c8] sm:$0xff]  ;;  %v72_v13 = vld [vmem:[%s1671_s0 + $0x1d0] sm:$0xff]  ;;  %v73_v15 = vld [vmem:[%s1671_s0 + $0x1d8] sm:$0xff] }
  0x19   :  { %990 = vmatpush3.bf16.msra.mxu0 %v987_v19  ;;  %1012 = vmatpush3.bf16.msra.mxu1 %v987_v19  ;;  %v42_v16 = vld [vmem:[%s1671_s0 + $0xe0] sm:$0xff]  ;;  %v43_v18 = vld [vmem:[%s1671_s0 + $0xe8] sm:$0xff]  ;;  %v44_v20 = vld [vmem:[%s1671_s0 + $0xf0] sm:$0xff] }
  0x1a   :  { %992 = vmatprep.subr.bf16.mxu0 %v991_v22  ;;  %1005 = vmatprep.subr.bf16.mxu1 %v991_v22  ;;  %v74_v17 = vld [vmem:[%s1671_s0 + $0x1e0] sm:$0xff]  ;;  %v75_v19 = vld [vmem:[%s1671_s0 + $0x1e8] sm:$0xff]  ;;  %v76_v21 = vld [vmem:[%s1671_s0 + $0x1f0] sm:$0xff] }
  0x1b   :  { %v77_v23 = vld [vmem:[%s1671_s0 + $0x1f8] sm:$0xff] }
  0x1d   :  { %994 = vmatpush3.bf16.msra.mxu0 %v991_v22  ;;  %1013 = vmatpush3.bf16.msra.mxu1 %v991_v22  ;;  %v45_v22 = vld [vmem:[%s1671_s0 + $0xf8] sm:$0xff] }
  0x1e   :  { %996 = vmatprep.subr.bf16.mxu0 %v995_v25  ;;  %1006 = vmatprep.subr.bf16.mxu1 %v995_v25 }
  0x21   :  { %998 = vmatpush3.bf16.msra.mxu0 %v995_v25  ;;  %1014 = vmatpush3.bf16.msra.mxu1 %v995_v25 }
  0x24   :  { %872 = vmatmul.mubr.f32.vlgmr.msra.gmra.mrb[0].mxu0 %v15_v26  ;;  %920 = vmatmul.mubr.f32.vlgmr.msra.gmra.mrb[0].mxu1 %v47_v27 }
  0x25   :  { %874 = vmatprep.mubr.f32.mxu0 %v16_v28  ;;  %922 = vmatprep.mubr.f32.mxu1 %v48_v29 }
  0x28   :  { %875 = vmatmul.mubr.f32.gmra.mrb[2].mxu0 %v17_v30  ;;  %923 = vmatmul.mubr.f32.gmra.mrb[2].mxu1 %v49_v31 }
  0x29   :  { %877 = vmatprep.mubr.f32.mxu0 %v18_v32  ;;  %925 = vmatprep.mubr.f32.mxu1 %v50_v33 }
  0x2c   :  { %878 = vmatmul.mubr.f32.gmra.mrb[4].mxu0 %v19_v34  ;;  %926 = vmatmul.mubr.f32.gmra.mrb[4].mxu1 %v51_v35 }
  0x2d   :  { %880 = vmatprep.mubr.f32.mxu0 %v20_v36  ;;  %928 = vmatprep.mubr.f32.mxu1 %v52_v37 }
  0x30   :  { %881 = vmatmul.mubr.f32.gmra.mrb[6].mxu0 %v21_v38  ;;  %929 = vmatmul.mubr.f32.gmra.mrb[6].mxu1 %v53_v39 }
  0x31   :  { %883 = vmatprep.mubr.f32.mxu0 %v22_v40  ;;  %931 = vmatprep.mubr.f32.mxu1 %v54_v41 }
  0x34   :  { %884 = vmatmul.mubr.f32.gmra.mrb[8].mxu0 %v23_v42  ;;  %932 = vmatmul.mubr.f32.gmra.mrb[8].mxu1 %v55_v43 }
  0x35   :  { %886 = vmatprep.mubr.f32.mxu0 %v24_v44  ;;  %934 = vmatprep.mubr.f32.mxu1 %v56_v45 }
  0x38   :  { %887 = vmatmul.mubr.f32.gmra.mrb[10].mxu0 %v25_v46  ;;  %935 = vmatmul.mubr.f32.gmra.mrb[10].mxu1 %v57_v47 }
  0x39   :  { %889 = vmatprep.mubr.f32.mxu0 %v26_v48  ;;  %937 = vmatprep.mubr.f32.mxu1 %v58_v49 }
  0x3c   :  { %890 = vmatmul.mubr.f32.gmra.mrb[12].mxu0 %v27_v50  ;;  %938 = vmatmul.mubr.f32.gmra.mrb[12].mxu1 %v59_v51 }
  0x3d   :  { %892 = vmatprep.mubr.f32.mxu0 %v28_v52  ;;  %940 = vmatprep.mubr.f32.mxu1 %v60_v53 }
  0x40   :  { %893 = vmatmul.mubr.f32.gmra.mrb[14].mxu0 %v29_v54  ;;  %941 = vmatmul.mubr.f32.gmra.mrb[14].mxu1 %v61_v55 }
  0x41   :  { %895 = vmatprep.mubr.f32.mxu0 %v30_v56  ;;  %943 = vmatprep.mubr.f32.mxu1 %v62_v57 }
  0x44   :  { %896 = vmatmul.mubr.f32.gmra.mrb[16].mxu0 %v31_v58  ;;  %944 = vmatmul.mubr.f32.gmra.mrb[16].mxu1 %v63_v59 }
  0x45   :  { %898 = vmatprep.mubr.f32.mxu0 %v32_v60  ;;  %946 = vmatprep.mubr.f32.mxu1 %v64_v61 }
  0x48   :  { %899 = vmatmul.mubr.f32.gmra.mrb[18].mxu0 %v33_v62  ;;  %947 = vmatmul.mubr.f32.gmra.mrb[18].mxu1 %v65_v63 }
  0x49   :  { %901 = vmatprep.mubr.f32.mxu0 %v34_v0  ;;  %949 = vmatprep.mubr.f32.mxu1 %v66_v1 }
  0x4c   :  { %902 = vmatmul.mubr.f32.gmra.mrb[20].mxu0 %v35_v2  ;;  %950 = vmatmul.mubr.f32.gmra.mrb[20].mxu1 %v67_v3 }
  0x4d   :  { %904 = vmatprep.mubr.f32.mxu0 %v36_v4  ;;  %952 = vmatprep.mubr.f32.mxu1 %v68_v5 }
  0x50   :  { %905 = vmatmul.mubr.f32.gmra.mrb[22].mxu0 %v37_v6  ;;  %953 = vmatmul.mubr.f32.gmra.mrb[22].mxu1 %v69_v7 }
  0x51   :  { %907 = vmatprep.mubr.f32.mxu0 %v38_v8  ;;  %955 = vmatprep.mubr.f32.mxu1 %v70_v9 }
  0x54   :  { %908 = vmatmul.mubr.f32.gmra.mrb[24].mxu0 %v39_v10  ;;  %956 = vmatmul.mubr.f32.gmra.mrb[24].mxu1 %v71_v11 }
  0x55   :  { %910 = vmatprep.mubr.f32.mxu0 %v40_v12  ;;  %958 = vmatprep.mubr.f32.mxu1 %v72_v13 }
  0x58   :  { %911 = vmatmul.mubr.f32.gmra.mrb[26].mxu0 %v41_v14  ;;  %959 = vmatmul.mubr.f32.gmra.mrb[26].mxu1 %v73_v15 }
  0x59   :  { %913 = vmatprep.mubr.f32.mxu0 %v42_v16  ;;  %961 = vmatprep.mubr.f32.mxu1 %v74_v17 }
  0x5c   :  { %914 = vmatmul.mubr.f32.gmra.mrb[28].mxu0 %v43_v18  ;;  %962 = vmatmul.mubr.f32.gmra.mrb[28].mxu1 %v75_v19 }
  0x5d   :  { %916 = vmatprep.mubr.f32.mxu0 %v44_v20  ;;  %964 = vmatprep.mubr.f32.mxu1 %v76_v21 }
  0x60   :  { %917 = vmatmul.mubr.f32.gmra.mrb[30].mxu0 %v45_v22  ;;  %965 = vmatmul.mubr.f32.gmra.mrb[30].mxu1 %v77_v23 }
  0xf7   :  { %v873_v24 = vpop.f32.mrb[0].mxu0  ;;  %v1280_v25 = vpop.f32.mrb[0].mxu1 }
  0xf8   :  { %480 = vst [vmem:[%s1672_s2 + $0x8] sm:$0xff] %v873_v24  ;;  %v614_v26 = vmul.f32 %v873_v24, %v873_v24  ;;  %v160_v27 = vpop.f32.mrb[1].mxu0  ;;  %512 = vst [vmem:[%s1672_s2 + $0x108] sm:$0xff] %v1280_v25  ;;  %v1289_v28 = vpop.f32.mrb[1].mxu1 }
  0xf9   :  { %479 = vst [vmem:[%s1672_s2] sm:$0xff] %v160_v27  ;;  %v543_v29 = vadd.f32 %v873_v24, %v160_v27  ;;  %v613_v30 = vmul.f32 %v160_v27, %v160_v27  ;;  %511 = vst [vmem:[%s1672_s2 + $0x100] sm:$0xff] %v1289_v28 }
  0xfb   :  { %v677_v31 = vadd.f32 %v614_v26, %v613_v30  ;;  %v876_v32 = vpop.f32.mrb[2].mxu0  ;;  %v1298_v33 = vpop.f32.mrb[2].mxu1 }
  0xfc   :  { %482 = vst [vmem:[%s1672_s2 + $0x18] sm:$0xff] %v876_v32  ;;  %v170_v34 = vpop.f32.mrb[3].mxu0  ;;  %514 = vst [vmem:[%s1672_s2 + $0x118] sm:$0xff] %v1298_v33  ;;  %v1307_v35 = vpop.f32.mrb[3].mxu1  ;;  %v616_v38 = vmul.f32 %v876_v32, %v876_v32 }
  0xfd   :  { %481 = vst [vmem:[%s1672_s2 + $0x10] sm:$0xff] %v170_v34  ;;  %v544_v36 = vadd.f32 %v543_v29, %v170_v34  ;;  %v615_v37 = vmul.f32 %v170_v34, %v170_v34  ;;  %513 = vst [vmem:[%s1672_s2 + $0x110] sm:$0xff] %v1307_v35 }
  0xff   :  { %v678_v39 = vadd.f32 %v677_v31, %v615_v37  ;;  %v879_v40 = vpop.f32.mrb[4].mxu0  ;;  %v545_v41 = vadd.f32 %v876_v32, %v544_v36  ;;  %v1316_v42 = vpop.f32.mrb[4].mxu1 }
 0x100   :  { %484 = vst [vmem:[%s1672_s2 + $0x28] sm:$0xff] %v879_v40  ;;  %v180_v43 = vpop.f32.mrb[5].mxu0  ;;  %516 = vst [vmem:[%s1672_s2 + $0x128] sm:$0xff] %v1316_v42  ;;  %v1325_v44 = vpop.f32.mrb[5].mxu1  ;;  %v618_v48 = vmul.f32 %v879_v40, %v879_v40 }
 0x101   :  { %483 = vst [vmem:[%s1672_s2 + $0x20] sm:$0xff] %v180_v43  ;;  %v546_v45 = vadd.f32 %v545_v41, %v180_v43  ;;  %v617_v46 = vmul.f32 %v180_v43, %v180_v43  ;;  %v679_v47 = vadd.f32 %v678_v39, %v616_v38  ;;  %515 = vst [vmem:[%s1672_s2 + $0x120] sm:$0xff] %v1325_v44 }
 0x103   :  { %v680_v49 = vadd.f32 %v679_v47, %v617_v46  ;;  %v882_v50 = vpop.f32.mrb[6].mxu0  ;;  %v547_v51 = vadd.f32 %v879_v40, %v546_v45  ;;  %v1334_v52 = vpop.f32.mrb[6].mxu1 }
 0x104   :  { %486 = vst [vmem:[%s1672_s2 + $0x38] sm:$0xff] %v882_v50  ;;  %v190_v53 = vpop.f32.mrb[7].mxu0  ;;  %518 = vst [vmem:[%s1672_s2 + $0x138] sm:$0xff] %v1334_v52  ;;  %v1343_v54 = vpop.f32.mrb[7].mxu1  ;;  %v620_v58 = vmul.f32 %v882_v50, %v882_v50 }
 0x105   :  { %485 = vst [vmem:[%s1672_s2 + $0x30] sm:$0xff] %v190_v53  ;;  %v548_v55 = vadd.f32 %v547_v51, %v190_v53  ;;  %v619_v56 = vmul.f32 %v190_v53, %v190_v53  ;;  %v681_v57 = vadd.f32 %v680_v49, %v618_v48  ;;  %517 = vst [vmem:[%s1672_s2 + $0x130] sm:$0xff] %v1343_v54 }
 0x107   :  { %v682_v59 = vadd.f32 %v681_v57, %v619_v56  ;;  %v885_v60 = vpop.f32.mrb[8].mxu0  ;;  %v549_v61 = vadd.f32 %v882_v50, %v548_v55  ;;  %v1352_v62 = vpop.f32.mrb[8].mxu1 }
 0x108   :  { %488 = vst [vmem:[%s1672_s2 + $0x48] sm:$0xff] %v885_v60  ;;  %v200_v63 = vpop.f32.mrb[9].mxu0  ;;  %520 = vst [vmem:[%s1672_s2 + $0x148] sm:$0xff] %v1352_v62  ;;  %v1361_v0 = vpop.f32.mrb[9].mxu1  ;;  %v622_v4 = vmul.f32 %v885_v60, %v885_v60 }
 0x109   :  { %487 = vst [vmem:[%s1672_s2 + $0x40] sm:$0xff] %v200_v63  ;;  %v550_v1 = vadd.f32 %v549_v61, %v200_v63  ;;  %v621_v2 = vmul.f32 %v200_v63, %v200_v63  ;;  %v683_v3 = vadd.f32 %v682_v59, %v620_v58  ;;  %519 = vst [vmem:[%s1672_s2 + $0x140] sm:$0xff] %v1361_v0 }
 0x10b   :  { %v684_v5 = vadd.f32 %v683_v3, %v621_v2  ;;  %v888_v6 = vpop.f32.mrb[10].mxu0  ;;  %v551_v7 = vadd.f32 %v885_v60, %v550_v1  ;;  %v1370_v8 = vpop.f32.mrb[10].mxu1 }
 0x10c   :  { %490 = vst [vmem:[%s1672_s2 + $0x58] sm:$0xff] %v888_v6  ;;  %v210_v9 = vpop.f32.mrb[11].mxu0  ;;  %522 = vst [vmem:[%s1672_s2 + $0x158] sm:$0xff] %v1370_v8  ;;  %v1379_v10 = vpop.f32.mrb[11].mxu1  ;;  %v624_v14 = vmul.f32 %v888_v6, %v888_v6 }
 0x10d   :  { %489 = vst [vmem:[%s1672_s2 + $0x50] sm:$0xff] %v210_v9  ;;  %v552_v11 = vadd.f32 %v551_v7, %v210_v9  ;;  %v623_v12 = vmul.f32 %v210_v9, %v210_v9  ;;  %v685_v13 = vadd.f32 %v684_v5, %v622_v4  ;;  %521 = vst [vmem:[%s1672_s2 + $0x150] sm:$0xff] %v1379_v10 }
 0x10f   :  { %v686_v15 = vadd.f32 %v685_v13, %v623_v12  ;;  %v891_v16 = vpop.f32.mrb[12].mxu0  ;;  %v553_v17 = vadd.f32 %v888_v6, %v552_v11  ;;  %v1388_v18 = vpop.f32.mrb[12].mxu1 }
 0x110   :  { %492 = vst [vmem:[%s1672_s2 + $0x68] sm:$0xff] %v891_v16  ;;  %v220_v19 = vpop.f32.mrb[13].mxu0  ;;  %524 = vst [vmem:[%s1672_s2 + $0x168] sm:$0xff] %v1388_v18  ;;  %v1397_v20 = vpop.f32.mrb[13].mxu1  ;;  %v626_v24 = vmul.f32 %v891_v16, %v891_v16 }
 0x111   :  { %491 = vst [vmem:[%s1672_s2 + $0x60] sm:$0xff] %v220_v19  ;;  %v554_v21 = vadd.f32 %v553_v17, %v220_v19  ;;  %v625_v22 = vmul.f32 %v220_v19, %v220_v19  ;;  %v687_v23 = vadd.f32 %v686_v15, %v624_v14  ;;  %523 = vst [vmem:[%s1672_s2 + $0x160] sm:$0xff] %v1397_v20 }
 0x113   :  { %v688_v26 = vadd.f32 %v687_v23, %v625_v22  ;;  %v894_v27 = vpop.f32.mrb[14].mxu0  ;;  %v555_v29 = vadd.f32 %v891_v16, %v554_v21  ;;  %v1406_v30 = vpop.f32.mrb[14].mxu1 }
 0x114   :  { %494 = vst [vmem:[%s1672_s2 + $0x78] sm:$0xff] %v894_v27  ;;  %v230_v31 = vpop.f32.mrb[15].mxu0  ;;  %526 = vst [vmem:[%s1672_s2 + $0x178] sm:$0xff] %v1406_v30  ;;  %v1415_v32 = vpop.f32.mrb[15].mxu1  ;;  %v628_v38 = vmul.f32 %v894_v27, %v894_v27 }
 0x115   :  { %493 = vst [vmem:[%s1672_s2 + $0x70] sm:$0xff] %v230_v31  ;;  %v556_v34 = vadd.f32 %v555_v29, %v230_v31  ;;  %v627_v36 = vmul.f32 %v230_v31, %v230_v31  ;;  %v689_v37 = vadd.f32 %v688_v26, %v626_v24  ;;  %525 = vst [vmem:[%s1672_s2 + $0x170] sm:$0xff] %v1415_v32 }
 0x117   :  { %v690_v39 = vadd.f32 %v689_v37, %v627_v36  ;;  %v897_v40 = vpop.f32.mrb[16].mxu0  ;;  %v557_v41 = vadd.f32 %v894_v27, %v556_v34  ;;  %v1424_v43 = vpop.f32.mrb[16].mxu1 }
 0x118   :  { %496 = vst [vmem:[%s1672_s2 + $0x88] sm:$0xff] %v897_v40  ;;  %v240_v45 = vpop.f32.mrb[17].mxu0  ;;  %528 = vst [vmem:[%s1672_s2 + $0x188] sm:$0xff] %v1424_v43  ;;  %v1433_v46 = vpop.f32.mrb[17].mxu1  ;;  %v630_v50 = vmul.f32 %v897_v40, %v897_v40 }
 0x119   :  { %495 = vst [vmem:[%s1672_s2 + $0x80] sm:$0xff] %v240_v45  ;;  %v558_v47 = vadd.f32 %v557_v41, %v240_v45  ;;  %v629_v48 = vmul.f32 %v240_v45, %v240_v45  ;;  %v691_v49 = vadd.f32 %v690_v39, %v628_v38  ;;  %527 = vst [vmem:[%s1672_s2 + $0x180] sm:$0xff] %v1433_v46 }
 0x11b   :  { %v692_v51 = vadd.f32 %v691_v49, %v629_v48  ;;  %v900_v53 = vpop.f32.mrb[18].mxu0  ;;  %v559_v55 = vadd.f32 %v897_v40, %v558_v47  ;;  %v1442_v56 = vpop.f32.mrb[18].mxu1 }
 0x11c   :  { %498 = vst [vmem:[%s1672_s2 + $0x98] sm:$0xff] %v900_v53  ;;  %v250_v57 = vpop.f32.mrb[19].mxu0  ;;  %530 = vst [vmem:[%s1672_s2 + $0x198] sm:$0xff] %v1442_v56  ;;  %v1451_v58 = vpop.f32.mrb[19].mxu1  ;;  %v632_v63 = vmul.f32 %v900_v53, %v900_v53 }
 0x11d   :  { %497 = vst [vmem:[%s1672_s2 + $0x90] sm:$0xff] %v250_v57  ;;  %v560_v59 = vadd.f32 %v559_v55, %v250_v57  ;;  %v631_v60 = vmul.f32 %v250_v57, %v250_v57  ;;  %v693_v61 = vadd.f32 %v692_v51, %v630_v50  ;;  %529 = vst [vmem:[%s1672_s2 + $0x190] sm:$0xff] %v1451_v58 }
 0x11f   :  { %v694_v1 = vadd.f32 %v693_v61, %v631_v60  ;;  %v903_v2 = vpop.f32.mrb[20].mxu0  ;;  %v561_v3 = vadd.f32 %v900_v53, %v560_v59  ;;  %v1460_v4 = vpop.f32.mrb[20].mxu1 }
 0x120   :  { %500 = vst [vmem:[%s1672_s2 + $0xa8] sm:$0xff] %v903_v2  ;;  %v260_v5 = vpop.f32.mrb[21].mxu0  ;;  %532 = vst [vmem:[%s1672_s2 + $0x1a8] sm:$0xff] %v1460_v4  ;;  %v1469_v6 = vpop.f32.mrb[21].mxu1  ;;  %v634_v12 = vmul.f32 %v903_v2, %v903_v2 }
 0x121   :  { %499 = vst [vmem:[%s1672_s2 + $0xa0] sm:$0xff] %v260_v5  ;;  %v562_v7 = vadd.f32 %v561_v3, %v260_v5  ;;  %v633_v9 = vmul.f32 %v260_v5, %v260_v5  ;;  %v695_v11 = vadd.f32 %v694_v1, %v632_v63  ;;  %531 = vst [vmem:[%s1672_s2 + $0x1a0] sm:$0xff] %v1469_v6 }
 0x123   :  { %v696_v13 = vadd.f32 %v695_v11, %v633_v9  ;;  %v906_v14 = vpop.f32.mrb[22].mxu0  ;;  %v563_v15 = vadd.f32 %v903_v2, %v562_v7  ;;  %v1478_v16 = vpop.f32.mrb[22].mxu1 }
 0x124   :  { %502 = vst [vmem:[%s1672_s2 + $0xb8] sm:$0xff] %v906_v14  ;;  %v270_v17 = vpop.f32.mrb[23].mxu0  ;;  %534 = vst [vmem:[%s1672_s2 + $0x1b8] sm:$0xff] %v1478_v16  ;;  %v1487_v19 = vpop.f32.mrb[23].mxu1  ;;  %v636_v24 = vmul.f32 %v906_v14, %v906_v14 }
 0x125   :  { %501 = vst [vmem:[%s1672_s2 + $0xb0] sm:$0xff] %v270_v17  ;;  %v564_v21 = vadd.f32 %v563_v15, %v270_v17  ;;  %v635_v22 = vmul.f32 %v270_v17, %v270_v17  ;;  %v697_v23 = vadd.f32 %v696_v13, %v634_v12  ;;  %533 = vst [vmem:[%s1672_s2 + $0x1b0] sm:$0xff] %v1487_v19 }
 0x127   :  { %v698_v26 = vadd.f32 %v697_v23, %v635_v22  ;;  %v909_v27 = vpop.f32.mrb[24].mxu0  ;;  %v565_v29 = vadd.f32 %v906_v14, %v564_v21  ;;  %v1496_v31 = vpop.f32.mrb[24].mxu1 }
 0x128   :  { %504 = vst [vmem:[%s1672_s2 + $0xc8] sm:$0xff] %v909_v27  ;;  %v280_v34 = vpop.f32.mrb[25].mxu0  ;;  %536 = vst [vmem:[%s1672_s2 + $0x1c8] sm:$0xff] %v1496_v31  ;;  %v1505_v36 = vpop.f32.mrb[25].mxu1  ;;  %v638_v40 = vmul.f32 %v909_v27, %v909_v27 }
 0x129   :  { %503 = vst [vmem:[%s1672_s2 + $0xc0] sm:$0xff] %v280_v34  ;;  %v566_v37 = vadd.f32 %v565_v29, %v280_v34  ;;  %v637_v38 = vmul.f32 %v280_v34, %v280_v34  ;;  %v699_v39 = vadd.f32 %v698_v26, %v636_v24  ;;  %535 = vst [vmem:[%s1672_s2 + $0x1c0] sm:$0xff] %v1505_v36 }
 0x12a   :  { %v645_v29 = vmul.f32 %v1289_v28, %v1289_v28 }
 0x12b   :  { %v700_v41 = vadd.f32 %v699_v39, %v637_v38  ;;  %v912_v45 = vpop.f32.mrb[26].mxu0  ;;  %v567_v47 = vadd.f32 %v909_v27, %v566_v37  ;;  %v1514_v48 = vpop.f32.mrb[26].mxu1  ;;  %v646_v38 = vmul.f32 %v1280_v25, %v1280_v25 }
 0x12c   :  { %506 = vst [vmem:[%s1672_s2 + $0xd8] sm:$0xff] %v912_v45  ;;  %v290_v49 = vpop.f32.mrb[27].mxu0  ;;  %538 = vst [vmem:[%s1672_s2 + $0x1d8] sm:$0xff] %v1514_v48  ;;  %v1523_v50 = vpop.f32.mrb[27].mxu1  ;;  %v640_v57 = vmul.f32 %v912_v45, %v912_v45 }
 0x12d   :  { %505 = vst [vmem:[%s1672_s2 + $0xd0] sm:$0xff] %v290_v49  ;;  %v568_v51 = vadd.f32 %v567_v47, %v290_v49  ;;  %v639_v53 = vmul.f32 %v290_v49, %v290_v49  ;;  %v701_v55 = vadd.f32 %v700_v41, %v638_v40  ;;  %537 = vst [vmem:[%s1672_s2 + $0x1d0] sm:$0xff] %v1523_v50 }
 0x12e   :  { %v647_v41 = vmul.f32 %v1307_v35, %v1307_v35  ;;  %v648_v49 = vmul.f32 %v1298_v33, %v1298_v33 }
 0x12f   :  { %v702_v59 = vadd.f32 %v701_v55, %v639_v53  ;;  %v915_v60 = vpop.f32.mrb[28].mxu0  ;;  %v569_v61 = vadd.f32 %v912_v45, %v568_v51  ;;  %v1532_v63 = vpop.f32.mrb[28].mxu1 }
 0x130   :  { %508 = vst [vmem:[%s1672_s2 + $0xe8] sm:$0xff] %v915_v60  ;;  %v300_v1 = vpop.f32.mrb[29].mxu0  ;;  %540 = vst [vmem:[%s1672_s2 + $0x1e8] sm:$0xff] %v1532_v63  ;;  %v1541_v2 = vpop.f32.mrb[29].mxu1  ;;  %v642_v9 = vmul.f32 %v915_v60, %v915_v60 }
 0x131   :  { %507 = vst [vmem:[%s1672_s2 + $0xe0] sm:$0xff] %v300_v1  ;;  %v570_v3 = vadd.f32 %v569_v61, %v300_v1  ;;  %v641_v5 = vmul.f32 %v300_v1, %v300_v1  ;;  %v703_v7 = vadd.f32 %v702_v59, %v640_v57  ;;  %539 = vst [vmem:[%s1672_s2 + $0x1e0] sm:$0xff] %v1541_v2 }
 0x133   :  { %v704_v11 = vadd.f32 %v703_v7, %v641_v5  ;;  %v918_v12 = vpop.f32.mrb[30].mxu0  ;;  %v571_v13 = vadd.f32 %v915_v60, %v570_v3  ;;  %v1550_v14 = vpop.f32.mrb[30].mxu1 }
 0x134   :  { %510 = vst [vmem:[%s1672_s2 + $0xf8] sm:$0xff] %v918_v12  ;;  %v310_v15 = vpop.f32.mrb[31].mxu0  ;;  %542 = vst [vmem:[%s1672_s2 + $0x1f8] sm:$0xff] %v1550_v14  ;;  %v1559_v17 = vpop.f32.mrb[31].mxu1  ;;  %v644_v24 = vmul.f32 %v918_v12, %v918_v12 }
 0x135   :  { %509 = vst [vmem:[%s1672_s2 + $0xf0] sm:$0xff] %v310_v15  ;;  %v572_v21 = vadd.f32 %v571_v13, %v310_v15  ;;  %v643_v22 = vmul.f32 %v310_v15, %v310_v15  ;;  %v705_v23 = vadd.f32 %v704_v11, %v642_v9  ;;  %541 = vst [vmem:[%s1672_s2 + $0x1f0] sm:$0xff] %v1559_v17 }
 0x137   :  { %v573_v26 = vadd.f32 %v918_v12, %v572_v21  ;;  %v706_v27 = vadd.f32 %v705_v23, %v643_v22 }
 0x139   :  { %v707_v34 = vadd.f32 %v706_v27, %v644_v24  ;;  %v574_v37 = vadd.f32 %v573_v26, %v1289_v28  ;;  %v649_v28 = vmul.f32 %v1325_v44, %v1325_v44 }
 0x13b   :  { %v708_v39 = vadd.f32 %v707_v34, %v645_v29  ;;  %v575_v40 = vadd.f32 %v1280_v25, %v574_v37  ;;  %v650_v25 = vmul.f32 %v1316_v42, %v1316_v42 }
 0x13d   :  { %v576_v45 = vadd.f32 %v575_v40, %v1307_v35  ;;  %v709_v47 = vadd.f32 %v708_v39, %v646_v38  ;;  %v651_v35 = vmul.f32 %v1343_v54, %v1343_v54 }
 0x13f   :  { %v710_v51 = vadd.f32 %v709_v47, %v647_v41  ;;  %v577_v53 = vadd.f32 %v1298_v33, %v576_v45  ;;  %v652_v33 = vmul.f32 %v1334_v52, %v1334_v52 }
 0x141   :  { %v578_v55 = vadd.f32 %v577_v53, %v1325_v44  ;;  %v711_v57 = vadd.f32 %v710_v51, %v648_v49  ;;  %v653_v44 = vmul.f32 %v1361_v0, %v1361_v0 }
 0x143   :  { %v712_v59 = vadd.f32 %v711_v57, %v649_v28  ;;  %v579_v60 = vadd.f32 %v1316_v42, %v578_v55  ;;  %v654_v42 = vmul.f32 %v1352_v62, %v1352_v62 }
 0x145   :  { %v580_v61 = vadd.f32 %v579_v60, %v1343_v54  ;;  %v713_v1 = vadd.f32 %v712_v59, %v650_v25  ;;  %v655_v54 = vmul.f32 %v1379_v10, %v1379_v10 }
 0x147   :  { %v714_v3 = vadd.f32 %v713_v1, %v651_v35  ;;  %v581_v5 = vadd.f32 %v1334_v52, %v580_v61  ;;  %v656_v52 = vmul.f32 %v1370_v8, %v1370_v8 }
 0x149   :  { %v582_v7 = vadd.f32 %v581_v5, %v1361_v0  ;;  %v715_v9 = vadd.f32 %v714_v3, %v652_v33  ;;  %v657_v0 = vmul.f32 %v1397_v20, %v1397_v20 }
 0x14b   :  { %v716_v11 = vadd.f32 %v715_v9, %v653_v44  ;;  %v583_v12 = vadd.f32 %v1352_v62, %v582_v7  ;;  %v658_v62 = vmul.f32 %v1388_v18, %v1388_v18 }
 0x14d   :  { %v584_v13 = vadd.f32 %v583_v12, %v1379_v10  ;;  %v717_v15 = vadd.f32 %v716_v11, %v654_v42  ;;  %v659_v10 = vmul.f32 %v1415_v32, %v1415_v32 }
 0x14f   :  { %v718_v21 = vadd.f32 %v717_v15, %v655_v54  ;;  %v585_v22 = vadd.f32 %v1370_v8, %v584_v13  ;;  %v660_v8 = vmul.f32 %v1406_v30, %v1406_v30 }
 0x151   :  { %v586_v23 = vadd.f32 %v585_v22, %v1397_v20  ;;  %v719_v24 = vadd.f32 %v718_v21, %v656_v52  ;;  %v661_v20 = vmul.f32 %v1433_v46, %v1433_v46 }
 0x153   :  { %v720_v26 = vadd.f32 %v719_v24, %v657_v0  ;;  %v587_v27 = vadd.f32 %v1388_v18, %v586_v23  ;;  %v662_v18 = vmul.f32 %v1424_v43, %v1424_v43 }
 0x155   :  { %v588_v29 = vadd.f32 %v587_v27, %v1415_v32  ;;  %v721_v34 = vadd.f32 %v720_v26, %v658_v62  ;;  %v663_v32 = vmul.f32 %v1451_v58, %v1451_v58 }
 0x157   :  { %v722_v37 = vadd.f32 %v721_v34, %v659_v10  ;;  %v589_v38 = vadd.f32 %v1406_v30, %v588_v29  ;;  %v664_v30 = vmul.f32 %v1442_v56, %v1442_v56 }
 0x159   :  { %v590_v39 = vadd.f32 %v589_v38, %v1433_v46  ;;  %v723_v40 = vadd.f32 %v722_v37, %v660_v8  ;;  %v665_v46 = vmul.f32 %v1469_v6, %v1469_v6 }
 0x15b   :  { %v724_v41 = vadd.f32 %v723_v40, %v661_v20  ;;  %v591_v45 = vadd.f32 %v1424_v43, %v590_v39  ;;  %v666_v43 = vmul.f32 %v1460_v4, %v1460_v4 }
 0x15d   :  { %v592_v47 = vadd.f32 %v591_v45, %v1451_v58  ;;  %v725_v49 = vadd.f32 %v724_v41, %v662_v18  ;;  %v667_v58 = vmul.f32 %v1487_v19, %v1487_v19 }
 0x15f   :  { %v726_v51 = vadd.f32 %v725_v49, %v663_v32  ;;  %v593_v53 = vadd.f32 %v1442_v56, %v592_v47  ;;  %v668_v56 = vmul.f32 %v1478_v16, %v1478_v16 }
 0x161   :  { %v594_v28 = vadd.f32 %v593_v53, %v1469_v6  ;;  %v727_v55 = vadd.f32 %v726_v51, %v664_v30  ;;  %v669_v6 = vmul.f32 %v1505_v36, %v1505_v36 }
 0x163   :  { %v728_v57 = vadd.f32 %v727_v55, %v665_v46  ;;  %v595_v25 = vadd.f32 %v1460_v4, %v594_v28  ;;  %v670_v4 = vmul.f32 %v1496_v31, %v1496_v31 }
 0x165   :  { %v596_v59 = vadd.f32 %v595_v25, %v1487_v19  ;;  %v729_v60 = vadd.f32 %v728_v57, %v666_v43  ;;  %v671_v19 = vmul.f32 %v1523_v50, %v1523_v50 }
 0x167   :  { %v730_v35 = vadd.f32 %v729_v60, %v667_v58  ;;  %v597_v61 = vadd.f32 %v1478_v16, %v596_v59  ;;  %v672_v16 = vmul.f32 %v1514_v48, %v1514_v48 }
 0x169   :  { %v598_v1 = vadd.f32 %v597_v61, %v1505_v36  ;;  %v731_v33 = vadd.f32 %v730_v35, %v668_v56  ;;  %v673_v36 = vmul.f32 %v1541_v2, %v1541_v2 }
 0x16b   :  { %v732_v3 = vadd.f32 %v731_v33, %v669_v6  ;;  %v599_v5 = vadd.f32 %v1496_v31, %v598_v1  ;;  %v674_v31 = vmul.f32 %v1532_v63, %v1532_v63 }
 0x16d   :  { %v600_v44 = vadd.f32 %v599_v5, %v1523_v50  ;;  %v733_v7 = vadd.f32 %v732_v3, %v670_v4  ;;  %v675_v50 = vmul.f32 %v1559_v17, %v1559_v17 }
 0x16f   :  { %v734_v9 = vadd.f32 %v733_v7, %v671_v19  ;;  %v601_v42 = vadd.f32 %v1514_v48, %v600_v44  ;;  %v676_v48 = vmul.f32 %v1550_v14, %v1550_v14 }
 0x171   :  { %v602_v11 = vadd.f32 %v601_v42, %v1541_v2  ;;  %v735_v12 = vadd.f32 %v734_v9, %v672_v16 }
 0x173   :  { %v736_v54 = vadd.f32 %v735_v12, %v673_v36  ;;  %v603_v13 = vadd.f32 %v1532_v63, %v602_v11 }
 0x175   :  { %v604_v15 = vadd.f32 %v603_v13, %v1559_v17  ;;  %v737_v52 = vadd.f32 %v736_v54, %v674_v31 }
 0x177   :  { %v605_v21 = vadd.f32 %v1550_v14, %v604_v15  ;;  %v738_v22 = vadd.f32 %v737_v52, %v675_v50 }
 0x179   :  { %v606_v2 = vrot.slane %v605_v21, 4  ;;  %v739_v0 = vadd.f32 %v738_v22, %v676_v48 }
 0x17b   :  { %v607_v23 = vadd.f32 %v606_v2, %v605_v21  ;;  %v740_v24 = vrot.slane %v739_v0, 4 }
 0x17d   :  { %v608_v62 = vrot.slane %v607_v23, 2  ;;  %v741_v26 = vadd.f32 %v740_v24, %v739_v0 }
 0x17f   :  { %v609_v27 = vadd.f32 %v608_v62, %v607_v23  ;;  %v742_v63 = vrot.slane %v741_v26, 2 }
 0x181   :  { %v610_v10 = vrot.slane %v609_v27, 1  ;;  %v743_v29 = vadd.f32 %v742_v63, %v741_v26 }
 0x183   :  { %v611_v34 = vadd.f32 %v610_v10, %v609_v27  ;;  %v744_v8 = vrot.slane %v743_v29, 1 }
 0x185   :  { %612 = vst [vmem:[%s1673_s3] sm:$0x1] %v611_v34  ;;  %v745_v17 = vadd.f32 %v744_v8, %v743_v29 }
 0x187   :  { %746 = vst [vmem:[%s1674_s4] sm:$0x1] %v745_v17 }

// kernel: bottleneck_forward.7
= control target key start
LH: loop header
LB: loop body
LE: loop exit
PB: predicated region body
PF: predicated region fallthrough
CT: control target
= control target key end

     0   :  { %s1087_s0 = inlined_call_operand.vmem [shape: f32[512,128], index: 0, kind: input, shape index: {}]   ;;  %s1088_s1 = inlined_call_operand.vmem [shape: f32[1,128], index: 1, kind: input, shape index: {}]   ;;  %s1089_s2 = inlined_call_operand.vmem [shape: f32[1,128], index: 2, kind: input, shape index: {}]   ;;  %s1090_s3 = inlined_call_operand.vmem [shape: f32[512,128], index: 3, kind: input, shape index: {}]   ;;  %s1091_s4 = inlined_call_operand.hbm [shape: f32[512,128], index: 4, kind: output, shape index: {}]  }
   0x1   :  { %v18_v0 = vld [vmem:[%s1087_s0] sm:$0xff]  ;;  %v19_v4 = vld [vmem:[%s1087_s0 + $0x8] sm:$0xff]  ;;  %v20_v7 = vld [vmem:[%s1087_s0 + $0x10] sm:$0xff] }
   0x2   :  { %v559_v1 = vld [vmem:[%s1088_s1] ss:$0 sm:$0xff]  ;;  %v21_v8 = vld [vmem:[%s1087_s0 + $0x18] sm:$0xff]  ;;  %v225_v10 = vld [vmem:[%s1090_s3 + $0x8] sm:$0xff] }
   0x3   :  { %v564_v2 = vld [vmem:[%s1089_s2] ss:$0 sm:$0xff]  ;;  %v89_v3 = vmul.f32 %v559_v1, %v18_v0  ;;  %v90_v6 = vmul.f32 %v559_v1, %v19_v4  ;;  %v91_v11 = vmul.f32 %v559_v1, %v20_v7  ;;  %v226_v12 = vld [vmem:[%s1090_s3 + $0x10] sm:$0xff]  ;;  %v92_v13 = vmul.f32 %v559_v1, %v21_v8  ;;  %v227_v16 = vld [vmem:[%s1090_s3 + $0x18] sm:$0xff] }
   0x4   :  { %v224_v5 = vld [vmem:[%s1090_s3] sm:$0xff]  ;;  %v23_v18 = vld [vmem:[%s1087_s0 + $0x28] sm:$0xff]  ;;  %v24_v19 = vld [vmem:[%s1087_s0 + $0x30] sm:$0xff] }
   0x5   :  { %v160_v9 = vadd.f32 %v564_v2, %v89_v3  ;;  %v22_v14 = vld [vmem:[%s1087_s0 + $0x20] sm:$0xff]  ;;  %v161_v15 = vadd.f32 %v564_v2, %v90_v6  ;;  %v162_v21 = vadd.f32 %v564_v2, %v91_v11  ;;  %v163_v22 = vadd.f32 %v564_v2, %v92_v13  ;;  %v25_v25 = vld [vmem:[%s1087_s0 + $0x38] sm:$0xff]  ;;  %v229_v28 = vld [vmem:[%s1090_s3 + $0x28] sm:$0xff] }
   0x6   :  { %v93_v17 = vmul.f32 %v559_v1, %v22_v14  ;;  %v228_v23 = vld [vmem:[%s1090_s3 + $0x20] sm:$0xff]  ;;  %v94_v24 = vmul.f32 %v559_v1, %v23_v18  ;;  %v95_v29 = vmul.f32 %v559_v1, %v24_v19  ;;  %v96_v30 = vmul.f32 %v559_v1, %v25_v25  ;;  %v230_v36 = vld [vmem:[%s1090_s3 + $0x30] sm:$0xff]  ;;  %v231_v37 = vld [vmem:[%s1090_s3 + $0x38] sm:$0xff] }
   0x7   :  { %v288_v20 = vadd.f32 %v224_v5, %v160_v9  ;;  %v289_v26 = vadd.f32 %v225_v10, %v161_v15  ;;  %v26_v31 = vld [vmem:[%s1087_s0 + $0x40] sm:$0xff]  ;;  %v290_v33 = vadd.f32 %v226_v12, %v162_v21  ;;  %v291_v34 = vadd.f32 %v227_v16, %v163_v22  ;;  %v27_v38 = vld [vmem:[%s1087_s0 + $0x48] sm:$0xff]  ;;  %v28_v43 = vld [vmem:[%s1087_s0 + $0x50] sm:$0xff] }
   0x8   :  { %v164_v27 = vadd.f32 %v564_v2, %v93_v17  ;;  %v165_v35 = vadd.f32 %v564_v2, %v94_v24  ;;  %v166_v41 = vadd.f32 %v564_v2, %v95_v29  ;;  %v167_v42 = vadd.f32 %v564_v2, %v96_v30  ;;  %v29_v44 = vld [vmem:[%s1087_s0 + $0x58] sm:$0xff]  ;;  %v30_v49 = vld [vmem:[%s1087_s0 + $0x60] sm:$0xff]  ;;  %v31_v55 = vld [vmem:[%s1087_s0 + $0x68] sm:$0xff] }
   0x9   :  { %v352_v32 = vmax.f32 %v288_v20, 0.0  ;;  %v353_v39 = vmax.f32 %v289_v26, 0.0  ;;  %v354_v45 = vmax.f32 %v290_v33, 0.0  ;;  %v355_v46 = vmax.f32 %v291_v34, 0.0  ;;  %v232_v53 = vld [vmem:[%s1090_s3 + $0x40] sm:$0xff]  ;;  %v233_v58 = vld [vmem:[%s1090_s3 + $0x48] sm:$0xff] }
   0xa   :  { %v292_v40 = vadd.f32 %v228_v23, %v164_v27  ;;  %v293_v47 = vadd.f32 %v229_v28, %v165_v35  ;;  %v97_v48 = vmul.f32 %v559_v1, %v26_v31  ;;  %v294_v51 = vadd.f32 %v230_v36, %v166_v41  ;;  %v32_v61 = vld [vmem:[%s1087_s0 + $0x70] sm:$0xff]  ;;  %v33_v62 = vld [vmem:[%s1087_s0 + $0x78] sm:$0xff]  ;;  %v236_v10 = vld [vmem:[%s1090_s3 + $0x60] sm:$0xff] }
   0xb   :  { %416 = vst [vmem:[#allocation2] sm:$0xff] %v352_v32  ;;  %417 = vst [vmem:[#allocation2 + $0x8] sm:$0xff] %v353_v39  ;;  %v295_v52 = vadd.f32 %v231_v37, %v167_v42  ;;  %v98_v54 = vmul.f32 %v559_v1, %v27_v38  ;;  %v99_v59 = vmul.f32 %v559_v1, %v28_v43  ;;  %v234_v4 = vld [vmem:[%s1090_s3 + $0x50] sm:$0xff]  ;;  %v235_v5 = vld [vmem:[%s1090_s3 + $0x58] sm:$0xff] }
   0xc   :  { %v356_v50 = vmax.f32 %v292_v40, 0.0  ;;  %418 = vst [vmem:[#allocation2 + $0x10] sm:$0xff] %v354_v45  ;;  %419 = vst [vmem:[#allocation2 + $0x18] sm:$0xff] %v355_v46  ;;  %v357_v56 = vmax.f32 %v293_v47, 0.0  ;;  %v168_v57 = vadd.f32 %v564_v2, %v97_v48  ;;  %v100_v60 = vmul.f32 %v559_v1, %v29_v44  ;;  %v237_v14 = vld [vmem:[%s1090_s3 + $0x68] sm:$0xff]  ;;  %v34_v17 = vld [vmem:[%s1087_s0 + $0x80] sm:$0xff] }
   0xd   :  { %v358_v63 = vmax.f32 %v294_v51, 0.0  ;;  %v359_v0 = vmax.f32 %v295_v52, 0.0  ;;  %v169_v3 = vadd.f32 %v564_v2, %v98_v54  ;;  %v101_v6 = vmul.f32 %v559_v1, %v30_v49  ;;  %v238_v22 = vld [vmem:[%s1090_s3 + $0x70] sm:$0xff]  ;;  %v239_v23 = vld [vmem:[%s1090_s3 + $0x78] sm:$0xff]  ;;  %v35_v24 = vld [vmem:[%s1087_s0 + $0x88] sm:$0xff] }
   0xe   :  { %420 = vst [vmem:[#allocation2 + $0x20] sm:$0xff] %v356_v50  ;;  %421 = vst [vmem:[#allocation2 + $0x28] sm:$0xff] %v357_v56  ;;  %v296_v7 = vadd.f32 %v232_v53, %v168_v57  ;;  %v170_v8 = vadd.f32 %v564_v2, %v99_v59  ;;  %v171_v9 = vadd.f32 %v564_v2, %v100_v60  ;;  %v36_v29 = vld [vmem:[%s1087_s0 + $0x90] sm:$0xff]  ;;  %v37_v30 = vld [vmem:[%s1087_s0 + $0x98] sm:$0xff] }
   0xf   :  { %v102_v11 = vmul.f32 %v559_v1, %v31_v55  ;;  %422 = vst [vmem:[#allocation2 + $0x30] sm:$0xff] %v358_v63  ;;  %423 = vst [vmem:[#allocation2 + $0x38] sm:$0xff] %v359_v0  ;;  %v297_v12 = vadd.f32 %v233_v58, %v169_v3  ;;  %v172_v13 = vadd.f32 %v564_v2, %v101_v6  ;;  %v38_v35 = vld [vmem:[%s1087_s0 + $0xa0] sm:$0xff]  ;;  %v39_v41 = vld [vmem:[%s1087_s0 + $0xa8] sm:$0xff] }
  0x10   :  { %v103_v15 = vmul.f32 %v559_v1, %v32_v61  ;;  %v104_v16 = vmul.f32 %v559_v1, %v33_v62  ;;  %v360_v18 = vmax.f32 %v296_v7, 0.0  ;;  %v298_v19 = vadd.f32 %v234_v4, %v170_v8  ;;  %v240_v39 = vld [vmem:[%s1090_s3 + $0x80] sm:$0xff]  ;;  %v241_v44 = vld [vmem:[%s1090_s3 + $0x88] sm:$0xff]  ;;  %v40_v47 = vld [vmem:[%s1087_s0 + $0xb0] sm:$0xff] }
  0x11   :  { %v299_v20 = vadd.f32 %v235_v5, %v171_v9  ;;  %v173_v21 = vadd.f32 %v564_v2, %v102_v11  ;;  %v361_v25 = vmax.f32 %v297_v12, 0.0  ;;  %v300_v26 = vadd.f32 %v236_v10, %v172_v13  ;;  %v41_v48 = vld [vmem:[%s1087_s0 + $0xb8] sm:$0xff]  ;;  %v242_v52 = vld [vmem:[%s1090_s3 + $0x90] sm:$0xff]  ;;  %v244_v58 = vld [vmem:[%s1090_s3 + $0xa0] sm:$0xff] }
  0x12   :  { %v174_v27 = vadd.f32 %v564_v2, %v103_v15  ;;  %v175_v28 = vadd.f32 %v564_v2, %v104_v16  ;;  %424 = vst [vmem:[#allocation2 + $0x40] sm:$0xff] %v360_v18  ;;  %v362_v31 = vmax.f32 %v298_v19, 0.0  ;;  %v105_v34 = vmul.f32 %v559_v1, %v34_v17  ;;  %v243_v53 = vld [vmem:[%s1090_s3 + $0x98] sm:$0xff]  ;;  %v245_v62 = vld [vmem:[%s1090_s3 + $0xa8] sm:$0xff]  ;;  %v42_v3 = vld [vmem:[%s1087_s0 + $0xc0] sm:$0xff] }
  0x13   :  { %v363_v32 = vmax.f32 %v299_v20, 0.0  ;;  %v301_v33 = vadd.f32 %v237_v14, %v173_v21  ;;  %425 = vst [vmem:[#allocation2 + $0x48] sm:$0xff] %v361_v25  ;;  %v364_v36 = vmax.f32 %v300_v26, 0.0  ;;  %v106_v40 = vmul.f32 %v559_v1, %v35_v24  ;;  %v246_v8 = vld [vmem:[%s1090_s3 + $0xb0] sm:$0xff]  ;;  %v247_v9 = vld [vmem:[%s1090_s3 + $0xb8] sm:$0xff]  ;;  %v43_v10 = vld [vmem:[%s1087_s0 + $0xc8] sm:$0xff] }
  0x14   :  { %v302_v37 = vadd.f32 %v238_v22, %v174_v27  ;;  %v303_v38 = vadd.f32 %v239_v23, %v175_v28  ;;  %426 = vst [vmem:[#allocation2 + $0x50] sm:$0xff] %v362_v31  ;;  %v176_v43 = vadd.f32 %v564_v2, %v105_v34  ;;  %v107_v45 = vmul.f32 %v559_v1, %v36_v29  ;;  %v44_v15 = vld [vmem:[%s1087_s0 + $0xd0] sm:$0xff]  ;;  %v45_v16 = vld [vmem:[%s1087_s0 + $0xd8] sm:$0xff]  ;;  %v46_v21 = vld [vmem:[%s1087_s0 + $0xe0] sm:$0xff] }
  0x15   :  { %427 = vst [vmem:[#allocation2 + $0x58] sm:$0xff] %v363_v32  ;;  %v365_v42 = vmax.f32 %v301_v33, 0.0  ;;  %v108_v46 = vmul.f32 %v559_v1, %v37_v30  ;;  %428 = vst [vmem:[#allocation2 + $0x60] sm:$0xff] %v364_v36  ;;  %v177_v51 = vadd.f32 %v564_v2, %v106_v40  ;;  %v109_v54 = vmul.f32 %v559_v1, %v38_v35  ;;  %v248_v25 = vld [vmem:[%s1090_s3 + $0xc0] sm:$0xff]  ;;  %v47_v27 = vld [vmem:[%s1087_s0 + $0xe8] sm:$0xff] }
  0x16   :  { %v366_v49 = vmax.f32 %v302_v37, 0.0  ;;  %v367_v50 = vmax.f32 %v303_v38, 0.0  ;;  %v304_v55 = vadd.f32 %v240_v39, %v176_v43  ;;  %v178_v56 = vadd.f32 %v564_v2, %v107_v45  ;;  %v249_v30 = vld [vmem:[%s1090_s3 + $0xc8] sm:$0xff]  ;;  %v48_v33 = vld [vmem:[%s1087_s0 + $0xf0] sm:$0xff]  ;;  %v49_v34 = vld [vmem:[%s1087_s0 + $0xf8] sm:$0xff] }
  0x17   :  { %429 = vst [vmem:[#allocation2 + $0x68] sm:$0xff] %v365_v42  ;;  %v179_v57 = vadd.f32 %v564_v2, %v108_v46  ;;  %v110_v59 = vmul.f32 %v559_v1, %v39_v41  ;;  %v305_v60 = vadd.f32 %v241_v44, %v177_v51  ;;  %v180_v61 = vadd.f32 %v564_v2, %v109_v54  ;;  %v250_v38 = vld [vmem:[%s1090_s3 + $0xd0] sm:$0xff]  ;;  %v251_v39 = vld [vmem:[%s1090_s3 + $0xd8] sm:$0xff]  ;;  %v252_v44 = vld [vmem:[%s1090_s3 + $0xe0] sm:$0xff] }
  0x18   :  { %430 = vst [vmem:[#allocation2 + $0x70] sm:$0xff] %v366_v49  ;;  %431 = vst [vmem:[#allocation2 + $0x78] sm:$0xff] %v367_v50  ;;  %v111_v63 = vmul.f32 %v559_v1, %v40_v47  ;;  %v112_v0 = vmul.f32 %v559_v1, %v41_v48  ;;  %v368_v4 = vmax.f32 %v304_v55, 0.0  ;;  %v306_v5 = vadd.f32 %v242_v52, %v178_v56  ;;  %v253_v48 = vld [vmem:[%s1090_s3 + $0xe8] sm:$0xff]  ;;  %v50_v51 = vld [vmem:[%s1087_s0 + $0x100] sm:$0xff] }
  0x19   :  { %v307_v6 = vadd.f32 %v243_v53, %v179_v57  ;;  %v181_v7 = vadd.f32 %v564_v2, %v110_v59  ;;  %v369_v11 = vmax.f32 %v305_v60, 0.0  ;;  %v308_v12 = vadd.f32 %v244_v58, %v180_v61  ;;  %v254_v56 = vld [vmem:[%s1090_s3 + $0xf0] sm:$0xff]  ;;  %v255_v57 = vld [vmem:[%s1090_s3 + $0xf8] sm:$0xff]  ;;  %v51_v58 = vld [vmem:[%s1087_s0 + $0x108] sm:$0xff] }
  0x1a   :  { %v182_v13 = vadd.f32 %v564_v2, %v111_v63  ;;  %v183_v14 = vadd.f32 %v564_v2, %v112_v0  ;;  %432 = vst [vmem:[#allocation2 + $0x80] sm:$0xff] %v368_v4  ;;  %v370_v17 = vmax.f32 %v306_v5, 0.0  ;;  %v113_v20 = vmul.f32 %v559_v1, %v42_v3  ;;  %v52_v63 = vld [vmem:[%s1087_s0 + $0x110] sm:$0xff]  ;;  %v53_v0 = vld [vmem:[%s1087_s0 + $0x118] sm:$0xff] }
  0x1b   :  { %v371_v18 = vmax.f32 %v307_v6, 0.0  ;;  %v309_v19 = vadd.f32 %v245_v62, %v181_v7  ;;  %433 = vst [vmem:[#allocation2 + $0x88] sm:$0xff] %v369_v11  ;;  %v372_v22 = vmax.f32 %v308_v12, 0.0  ;;  %v114_v26 = vmul.f32 %v559_v1, %v43_v10  ;;  %v54_v7 = vld [vmem:[%s1087_s0 + $0x120] sm:$0xff] }
  0x1c   :  { %v310_v23 = vadd.f32 %v246_v8, %v182_v13  ;;  %v311_v24 = vadd.f32 %v247_v9, %v183_v14  ;;  %434 = vst [vmem:[#allocation2 + $0x90] sm:$0xff] %v370_v17  ;;  %v184_v29 = vadd.f32 %v564_v2, %v113_v20  ;;  %v115_v31 = vmul.f32 %v559_v1, %v44_v15  ;;  %v256_v11 = vld [vmem:[%s1090_s3 + $0x100] sm:$0xff]  ;;  %v55_v13 = vld [vmem:[%s1087_s0 + $0x128] sm:$0xff]  ;;  %v57_v20 = vld [vmem:[%s1087_s0 + $0x138] sm:$0xff] }
  0x1d   :  { %435 = vst [vmem:[#allocation2 + $0x98] sm:$0xff] %v371_v18  ;;  %v373_v28 = vmax.f32 %v309_v19, 0.0  ;;  %v116_v32 = vmul.f32 %v559_v1, %v45_v16  ;;  %436 = vst [vmem:[#allocation2 + $0xa0] sm:$0xff] %v372_v22  ;;  %v185_v37 = vadd.f32 %v564_v2, %v114_v26  ;;  %v117_v40 = vmul.f32 %v559_v1, %v46_v21  ;;  %v257_v16 = vld [vmem:[%s1090_s3 + $0x108] sm:$0xff]  ;;  %v56_v19 = vld [vmem:[%s1087_s0 + $0x130] sm:$0xff] }
  0x1e   :  { %v374_v35 = vmax.f32 %v310_v23, 0.0  ;;  %v375_v36 = vmax.f32 %v311_v24, 0.0  ;;  %v312_v41 = vadd.f32 %v248_v25, %v184_v29  ;;  %v186_v42 = vadd.f32 %v564_v2, %v115_v31  ;;  %v258_v24 = vld [vmem:[%s1090_s3 + $0x110] sm:$0xff]  ;;  %v259_v25 = vld [vmem:[%s1090_s3 + $0x118] sm:$0xff] }
  0x1f   :  { %437 = vst [vmem:[#allocation2 + $0xa8] sm:$0xff] %v373_v28  ;;  %v187_v43 = vadd.f32 %v564_v2, %v116_v32  ;;  %v118_v45 = vmul.f32 %v559_v1, %v47_v27  ;;  %v313_v46 = vadd.f32 %v249_v30, %v185_v37  ;;  %v188_v47 = vadd.f32 %v564_v2, %v117_v40  ;;  %v260_v30 = vld [vmem:[%s1090_s3 + $0x120] sm:$0xff] }
  0x20   :  { %438 = vst [vmem:[#allocation2 + $0xb0] sm:$0xff] %v374_v35  ;;  %439 = vst [vmem:[#allocation2 + $0xb8] sm:$0xff] %v375_v36  ;;  %v119_v49 = vmul.f32 %v559_v1, %v48_v33  ;;  %v120_v50 = vmul.f32 %v559_v1, %v49_v34  ;;  %v376_v52 = vmax.f32 %v312_v41, 0.0  ;;  %v314_v53 = vadd.f32 %v250_v38, %v186_v42  ;;  %v261_v34 = vld [vmem:[%s1090_s3 + $0x128] sm:$0xff]  ;;  %v58_v37 = vld [vmem:[%s1087_s0 + $0x140] sm:$0xff] }
  0x21   :  { %v315_v54 = vadd.f32 %v251_v39, %v187_v43  ;;  %v189_v55 = vadd.f32 %v564_v2, %v118_v45  ;;  %v377_v59 = vmax.f32 %v313_v46, 0.0  ;;  %v316_v60 = vadd.f32 %v252_v44, %v188_v47  ;;  %v262_v42 = vld [vmem:[%s1090_s3 + $0x130] sm:$0xff]  ;;  %v263_v43 = vld [vmem:[%s1090_s3 + $0x138] sm:$0xff]  ;;  %v59_v44 = vld [vmem:[%s1087_s0 + $0x148] sm:$0xff] }
  0x22   :  { %v190_v61 = vadd.f32 %v564_v2, %v119_v49  ;;  %v191_v62 = vadd.f32 %v564_v2, %v120_v50  ;;  %440 = vst [vmem:[#allocation2 + $0xc0] sm:$0xff] %v376_v52  ;;  %v378_v3 = vmax.f32 %v314_v53, 0.0  ;;  %v121_v6 = vmul.f32 %v559_v1, %v50_v51  ;;  %v60_v49 = vld [vmem:[%s1087_s0 + $0x150] sm:$0xff]  ;;  %v61_v50 = vld [vmem:[%s1087_s0 + $0x158] sm:$0xff] }
  0x23   :  { %v379_v4 = vmax.f32 %v315_v54, 0.0  ;;  %v317_v5 = vadd.f32 %v253_v48, %v189_v55  ;;  %441 = vst [vmem:[#allocation2 + $0xc8] sm:$0xff] %v377_v59  ;;  %v380_v8 = vmax.f32 %v316_v60, 0.0  ;;  %v122_v12 = vmul.f32 %v559_v1, %v51_v58  ;;  %v62_v55 = vld [vmem:[%s1087_s0 + $0x160] sm:$0xff] }
  0x24   :  { %v318_v9 = vadd.f32 %v254_v56, %v190_v61  ;;  %v319_v10 = vadd.f32 %v255_v57, %v191_v62  ;;  %442 = vst [vmem:[#allocation2 + $0xd0] sm:$0xff] %v378_v3  ;;  %v192_v15 = vadd.f32 %v564_v2, %v121_v6  ;;  %v123_v17 = vmul.f32 %v559_v1, %v52_v63  ;;  %v264_v59 = vld [vmem:[%s1090_s3 + $0x140] sm:$0xff]  ;;  %v265_v61 = vld [vmem:[%s1090_s3 + $0x148] sm:$0xff]  ;;  %v65_v6 = vld [vmem:[%s1087_s0 + $0x178] sm:$0xff] }
  0x25   :  { %443 = vst [vmem:[#allocation2 + $0xd8] sm:$0xff] %v379_v4  ;;  %v381_v14 = vmax.f32 %v317_v5, 0.0  ;;  %v124_v18 = vmul.f32 %v559_v1, %v53_v0  ;;  %444 = vst [vmem:[#allocation2 + $0xe0] sm:$0xff] %v380_v8  ;;  %v193_v23 = vadd.f32 %v564_v2, %v122_v12  ;;  %v125_v26 = vmul.f32 %v559_v1, %v54_v7  ;;  %v63_v62 = vld [vmem:[%s1087_s0 + $0x168] sm:$0xff]  ;;  %v64_v5 = vld [vmem:[%s1087_s0 + $0x170] sm:$0xff] }
  0x26   :  { %v382_v21 = vmax.f32 %v318_v9, 0.0  ;;  %v383_v22 = vmax.f32 %v319_v10, 0.0  ;;  %v320_v27 = vadd.f32 %v256_v11, %v192_v15  ;;  %v194_v28 = vadd.f32 %v564_v2, %v123_v17 }
  0x27   :  { %445 = vst [vmem:[#allocation2 + $0xe8] sm:$0xff] %v381_v14  ;;  %v195_v29 = vadd.f32 %v564_v2, %v124_v18  ;;  %v126_v31 = vmul.f32 %v559_v1, %v55_v13  ;;  %v321_v32 = vadd.f32 %v257_v16, %v193_v23  ;;  %v196_v33 = vadd.f32 %v564_v2, %v125_v26 }
  0x28   :  { %446 = vst [vmem:[#allocation2 + $0xf0] sm:$0xff] %v382_v21  ;;  %447 = vst [vmem:[#allocation2 + $0xf8] sm:$0xff] %v383_v22  ;;  %v127_v35 = vmul.f32 %v559_v1, %v56_v19  ;;  %v128_v36 = vmul.f32 %v559_v1, %v57_v20  ;;  %v384_v38 = vmax.f32 %v320_v27, 0.0  ;;  %v322_v39 = vadd.f32 %v258_v24, %v194_v28 }
  0x29   :  { %v323_v40 = vadd.f32 %v259_v25, %v195_v29  ;;  %v197_v41 = vadd.f32 %v564_v2, %v126_v31  ;;  %v385_v45 = vmax.f32 %v321_v32, 0.0  ;;  %v324_v46 = vadd.f32 %v260_v30, %v196_v33 }
  0x2a   :  { %v198_v47 = vadd.f32 %v564_v2, %v127_v35  ;;  %v199_v48 = vadd.f32 %v564_v2, %v128_v36  ;;  %448 = vst [vmem:[#allocation2 + $0x100] sm:$0xff] %v384_v38  ;;  %v386_v51 = vmax.f32 %v322_v39, 0.0  ;;  %v129_v54 = vmul.f32 %v559_v1, %v58_v37 }
  0x2b   :  { %v387_v52 = vmax.f32 %v323_v40, 0.0  ;;  %v325_v53 = vadd.f32 %v261_v34, %v197_v41  ;;  %449 = vst [vmem:[#allocation2 + $0x108] sm:$0xff] %v385_v45  ;;  %v388_v56 = vmax.f32 %v324_v46, 0.0  ;;  %v130_v60 = vmul.f32 %v559_v1, %v59_v44 }
  0x2c   :  { %v326_v57 = vadd.f32 %v262_v42, %v198_v47  ;;  %v327_v58 = vadd.f32 %v263_v43, %v199_v48  ;;  %450 = vst [vmem:[#allocation2 + $0x110] sm:$0xff] %v386_v51  ;;  %v200_v0 = vadd.f32 %v564_v2, %v129_v54  ;;  %v131_v3 = vmul.f32 %v559_v1, %v60_v49 }
  0x2d   :  { %451 = vst [vmem:[#allocation2 + $0x118] sm:$0xff] %v387_v52  ;;  %v389_v63 = vmax.f32 %v325_v53, 0.0  ;;  %v132_v4 = vmul.f32 %v559_v1, %v61_v50 }
  0x2e   :  { %9 = vsyncpa [#allocation3], 0  ;;  %452 = vst [vmem:[#allocation2 + $0x120] sm:$0xff] %v388_v56  ;;  %v390_v7 = vmax.f32 %v326_v57, 0.0  ;;  %v391_v8 = vmax.f32 %v327_v58, 0.0  ;;  %v201_v9 = vadd.f32 %v564_v2, %v130_v60  ;;  %v266_v10 = vld [vmem:[%s1090_s3 + $0x150] sm:$0xff]  ;;  %v133_v12 = vmul.f32 %v559_v1, %v62_v55 }
  0x2f   :  { %v267_v11 = vld [vmem:[%s1090_s3 + $0x158] sm:$0xff]  ;;  %453 = vst [vmem:[#allocation2 + $0x128] sm:$0xff] %v389_v63  ;;  %v328_v13 = vadd.f32 %v264_v59, %v200_v0  ;;  %v202_v14 = vadd.f32 %v564_v2, %v131_v3  ;;  %v203_v15 = vadd.f32 %v564_v2, %v132_v4  ;;  %v268_v16 = vld [vmem:[%s1090_s3 + $0x160] sm:$0xff]  ;;  %v134_v17 = vmul.f32 %v559_v1, %v63_v62  ;;  %v269_v20 = vld [vmem:[%s1090_s3 + $0x168] sm:$0xff]  ;;  %s525_s22 = smov [#allocation2]  }
  0x30   :  { %454 = vst [vmem:[#allocation2 + $0x130] sm:$0xff] %v390_v7  ;;  %455 = vst [vmem:[#allocation2 + $0x138] sm:$0xff] %v391_v8  ;;  %v329_v18 = vadd.f32 %v265_v61, %v201_v9  ;;  %v204_v19 = vadd.f32 %v564_v2, %v133_v12  ;;  %v135_v21 = vmul.f32 %v559_v1, %v64_v5  ;;  %v66_v23 = vld [vmem:[%s1087_s0 + $0x180] sm:$0xff]  ;;  %v270_v28 = vld [vmem:[%s1090_s3 + $0x170] sm:$0xff]  ;;  %s485_s23 = sshll.u32 %s525_s22, 4  ;;  %s486_s23 = int_to_ptr.vmem [resolvable:$true] %s485_s23 }
  0x31   :  { %v136_v22 = vmul.f32 %v559_v1, %v65_v6  ;;  %v392_v24 = vmax.f32 %v328_v13, 0.0  ;;  %v330_v25 = vadd.f32 %v266_v10, %v202_v14  ;;  %v331_v26 = vadd.f32 %v267_v11, %v203_v15  ;;  %v271_v29 = vld [vmem:[%s1090_s3 + $0x178] sm:$0xff]  ;;  %v67_v30 = vld [vmem:[%s1087_s0 + $0x188] sm:$0xff]  ;;  %v68_v35 = vld [vmem:[%s1087_s0 + $0x190] sm:$0xff]  ;;  %p506_p1 = scmp.lt.s32.totalorder %s486_s23, %s486_s23 }
  0x32   :  { %v205_v27 = vadd.f32 %v564_v2, %v134_v17  ;;  %v393_v31 = vmax.f32 %v329_v18, 0.0  ;;  %v332_v32 = vadd.f32 %v268_v16, %v204_v19  ;;  %v206_v33 = vadd.f32 %v564_v2, %v135_v21  ;;  %v69_v36 = vld [vmem:[%s1087_s0 + $0x198] sm:$0xff]  ;;  %v70_v41 = vld [vmem:[%s1087_s0 + $0x1a0] sm:$0xff]  ;;  %v71_v47 = vld [vmem:[%s1087_s0 + $0x1a8] sm:$0xff] }
  0x33   :  { %v207_v34 = vadd.f32 %v564_v2, %v136_v22  ;;  %456 = vst [vmem:[#allocation2 + $0x140] sm:$0xff] %v392_v24  ;;  %v394_v37 = vmax.f32 %v330_v25, 0.0  ;;  %v395_v38 = vmax.f32 %v331_v26, 0.0  ;;  %v137_v40 = vmul.f32 %v559_v1, %v66_v23  ;;  %v272_v45 = vld [vmem:[%s1090_s3 + $0x180] sm:$0xff]  ;;  %v273_v50 = vld [vmem:[%s1090_s3 + $0x188] sm:$0xff]  ;;  %v72_v53 = vld [vmem:[%s1087_s0 + $0x1b0] sm:$0xff] }
  0x34   :  { %v333_v39 = vadd.f32 %v269_v20, %v205_v27  ;;  %457 = vst [vmem:[#allocation2 + $0x148] sm:$0xff] %v393_v31  ;;  %v396_v42 = vmax.f32 %v332_v32, 0.0  ;;  %v334_v43 = vadd.f32 %v270_v28, %v206_v33  ;;  %v138_v46 = vmul.f32 %v559_v1, %v67_v30  ;;  %v73_v54 = vld [vmem:[%s1087_s0 + $0x1b8] sm:$0xff]  ;;  %v274_v58 = vld [vmem:[%s1090_s3 + $0x190] sm:$0xff]  ;;  %v276_v0 = vld [vmem:[%s1090_s3 + $0x1a0] sm:$0xff] }
  0x35   :  { %v335_v44 = vadd.f32 %v271_v29, %v207_v34  ;;  %458 = vst [vmem:[#allocation2 + $0x150] sm:$0xff] %v394_v37  ;;  %459 = vst [vmem:[#allocation2 + $0x158] sm:$0xff] %v395_v38  ;;  %v208_v49 = vadd.f32 %v564_v2, %v137_v40  ;;  %v139_v51 = vmul.f32 %v559_v1, %v68_v35  ;;  %v275_v59 = vld [vmem:[%s1090_s3 + $0x198] sm:$0xff]  ;;  %v277_v6 = vld [vmem:[%s1090_s3 + $0x1a8] sm:$0xff] }
  0x36   :  { %v397_v48 = vmax.f32 %v333_v39, 0.0  ;;  %v140_v52 = vmul.f32 %v559_v1, %v69_v36  ;;  %460 = vst [vmem:[#allocation2 + $0x160] sm:$0xff] %v396_v42  ;;  %v398_v55 = vmax.f32 %v334_v43, 0.0  ;;  %v209_v57 = vadd.f32 %v564_v2, %v138_v46  ;;  %v74_v9 = vld [vmem:[%s1087_s0 + $0x1c0] sm:$0xff]  ;;  %v278_v14 = vld [vmem:[%s1090_s3 + $0x1b0] sm:$0xff]  ;;  %v279_v15 = vld [vmem:[%s1090_s3 + $0x1b8] sm:$0xff] }
  0x37   :  { %v399_v56 = vmax.f32 %v335_v44, 0.0  ;;  %v141_v60 = vmul.f32 %v559_v1, %v70_v41  ;;  %v336_v61 = vadd.f32 %v272_v45, %v208_v49  ;;  %v210_v62 = vadd.f32 %v564_v2, %v139_v51  ;;  %v75_v16 = vld [vmem:[%s1087_s0 + $0x1c8] sm:$0xff]  ;;  %v76_v21 = vld [vmem:[%s1087_s0 + $0x1d0] sm:$0xff]  ;;  %v77_v22 = vld [vmem:[%s1087_s0 + $0x1d8] sm:$0xff] }
  0x38   :  { %461 = vst [vmem:[#allocation2 + $0x168] sm:$0xff] %v397_v48  ;;  %v211_v63 = vadd.f32 %v564_v2, %v140_v52  ;;  %v142_v3 = vmul.f32 %v559_v1, %v71_v47  ;;  %462 = vst [vmem:[#allocation2 + $0x170] sm:$0xff] %v398_v55  ;;  %v337_v4 = vadd.f32 %v273_v50, %v209_v57  ;;  %v78_v27 = vld [vmem:[%s1087_s0 + $0x1e0] sm:$0xff]  ;;  %v79_v33 = vld [vmem:[%s1087_s0 + $0x1e8] sm:$0xff] }
  0x39   :  { %463 = vst [vmem:[#allocation2 + $0x178] sm:$0xff] %v399_v56  ;;  %v212_v5 = vadd.f32 %v564_v2, %v141_v60  ;;  %v143_v7 = vmul.f32 %v559_v1, %v72_v53  ;;  %v144_v8 = vmul.f32 %v559_v1, %v73_v54  ;;  %v400_v10 = vmax.f32 %v336_v61, 0.0  ;;  %v280_v31 = vld [vmem:[%s1090_s3 + $0x1c0] sm:$0xff]  ;;  %v281_v36 = vld [vmem:[%s1090_s3 + $0x1c8] sm:$0xff]  ;;  %v80_v39 = vld [vmem:[%s1087_s0 + $0x1f0] sm:$0xff] }
  0x3a   :  { %v338_v11 = vadd.f32 %v274_v58, %v210_v62  ;;  %v339_v12 = vadd.f32 %v275_v59, %v211_v63  ;;  %v213_v13 = vadd.f32 %v564_v2, %v142_v3  ;;  %v401_v17 = vmax.f32 %v337_v4, 0.0  ;;  %v81_v40 = vld [vmem:[%s1087_s0 + $0x1f8] sm:$0xff]  ;;  %v282_v44 = vld [vmem:[%s1090_s3 + $0x1d0] sm:$0xff]  ;;  %v284_v50 = vld [vmem:[%s1090_s3 + $0x1e0] sm:$0xff] }
  0x3b   :  { %v340_v18 = vadd.f32 %v276_v0, %v212_v5  ;;  %v214_v19 = vadd.f32 %v564_v2, %v143_v7  ;;  %v215_v20 = vadd.f32 %v564_v2, %v144_v8  ;;  %464 = vst [vmem:[#allocation2 + $0x180] sm:$0xff] %v400_v10  ;;  %v145_v26 = vmul.f32 %v559_v1, %v74_v9  ;;  %v283_v45 = vld [vmem:[%s1090_s3 + $0x1d8] sm:$0xff]  ;;  %v285_v54 = vld [vmem:[%s1090_s3 + $0x1e8] sm:$0xff]  ;;  %v286_v61 = vld [vmem:[%s1090_s3 + $0x1f0] sm:$0xff] }
  0x3c   :  { %v402_v23 = vmax.f32 %v338_v11, 0.0  ;;  %v403_v24 = vmax.f32 %v339_v12, 0.0  ;;  %v341_v25 = vadd.f32 %v277_v6, %v213_v13  ;;  %465 = vst [vmem:[#allocation2 + $0x188] sm:$0xff] %v401_v17  ;;  %v146_v32 = vmul.f32 %v559_v1, %v75_v16  ;;  %v287_v62 = vld [vmem:[%s1090_s3 + $0x1f8] sm:$0xff]  ;;  %s501_s3 = scalar_lea.vmem %s486_s23, 8192 }
  0x3d   :  { %v404_v28 = vmax.f32 %v340_v18, 0.0  ;;  %v342_v29 = vadd.f32 %v278_v14, %v214_v19  ;;  %v343_v30 = vadd.f32 %v279_v15, %v215_v20  ;;  %v216_v35 = vadd.f32 %v564_v2, %v145_v26  ;;  %p502_p0 = scmp.ne.s32.totalorder %s486_s23, %s501_s3  ;;  %p507_p2 = scmp.lt.s32.totalorder %s501_s3, %s501_s3 }
  0x3e   :  { %466 = vst [vmem:[#allocation2 + $0x190] sm:$0xff] %v402_v23  ;;  %467 = vst [vmem:[#allocation2 + $0x198] sm:$0xff] %v403_v24  ;;  %v405_v34 = vmax.f32 %v341_v25, 0.0  ;;  %v147_v37 = vmul.f32 %v559_v1, %v76_v21  ;;  %v148_v38 = vmul.f32 %v559_v1, %v77_v22  ;;  %v217_v43 = vadd.f32 %v564_v2, %v146_v32 }
  0x3f   :  { %468 = vst [vmem:[#allocation2 + $0x1a0] sm:$0xff] %v404_v28  ;;  %v406_v41 = vmax.f32 %v342_v29, 0.0  ;;  %v407_v42 = vmax.f32 %v343_v30, 0.0  ;;  %v149_v46 = vmul.f32 %v559_v1, %v78_v27  ;;  %v344_v47 = vadd.f32 %v280_v31, %v216_v35  ;;  %p508_p3 = por %p507_p2, %p506_p1 }
  0x40   :  { %469 = vst [vmem:[#allocation2 + $0x1a8] sm:$0xff] %v405_v34  ;;  %v218_v48 = vadd.f32 %v564_v2, %v147_v37  ;;  %v219_v49 = vadd.f32 %v564_v2, %v148_v38  ;;  %v150_v51 = vmul.f32 %v559_v1, %v79_v33  ;;  %v345_v52 = vadd.f32 %v281_v36, %v217_v43 }
  0x41   :  { %470 = vst [vmem:[#allocation2 + $0x1b0] sm:$0xff] %v406_v41  ;;  %471 = vst [vmem:[#allocation2 + $0x1b8] sm:$0xff] %v407_v42  ;;  %v220_v53 = vadd.f32 %v564_v2, %v149_v46  ;;  %v151_v55 = vmul.f32 %v559_v1, %v80_v39  ;;  %v152_v56 = vmul.f32 %v559_v1, %v81_v40  ;;  %v408_v57 = vmax.f32 %v344_v47, 0.0  ;;  %p509_p4 = pnand %p508_p3, %p502_p0 }
  0x42   :  { %v346_v58 = vadd.f32 %v282_v44, %v218_v48  ;;  %v347_v59 = vadd.f32 %v283_v45, %v219_v49  ;;  %v221_v60 = vadd.f32 %v564_v2, %v150_v51  ;;  %v409_v63 = vmax.f32 %v345_v52, 0.0 }
  0x43   :  { %v348_v0 = vadd.f32 %v284_v50, %v220_v53  ;;  %v222_v3 = vadd.f32 %v564_v2, %v151_v55  ;;  %v223_v4 = vadd.f32 %v564_v2, %v152_v56  ;;  %472 = vst [vmem:[#allocation2 + $0x1c0] sm:$0xff] %v408_v57 }
  0x44   :  { %v410_v1 = vmax.f32 %v346_v58, 0.0  ;;  %v411_v5 = vmax.f32 %v347_v59, 0.0  ;;  %v349_v6 = vadd.f32 %v285_v54, %v221_v60  ;;  %473 = vst [vmem:[#allocation2 + $0x1c8] sm:$0xff] %v409_v63 }
  0x45   :  { %v412_v7 = vmax.f32 %v348_v0, 0.0  ;;  %v350_v8 = vadd.f32 %v286_v61, %v222_v3  ;;  %v351_v9 = vadd.f32 %v287_v62, %v223_v4 }
  0x46   :  { %474 = vst [vmem:[#allocation2 + $0x1d0] sm:$0xff] %v410_v1  ;;  %475 = vst [vmem:[#allocation2 + $0x1d8] sm:$0xff] %v411_v5  ;;  %v413_v10 = vmax.f32 %v349_v6, 0.0 }
  0x47   :  { %476 = vst [vmem:[#allocation2 + $0x1e0] sm:$0xff] %v412_v7  ;;  %v414_v11 = vmax.f32 %v350_v8, 0.0  ;;  %v415_v12 = vmax.f32 %v351_v9, 0.0 }
  0x48   :  { %477 = vst [vmem:[#allocation2 + $0x1e8] sm:$0xff] %v413_v10 }
  0x49   :  { %478 = vst [vmem:[#allocation2 + $0x1f0] sm:$0xff] %v414_v11  ;;  %479 = vst [vmem:[#allocation2 + $0x1f8] sm:$0xff] %v415_v12 }
  0x4a   :  { %512 = shalt.err (!%p509_p4)
}
  0x4b   :  { %s513_s1 = scalar_lea.hbm %s1091_s4, 8192 }
  0x4c   :  { %p514_p5 = scmp.ne.s32.totalorder %s1091_s4, %s513_s1  ;;  %p517_p6 = scmp.lt.u32.totalorder %s513_s1, %s1091_s4 }
  0x4e   :  { %p519_p7 = pnand %p517_p6, %p514_p5 }
  0x50   :  { %522 = shalt.err (!%p519_p7)
}
  0x51   :  { %s526_s29 = smov 128   ;;  %s527_s30 = smov 8  }
  0x52   :  { %491 = dma.vmem_to_hbm [thread:$0]  %s486_s23, 8192, %s1091_s4, [#allocation3], %s526_s29, %s526_s29, %s527_s30  }
  0x53   :  { %523 = dma.done.wait [#allocation3], 8192  }
  0x54   :  { %524 = vsyncadd [#allocation3], 4294959104 }
  0x55   :  { %495 = vsyncpa [#allocation3], 1 }

// kernel: bottleneck_forward.6
= control target key start
LH: loop header
LB: loop body
LE: loop exit
PB: predicated region body
PF: predicated region fallthrough
CT: control target
= control target key end

     0   :  { %s2146_s3 = inlined_call_operand.vmem [shape: f32[128,128], index: 3, kind: input, shape index: {}]   ;;  %s2147_s0 = inlined_call_operand.vmem [shape: f32[512,128], index: 0, kind: input, shape index: {}]   ;;  %s2148_s1 = inlined_call_operand.vmem [shape: f32[1,128], index: 1, kind: input, shape index: {}]   ;;  %s2149_s2 = inlined_call_operand.vmem [shape: f32[1,128], index: 2, kind: input, shape index: {}]   ;;  %s2150_s4 = inlined_call_operand.vmem [shape: f32[512,128], index: 4, kind: output, shape index: {0}]   ;;  %s2151_s5 = inlined_call_operand.vmem [shape: f32[1,1,128], index: 5, kind: output, shape index: {1}]   ;;  %s2152_s6 = inlined_call_operand.vmem [shape: f32[1,1,128], index: 6, kind: output, shape index: {2}]  }
   0x1   :  { %v290_v0 = vld [vmem:[%s2146_s3] sm:$0xff]  ;;  %v291_v1 = vld [vmem:[%s2146_s3 + $0x8] sm:$0xff]  ;;  %v292_v2 = vld [vmem:[%s2146_s3 + $0x10] sm:$0xff] }
   0x2   :  { %v1181_v3 = vpack.c.bf16 %v291_v1, %v290_v0  ;;  %v293_v4 = vld [vmem:[%s2146_s3 + $0x18] sm:$0xff]  ;;  %v294_v6 = vld [vmem:[%s2146_s3 + $0x20] sm:$0xff]  ;;  %v295_v7 = vld [vmem:[%s2146_s3 + $0x28] sm:$0xff] }
   0x3   :  { %v1185_v5 = vpack.c.bf16 %v293_v4, %v292_v2  ;;  %v1189_v8 = vpack.c.bf16 %v295_v7, %v294_v6  ;;  %v20_v9 = vld [vmem:[%s2147_s0] sm:$0xff]  ;;  %v296_v11 = vld [vmem:[%s2146_s3 + $0x30] sm:$0xff]  ;;  %v297_v12 = vld [vmem:[%s2146_s3 + $0x38] sm:$0xff] }
   0x4   :  { %1182 = vmatprep.subr.bf16.mxu0 %v1181_v3  ;;  %1213 = vmatprep.subr.bf16.mxu1 %v1181_v3  ;;  %v1288_v10 = vld [vmem:[%s2148_s1] ss:$0 sm:$0xff]  ;;  %v1193_v16 = vpack.c.bf16 %v297_v12, %v296_v11  ;;  %v299_v18 = vld [vmem:[%s2146_s3 + $0x48] sm:$0xff]  ;;  %v300_v21 = vld [vmem:[%s2146_s3 + $0x50] sm:$0xff] }
   0x5   :  { %1184 = vmatpush3.bf16.msra.mxu0 %v1181_v3  ;;  %1221 = vmatpush3.bf16.msra.mxu1 %v1181_v3  ;;  %v91_v13 = vmul.f32 %v1288_v10, %v20_v9  ;;  %v1300_v14 = vld [vmem:[%s2149_s2] ss:$0 sm:$0xff]  ;;  %v301_v22 = vld [vmem:[%s2146_s3 + $0x58] sm:$0xff]  ;;  %v303_v25 = vld [vmem:[%s2146_s3 + $0x68] sm:$0xff] }
   0x6   :  { %1186 = vmatprep.subr.bf16.mxu0 %v1185_v5  ;;  %1214 = vmatprep.subr.bf16.mxu1 %v1185_v5  ;;  %v298_v17 = vld [vmem:[%s2146_s3 + $0x40] sm:$0xff]  ;;  %v1201_v23 = vpack.c.bf16 %v301_v22, %v300_v21  ;;  %v21_v26 = vld [vmem:[%s2147_s0 + $0x8] sm:$0xff]  ;;  %v22_v27 = vld [vmem:[%s2147_s0 + $0x10] sm:$0xff] }
   0x7   :  { %v162_v15 = vadd.f32 %v1300_v14, %v91_v13  ;;  %v1197_v20 = vpack.c.bf16 %v299_v18, %v298_v17  ;;  %v302_v24 = vld [vmem:[%s2146_s3 + $0x60] sm:$0xff]  ;;  %v42_v28 = vld [vmem:[%s2147_s0 + $0xb0] sm:$0xff]  ;;  %v43_v29 = vld [vmem:[%s2147_s0 + $0xb8] sm:$0xff]  ;;  %v92_v32 = vmul.f32 %v1288_v10, %v21_v26  ;;  %v93_v35 = vmul.f32 %v1288_v10, %v22_v27 }
   0x8   :  { %v304_v30 = vld [vmem:[%s2146_s3 + $0x70] sm:$0xff]  ;;  %v305_v31 = vld [vmem:[%s2146_s3 + $0x78] sm:$0xff]  ;;  %v1205_v34 = vpack.c.bf16 %v303_v25, %v302_v24  ;;  %v24_v36 = vld [vmem:[%s2147_s0 + $0x20] sm:$0xff]  ;;  %v113_v38 = vmul.f32 %v1288_v10, %v42_v28  ;;  %v114_v39 = vmul.f32 %v1288_v10, %v43_v29 }
   0x9   :  { %1188 = vmatpush3.bf16.msra.mxu0 %v1185_v5  ;;  %v226_v19 = vmax.f32 %v162_v15, 0.0  ;;  %1222 = vmatpush3.bf16.msra.mxu1 %v1185_v5  ;;  %v23_v33 = vld [vmem:[%s2147_s0 + $0x18] sm:$0xff]  ;;  %v25_v37 = vld [vmem:[%s2147_s0 + $0x28] sm:$0xff]  ;;  %v44_v40 = vld [vmem:[%s2147_s0 + $0xc0] sm:$0xff]  ;;  %v1364_v44 = vpack.c.bf16 %v305_v31, %v304_v30  ;;  %v1383_v51 = vadd.f32 %v1300_v14, %v92_v32  ;;  %v95_v52 = vmul.f32 %v1288_v10, %v24_v36 }
   0xa   :  { %1190 = vmatprep.subr.bf16.mxu0 %v1189_v8  ;;  %1215 = vmatprep.subr.bf16.mxu1 %v1189_v8  ;;  %v26_v41 = vld [vmem:[%s2147_s0 + $0x30] sm:$0xff]  ;;  %v45_v42 = vld [vmem:[%s2147_s0 + $0xc8] sm:$0xff]  ;;  %v94_v45 = vmul.f32 %v1288_v10, %v23_v33  ;;  %v1368_v46 = vadd.f32 %v1300_v14, %v113_v38  ;;  %v1371_v47 = vadd.f32 %v1300_v14, %v114_v39  ;;  %v47_v48 = vld [vmem:[%s2147_s0 + $0xd8] sm:$0xff] }
   0xb   :  { %1085 = vmatprep.mubr.f32.mxu0 %v226_v19  ;;  %v46_v43 = vld [vmem:[%s2147_s0 + $0xd0] sm:$0xff]  ;;  %v48_v49 = vld [vmem:[%s2147_s0 + $0xe0] sm:$0xff]  ;;  %v49_v50 = vld [vmem:[%s2147_s0 + $0xe8] sm:$0xff]  ;;  %v96_v53 = vmul.f32 %v1288_v10, %v25_v37  ;;  %v115_v54 = vmul.f32 %v1288_v10, %v44_v40  ;;  %v1395_v57 = vadd.f32 %v1300_v14, %v93_v35  ;;  %v97_v58 = vmul.f32 %v1288_v10, %v26_v41 }
   0xc   :  { %v50_v55 = vld [vmem:[%s2147_s0 + $0xf0] sm:$0xff]  ;;  %v51_v56 = vld [vmem:[%s2147_s0 + $0xf8] sm:$0xff]  ;;  %v116_v59 = vmul.f32 %v1288_v10, %v45_v42  ;;  %v117_v60 = vmul.f32 %v1288_v10, %v46_v43  ;;  %v118_v63 = vmul.f32 %v1288_v10, %v47_v48  ;;  %v119_v0 = vmul.f32 %v1288_v10, %v48_v49  ;;  %v52_v6 = vld [vmem:[%s2147_s0 + $0x100] sm:$0xff] }
   0xd   :  { %1192 = vmatpush3.bf16.msra.mxu0 %v1189_v8  ;;  %1223 = vmatpush3.bf16.msra.mxu1 %v1189_v8  ;;  %v27_v61 = vld [vmem:[%s2147_s0 + $0x38] sm:$0xff]  ;;  %v1404_v62 = vadd.f32 %v1300_v14, %v115_v54  ;;  %v120_v1 = vmul.f32 %v1288_v10, %v49_v50  ;;  %v121_v4 = vmul.f32 %v1288_v10, %v50_v55  ;;  %v53_v12 = vld [vmem:[%s2147_s0 + $0x108] sm:$0xff]  ;;  %v54_v13 = vld [vmem:[%s2147_s0 + $0x110] sm:$0xff]  ;;  %v228_v26 = vmax.f32 %v1395_v57, 0.0 }
   0xe   :  { %1194 = vmatprep.subr.bf16.mxu0 %v1193_v16  ;;  %1216 = vmatprep.subr.bf16.mxu1 %v1193_v16  ;;  %v1410_v2 = vadd.f32 %v1300_v14, %v116_v59  ;;  %v1413_v3 = vadd.f32 %v1300_v14, %v117_v60  ;;  %v122_v5 = vmul.f32 %v1288_v10, %v51_v56  ;;  %v55_v18 = vld [vmem:[%s2147_s0 + $0x118] sm:$0xff]  ;;  %v56_v19 = vld [vmem:[%s2147_s0 + $0x120] sm:$0xff]  ;;  %v57_v25 = vld [vmem:[%s2147_s0 + $0x128] sm:$0xff] }
   0xf   :  { %v1421_v7 = vadd.f32 %v1300_v14, %v94_v45  ;;  %v1424_v8 = vadd.f32 %v1300_v14, %v118_v63  ;;  %v1427_v9 = vadd.f32 %v1300_v14, %v119_v0  ;;  %v1430_v11 = vadd.f32 %v1300_v14, %v120_v1  ;;  %v58_v30 = vld [vmem:[%s2147_s0 + $0x130] sm:$0xff]  ;;  %v29_v32 = vld [vmem:[%s2147_s0 + $0x48] sm:$0xff]  ;;  %v59_v41 = vld [vmem:[%s2147_s0 + $0x138] sm:$0xff] }
  0x10   :  { %v98_v15 = vmul.f32 %v1288_v10, %v27_v61  ;;  %v1444_v17 = vadd.f32 %v1300_v14, %v122_v5  ;;  %v1454_v21 = vadd.f32 %v1300_v14, %v95_v52  ;;  %v1457_v22 = vadd.f32 %v1300_v14, %v96_v53  ;;  %v30_v33 = vld [vmem:[%s2147_s0 + $0x50] sm:$0xff]  ;;  %v31_v42 = vld [vmem:[%s2147_s0 + $0x58] sm:$0xff]  ;;  %v32_v52 = vld [vmem:[%s2147_s0 + $0x60] sm:$0xff] }
  0x11   :  { %1196 = vmatpush3.bf16.msra.mxu0 %v1193_v16  ;;  %1224 = vmatpush3.bf16.msra.mxu1 %v1193_v16  ;;  %v1441_v16 = vadd.f32 %v1300_v14, %v121_v4  ;;  %v123_v24 = vmul.f32 %v1288_v10, %v52_v6  ;;  %v1468_v27 = vadd.f32 %v1300_v14, %v97_v58  ;;  %v229_v31 = vmax.f32 %v1421_v7, 0.0  ;;  %v33_v58 = vld [vmem:[%s2147_s0 + $0x68] sm:$0xff]  ;;  %v34_v59 = vld [vmem:[%s2147_s0 + $0x70] sm:$0xff]  ;;  %v35_v0 = vld [vmem:[%s2147_s0 + $0x78] sm:$0xff] }
  0x12   :  { %1198 = vmatprep.subr.bf16.mxu0 %v1197_v20  ;;  %1217 = vmatprep.subr.bf16.mxu1 %v1197_v20  ;;  %v124_v28 = vmul.f32 %v1288_v10, %v53_v12  ;;  %v125_v29 = vmul.f32 %v1288_v10, %v54_v13  ;;  %v126_v35 = vmul.f32 %v1288_v10, %v55_v18  ;;  %v230_v55 = vmax.f32 %v1454_v21, 0.0  ;;  %v61_v13 = vld [vmem:[%s2147_s0 + $0x148] sm:$0xff] }
  0x13   :  { %v127_v36 = vmul.f32 %v1288_v10, %v56_v19  ;;  %v128_v40 = vmul.f32 %v1288_v10, %v57_v25  ;;  %v129_v49 = vmul.f32 %v1288_v10, %v58_v30  ;;  %v100_v50 = vmul.f32 %v1288_v10, %v29_v32  ;;  %v73_v32 = vld [vmem:[%s2147_s0 + $0x1a8] sm:$0xff] }
  0x14   :  { %v195_v38 = vadd.f32 %v1300_v14, %v124_v28  ;;  %v196_v39 = vadd.f32 %v1300_v14, %v125_v29  ;;  %v197_v45 = vadd.f32 %v1300_v14, %v126_v35  ;;  %v231_v56 = vmax.f32 %v1457_v22, 0.0 }
  0x15   :  { %1200 = vmatpush3.bf16.msra.mxu0 %v1197_v20  ;;  %1225 = vmatpush3.bf16.msra.mxu1 %v1197_v20  ;;  %v227_v20 = vmax.f32 %v1383_v51, 0.0  ;;  %v198_v48 = vadd.f32 %v1300_v14, %v127_v36  ;;  %v101_v51 = vmul.f32 %v1288_v10, %v30_v33  ;;  %v1512_v57 = vadd.f32 %v1300_v14, %v98_v15  ;;  %v62_v15 = vld [vmem:[%s2147_s0 + $0x150] sm:$0xff] }
  0x16   :  { %1202 = vmatprep.subr.bf16.mxu0 %v1201_v23  ;;  %1218 = vmatprep.subr.bf16.mxu1 %v1201_v23  ;;  %v259_v53 = vmax.f32 %v195_v38, 0.0  ;;  %v260_v54 = vmax.f32 %v196_v39, 0.0  ;;  %v130_v60 = vmul.f32 %v1288_v10, %v59_v41  ;;  %v102_v63 = vmul.f32 %v1288_v10, %v31_v42  ;;  %v75_v38 = vld [vmem:[%s2147_s0 + $0x1b8] sm:$0xff] }
  0x17   :  { %v261_v1 = vmax.f32 %v197_v45, 0.0  ;;  %v199_v4 = vadd.f32 %v1300_v14, %v128_v40  ;;  %v103_v5 = vmul.f32 %v1288_v10, %v32_v52  ;;  %v262_v6 = vmax.f32 %v198_v48, 0.0 }
  0x18   :  { %v200_v7 = vadd.f32 %v1300_v14, %v129_v49  ;;  %v1539_v18 = vadd.f32 %v1300_v14, %v100_v50  ;;  %v1542_v19 = vadd.f32 %v1300_v14, %v101_v51  ;;  %v105_v21 = vmul.f32 %v1288_v10, %v34_v59  ;;  %v65_v50 = vld [vmem:[%s2147_s0 + $0x168] sm:$0xff] }
  0x19   :  { %1204 = vmatpush3.bf16.msra.mxu0 %v1201_v23  ;;  %1226 = vmatpush3.bf16.msra.mxu1 %v1201_v23  ;;  %v28_v23 = vld [vmem:[%s2147_s0 + $0x40] sm:$0xff]  ;;  %v232_v22 = vmax.f32 %v1468_v27, 0.0  ;;  %v201_v25 = vadd.f32 %v1300_v14, %v130_v60  ;;  %v263_v28 = vmax.f32 %v199_v4, 0.0  ;;  %v132_v29 = vmul.f32 %v1288_v10, %v61_v13 }
  0x1a   :  { %1206 = vmatprep.subr.bf16.mxu0 %v1205_v34  ;;  %1219 = vmatprep.subr.bf16.mxu1 %v1205_v34  ;;  %v99_v37 = vmul.f32 %v1288_v10, %v28_v23  ;;  %v233_v23 = vmax.f32 %v1512_v57, 0.0  ;;  %v133_v30 = vmul.f32 %v1288_v10, %v62_v15  ;;  %v64_v27 = vld [vmem:[%s2147_s0 + $0x160] sm:$0xff]  ;;  %v1565_v33 = vadd.f32 %v1300_v14, %v102_v63  ;;  %v78_v63 = vld [vmem:[%s2147_s0 + $0x1d0] sm:$0xff] }
  0x1b   :  { %v264_v35 = vmax.f32 %v200_v7, 0.0  ;;  %v235_v39 = vmax.f32 %v1539_v18, 0.0  ;;  %v236_v40 = vmax.f32 %v1542_v19, 0.0  ;;  %v1583_v42 = vadd.f32 %v1300_v14, %v105_v21  ;;  %v80_v7 = vld [vmem:[%s2147_s0 + $0x1e0] sm:$0xff]  ;;  %v83_v21 = vld [vmem:[%s2147_s0 + $0x1f8] sm:$0xff] }
  0x1c   :  { %v1522_v61 = vadd.f32 %v1300_v14, %v99_v37  ;;  %v74_v37 = vld [vmem:[%s2147_s0 + $0x1b0] sm:$0xff]  ;;  %v265_v45 = vmax.f32 %v201_v25, 0.0  ;;  %v135_v49 = vmul.f32 %v1288_v10, %v64_v27  ;;  %v144_v51 = vmul.f32 %v1288_v10, %v73_v32  ;;  %v67_v25 = vld [vmem:[%s2147_s0 + $0x178] sm:$0xff]  ;;  %v68_v32 = vld [vmem:[%s2147_s0 + $0x180] sm:$0xff] }
  0x1d   :  { %1208 = vmatpush3.bf16.msra.mxu0 %v1205_v34  ;;  %1227 = vmatpush3.bf16.msra.mxu1 %v1205_v34  ;;  %v194_v34 = vadd.f32 %v1300_v14, %v123_v24  ;;  %v1549_v24 = vmul.f32 %v1288_v10, %v35_v0  ;;  %v203_v52 = vadd.f32 %v1300_v14, %v132_v29  ;;  %v237_v57 = vmax.f32 %v1565_v33, 0.0 }
  0x1e   :  { %1210 = vmatprep.subr.bf16.mxu0 %v1364_v44  ;;  %1220 = vmatprep.subr.bf16.mxu1 %v1364_v44  ;;  %v1607_v60 = vadd.f32 %v1300_v14, %v144_v51  ;;  %v206_v15 = vadd.f32 %v1300_v14, %v135_v49 }
  0x1f   :  { %v258_v43 = vmax.f32 %v194_v34, 0.0  ;;  %v1568_v34 = vadd.f32 %v1300_v14, %v103_v5 }
  0x21   :  { %1212 = vmatpush3.bf16.msra.mxu0 %v1364_v44  ;;  %1228 = vmatpush3.bf16.msra.mxu1 %v1364_v44  ;;  %v60_v44 = vld [vmem:[%s2147_s0 + $0x140] sm:$0xff] }
  0x22   :  { %1133 = vmatprep.mubr.f32.mxu1 %v258_v43  ;;  %v131_v12 = vmul.f32 %v1288_v10, %v60_v44  ;;  %v36_v43 = vld [vmem:[%s2147_s0 + $0x80] sm:$0xff]  ;;  %v145_v44 = vmul.f32 %v1288_v10, %v74_v37  ;;  %v37_v37 = vld [vmem:[%s2147_s0 + $0x88] sm:$0xff] }
  0x23   :  { %v107_v0 = vmul.f32 %v1288_v10, %v36_v43 }
  0x24   :  { %1086 = vmatmul.mubr.f32.vlgmr.msra.gmra.mrb[0].mxu0 %v227_v20  ;;  %1134 = vmatmul.mubr.f32.vlgmr.msra.gmra.mrb[0].mxu1 %v259_v53  ;;  %v104_v20 = vmul.f32 %v1288_v10, %v33_v58  ;;  %v202_v36 = vadd.f32 %v1300_v14, %v131_v12  ;;  %v204_v53 = vadd.f32 %v1300_v14, %v133_v30  ;;  %v238_v58 = vmax.f32 %v1568_v34, 0.0  ;;  %v81_v12 = vld [vmem:[%s2147_s0 + $0x1e8] sm:$0xff] }
  0x25   :  { %1088 = vmatprep.mubr.f32.mxu0 %v228_v26  ;;  %1136 = vmatprep.mubr.f32.mxu1 %v260_v54  ;;  %v234_v26 = vmax.f32 %v1522_v61, 0.0  ;;  %v66_v54 = vld [vmem:[%s2147_s0 + $0x170] sm:$0xff]  ;;  %v77_v61 = vld [vmem:[%s2147_s0 + $0x1c8] sm:$0xff]  ;;  %v1618_v4 = vadd.f32 %v1300_v14, %v145_v44  ;;  %v152_v27 = vmul.f32 %v1288_v10, %v81_v12 }
  0x26   :  { %v1580_v41 = vadd.f32 %v1300_v14, %v104_v20  ;;  %v266_v59 = vmax.f32 %v202_v36, 0.0  ;;  %v137_v18 = vmul.f32 %v1288_v10, %v66_v54  ;;  %v82_v20 = vld [vmem:[%s2147_s0 + $0x1f0] sm:$0xff]  ;;  %v154_v36 = vmul.f32 %v1288_v10, %v83_v21  ;;  %v69_v44 = vld [vmem:[%s2147_s0 + $0x188] sm:$0xff] }
  0x27   :  { %v139_v54 = vmul.f32 %v1288_v10, %v68_v32 }
  0x28   :  { %1089 = vmatmul.mubr.f32.gmra.mrb[2].mxu0 %v229_v31  ;;  %1137 = vmatmul.mubr.f32.gmra.mrb[2].mxu1 %v261_v1  ;;  %v63_v31 = vld [vmem:[%s2147_s0 + $0x158] sm:$0xff]  ;;  %v136_v1 = vmul.f32 %v1288_v10, %v65_v50  ;;  %v1685_v51 = vadd.f32 %v1300_v14, %v154_v36 }
  0x29   :  { %1091 = vmatprep.mubr.f32.mxu0 %v230_v55  ;;  %1139 = vmatprep.mubr.f32.mxu1 %v262_v6  ;;  %v134_v48 = vmul.f32 %v1288_v10, %v63_v31  ;;  %v146_v55 = vmul.f32 %v1288_v10, %v75_v38  ;;  %v79_v6 = vld [vmem:[%s2147_s0 + $0x1d8] sm:$0xff]  ;;  %v151_v31 = vmul.f32 %v1288_v10, %v80_v7 }
  0x2a   :  { %v150_v30 = vmul.f32 %v1288_v10, %v79_v6  ;;  %v138_v38 = vmul.f32 %v1288_v10, %v67_v25  ;;  %v207_v49 = vadd.f32 %v1300_v14, %v136_v1  ;;  %v178_v1 = vadd.f32 %v1300_v14, %v107_v0  ;;  %v41_v25 = vld [vmem:[%s2147_s0 + $0xa8] sm:$0xff] }
  0x2b   :  { %v1621_v5 = vadd.f32 %v1300_v14, %v146_v55  ;;  %v205_v13 = vadd.f32 %v1300_v14, %v134_v48  ;;  %v1672_v43 = vadd.f32 %v1300_v14, %v151_v31  ;;  %v38_v48 = vld [vmem:[%s2147_s0 + $0x90] sm:$0xff]  ;;  %v239_v55 = vmax.f32 %v1580_v41, 0.0  ;;  %v39_v41 = vld [vmem:[%s2147_s0 + $0x98] sm:$0xff] }
  0x2c   :  { %1092 = vmatmul.mubr.f32.gmra.mrb[4].mxu0 %v231_v56  ;;  %1140 = vmatmul.mubr.f32.gmra.mrb[4].mxu1 %v263_v28  ;;  %v76_v56 = vld [vmem:[%s2147_s0 + $0x1c0] sm:$0xff]  ;;  %v149_v28 = vmul.f32 %v1288_v10, %v78_v63  ;;  %v240_v63 = vmax.f32 %v1583_v42, 0.0  ;;  %v109_v6 = vmul.f32 %v1288_v10, %v38_v48  ;;  %v209_v7 = vadd.f32 %v1300_v14, %v138_v38 }
  0x2d   :  { %1094 = vmatprep.mubr.f32.mxu0 %v232_v22  ;;  %1142 = vmatprep.mubr.f32.mxu1 %v264_v35  ;;  %v147_v19 = vmul.f32 %v1288_v10, %v76_v56  ;;  %v267_v22 = vmax.f32 %v203_v52, 0.0  ;;  %v153_v35 = vmul.f32 %v1288_v10, %v82_v20  ;;  %v270_v52 = vmax.f32 %v206_v15, 0.0  ;;  %v72_v20 = vld [vmem:[%s2147_s0 + $0x1a0] sm:$0xff] }
  0x2e   :  { %v1660_v34 = vadd.f32 %v1300_v14, %v149_v28  ;;  %v177_v56 = vadd.f32 %v1300_v14, %v1549_v24  ;;  %v40_v24 = vld [vmem:[%s2147_s0 + $0xa0] sm:$0xff]  ;;  %v210_v0 = vadd.f32 %v1300_v14, %v139_v54  ;;  %v242_v21 = vmax.f32 %v178_v1, 0.0 }
  0x2f   :  { %v1648_v29 = vadd.f32 %v1300_v14, %v147_v19  ;;  %v1682_v50 = vadd.f32 %v1300_v14, %v153_v35  ;;  %v110_v19 = vmul.f32 %v1288_v10, %v39_v41  ;;  %v143_v32 = vmul.f32 %v1288_v10, %v72_v20 }
  0x30   :  { %1095 = vmatmul.mubr.f32.gmra.mrb[6].mxu0 %v233_v23  ;;  %1143 = vmatmul.mubr.f32.gmra.mrb[6].mxu1 %v265_v45  ;;  %v268_v23 = vmax.f32 %v204_v53, 0.0  ;;  %v1675_v45 = vadd.f32 %v1300_v14, %v152_v27  ;;  %v208_v53 = vadd.f32 %v1300_v14, %v137_v18  ;;  %v241_v15 = vmax.f32 %v177_v56, 0.0 }
  0x31   :  { %1097 = vmatprep.mubr.f32.mxu0 %v234_v26  ;;  %v148_v26 = vmul.f32 %v1288_v10, %v77_v61  ;;  %1145 = vmatprep.mubr.f32.mxu1 %v266_v59  ;;  %v108_v59 = vmul.f32 %v1288_v10, %v37_v37  ;;  %v70_v61 = vld [vmem:[%s2147_s0 + $0x190] sm:$0xff]  ;;  %v274_v31 = vmax.f32 %v210_v0, 0.0  ;;  %v181_v36 = vadd.f32 %v1300_v14, %v110_v19 }
  0x32   :  { %v272_v42 = vmax.f32 %v208_v53, 0.0  ;;  %v141_v12 = vmul.f32 %v1288_v10, %v70_v61  ;;  %v112_v37 = vmul.f32 %v1288_v10, %v41_v25  ;;  %v214_v53 = vadd.f32 %v1300_v14, %v143_v32 }
  0x33   :  { %v1657_v33 = vadd.f32 %v1300_v14, %v148_v26  ;;  %v179_v18 = vadd.f32 %v1300_v14, %v108_v59  ;;  %v273_v26 = vmax.f32 %v209_v7, 0.0  ;;  %v245_v54 = vmax.f32 %v181_v36, 0.0 }
  0x34   :  { %1098 = vmatmul.mubr.f32.gmra.mrb[8].mxu0 %v235_v39  ;;  %v1669_v39 = vadd.f32 %v1300_v14, %v150_v30  ;;  %1146 = vmatmul.mubr.f32.gmra.mrb[8].mxu1 %v267_v22  ;;  %v180_v22 = vadd.f32 %v1300_v14, %v109_v6  ;;  %v212_v27 = vadd.f32 %v1300_v14, %v141_v12  ;;  %v278_v56 = vmax.f32 %v214_v53, 0.0 }
  0x35   :  { %1100 = vmatprep.mubr.f32.mxu0 %v236_v40  ;;  %v269_v40 = vmax.f32 %v205_v13, 0.0  ;;  %1148 = vmatprep.mubr.f32.mxu1 %v268_v23  ;;  %v71_v13 = vld [vmem:[%s2147_s0 + $0x198] sm:$0xff]  ;;  %v111_v23 = vmul.f32 %v1288_v10, %v40_v24  ;;  %v243_v35 = vmax.f32 %v179_v18, 0.0  ;;  %v248_v61 = vmax.f32 %v1368_v46, 0.0 }
  0x36   :  { %v142_v30 = vmul.f32 %v1288_v10, %v71_v13  ;;  %v244_v38 = vmax.f32 %v180_v22, 0.0  ;;  %v280_v1 = vmax.f32 %v1618_v4, 0.0  ;;  %v250_v6 = vmax.f32 %v1404_v62, 0.0 }
  0x37   :  { %v182_v48 = vadd.f32 %v1300_v14, %v111_v23  ;;  %v281_v41 = vmax.f32 %v1621_v5, 0.0  ;;  %v282_v24 = vmax.f32 %v1648_v29, 0.0  ;;  %v251_v46 = vmax.f32 %v1410_v2, 0.0 }
  0x38   :  { %1101 = vmatmul.mubr.f32.gmra.mrb[10].mxu0 %v237_v57  ;;  %1149 = vmatmul.mubr.f32.gmra.mrb[10].mxu1 %v269_v40  ;;  %v271_v57 = vmax.f32 %v207_v49, 0.0  ;;  %v213_v49 = vadd.f32 %v1300_v14, %v142_v30  ;;  %v283_v4 = vmax.f32 %v1657_v33, 0.0  ;;  %v253_v62 = vmax.f32 %v1424_v8, 0.0 }
  0x39   :  { %1103 = vmatprep.mubr.f32.mxu0 %v238_v58  ;;  %v140_v58 = vmul.f32 %v1288_v10, %v69_v44  ;;  %1151 = vmatprep.mubr.f32.mxu1 %v270_v52  ;;  %v276_v52 = vmax.f32 %v212_v27, 0.0  ;;  %v183_v44 = vadd.f32 %v1300_v14, %v112_v37  ;;  %v254_v5 = vmax.f32 %v1427_v9, 0.0 }
  0x3a   :  { %v277_v10 = vmax.f32 %v213_v49, 0.0  ;;  %v285_v29 = vmax.f32 %v1669_v39, 0.0  ;;  %v286_v2 = vmax.f32 %v1672_v43, 0.0  ;;  %v256_v33 = vmax.f32 %v1441_v16, 0.0 }
  0x3b   :  { %v211_v28 = vadd.f32 %v1300_v14, %v140_v58  ;;  %v247_v59 = vmax.f32 %v183_v44, 0.0  ;;  %v249_v14 = vmax.f32 %v1371_v47, 0.0  ;;  %v284_v47 = vmax.f32 %v1660_v34, 0.0 }
  0x3c   :  { %1104 = vmatmul.mubr.f32.gmra.mrb[12].mxu0 %v239_v55  ;;  %1152 = vmatmul.mubr.f32.gmra.mrb[12].mxu1 %v271_v57  ;;  %v246_v55 = vmax.f32 %v182_v48, 0.0  ;;  %v287_v34 = vmax.f32 %v1675_v45, 0.0  ;;  %v288_v8 = vmax.f32 %v1682_v50, 0.0  ;;  %v257_v9 = vmax.f32 %v1444_v17, 0.0 }
  0x3d   :  { %1106 = vmatprep.mubr.f32.mxu0 %v240_v63  ;;  %1154 = vmatprep.mubr.f32.mxu1 %v272_v42  ;;  %v275_v40 = vmax.f32 %v211_v28, 0.0  ;;  %v279_v63 = vmax.f32 %v1607_v60, 0.0  ;;  %v252_v60 = vmax.f32 %v1413_v3, 0.0  ;;  %v255_v3 = vmax.f32 %v1430_v11, 0.0 }
  0x3e   :  { %v289_v39 = vmax.f32 %v1685_v51, 0.0 }
  0x40   :  { %1107 = vmatmul.mubr.f32.gmra.mrb[14].mxu0 %v241_v15  ;;  %1155 = vmatmul.mubr.f32.gmra.mrb[14].mxu1 %v273_v26 }
  0x41   :  { %1109 = vmatprep.mubr.f32.mxu0 %v242_v21  ;;  %1157 = vmatprep.mubr.f32.mxu1 %v274_v31 }
  0x44   :  { %1110 = vmatmul.mubr.f32.gmra.mrb[16].mxu0 %v243_v35  ;;  %1158 = vmatmul.mubr.f32.gmra.mrb[16].mxu1 %v275_v40 }
  0x45   :  { %1112 = vmatprep.mubr.f32.mxu0 %v244_v38  ;;  %1160 = vmatprep.mubr.f32.mxu1 %v276_v52 }
  0x48   :  { %1113 = vmatmul.mubr.f32.gmra.mrb[18].mxu0 %v245_v54  ;;  %1161 = vmatmul.mubr.f32.gmra.mrb[18].mxu1 %v277_v10 }
  0x49   :  { %1115 = vmatprep.mubr.f32.mxu0 %v246_v55  ;;  %1163 = vmatprep.mubr.f32.mxu1 %v278_v56 }
  0x4c   :  { %1116 = vmatmul.mubr.f32.gmra.mrb[20].mxu0 %v247_v59  ;;  %1164 = vmatmul.mubr.f32.gmra.mrb[20].mxu1 %v279_v63 }
  0x4d   :  { %1118 = vmatprep.mubr.f32.mxu0 %v248_v61  ;;  %1166 = vmatprep.mubr.f32.mxu1 %v280_v1 }
  0x50   :  { %1119 = vmatmul.mubr.f32.gmra.mrb[22].mxu0 %v249_v14  ;;  %1167 = vmatmul.mubr.f32.gmra.mrb[22].mxu1 %v281_v41 }
  0x51   :  { %1121 = vmatprep.mubr.f32.mxu0 %v250_v6  ;;  %1169 = vmatprep.mubr.f32.mxu1 %v282_v24 }
  0x54   :  { %1122 = vmatmul.mubr.f32.gmra.mrb[24].mxu0 %v251_v46  ;;  %1170 = vmatmul.mubr.f32.gmra.mrb[24].mxu1 %v283_v4 }
  0x55   :  { %1124 = vmatprep.mubr.f32.mxu0 %v252_v60  ;;  %1172 = vmatprep.mubr.f32.mxu1 %v284_v47 }
  0x58   :  { %1125 = vmatmul.mubr.f32.gmra.mrb[26].mxu0 %v253_v62  ;;  %1173 = vmatmul.mubr.f32.gmra.mrb[26].mxu1 %v285_v29 }
  0x59   :  { %1127 = vmatprep.mubr.f32.mxu0 %v254_v5  ;;  %1175 = vmatprep.mubr.f32.mxu1 %v286_v2 }
  0x5c   :  { %1128 = vmatmul.mubr.f32.gmra.mrb[28].mxu0 %v255_v3  ;;  %1176 = vmatmul.mubr.f32.gmra.mrb[28].mxu1 %v287_v34 }
  0x5d   :  { %1130 = vmatprep.mubr.f32.mxu0 %v256_v33  ;;  %1178 = vmatprep.mubr.f32.mxu1 %v288_v8 }
  0x60   :  { %1131 = vmatmul.mubr.f32.gmra.mrb[30].mxu0 %v257_v9  ;;  %1179 = vmatmul.mubr.f32.gmra.mrb[30].mxu1 %v289_v39 }
  0xf7   :  { %v1087_v11 = vpop.f32.mrb[0].mxu0  ;;  %v1762_v50 = vpop.f32.mrb[0].mxu1 }
  0xf8   :  { %692 = vst [vmem:[%s2150_s4 + $0x8] sm:$0xff] %v1087_v11  ;;  %v826_v16 = vmul.f32 %v1087_v11, %v1087_v11  ;;  %v372_v43 = vpop.f32.mrb[1].mxu0  ;;  %724 = vst [vmem:[%s2150_s4 + $0x108] sm:$0xff] %v1762_v50  ;;  %v1768_v51 = vpop.f32.mrb[1].mxu1 }
  0xf9   :  { %691 = vst [vmem:[%s2150_s4] sm:$0xff] %v372_v43  ;;  %v755_v45 = vadd.f32 %v1087_v11, %v372_v43  ;;  %v825_v17 = vmul.f32 %v372_v43, %v372_v43  ;;  %723 = vst [vmem:[%s2150_s4 + $0x100] sm:$0xff] %v1768_v51 }
  0xfb   :  { %v889_v57 = vadd.f32 %v826_v16, %v825_v17  ;;  %v1090_v7 = vpop.f32.mrb[2].mxu0  ;;  %v1780_v12 = vpop.f32.mrb[2].mxu1 }
  0xfc   :  { %694 = vst [vmem:[%s2150_s4 + $0x18] sm:$0xff] %v1090_v7  ;;  %v382_v58 = vpop.f32.mrb[3].mxu0  ;;  %726 = vst [vmem:[%s2150_s4 + $0x118] sm:$0xff] %v1780_v12  ;;  %v1786_v13 = vpop.f32.mrb[3].mxu1  ;;  %v828_v15 = vmul.f32 %v1090_v7, %v1090_v7 }
  0xfd   :  { %693 = vst [vmem:[%s2150_s4 + $0x10] sm:$0xff] %v382_v58  ;;  %v756_v42 = vadd.f32 %v755_v45, %v382_v58  ;;  %v827_v0 = vmul.f32 %v382_v58, %v382_v58  ;;  %725 = vst [vmem:[%s2150_s4 + $0x110] sm:$0xff] %v1786_v13 }
  0xff   :  { %v890_v18 = vadd.f32 %v889_v57, %v827_v0  ;;  %v1093_v19 = vpop.f32.mrb[4].mxu0  ;;  %v757_v20 = vadd.f32 %v1090_v7, %v756_v42  ;;  %v1798_v26 = vpop.f32.mrb[4].mxu1 }
 0x100   :  { %696 = vst [vmem:[%s2150_s4 + $0x28] sm:$0xff] %v1093_v19  ;;  %v392_v21 = vpop.f32.mrb[5].mxu0  ;;  %728 = vst [vmem:[%s2150_s4 + $0x128] sm:$0xff] %v1798_v26  ;;  %v1804_v28 = vpop.f32.mrb[5].mxu1  ;;  %v830_v30 = vmul.f32 %v1093_v19, %v1093_v19 }
 0x101   :  { %695 = vst [vmem:[%s2150_s4 + $0x20] sm:$0xff] %v392_v21  ;;  %v758_v22 = vadd.f32 %v757_v20, %v392_v21  ;;  %v829_v23 = vmul.f32 %v392_v21, %v392_v21  ;;  %v891_v25 = vadd.f32 %v890_v18, %v828_v15  ;;  %727 = vst [vmem:[%s2150_s4 + $0x120] sm:$0xff] %v1804_v28 }
 0x103   :  { %v892_v31 = vadd.f32 %v891_v25, %v829_v23  ;;  %v1096_v27 = vpop.f32.mrb[6].mxu0  ;;  %v759_v32 = vadd.f32 %v1093_v19, %v758_v22  ;;  %v1816_v48 = vpop.f32.mrb[6].mxu1 }
 0x104   :  { %698 = vst [vmem:[%s2150_s4 + $0x38] sm:$0xff] %v1096_v27  ;;  %v402_v35 = vpop.f32.mrb[7].mxu0  ;;  %730 = vst [vmem:[%s2150_s4 + $0x138] sm:$0xff] %v1816_v48  ;;  %v1822_v40 = vpop.f32.mrb[7].mxu1  ;;  %v832_v49 = vmul.f32 %v1096_v27, %v1096_v27 }
 0x105   :  { %697 = vst [vmem:[%s2150_s4 + $0x30] sm:$0xff] %v402_v35  ;;  %v760_v36 = vadd.f32 %v759_v32, %v402_v35  ;;  %v831_v37 = vmul.f32 %v402_v35, %v402_v35  ;;  %v893_v38 = vadd.f32 %v892_v31, %v830_v30  ;;  %729 = vst [vmem:[%s2150_s4 + $0x130] sm:$0xff] %v1822_v40 }
 0x107   :  { %v894_v52 = vadd.f32 %v893_v38, %v831_v37  ;;  %v1099_v53 = vpop.f32.mrb[8].mxu0  ;;  %v761_v54 = vadd.f32 %v1096_v27, %v760_v36  ;;  %v1834_v59 = vpop.f32.mrb[8].mxu1 }
 0x108   :  { %700 = vst [vmem:[%s2150_s4 + $0x48] sm:$0xff] %v1099_v53  ;;  %v412_v44 = vpop.f32.mrb[9].mxu0  ;;  %732 = vst [vmem:[%s2150_s4 + $0x148] sm:$0xff] %v1834_v59  ;;  %v1840_v61 = vpop.f32.mrb[9].mxu1  ;;  %v834_v63 = vmul.f32 %v1099_v53, %v1099_v53 }
 0x109   :  { %699 = vst [vmem:[%s2150_s4 + $0x40] sm:$0xff] %v412_v44  ;;  %v762_v55 = vadd.f32 %v761_v54, %v412_v44  ;;  %v833_v10 = vmul.f32 %v412_v44, %v412_v44  ;;  %v895_v56 = vadd.f32 %v894_v52, %v832_v49  ;;  %731 = vst [vmem:[%s2150_s4 + $0x140] sm:$0xff] %v1840_v61 }
 0x10b   :  { %v896_v1 = vadd.f32 %v895_v56, %v833_v10  ;;  %v1102_v14 = vpop.f32.mrb[10].mxu0  ;;  %v763_v6 = vadd.f32 %v1099_v53, %v762_v55  ;;  %v1852_v4 = vpop.f32.mrb[10].mxu1 }
 0x10c   :  { %702 = vst [vmem:[%s2150_s4 + $0x58] sm:$0xff] %v1102_v14  ;;  %v422_v41 = vpop.f32.mrb[11].mxu0  ;;  %734 = vst [vmem:[%s2150_s4 + $0x158] sm:$0xff] %v1852_v4  ;;  %v1858_v47 = vpop.f32.mrb[11].mxu1  ;;  %v836_v62 = vmul.f32 %v1102_v14, %v1102_v14 }
 0x10d   :  { %701 = vst [vmem:[%s2150_s4 + $0x50] sm:$0xff] %v422_v41  ;;  %v764_v24 = vadd.f32 %v763_v6, %v422_v41  ;;  %v835_v46 = vmul.f32 %v422_v41, %v422_v41  ;;  %v897_v60 = vadd.f32 %v896_v1, %v834_v63  ;;  %733 = vst [vmem:[%s2150_s4 + $0x150] sm:$0xff] %v1858_v47 }
 0x10f   :  { %v898_v5 = vadd.f32 %v897_v60, %v835_v46  ;;  %v1105_v29 = vpop.f32.mrb[12].mxu0  ;;  %v765_v2 = vadd.f32 %v1102_v14, %v764_v24  ;;  %v1870_v9 = vpop.f32.mrb[12].mxu1 }
 0x110   :  { %704 = vst [vmem:[%s2150_s4 + $0x68] sm:$0xff] %v1105_v29  ;;  %v432_v3 = vpop.f32.mrb[13].mxu0  ;;  %736 = vst [vmem:[%s2150_s4 + $0x168] sm:$0xff] %v1870_v9  ;;  %v1876_v39 = vpop.f32.mrb[13].mxu1  ;;  %v838_v11 = vmul.f32 %v1105_v29, %v1105_v29 }
 0x111   :  { %703 = vst [vmem:[%s2150_s4 + $0x60] sm:$0xff] %v432_v3  ;;  %v766_v33 = vadd.f32 %v765_v2, %v432_v3  ;;  %v837_v34 = vmul.f32 %v432_v3, %v432_v3  ;;  %v899_v8 = vadd.f32 %v898_v5, %v836_v62  ;;  %735 = vst [vmem:[%s2150_s4 + $0x160] sm:$0xff] %v1876_v39 }
 0x113   :  { %v900_v16 = vadd.f32 %v899_v8, %v837_v34  ;;  %v1108_v43 = vpop.f32.mrb[14].mxu0  ;;  %v767_v45 = vadd.f32 %v1105_v29, %v766_v33  ;;  %v1888_v42 = vpop.f32.mrb[14].mxu1 }
 0x114   :  { %706 = vst [vmem:[%s2150_s4 + $0x78] sm:$0xff] %v1108_v43  ;;  %v442_v17 = vpop.f32.mrb[15].mxu0  ;;  %738 = vst [vmem:[%s2150_s4 + $0x178] sm:$0xff] %v1888_v42  ;;  %v1894_v0 = vpop.f32.mrb[15].mxu1  ;;  %v840_v15 = vmul.f32 %v1108_v43, %v1108_v43 }
 0x115   :  { %705 = vst [vmem:[%s2150_s4 + $0x70] sm:$0xff] %v442_v17  ;;  %v768_v57 = vadd.f32 %v767_v45, %v442_v17  ;;  %v839_v7 = vmul.f32 %v442_v17, %v442_v17  ;;  %v901_v58 = vadd.f32 %v900_v16, %v838_v11  ;;  %737 = vst [vmem:[%s2150_s4 + $0x170] sm:$0xff] %v1894_v0 }
 0x117   :  { %v902_v18 = vadd.f32 %v901_v58, %v839_v7  ;;  %v1111_v19 = vpop.f32.mrb[16].mxu0  ;;  %v769_v20 = vadd.f32 %v1108_v43, %v768_v57  ;;  %v1906_v30 = vpop.f32.mrb[16].mxu1 }
 0x118   :  { %708 = vst [vmem:[%s2150_s4 + $0x88] sm:$0xff] %v1111_v19  ;;  %v452_v21 = vpop.f32.mrb[17].mxu0  ;;  %740 = vst [vmem:[%s2150_s4 + $0x188] sm:$0xff] %v1906_v30  ;;  %v1912_v31 = vpop.f32.mrb[17].mxu1  ;;  %v842_v27 = vmul.f32 %v1111_v19, %v1111_v19 }
 0x119   :  { %707 = vst [vmem:[%s2150_s4 + $0x80] sm:$0xff] %v452_v21  ;;  %v770_v22 = vadd.f32 %v769_v20, %v452_v21  ;;  %v841_v23 = vmul.f32 %v452_v21, %v452_v21  ;;  %v903_v25 = vadd.f32 %v902_v18, %v840_v15  ;;  %739 = vst [vmem:[%s2150_s4 + $0x180] sm:$0xff] %v1912_v31 }
 0x11b   :  { %v904_v32 = vadd.f32 %v903_v25, %v841_v23  ;;  %v1114_v35 = vpop.f32.mrb[18].mxu0  ;;  %v771_v36 = vadd.f32 %v1111_v19, %v770_v22  ;;  %v1924_v53 = vpop.f32.mrb[18].mxu1 }
 0x11c   :  { %710 = vst [vmem:[%s2150_s4 + $0x98] sm:$0xff] %v1114_v35  ;;  %v462_v37 = vpop.f32.mrb[19].mxu0  ;;  %742 = vst [vmem:[%s2150_s4 + $0x198] sm:$0xff] %v1924_v53  ;;  %v1930_v54 = vpop.f32.mrb[19].mxu1  ;;  %v844_v44 = vmul.f32 %v1114_v35, %v1114_v35 }
 0x11d   :  { %709 = vst [vmem:[%s2150_s4 + $0x90] sm:$0xff] %v462_v37  ;;  %v772_v38 = vadd.f32 %v771_v36, %v462_v37  ;;  %v843_v49 = vmul.f32 %v462_v37, %v462_v37  ;;  %v905_v52 = vadd.f32 %v904_v32, %v842_v27  ;;  %741 = vst [vmem:[%s2150_s4 + $0x190] sm:$0xff] %v1930_v54 }
 0x11f   :  { %v906_v55 = vadd.f32 %v905_v52, %v843_v49  ;;  %v1117_v10 = vpop.f32.mrb[20].mxu0  ;;  %v773_v56 = vadd.f32 %v1114_v35, %v772_v38  ;;  %v1942_v41 = vpop.f32.mrb[20].mxu1 }
 0x120   :  { %712 = vst [vmem:[%s2150_s4 + $0xa8] sm:$0xff] %v1117_v10  ;;  %v472_v63 = vpop.f32.mrb[21].mxu0  ;;  %744 = vst [vmem:[%s2150_s4 + $0x1a8] sm:$0xff] %v1942_v41  ;;  %v1948_v24 = vpop.f32.mrb[21].mxu1  ;;  %v846_v46 = vmul.f32 %v1117_v10, %v1117_v10 }
 0x121   :  { %711 = vst [vmem:[%s2150_s4 + $0xa0] sm:$0xff] %v472_v63  ;;  %v774_v1 = vadd.f32 %v773_v56, %v472_v63  ;;  %v845_v14 = vmul.f32 %v472_v63, %v472_v63  ;;  %v907_v6 = vadd.f32 %v906_v55, %v844_v44  ;;  %743 = vst [vmem:[%s2150_s4 + $0x1a0] sm:$0xff] %v1948_v24 }
 0x123   :  { %v908_v60 = vadd.f32 %v907_v6, %v845_v14  ;;  %v1120_v62 = vpop.f32.mrb[22].mxu0  ;;  %v775_v5 = vadd.f32 %v1117_v10, %v774_v1  ;;  %v1960_v34 = vpop.f32.mrb[22].mxu1 }
 0x124   :  { %714 = vst [vmem:[%s2150_s4 + $0xb8] sm:$0xff] %v1120_v62  ;;  %v482_v29 = vpop.f32.mrb[23].mxu0  ;;  %746 = vst [vmem:[%s2150_s4 + $0x1b8] sm:$0xff] %v1960_v34  ;;  %v1966_v8 = vpop.f32.mrb[23].mxu1  ;;  %v848_v11 = vmul.f32 %v1120_v62, %v1120_v62 }
 0x125   :  { %713 = vst [vmem:[%s2150_s4 + $0xb0] sm:$0xff] %v482_v29  ;;  %v776_v2 = vadd.f32 %v775_v5, %v482_v29  ;;  %v847_v3 = vmul.f32 %v482_v29, %v482_v29  ;;  %v909_v33 = vadd.f32 %v908_v60, %v846_v46  ;;  %745 = vst [vmem:[%s2150_s4 + $0x1b0] sm:$0xff] %v1966_v8 }
 0x127   :  { %v910_v16 = vadd.f32 %v909_v33, %v847_v3  ;;  %v1123_v43 = vpop.f32.mrb[24].mxu0  ;;  %v777_v45 = vadd.f32 %v1120_v62, %v776_v2  ;;  %v1978_v15 = vpop.f32.mrb[24].mxu1 }
 0x128   :  { %716 = vst [vmem:[%s2150_s4 + $0xc8] sm:$0xff] %v1123_v43  ;;  %v492_v17 = vpop.f32.mrb[25].mxu0  ;;  %748 = vst [vmem:[%s2150_s4 + $0x1c8] sm:$0xff] %v1978_v15  ;;  %v1984_v18 = vpop.f32.mrb[25].mxu1  ;;  %v850_v19 = vmul.f32 %v1123_v43, %v1123_v43 }
 0x129   :  { %715 = vst [vmem:[%s2150_s4 + $0xc0] sm:$0xff] %v492_v17  ;;  %v778_v57 = vadd.f32 %v777_v45, %v492_v17  ;;  %v849_v7 = vmul.f32 %v492_v17, %v492_v17  ;;  %v911_v58 = vadd.f32 %v910_v16, %v848_v11  ;;  %747 = vst [vmem:[%s2150_s4 + $0x1c0] sm:$0xff] %v1984_v18 }
 0x12a   :  { %v857_v45 = vmul.f32 %v1768_v51, %v1768_v51 }
 0x12b   :  { %v912_v20 = vadd.f32 %v911_v58, %v849_v7  ;;  %v1126_v21 = vpop.f32.mrb[26].mxu0  ;;  %v779_v22 = vadd.f32 %v1123_v43, %v778_v57  ;;  %v1996_v35 = vpop.f32.mrb[26].mxu1  ;;  %v858_v7 = vmul.f32 %v1762_v50, %v1762_v50 }
 0x12c   :  { %718 = vst [vmem:[%s2150_s4 + $0xd8] sm:$0xff] %v1126_v21  ;;  %v502_v23 = vpop.f32.mrb[27].mxu0  ;;  %750 = vst [vmem:[%s2150_s4 + $0x1d8] sm:$0xff] %v1996_v35  ;;  %v2002_v36 = vpop.f32.mrb[27].mxu1  ;;  %v852_v37 = vmul.f32 %v1126_v21, %v1126_v21 }
 0x12d   :  { %717 = vst [vmem:[%s2150_s4 + $0xd0] sm:$0xff] %v502_v23  ;;  %v780_v25 = vadd.f32 %v779_v22, %v502_v23  ;;  %v851_v27 = vmul.f32 %v502_v23, %v502_v23  ;;  %v913_v32 = vadd.f32 %v912_v20, %v850_v19  ;;  %749 = vst [vmem:[%s2150_s4 + $0x1d0] sm:$0xff] %v2002_v36 }
 0x12e   :  { %v859_v20 = vmul.f32 %v1786_v13, %v1786_v13  ;;  %v860_v23 = vmul.f32 %v1780_v12, %v1780_v12 }
 0x12f   :  { %v914_v38 = vadd.f32 %v913_v32, %v851_v27  ;;  %v1129_v49 = vpop.f32.mrb[28].mxu0  ;;  %v781_v52 = vadd.f32 %v1126_v21, %v780_v25  ;;  %v2014_v63 = vpop.f32.mrb[28].mxu1 }
 0x130   :  { %720 = vst [vmem:[%s2150_s4 + $0xe8] sm:$0xff] %v1129_v49  ;;  %v512_v44 = vpop.f32.mrb[29].mxu0  ;;  %752 = vst [vmem:[%s2150_s4 + $0x1e8] sm:$0xff] %v2014_v63  ;;  %v2020_v1 = vpop.f32.mrb[29].mxu1  ;;  %v854_v14 = vmul.f32 %v1129_v49, %v1129_v49 }
 0x131   :  { %719 = vst [vmem:[%s2150_s4 + $0xe0] sm:$0xff] %v512_v44  ;;  %v782_v55 = vadd.f32 %v781_v52, %v512_v44  ;;  %v853_v10 = vmul.f32 %v512_v44, %v512_v44  ;;  %v915_v56 = vadd.f32 %v914_v38, %v852_v37  ;;  %751 = vst [vmem:[%s2150_s4 + $0x1e0] sm:$0xff] %v2020_v1 }
 0x133   :  { %v916_v6 = vadd.f32 %v915_v56, %v853_v10  ;;  %v1132_v46 = vpop.f32.mrb[30].mxu0  ;;  %v783_v60 = vadd.f32 %v1129_v49, %v782_v55  ;;  %v2032_v3 = vpop.f32.mrb[30].mxu1 }
 0x134   :  { %722 = vst [vmem:[%s2150_s4 + $0xf8] sm:$0xff] %v1132_v46  ;;  %v522_v62 = vpop.f32.mrb[31].mxu0  ;;  %754 = vst [vmem:[%s2150_s4 + $0x1f8] sm:$0xff] %v2032_v3  ;;  %v2038_v33 = vpop.f32.mrb[31].mxu1  ;;  %v856_v11 = vmul.f32 %v1132_v46, %v1132_v46 }
 0x135   :  { %721 = vst [vmem:[%s2150_s4 + $0xf0] sm:$0xff] %v522_v62  ;;  %v784_v5 = vadd.f32 %v783_v60, %v522_v62  ;;  %v855_v29 = vmul.f32 %v522_v62, %v522_v62  ;;  %v917_v2 = vadd.f32 %v916_v6, %v854_v14  ;;  %753 = vst [vmem:[%s2150_s4 + $0x1f0] sm:$0xff] %v2038_v33 }
 0x137   :  { %v785_v16 = vadd.f32 %v1132_v46, %v784_v5  ;;  %v918_v43 = vadd.f32 %v917_v2, %v855_v29 }
 0x139   :  { %v919_v17 = vadd.f32 %v918_v43, %v856_v11  ;;  %v786_v57 = vadd.f32 %v785_v16, %v1768_v51  ;;  %v861_v51 = vmul.f32 %v1804_v28, %v1804_v28 }
 0x13b   :  { %v920_v58 = vadd.f32 %v919_v17, %v857_v45  ;;  %v787_v19 = vadd.f32 %v1762_v50, %v786_v57  ;;  %v862_v50 = vmul.f32 %v1798_v26, %v1798_v26 }
 0x13d   :  { %v788_v21 = vadd.f32 %v787_v19, %v1786_v13  ;;  %v921_v22 = vadd.f32 %v920_v58, %v858_v7  ;;  %v863_v13 = vmul.f32 %v1822_v40, %v1822_v40 }
 0x13f   :  { %v922_v25 = vadd.f32 %v921_v22, %v859_v20  ;;  %v789_v27 = vadd.f32 %v1780_v12, %v788_v21  ;;  %v864_v12 = vmul.f32 %v1816_v48, %v1816_v48 }
 0x141   :  { %v790_v32 = vadd.f32 %v789_v27, %v1804_v28  ;;  %v923_v37 = vadd.f32 %v922_v25, %v860_v23  ;;  %v865_v28 = vmul.f32 %v1840_v61, %v1840_v61 }
 0x143   :  { %v924_v38 = vadd.f32 %v923_v37, %v861_v51  ;;  %v791_v49 = vadd.f32 %v1798_v26, %v790_v32  ;;  %v866_v26 = vmul.f32 %v1834_v59, %v1834_v59 }
 0x145   :  { %v792_v52 = vadd.f32 %v791_v49, %v1822_v40  ;;  %v925_v44 = vadd.f32 %v924_v38, %v862_v50  ;;  %v867_v40 = vmul.f32 %v1858_v47, %v1858_v47 }
 0x147   :  { %v926_v55 = vadd.f32 %v925_v44, %v863_v13  ;;  %v793_v10 = vadd.f32 %v1816_v48, %v792_v52  ;;  %v868_v48 = vmul.f32 %v1852_v4, %v1852_v4 }
 0x149   :  { %v794_v56 = vadd.f32 %v793_v10, %v1840_v61  ;;  %v927_v14 = vadd.f32 %v926_v55, %v864_v12  ;;  %v869_v61 = vmul.f32 %v1876_v39, %v1876_v39 }
 0x14b   :  { %v928_v6 = vadd.f32 %v927_v14, %v865_v28  ;;  %v795_v46 = vadd.f32 %v1834_v59, %v794_v56  ;;  %v870_v59 = vmul.f32 %v1870_v9, %v1870_v9 }
 0x14d   :  { %v796_v60 = vadd.f32 %v795_v46, %v1858_v47  ;;  %v929_v62 = vadd.f32 %v928_v6, %v866_v26  ;;  %v871_v47 = vmul.f32 %v1894_v0, %v1894_v0 }
 0x14f   :  { %v930_v5 = vadd.f32 %v929_v62, %v867_v40  ;;  %v797_v29 = vadd.f32 %v1852_v4, %v796_v60  ;;  %v872_v4 = vmul.f32 %v1888_v42, %v1888_v42 }
 0x151   :  { %v798_v2 = vadd.f32 %v797_v29, %v1876_v39  ;;  %v931_v11 = vadd.f32 %v930_v5, %v868_v48  ;;  %v873_v39 = vmul.f32 %v1912_v31, %v1912_v31 }
 0x153   :  { %v932_v16 = vadd.f32 %v931_v11, %v869_v61  ;;  %v799_v43 = vadd.f32 %v1870_v9, %v798_v2  ;;  %v874_v9 = vmul.f32 %v1906_v30, %v1906_v30 }
 0x155   :  { %v800_v45 = vadd.f32 %v799_v43, %v1894_v0  ;;  %v933_v17 = vadd.f32 %v932_v16, %v870_v59  ;;  %v875_v0 = vmul.f32 %v1930_v54, %v1930_v54 }
 0x157   :  { %v934_v57 = vadd.f32 %v933_v17, %v871_v47  ;;  %v801_v7 = vadd.f32 %v1888_v42, %v800_v45  ;;  %v876_v42 = vmul.f32 %v1924_v53, %v1924_v53 }
 0x159   :  { %v802_v58 = vadd.f32 %v801_v7, %v1912_v31  ;;  %v935_v19 = vadd.f32 %v934_v57, %v872_v4  ;;  %v877_v31 = vmul.f32 %v1948_v24, %v1948_v24 }
 0x15b   :  { %v936_v20 = vadd.f32 %v935_v19, %v873_v39  ;;  %v803_v21 = vadd.f32 %v1906_v30, %v802_v58  ;;  %v878_v30 = vmul.f32 %v1942_v41, %v1942_v41 }
 0x15d   :  { %v804_v22 = vadd.f32 %v803_v21, %v1930_v54  ;;  %v937_v23 = vadd.f32 %v936_v20, %v874_v9  ;;  %v879_v54 = vmul.f32 %v1966_v8, %v1966_v8 }
 0x15f   :  { %v938_v25 = vadd.f32 %v937_v23, %v875_v0  ;;  %v805_v27 = vadd.f32 %v1924_v53, %v804_v22  ;;  %v880_v53 = vmul.f32 %v1960_v34, %v1960_v34 }
 0x161   :  { %v806_v51 = vadd.f32 %v805_v27, %v1948_v24  ;;  %v939_v32 = vadd.f32 %v938_v25, %v876_v42  ;;  %v881_v24 = vmul.f32 %v1984_v18, %v1984_v18 }
 0x163   :  { %v940_v37 = vadd.f32 %v939_v32, %v877_v31  ;;  %v807_v50 = vadd.f32 %v1942_v41, %v806_v51  ;;  %v882_v41 = vmul.f32 %v1978_v15, %v1978_v15 }
 0x165   :  { %v808_v38 = vadd.f32 %v807_v50, %v1966_v8  ;;  %v941_v49 = vadd.f32 %v940_v37, %v878_v30  ;;  %v883_v8 = vmul.f32 %v2002_v36, %v2002_v36 }
 0x167   :  { %v942_v13 = vadd.f32 %v941_v49, %v879_v54  ;;  %v809_v52 = vadd.f32 %v1960_v34, %v808_v38  ;;  %v884_v34 = vmul.f32 %v1996_v35, %v1996_v35 }
 0x169   :  { %v810_v44 = vadd.f32 %v809_v52, %v1984_v18  ;;  %v943_v12 = vadd.f32 %v942_v13, %v880_v53  ;;  %v885_v18 = vmul.f32 %v2020_v1, %v2020_v1 }
 0x16b   :  { %v944_v55 = vadd.f32 %v943_v12, %v881_v24  ;;  %v811_v10 = vadd.f32 %v1978_v15, %v810_v44  ;;  %v886_v15 = vmul.f32 %v2014_v63, %v2014_v63 }
 0x16d   :  { %v812_v28 = vadd.f32 %v811_v10, %v2002_v36  ;;  %v945_v56 = vadd.f32 %v944_v55, %v882_v41  ;;  %v887_v36 = vmul.f32 %v2038_v33, %v2038_v33 }
 0x16f   :  { %v946_v14 = vadd.f32 %v945_v56, %v883_v8  ;;  %v813_v26 = vadd.f32 %v1996_v35, %v812_v28  ;;  %v888_v35 = vmul.f32 %v2032_v3, %v2032_v3 }
 0x171   :  { %v814_v6 = vadd.f32 %v813_v26, %v2020_v1  ;;  %v947_v46 = vadd.f32 %v946_v14, %v884_v34 }
 0x173   :  { %v948_v40 = vadd.f32 %v947_v46, %v885_v18  ;;  %v815_v60 = vadd.f32 %v2014_v63, %v814_v6 }
 0x175   :  { %v816_v62 = vadd.f32 %v815_v60, %v2038_v33  ;;  %v949_v48 = vadd.f32 %v948_v40, %v886_v15 }
 0x177   :  { %v817_v5 = vadd.f32 %v2032_v3, %v816_v62  ;;  %v950_v29 = vadd.f32 %v949_v48, %v887_v36 }
 0x179   :  { %v818_v1 = vrot.slane %v817_v5, 4  ;;  %v951_v61 = vadd.f32 %v950_v29, %v888_v35 }
 0x17b   :  { %v819_v2 = vadd.f32 %v818_v1, %v817_v5  ;;  %v952_v11 = vrot.slane %v951_v61, 4 }
 0x17d   :  { %v820_v59 = vrot.slane %v819_v2, 2  ;;  %v953_v16 = vadd.f32 %v952_v11, %v951_v61 }
 0x17f   :  { %v821_v43 = vadd.f32 %v820_v59, %v819_v2  ;;  %v954_v63 = vrot.slane %v953_v16, 2 }
 0x181   :  { %v822_v47 = vrot.slane %v821_v43, 1  ;;  %v955_v45 = vadd.f32 %v954_v63, %v953_v16 }
 0x183   :  { %v823_v17 = vadd.f32 %v822_v47, %v821_v43  ;;  %v956_v4 = vrot.slane %v955_v45, 1 }
 0x185   :  { %824 = vst [vmem:[%s2151_s5] sm:$0x1] %v823_v17  ;;  %v957_v33 = vadd.f32 %v956_v4, %v955_v45 }
 0x187   :  { %958 = vst [vmem:[%s2152_s6] sm:$0x1] %v957_v33 }

// kernel: bottleneck_forward.5
= control target key start
LH: loop header
LB: loop body
LE: loop exit
PB: predicated region body
PF: predicated region fallthrough
CT: control target
= control target key end

     0   :  { %s6194_s27 = smov 0   ;;  %s6196_s28 = smov 0   ;;  %s8814_s0 = inlined_call_operand.vmem [shape: f32[2,6,10,10,128], index: 0, kind: input, shape index: {}, may-alias: {0,1,2}]   ;;  %s8815_s1 = inlined_call_operand.vmem [shape: f32[2,6,10,10,128], index: 1, kind: input, shape index: {}, may-alias: {0,1,2}]   ;;  %s8816_s2 = inlined_call_operand.vmem [shape: f32[2,6,10,10,128], index: 2, kind: input, shape index: {}, may-alias: {0,1,2}]   ;;  %s8817_s3 = inlined_call_operand.vmem [shape: f32[1,128], index: 3, kind: input, shape index: {}]   ;;  %s8818_s4 = inlined_call_operand.vmem [shape: f32[1,128], index: 4, kind: input, shape index: {}]   ;;  %s8819_s5 = inlined_call_operand.vmem [shape: f32[9,384,128], index: 5, kind: input, shape index: {}]   ;;  %s8820_s6 = inlined_call_operand.vmem [shape: f32[2,4,8,8,128], index: 6, kind: output, shape index: {0}]   ;;  %s8821_s7 = inlined_call_operand.vmem [shape: f32[8,1,128], index: 7, kind: output, shape index: {1}]   ;;  %s8822_s8 = inlined_call_operand.vmem [shape: f32[8,1,128], index: 8, kind: output, shape index: {2}]  }
   0x1   :  { %s6198_s29 = smov 0   ;;  %s6200_s30 = smov 0  }
   0x2   :  { %s6202_s9 = smov 0  }
   0x3 LB: > { %s28_s10 = sadd.s32 1, %s6138_s29  ;;  %s31_s11 = sadd.s32 1, %s6142_s30  ;;  %s6146_s9 = sphi %s6202_s9, %s19_s9   ;;  %s6142_s30 = sphi %s6200_s30, %s8856_s30   ;;  %s6138_s29 = sphi %s6198_s29, %s8855_s29   ;;  %s6134_s28 = sphi %s6196_s28, %s8854_s28   ;;  %s6130_s27 = sphi %s6194_s27, %s8853_s27  }
   0x4   : > { %p29_p0 = scmp.ge.s32.totalorder %s28_s10, 4  ;;  %p3765_p1 = scmp.ge.s32.totalorder %s6146_s9, 1 }
   0x5   : > { %p335_p2 = scmp.lt.s32.totalorder %s6146_s9, 9 }
   0x6   : > { %s8858_s10 = smov (%p29_p0, %s28_s10), 0  ;;  %s8860_s11 = smov (!%p29_p0, %s31_s11), %s6142_s30 }
   0x7   : > { %p336_p3 = pnand %p3765_p1, %p335_p2  ;;  %p33_p4 = scmp.ge.s32.totalorder %s8860_s11, 2 }
   0x9   : > { %s8862_s11 = smov (%p33_p4, %s8860_s11), 0  ;;  %339 = sbr.rel (%p336_p3) target bundleno = 572 (0x23c), region = 44 }
  0x10   : > { %v3793_v0 = vld [vmem:[%s8819_s5 + $0x200] sm:$0xff]  ;;  %v3794_v1 = vld [vmem:[%s8819_s5 + $0x208] sm:$0xff]  ;;  %p407_p5 = scmp.lt.s32.totalorder %s6134_s28, 1  ;;  %p409_p6 = scmp.lt.s32.totalorder %s6130_s27, 5  ;;  %v3795_v9 = vld [vmem:[%s8819_s5 + $0x210] sm:$0xff]  ;;  %v463_v28 = vlaneseq  ;;  %vm617_vm5 = vcmask 1046528  }
  0x11   : > { %v3809_v2 = vld [vmem:[%s8819_s5 + $0x280] sm:$0xff]  ;;  %v5347_v3 = vpack.c.bf16 %v3794_v1, %v3793_v0  ;;  %v3810_v4 = vld [vmem:[%s8819_s5 + $0x288] sm:$0xff]  ;;  %v3796_v10 = vld [vmem:[%s8819_s5 + $0x218] sm:$0xff]  ;;  %p498_p7 = scmp.ge.s32.totalorder %s6130_s27, 1  ;;  %p499_p8 = scmp.le.s32.totalorder %s6130_s27, 4  ;;  %vm650_vm6 = vcmask 1045504  }
  0x12   : > { %v3777_v5 = vld [vmem:[%s8819_s5 + $0x180] sm:$0xff]  ;;  %v3778_v6 = vld [vmem:[%s8819_s5 + $0x188] sm:$0xff]  ;;  %v5379_v7 = vpack.c.bf16 %v3810_v4, %v3809_v2  ;;  %v3811_v11 = vld [vmem:[%s8819_s5 + $0x290] sm:$0xff]  ;;  %s6258_s15 = scalar_select %p407_p5, %s6134_s28, 1  ;;  %v5351_v12 = vpack.c.bf16 %v3796_v10, %v3795_v9  ;;  %v6320_v38 = vshrl.u32 %v463_v28, 7 }
  0x13   : > { %v5349_v8 = vpack.c.bf16 %v3778_v6, %v3777_v5  ;;  %5348 = vmatprep.subr.bf16.mxu0 %v5347_v3  ;;  %v3812_v13 = vld [vmem:[%s8819_s5 + $0x298] sm:$0xff]  ;;  %v3779_v14 = vld [vmem:[%s8819_s5 + $0x190] sm:$0xff]  ;;  %s410_s22 = scalar_select %p409_p6, %s6130_s27, 5  ;;  %v3797_v18 = vld [vmem:[%s8819_s5 + $0x220] sm:$0xff] }
  0x14   : > { %v3780_v15 = vld [vmem:[%s8819_s5 + $0x198] sm:$0xff]  ;;  %5380 = vmatprep.subr.bf16.mxu1 %v5379_v7  ;;  %v5383_v16 = vpack.c.bf16 %v3812_v13, %v3811_v11  ;;  %v3798_v19 = vld [vmem:[%s8819_s5 + $0x228] sm:$0xff]  ;;  %v3813_v20 = vld [vmem:[%s8819_s5 + $0x2a0] sm:$0xff]  ;;  %s6282_s14 = smul.u32 120, %s6258_s15  ;;  %p6330_p9 = pnand %p499_p8, %p498_p7  ;;  %v6352_v48 = vadd.s32 8, %v6320_v38  ;;  %vm466_vm0 = vcmp.ge.s32.totalorder %v6320_v38, 1 }
  0x15   : > { %5350 = vmatpush3.bf16.msra.mxu0 %v5349_v8  ;;  %v5353_v17 = vpack.c.bf16 %v3780_v15, %v3779_v14  ;;  %5382 = vmatpush3.bf16.msra.mxu1 %v5379_v7  ;;  %v5355_v21 = vpack.c.bf16 %v3798_v19, %v3797_v18  ;;  %v3814_v22 = vld [vmem:[%s8819_s5 + $0x2a8] sm:$0xff]  ;;  %v3781_v23 = vld [vmem:[%s8819_s5 + $0x1a0] sm:$0xff]  ;;  %s6059_s23 = smul.u32 20, %s410_s22  ;;  %v3799_v26 = vld [vmem:[%s8819_s5 + $0x230] sm:$0xff]  ;;  %p440_p4 = scmp.lt.s32.totalorder %s6130_s27, 3 }
  0x16   : > { %5352 = vmatprep.subr.bf16.mxu0 %v5351_v12  ;;  %v3782_v24 = vld [vmem:[%s8819_s5 + $0x1a8] sm:$0xff]  ;;  %5384 = vmatprep.subr.bf16.mxu1 %v5383_v16  ;;  %v5387_v25 = vpack.c.bf16 %v3814_v22, %v3813_v20  ;;  %v3800_v27 = vld [vmem:[%s8819_s5 + $0x238] sm:$0xff]  ;;  %v3815_v29 = vld [vmem:[%s8819_s5 + $0x2b0] sm:$0xff]  ;;  %vm473_vm2 = vcmp.le.s32.totalorder %v6352_v48, 8  ;;  %s3770_s20 = sshll.u32 %s6258_s15, 5  ;;  %s3772_s15 = sshll.u32 %s6134_s28, 2 }
  0x17   : > { %v3816_v30 = vld [vmem:[%s8819_s5 + $0x2b8] sm:$0xff]  ;;  %s413_s22 = sadd.s32 %s6282_s14, %s6059_s23  ;;  %v5357_v31 = vpack.c.bf16 %v3782_v24, %v3781_v23  ;;  %v5359_v32 = vpack.c.bf16 %v3800_v27, %v3799_v26  ;;  %v3783_v33 = vld [vmem:[%s8819_s5 + $0x1b0] sm:$0xff]  ;;  %v3801_v36 = vld [vmem:[%s8819_s5 + $0x240] sm:$0xff] }
  0x18   : > { %v3784_v34 = vld [vmem:[%s8819_s5 + $0x1b8] sm:$0xff]  ;;  %v5391_v35 = vpack.c.bf16 %v3816_v30, %v3815_v29  ;;  %v3802_v37 = vld [vmem:[%s8819_s5 + $0x248] sm:$0xff]  ;;  %s3766_s13 = sshll.u32 %s413_s22, 3  ;;  %v3817_v39 = vld [vmem:[%s8819_s5 + $0x2c0] sm:$0xff] }
  0x19   : > { %5354 = vmatpush3.bf16.msra.mxu0 %v5353_v17  ;;  %5386 = vmatpush3.bf16.msra.mxu1 %v5383_v16  ;;  %v3818_v40 = vld [vmem:[%s8819_s5 + $0x2c8] sm:$0xff]  ;;  %v5361_v41 = vpack.c.bf16 %v3784_v34, %v3783_v33  ;;  %v5363_v42 = vpack.c.bf16 %v3802_v37, %v3801_v36  ;;  %v3785_v43 = vld [vmem:[%s8819_s5 + $0x1c0] sm:$0xff]  ;;  %s6343_s12 = scalar_lea.vmem %s8814_s0, %s3766_s13  ;;  %v3803_v46 = vld [vmem:[%s8819_s5 + $0x250] sm:$0xff]  ;;  %s6738_s13 = sadd.s32 1, %s6130_s27 }
  0x1a   : > { %5356 = vmatprep.subr.bf16.mxu0 %v5355_v21  ;;  %5388 = vmatprep.subr.bf16.mxu1 %v5387_v25  ;;  %v3786_v44 = vld [vmem:[%s8819_s5 + $0x1c8] sm:$0xff]  ;;  %v5395_v45 = vpack.c.bf16 %v3818_v40, %v3817_v39  ;;  %v3804_v47 = vld [vmem:[%s8819_s5 + $0x258] sm:$0xff]  ;;  %s3774_s22 = scalar_select %p6330_p9, 0, 1  ;;  %v3819_v49 = vld [vmem:[%s8819_s5 + $0x2d0] sm:$0xff] }
  0x1b   : > { %v3820_v50 = vld [vmem:[%s8819_s5 + $0x2d8] sm:$0xff]  ;;  %v5365_v51 = vpack.c.bf16 %v3786_v44, %v3785_v43  ;;  %v6365_v52 = vld [vmem:[%s8817_s3] ss:$0 sm:$0xff]  ;;  %v480_v54 = vld [vmem:[%s6343_s12 + $0x10] sm:$0xff]  ;;  %v5367_v56 = vpack.c.bf16 %v3804_v47, %v3803_v46  ;;  %p419_p10 = scmp.lt.s32.totalorder %s6738_s13, 5  ;;  %p1508_p11 = scmp.ge.s32.totalorder %s6738_s13, 1 }
  0x1c   : > { %v6370_v53 = vld [vmem:[%s8818_s4] ss:$0 sm:$0xff]  ;;  %v503_v55 = vstv %s3774_s22  ;;  %v3787_v57 = vld [vmem:[%s8819_s5 + $0x1d0] sm:$0xff]  ;;  %v3788_v58 = vld [vmem:[%s8819_s5 + $0x1d8] sm:$0xff]  ;;  %v517_v60 = vmul.f32 %v6365_v52, %v480_v54  ;;  %v5399_v61 = vpack.c.bf16 %v3820_v50, %v3819_v49  ;;  %p1509_p12 = scmp.le.s32.totalorder %s6738_s13, 4  ;;  %s448_s22 = sadd.s32 %s6130_s27, %s3772_s15 }
  0x1d   : > { %5358 = vmatpush3.bf16.msra.mxu0 %v5357_v31  ;;  %5390 = vmatpush3.bf16.msra.mxu1 %v5387_v25  ;;  %v481_v59 = vld [vmem:[%s6343_s12 + $0x18] sm:$0x3]  ;;  %vm504_vm1 = vcmp.eq.s32.totalorder %v503_v55, 1  ;;  %v3805_v62 = vld [vmem:[%s8819_s5 + $0x260] sm:$0xff]  ;;  %v3806_v63 = vld [vmem:[%s8819_s5 + $0x268] sm:$0xff]  ;;  %v5369_v6 = vpack.c.bf16 %v3788_v58, %v3787_v57  ;;  %s6805_s17 = scalar_select %p419_p10, %s6738_s13, 5 }
  0x1e   : > { %5360 = vmatprep.subr.bf16.mxu0 %v5359_v32  ;;  %5392 = vmatprep.subr.bf16.mxu1 %v5391_v35  ;;  %v3821_v0 = vld [vmem:[%s8819_s5 + $0x2e0] sm:$0xff]  ;;  %v518_v1 = vmul.f32 %v6365_v52, %v481_v59  ;;  %v3822_v2 = vld [vmem:[%s8819_s5 + $0x2e8] sm:$0xff]  ;;  %v543_v3 = vadd.f32 %v6370_v53, %v517_v60  ;;  %vm6408_vm3 = vmand %vm466_vm0, %vm504_vm1  ;;  %v5371_v13 = vpack.c.bf16 %v3806_v63, %v3805_v62  ;;  %p6853_p13 = pnand %p1509_p12, %p1508_p11  ;;  %p449_p5 = scmp.lt.s32.totalorder %s448_s22, 7 }
  0x1f   : > { %v482_v4 = vld [vmem:[%s6343_s12 + $0x20] sm:$0xff]  ;;  %v483_v5 = vld [vmem:[%s6343_s12 + $0x28] sm:$0x3]  ;;  %v3807_v14 = vld [vmem:[%s8819_s5 + $0x270] sm:$0xff]  ;;  %v5403_v18 = vpack.c.bf16 %v3822_v2, %v3821_v0  ;;  %s6061_s18 = smul.u32 20, %s6805_s17 }
  0x20   : > { %v3789_v7 = vld [vmem:[%s8819_s5 + $0x1e0] sm:$0xff]  ;;  %v3790_v8 = vld [vmem:[%s8819_s5 + $0x1e8] sm:$0xff]  ;;  %v544_v10 = vadd.f32 %v6370_v53, %v518_v1  ;;  %v519_v11 = vmul.f32 %v6365_v52, %v482_v4  ;;  %v520_v12 = vmul.f32 %v6365_v52, %v483_v5  ;;  %v3808_v15 = vld [vmem:[%s8819_s5 + $0x278] sm:$0xff]  ;;  %v6428_v17 = vmax.f32 %v543_v3, 0.0  ;;  %s3895_s23 = scalar_select %p6853_p13, 0, 1 }
  0x21   : > { %5362 = vmatpush3.bf16.msra.mxu0 %v5361_v41  ;;  %5394 = vmatpush3.bf16.msra.mxu1 %v5391_v35  ;;  %vm6424_vm4 = vmand %vm473_vm2, %vm504_vm1  ;;  %v3823_v19 = vld [vmem:[%s8819_s5 + $0x2f0] sm:$0xff]  ;;  %v3824_v20 = vld [vmem:[%s8819_s5 + $0x2f8] sm:$0xff]  ;;  %v5373_v25 = vpack.c.bf16 %v3790_v8, %v3789_v7  ;;  %v5375_v30 = vpack.c.bf16 %v3808_v15, %v3807_v14  ;;  %s6874_s21 = sadd.s32 %s6061_s18, %s6282_s14  ;;  %s8866_s22 = smov (!%p449_p5, %s448_s22), 7 }
  0x22   : > { %5364 = vmatprep.subr.bf16.mxu0 %v5363_v42  ;;  %5396 = vmatprep.subr.bf16.mxu1 %v5395_v45  ;;  %v6439_v21 = vld [vmem:[%s8819_s5 + $0x1f0] sm:$0xff]  ;;  %v564_v22 = vmax.f32 %v544_v10, 0.0  ;;  %v545_v23 = vadd.f32 %v6370_v53, %v519_v11  ;;  %v546_v24 = vadd.f32 %v6370_v53, %v520_v12  ;;  %v3792_v26 = vld [vmem:[%s8819_s5 + $0x1f8] sm:$0xff]  ;;  %v583_v27 = vsel %vm6408_vm3, %v6428_v17, 0.0  ;;  %v699_v34 = vld [vmem:[%s8819_s5 + $0x80] sm:$0xff]  ;;  %s3767_s24 = sshll.u32 %s6874_s21, 3 }
  0x23   : > { %v484_v28 = vld [vmem:[%s6343_s12 + $0x30] sm:$0xff]  ;;  %v485_v29 = vld [vmem:[%s6343_s12 + $0x38] sm:$0x3]  ;;  %v621_v32 = vrot.slane %v583_v27, 1  ;;  %v654_v33 = vrot.slane %v583_v27, 2  ;;  %v700_v37 = vld [vmem:[%s8819_s5 + $0x88] sm:$0xff]  ;;  %v5407_v42 = vpack.c.bf16 %v3824_v20, %v3823_v19  ;;  %v5377_v43 = vpack.c.bf16 %v3792_v26, %v6439_v21  ;;  %s6925_s26 = scalar_lea.vmem %s8815_s1, %s3767_s24 }
  0x24   : > { %v584_v31 = vsel %vm6424_vm4, %v564_v22, 0.0  ;;  %v715_v39 = vld [vmem:[%s8819_s5 + $0x100] sm:$0xff]  ;;  %v6462_v40 = vmax.f32 %v545_v23, 0.0  ;;  %v566_v41 = vmax.f32 %v546_v24, 0.0  ;;  %v716_v44 = vld [vmem:[%s8819_s5 + $0x108] sm:$0xff]  ;;  %v521_v47 = vmul.f32 %v6365_v52, %v484_v28  ;;  %v6499_v57 = vld [vmem:[%s8819_s5 + $0x98] sm:$0xff] }
  0x25   : > { %5366 = vmatpush3.bf16.msra.mxu0 %v5365_v51  ;;  %5398 = vmatpush3.bf16.msra.mxu1 %v5395_v45  ;;  %v622_v35 = vrot.slane %v584_v31, 1  ;;  %v655_v36 = vrot.slane %v584_v31, 2  ;;  %v6471_v45 = vld [vmem:[%s8819_s5] sm:$0xff]  ;;  %v6476_v46 = vld [vmem:[%s8819_s5 + $0x8] sm:$0xff]  ;;  %v522_v49 = vmul.f32 %v6365_v52, %v485_v29  ;;  %v717_v58 = vld [vmem:[%s8819_s5 + $0x110] sm:$0xff]  ;;  %v5411_v1 = vpack.c.bf16 %v700_v37, %v699_v34  ;;  %s7206_s24 = sadd.s32 2, %s6130_s27 }
  0x26   : > { %5368 = vmatprep.subr.bf16.mxu0 %v5367_v56  ;;  %5400 = vmatprep.subr.bf16.mxu1 %v5399_v61  ;;  %v585_v54 = vsel %vm6408_vm3, %v6462_v40, 0.0  ;;  %v586_v55 = vsel %vm6424_vm4, %v566_v41, 0.0  ;;  %v6494_v56 = vld [vmem:[%s8819_s5 + $0x90] sm:$0xff]  ;;  %v718_v63 = vld [vmem:[%s8819_s5 + $0x118] sm:$0xff]  ;;  %v486_v0 = vld [vmem:[%s6343_s12 + $0x40] sm:$0xff]  ;;  %v547_v4 = vadd.f32 %v6370_v53, %v521_v47  ;;  %v5443_v7 = vpack.c.bf16 %v716_v44, %v715_v39  ;;  %p2521_p0 = scmp.ge.s32.totalorder %s7206_s24, 1 }
  0x27   : > { %v6481_v50 = vsel %vm617_vm5, %v621_v32, %v622_v35  ;;  %v6484_v51 = vsel %vm650_vm6, %v654_v33, %v655_v36  ;;  %v657_v59 = vrot.slane %v585_v54, 2  ;;  %v658_v60 = vrot.slane %v586_v55, 2  ;;  %v6512_v2 = vld [vmem:[%s8819_s5 + $0x10] sm:$0xff]  ;;  %v6517_v3 = vld [vmem:[%s8819_s5 + $0x18] sm:$0xff]  ;;  %v6535_v15 = vld [vmem:[%s8819_s5 + $0xa0] sm:$0xff]  ;;  %p2522_p1 = scmp.le.s32.totalorder %s7206_s24, 4 }
  0x28   : > { %854 = vmatprep.mubr.f32.mxu0 %v6481_v50  ;;  %v625_v62 = vrot.slane %v586_v55, 1  ;;  %v548_v5 = vadd.f32 %v6370_v53, %v522_v49  ;;  %4983 = vmatprep.mubr.f32.mxu1 %v6484_v51  ;;  %v5413_v8 = vpack.c.bf16 %v6476_v46, %v6471_v45  ;;  %v5415_v10 = vpack.c.bf16 %v6499_v57, %v6494_v56  ;;  %v488_v11 = vld [vmem:[%s6343_s12 + $0x50] sm:$0xff]  ;;  %v489_v19 = vld [vmem:[%s6343_s12 + $0x58] sm:$0x3]  ;;  %v704_v23 = vld [vmem:[%s8819_s5 + $0xa8] sm:$0xff]  ;;  %p430_p2 = scmp.lt.s32.totalorder %s7206_s24, 5 }
  0x29   : > { %5370 = vmatpush3.bf16.msra.mxu0 %v5369_v6  ;;  %5402 = vmatpush3.bf16.msra.mxu1 %v5399_v61  ;;  %v624_v61 = vrot.slane %v585_v54, 1  ;;  %v487_v6 = vld [vmem:[%s6343_s12 + $0x48] sm:$0x3]  ;;  %v6528_v12 = vpack.c.bf16 %v718_v63, %v717_v58  ;;  %v6540_v20 = vsel %vm650_vm6, %v657_v59, %v658_v60  ;;  %v5417_v22 = vpack.c.bf16 %v6517_v3, %v6512_v2  ;;  %v719_v24 = vld [vmem:[%s8819_s5 + $0x120] sm:$0xff]  ;;  %v705_v55 = vld [vmem:[%s8819_s5 + $0xb0] sm:$0xff]  ;;  %p7258_p3 = pnand %p2522_p1, %p2521_p0 }
  0x2a   : > { %5372 = vmatprep.subr.bf16.mxu0 %v5371_v13  ;;  %5404 = vmatprep.subr.bf16.mxu1 %v5403_v18  ;;  %v6530_v13 = vmax.f32 %v547_v4, 0.0  ;;  %v568_v14 = vmax.f32 %v548_v5, 0.0  ;;  %v524_v26 = vmul.f32 %v6365_v52, %v487_v6  ;;  %v6569_v29 = vld [vmem:[%s8819_s5 + $0x20] sm:$0xff]  ;;  %v525_v32 = vmul.f32 %v6365_v52, %v488_v11  ;;  %v491_v39 = vld [vmem:[%s6343_s12 + $0x68] sm:$0x3]  ;;  %v706_v56 = vld [vmem:[%s8819_s5 + $0xb8] sm:$0xff] }
  0x2b   : > { %v6543_v21 = vsel %vm617_vm5, %v624_v61, %v625_v62  ;;  %v526_v36 = vmul.f32 %v6365_v52, %v489_v19  ;;  %v490_v37 = vld [vmem:[%s6343_s12 + $0x60] sm:$0xff]  ;;  %v5419_v41 = vpack.c.bf16 %v704_v23, %v6535_v15  ;;  %v528_v59 = vmul.f32 %v6365_v52, %v491_v39  ;;  %v722_v2 = vld [vmem:[%s8819_s5 + $0x138] sm:$0xff]  ;;  %v6630_v3 = vld [vmem:[%s8819_s5 + $0x30] sm:$0xff]  ;;  %s8864_s24 = smov (!%p430_p2, %s7206_s24), 5 }
  0x2c   : > { %v6560_v27 = vsel %vm6408_vm3, %v6530_v13, 0.0  ;;  %v6564_v28 = vsel %vm6424_vm4, %v568_v14, 0.0  ;;  %v550_v35 = vadd.f32 %v6370_v53, %v524_v26  ;;  %v551_v44 = vadd.f32 %v6370_v53, %v525_v32  ;;  %v707_v14 = vld [vmem:[%s8819_s5 + $0xc0] sm:$0xff]  ;;  %v708_v15 = vld [vmem:[%s8819_s5 + $0xc8] sm:$0xff]  ;;  %s8838_s18 = scalar_select %p7258_p3, 0, 1 }
  0x2d   : > { %5374 = vmatpush3.bf16.msra.mxu0 %v5373_v25  ;;  %5406 = vmatpush3.bf16.msra.mxu1 %v5403_v18  ;;  %v523_v18 = vmul.f32 %v6365_v52, %v486_v0  ;;  %v720_v25 = vld [vmem:[%s8819_s5 + $0x128] sm:$0xff]  ;;  %v627_v33 = vrot.slane %v6560_v27, 1  ;;  %v628_v34 = vrot.slane %v6564_v28, 1  ;;  %v552_v49 = vadd.f32 %v6370_v53, %v526_v36  ;;  %v723_v32 = vld [vmem:[%s8819_s5 + $0x140] sm:$0xff]  ;;  %v3989_v9 = vld [vmem:[%s8819_s5 + $0x730] sm:$0xff] }
  0x2e   : > { %5376 = vmatprep.subr.bf16.mxu0 %v5375_v30  ;;  %5408 = vmatprep.subr.bf16.mxu1 %v5407_v42  ;;  %v6574_v30 = vld [vmem:[%s8819_s5 + $0x28] sm:$0xff]  ;;  %v570_v47 = vmax.f32 %v550_v35, 0.0  ;;  %v6610_v57 = vmax.f32 %v551_v44, 0.0  ;;  %v527_v58 = vmul.f32 %v6365_v52, %v490_v37  ;;  %v660_v63 = vrot.slane %v6560_v27, 2  ;;  %v691_v37 = vld [vmem:[%s8819_s5 + $0x40] sm:$0xff] }
  0x2f   : > { %v549_v31 = vadd.f32 %v6370_v53, %v523_v18  ;;  %v6595_v45 = vsel %vm617_vm5, %v627_v33, %v628_v34  ;;  %v5421_v46 = vpack.c.bf16 %v6574_v30, %v6569_v29  ;;  %v572_v62 = vmax.f32 %v552_v49, 0.0  ;;  %v724_v33 = vld [vmem:[%s8819_s5 + $0x148] sm:$0xff] }
  0x30   : > { %v590_v60 = vsel %vm6424_vm4, %v570_v47, 0.0  ;;  %v591_v4 = vsel %vm6408_vm3, %v6610_v57, 0.0  ;;  %v553_v5 = vadd.f32 %v6370_v53, %v527_v58  ;;  %v554_v6 = vadd.f32 %v6370_v53, %v528_v59  ;;  %v692_v39 = vld [vmem:[%s8819_s5 + $0x48] sm:$0xff] }
  0x31   : > { %5378 = vmatpush3.bf16.msra.mxu0 %v5377_v43  ;;  %5410 = vmatpush3.bf16.msra.mxu1 %v5407_v42  ;;  %v6588_v42 = vpack.c.bf16 %v720_v25, %v719_v24  ;;  %v6590_v43 = vmax.f32 %v549_v31, 0.0  ;;  %v631_v0 = vrot.slane %v590_v60, 1  ;;  %v633_v11 = vrot.slane %v591_v4, 1  ;;  %v492_v25 = vld [vmem:[%s6343_s12 + $0x70] sm:$0xff]  ;;  %v495_v58 = vld [vmem:[%s6343_s12 + $0x88] sm:$0x3] }
  0x32   : > { %5412 = vmatprep.subr.bf16.mxu0 %v5411_v1  ;;  %5444 = vmatprep.subr.bf16.mxu1 %v5443_v7  ;;  %v721_v1 = vld [vmem:[%s8819_s5 + $0x130] sm:$0xff]  ;;  %v661_v18 = vrot.slane %v6564_v28, 2  ;;  %v6654_v23 = vmax.f32 %v553_v5, 0.0  ;;  %v574_v24 = vmax.f32 %v554_v6, 0.0  ;;  %v664_v30 = vrot.slane %v590_v60, 2  ;;  %v694_v6 = vld [vmem:[%s8819_s5 + $0x58] sm:$0xff] }
  0x33   : > { %v589_v54 = vsel %vm6408_vm3, %v6590_v43, 0.0  ;;  %v5455_v26 = vpack.c.bf16 %v722_v2, %v721_v1  ;;  %v493_v28 = vld [vmem:[%s6343_s12 + $0x78] sm:$0x3]  ;;  %v5427_v31 = vpack.c.bf16 %v708_v15, %v707_v14  ;;  %v529_v47 = vmul.f32 %v6365_v52, %v492_v25  ;;  %v709_v60 = vld [vmem:[%s8819_s5 + $0xd0] sm:$0xff] }
  0x34   : > { %3825 = vmatmul.mubr.msk.f32.vlgmr.msra.gmra.mrb[0].mxu0 %vm6408_vm3, %v6428_v17  ;;  %4984 = vmatmul.mubr.f32.vlgmr.msra.gmra.mrb[0].mxu1 %v6540_v20  ;;  %v630_v61 = vrot.slane %v589_v54, 1  ;;  %v6659_v27 = vsel %vm650_vm6, %v660_v63, %v661_v18  ;;  %v663_v29 = vrot.slane %v589_v54, 2  ;;  %v593_v34 = vsel %vm6408_vm3, %v6654_v23, 0.0  ;;  %v725_v63 = vld [vmem:[%s8819_s5 + $0x150] sm:$0xff]  ;;  %v711_v18 = vld [vmem:[%s8819_s5 + $0xe0] sm:$0xff] }
  0x35   : > { %5414 = vmatpush3.bf16.msra.mxu0 %v5413_v8  ;;  %5446 = vmatpush3.bf16.msra.mxu1 %v5443_v7  ;;  %v5423_v7 = vpack.c.bf16 %v706_v56, %v705_v55  ;;  %v690_v8 = vld [vmem:[%s8819_s5 + $0x38] sm:$0xff]  ;;  %v594_v35 = vsel %vm6424_vm4, %v574_v24, 0.0  ;;  %v530_v49 = vmul.f32 %v6365_v52, %v493_v28  ;;  %v666_v54 = vrot.slane %v591_v4, 2  ;;  %v494_v56 = vld [vmem:[%s6343_s12 + $0x80] sm:$0xff]  ;;  %v693_v5 = vld [vmem:[%s8819_s5 + $0x50] sm:$0xff]  ;;  %s458_s12 = scalar_lea.vmem %s8822_s8, %s8866_s22 }
  0x36   : > { %859 = vmatprep.mubr.f32.mxu0 %v6543_v21  ;;  %5416 = vmatprep.subr.bf16.mxu0 %v5415_v10  ;;  %v592_v10 = vsel %vm6424_vm4, %v572_v62, 0.0  ;;  %v6652_v19 = vsel %vm617_vm5, %v630_v61, %v631_v0  ;;  %v6689_v44 = vsel %vm650_vm6, %v663_v29, %v664_v30  ;;  %v5459_v59 = vpack.c.bf16 %v724_v33, %v723_v32  ;;  %v710_v61 = vld [vmem:[%s8819_s5 + $0xd8] sm:$0xff]  ;;  %v727_v29 = vld [vmem:[%s8819_s5 + $0x160] sm:$0xff]  ;;  %v728_v30 = vld [vmem:[%s8819_s5 + $0x168] sm:$0xff] }
  0x37   : > { %5448 = vmatprep.subr.bf16.mxu1 %v6528_v12  ;;  %4986 = vmatprep.mubr.f32.mxu1 %v6659_v27  ;;  %v667_v55 = vrot.slane %v592_v10, 2  ;;  %v669_v62 = vrot.slane %v593_v34, 2  ;;  %v726_v0 = vld [vmem:[%s8819_s5 + $0x158] sm:$0xff]  ;;  %v556_v1 = vadd.f32 %v6370_v53, %v530_v49  ;;  %v5429_v4 = vpack.c.bf16 %v692_v39, %v691_v37  ;;  %v695_v49 = vld [vmem:[%s8819_s5 + $0x60] sm:$0xff] }
  0x38   : > { %3826 = vmatmul.mubr.msk.f32.gmra.mrb[2].mxu0 %vm6408_vm3, %v6462_v40  ;;  %4987 = vmatmul.mubr.f32.gmra.mrb[2].mxu1 %v6689_v44  ;;  %v5431_v14 = vpack.c.bf16 %v710_v61, %v709_v60  ;;  %v5463_v24 = vpack.c.bf16 %v726_v0, %v725_v63  ;;  %v729_v0 = vld [vmem:[%s8819_s5 + $0x170] sm:$0xff] }
  0x39   : > { %5418 = vmatpush3.bf16.msra.mxu0 %v5417_v22  ;;  %864 = vmatprep.mubr.f32.mxu0 %v6595_v45  ;;  %v634_v22 = vrot.slane %v592_v10, 1  ;;  %v6715_v2 = vsel %vm650_vm6, %v666_v54, %v667_v55  ;;  %v532_v10 = vmul.f32 %v6365_v52, %v495_v58  ;;  %v576_v15 = vmax.f32 %v556_v1, 0.0  ;;  %v696_v54 = vld [vmem:[%s8819_s5 + $0x68] sm:$0xff]  ;;  %v730_v1 = vld [vmem:[%s8819_s5 + $0x178] sm:$0xff] }
  0x3a   : > { %5450 = vmatpush3.bf16.msra.mxu1 %v6528_v12  ;;  %5420 = vmatprep.subr.bf16.mxu0 %v5419_v41  ;;  %v5425_v12 = vpack.c.bf16 %v690_v8, %v6630_v3  ;;  %v636_v41 = vrot.slane %v593_v34, 1  ;;  %v670_v3 = vrot.slane %v594_v35, 2  ;;  %v531_v8 = vmul.f32 %v6365_v52, %v494_v56 }
  0x3b   : > { %5452 = vmatprep.subr.bf16.mxu1 %v6588_v42  ;;  %v6680_v36 = vsel %vm617_vm5, %v633_v11, %v634_v22  ;;  %4989 = vmatprep.mubr.f32.mxu1 %v6715_v2  ;;  %v596_v32 = vsel %vm6424_vm4, %v576_v15, 0.0  ;;  %v8823_v55 = vmov 0.0   ;;  %v698_v15 = vld [vmem:[%s8819_s5 + $0x78] sm:$0xff] }
  0x3c   : > { %3827 = vmatmul.mubr.msk.f32.gmra.mrb[4].mxu0 %vm6408_vm3, %v6530_v13  ;;  %v6735_v22 = vsel %vm650_vm6, %v669_v62, %v670_v3  ;;  %v557_v28 = vadd.f32 %v6370_v53, %v531_v8  ;;  %v6772_v56 = vrot.slane %v8823_v55, 2  ;;  %v714_v62 = vld [vmem:[%s8819_s5 + $0xf8] sm:$0xff] }
  0x3d   : > { %5422 = vmatpush3.bf16.msra.mxu0 %v5421_v46  ;;  %869 = vmatprep.mubr.f32.mxu0 %v6652_v19  ;;  %v637_v46 = vrot.slane %v594_v35, 1  ;;  %v640_v35 = vrot.slane %v596_v32, 1 }
  0x3e   : > { %5454 = vmatpush3.bf16.msra.mxu1 %v6588_v42  ;;  %5424 = vmatprep.subr.bf16.mxu0 %v5423_v7  ;;  %v555_v42 = vadd.f32 %v6370_v53, %v529_v47  ;;  %v6762_v37 = vmax.f32 %v557_v28, 0.0  ;;  %v6840_v28 = vrot.slane %v8823_v55, 1 }
  0x3f   : > { %5456 = vmatprep.subr.bf16.mxu1 %v5455_v26  ;;  %v6729_v11 = vsel %vm617_vm5, %v636_v41, %v637_v46  ;;  %4990 = vmatmul.mubr.f32.gmra.mrb[4].mxu1 %v6735_v22  ;;  %v673_v41 = vrot.slane %v596_v32, 2  ;;  %v5467_v46 = vpack.c.bf16 %v728_v30, %v727_v29  ;;  %v3873_v29 = vld [vmem:[%s8819_s5 + $0x408] sm:$0xff] }
  0x40   : > { %3828 = vmatmul.mubr.msk.f32.gmra.mrb[6].mxu0 %vm6408_vm3, %v6590_v43  ;;  %v6724_v7 = vmax.f32 %v555_v42, 0.0  ;;  %v713_v42 = vld [vmem:[%s8819_s5 + $0xf0] sm:$0xff]  ;;  %v3841_v32 = vld [vmem:[%s8819_s5 + $0x308] sm:$0xff] }
  0x41   : > { %5426 = vmatpush3.bf16.msra.mxu0 %v5425_v12  ;;  %874 = vmatprep.mubr.f32.mxu0 %v6680_v36  ;;  %v558_v12 = vadd.f32 %v6370_v53, %v532_v10  ;;  %v5439_v8 = vpack.c.bf16 %v714_v62, %v713_v42  ;;  %v3861_v42 = vld [vmem:[%s8819_s5 + $0x3a8] sm:$0xff]  ;;  %v3876_v62 = vld [vmem:[%s8819_s5 + $0x420] sm:$0xff] }
  0x42   : > { %5458 = vmatpush3.bf16.msra.mxu1 %v5455_v26  ;;  %5428 = vmatprep.subr.bf16.mxu0 %v5427_v31  ;;  %v595_v25 = vsel %vm6408_vm3, %v6724_v7, 0.0  ;;  %v712_v26 = vld [vmem:[%s8819_s5 + $0xe8] sm:$0xff]  ;;  %v5433_v31 = vpack.c.bf16 %v694_v6, %v693_v5  ;;  %v5437_v5 = vpack.c.bf16 %v696_v54, %v695_v49  ;;  %v3843_v49 = vld [vmem:[%s8819_s5 + $0x318] sm:$0xff] }
  0x43   : > { %5460 = vmatprep.subr.bf16.mxu1 %v5459_v59  ;;  %v639_v33 = vrot.slane %v595_v25, 1  ;;  %v672_v34 = vrot.slane %v595_v25, 2  ;;  %v578_v39 = vmax.f32 %v558_v12, 0.0  ;;  %v5435_v47 = vpack.c.bf16 %v712_v26, %v711_v18  ;;  %v3857_v25 = vld [vmem:[%s8819_s5 + $0x388] sm:$0xff]  ;;  %v3872_v26 = vld [vmem:[%s8819_s5 + $0x400] sm:$0xff] }
  0x44   : > { %3829 = vmatmul.mubr.msk.f32.gmra.mrb[8].mxu0 %vm6408_vm3, %v6610_v57  ;;  %v5471_v18 = vpack.c.bf16 %v730_v1, %v729_v0  ;;  %v3844_v1 = vld [vmem:[%s8819_s5 + $0x320] sm:$0xff] }
  0x45   : > { %5430 = vmatpush3.bf16.msra.mxu0 %v5429_v4  ;;  %879 = vmatprep.mubr.f32.mxu0 %v6729_v11  ;;  %v6775_v58 = vsel %vm617_vm5, %v639_v33, %v640_v35  ;;  %v598_v60 = vsel %vm6424_vm4, %v578_v39, 0.0  ;;  %v6783_v61 = vsel %vm650_vm6, %v672_v34, %v673_v41  ;;  %v5507_v33 = vpack.c.bf16 %v3873_v29, %v3872_v26  ;;  %v3858_v34 = vld [vmem:[%s8819_s5 + $0x390] sm:$0xff]  ;;  %v3859_v35 = vld [vmem:[%s8819_s5 + $0x398] sm:$0xff]  ;;  %v3864_v26 = vld [vmem:[%s8819_s5 + $0x3c0] sm:$0xff] }
  0x46   : > { %5462 = vmatpush3.bf16.msra.mxu1 %v5459_v59  ;;  %5432 = vmatprep.subr.bf16.mxu0 %v5431_v14  ;;  %v597_v59 = vsel %vm6408_vm3, %v6762_v37, 0.0  ;;  %v734_v16 = vrot.slane %v598_v60, 1  ;;  %v738_v4 = vrot.slane %v598_v60, 2  ;;  %v697_v14 = vld [vmem:[%s8819_s5 + $0x70] sm:$0xff]  ;;  %v3875_v41 = vld [vmem:[%s8819_s5 + $0x418] sm:$0xff]  ;;  %v5479_v54 = vpack.c.bf16 %v3859_v35, %v3858_v34  ;;  %v3860_v60 = vld [vmem:[%s8819_s5 + $0x3a0] sm:$0xff] }
  0x47   : > { %5464 = vmatprep.subr.bf16.mxu1 %v5463_v24  ;;  %v733_v63 = vrot.slane %v597_v59, 1  ;;  %4992 = vmatprep.mubr.f32.mxu1 %v6783_v61  ;;  %v737_v3 = vrot.slane %v597_v59, 2  ;;  %v5441_v30 = vpack.c.bf16 %v698_v15, %v697_v14  ;;  %v3874_v39 = vld [vmem:[%s8819_s5 + $0x410] sm:$0xff]  ;;  %v5483_v0 = vpack.c.bf16 %v3861_v42, %v3860_v60  ;;  %v3879_v14 = vld [vmem:[%s8819_s5 + $0x438] sm:$0xff]  ;;  %v3865_v29 = vld [vmem:[%s8819_s5 + $0x3c8] sm:$0xff] }
  0x48   : > { %3830 = vmatmul.mubr.msk.f32.gmra.mrb[10].mxu0 %vm6408_vm3, %v6654_v23  ;;  %v5511_v59 = vpack.c.bf16 %v3875_v41, %v3874_v39  ;;  %v5491_v41 = vpack.c.bf16 %v3865_v29, %v3864_v26  ;;  %v3869_v29 = vld [vmem:[%s8819_s5 + $0x3e8] sm:$0xff] }
  0x49   : > { %5434 = vmatpush3.bf16.msra.mxu0 %v5433_v31  ;;  %884 = vmatprep.mubr.f32.mxu0 %v6775_v58  ;;  %v6808_v6 = vsel %vm617_vm5, %v733_v63, %v734_v16  ;;  %v6811_v10 = vsel %vm650_vm6, %v737_v3, %v738_v4  ;;  %v3840_v31 = vld [vmem:[%s8819_s5 + $0x300] sm:$0xff]  ;;  %v3877_v63 = vld [vmem:[%s8819_s5 + $0x428] sm:$0xff]  ;;  %v1513_v4 = vstv %s3895_s23  ;;  %s8839_s23 = smul.u32 20, %s8864_s24 }
  0x4a   : > { %5466 = vmatpush3.bf16.msra.mxu1 %v5463_v24  ;;  %5436 = vmatprep.subr.bf16.mxu0 %v5435_v47  ;;  %v3856_v24 = vld [vmem:[%s8819_s5 + $0x380] sm:$0xff]  ;;  %v5477_v47 = vpack.c.bf16 %v3841_v32, %v3840_v31  ;;  %v3845_v3 = vld [vmem:[%s8819_s5 + $0x328] sm:$0xff]  ;;  %vm1514_vm7 = vcmp.eq.s32.totalorder %v1513_v4, 1  ;;  %v1489_v31 = vld [vmem:[%s6925_s26 + $0x10] sm:$0xff] }
  0x4b   : > { %5468 = vmatprep.subr.bf16.mxu1 %v5467_v46  ;;  %4993 = vmatmul.mubr.f32.gmra.mrb[6].mxu1 %v6811_v10  ;;  %v5475_v12 = vpack.c.bf16 %v3857_v25, %v3856_v24  ;;  %v5485_v15 = vpack.c.bf16 %v3845_v3, %v3844_v1  ;;  %v3847_v24 = vld [vmem:[%s8819_s5 + $0x338] sm:$0xff]  ;;  %vm6956_vm8 = vmand %vm466_vm0, %vm1514_vm7  ;;  %v1521_v35 = vmul.f32 %v6365_v52, %v1489_v31  ;;  %v3884_v31 = vld [vmem:[%s8819_s5 + $0x460] sm:$0xff]  ;;  %s7412_s25 = sadd.s32 %s8839_s23, %s6282_s14  ;;  %s451_s23 = scalar_lea.vmem %s8821_s7, %s8866_s22 }
  0x4c   : > { %3831 = vmatmul.mubr.msk.f32.gmra.mrb[12].mxu0 %vm6408_vm3, %v6724_v7  ;;  %5027 = vmatprep.mubr.f32.mxu1 %v6772_v56  ;;  %v1490_v32 = vld [vmem:[%s6925_s26 + $0x18] sm:$0x3]  ;;  %vm6983_vm9 = vmand %vm473_vm2, %vm1514_vm7  ;;  %s3768_s16 = sshll.u32 %s7412_s25, 3 }
  0x4d   : > { %5438 = vmatpush3.bf16.msra.mxu0 %v5437_v5  ;;  %889 = vmatprep.mubr.f32.mxu0 %v6808_v6  ;;  %v5515_v5 = vpack.c.bf16 %v3877_v63, %v3876_v62  ;;  %v1522_v39 = vmul.f32 %v6365_v52, %v1490_v32  ;;  %v1541_v60 = vadd.f32 %v6370_v53, %v1521_v35  ;;  %v1491_v62 = vld [vmem:[%s6925_s26 + $0x20] sm:$0xff]  ;;  %v1492_v63 = vld [vmem:[%s6925_s26 + $0x28] sm:$0x3]  ;;  %v3883_v1 = vld [vmem:[%s8819_s5 + $0x458] sm:$0xff]  ;;  %s7534_s24 = scalar_lea.vmem %s8816_s2, %s3768_s16 }
  0x4e   : > { %5470 = vmatpush3.bf16.msra.mxu1 %v5467_v46  ;;  %5440 = vmatprep.subr.bf16.mxu0 %v5439_v8  ;;  %v3842_v46 = vld [vmem:[%s8819_s5 + $0x310] sm:$0xff]  ;;  %v1523_v3 = vmul.f32 %v6365_v52, %v1491_v62  ;;  %v1524_v4 = vmul.f32 %v6365_v52, %v1492_v63  ;;  %v3885_v32 = vld [vmem:[%s8819_s5 + $0x468] sm:$0xff] }
  0x4f   : > { %5472 = vmatprep.subr.bf16.mxu1 %v5471_v18  ;;  %v5481_v16 = vpack.c.bf16 %v3843_v49, %v3842_v46  ;;  %v3878_v8 = vld [vmem:[%s8819_s5 + $0x430] sm:$0xff]  ;;  %v3849_v46 = vld [vmem:[%s8819_s5 + $0x348] sm:$0xff]  ;;  %v1542_v42 = vadd.f32 %v6370_v53, %v1522_v39 }
  0x50   : > { %3832 = vmatmul.mubr.msk.f32.gmra.mrb[14].mxu0 %vm6408_vm3, %v6762_v37  ;;  %v5519_v25 = vpack.c.bf16 %v3879_v14, %v3878_v8  ;;  %v3866_v49 = vld [vmem:[%s8819_s5 + $0x3d0] sm:$0xff]  ;;  %v2505_v48 = vld [vmem:[%s7534_s24 + $0x28] sm:$0x3] }
  0x51   : > { %5442 = vmatpush3.bf16.msra.mxu0 %v5441_v30  ;;  %1064 = vmatprep.mubr.f32.mxu0 %v6840_v28  ;;  %v3880_v30 = vld [vmem:[%s8819_s5 + $0x440] sm:$0xff]  ;;  %v3850_v14 = vld [vmem:[%s8819_s5 + $0x350] sm:$0xff] }
  0x52   : > { %5474 = vmatpush3.bf16.msra.mxu1 %v5471_v18  ;;  %5476 = vmatprep.subr.bf16.mxu0 %v5475_v12  ;;  %v3846_v18 = vld [vmem:[%s8819_s5 + $0x330] sm:$0xff]  ;;  %v3881_v12 = vld [vmem:[%s8819_s5 + $0x448] sm:$0xff] }
  0x53   : > { %5508 = vmatprep.subr.bf16.mxu1 %v5507_v33  ;;  %v5489_v34 = vpack.c.bf16 %v3847_v24, %v3846_v18  ;;  %v1544_v18 = vadd.f32 %v6370_v53, %v1524_v4  ;;  %v1494_v24 = vld [vmem:[%s6925_s26 + $0x38] sm:$0x3] }
  0x54   : > { %1065 = vmatmul.mubr.f32.vlgmr.msra.gmra.mrb[16].mxu0 %v8823_v55 }
  0x55   : > { %5028 = vmatmul.mubr.f32.vlgmr.msra.gmra.mrb[0].mxu1 %v6484_v51  ;;  %5478 = vmatpush3.bf16.msra.mxu0 %v5477_v47  ;;  %v3862_v51 = vld [vmem:[%s8819_s5 + $0x3b0] sm:$0xff]  ;;  %v3848_v47 = vld [vmem:[%s8819_s5 + $0x340] sm:$0xff] }
  0x56   : > { %5510 = vmatpush3.bf16.msra.mxu1 %v5507_v33  ;;  %1069 = vmatprep.mubr.f32.mxu0 %v6481_v50  ;;  %v3863_v50 = vld [vmem:[%s8819_s5 + $0x3b8] sm:$0xff]  ;;  %v4118_v33 = vld [vmem:[%s8819_s5 + $0xa80] sm:$0xff] }
  0x57   : > { %5480 = vmatprep.subr.bf16.mxu0 %v5479_v54  ;;  %5512 = vmatprep.subr.bf16.mxu1 %v5511_v59  ;;  %v5523_v54 = vpack.c.bf16 %v3881_v12, %v3880_v30 }
  0x58   : > { %3833 = vmatmul.mubr.msk.f32.gmra.mrb[18].mxu0 %vm6408_vm3, %v6428_v17  ;;  %5030 = vmatprep.mubr.f32.mxu1 %v6540_v20  ;;  %v5487_v17 = vpack.c.bf16 %v3863_v50, %v3862_v51  ;;  %v7000_v51 = vmax.f32 %v1541_v60, 0.0  ;;  %v1562_v50 = vmax.f32 %v1542_v42, 0.0  ;;  %v3853_v42 = vld [vmem:[%s8819_s5 + $0x368] sm:$0xff] }
  0x59   : > { %5482 = vmatpush3.bf16.msra.mxu0 %v5481_v16  ;;  %1074 = vmatprep.mubr.f32.mxu0 %v6543_v21  ;;  %v7472_v16 = vld [vmem:[%s8819_s5 + $0x6b0] sm:$0xff] }
  0x5a   : > { %5514 = vmatpush3.bf16.msra.mxu1 %v5511_v59  ;;  %5484 = vmatprep.subr.bf16.mxu0 %v5483_v0  ;;  %v3867_v59 = vld [vmem:[%s8819_s5 + $0x3d8] sm:$0xff]  ;;  %v3882_v0 = vld [vmem:[%s8819_s5 + $0x450] sm:$0xff]  ;;  %v1581_v30 = vsel %vm6956_vm8, %v7000_v51, 0.0  ;;  %v1582_v12 = vsel %vm6983_vm9, %v1562_v50, 0.0 }
  0x5b   : > { %5516 = vmatprep.subr.bf16.mxu1 %v5515_v5  ;;  %5031 = vmatmul.mubr.f32.gmra.mrb[2].mxu1 %v6659_v27  ;;  %v5495_v8 = vpack.c.bf16 %v3867_v59, %v3866_v49  ;;  %v5527_v26 = vpack.c.bf16 %v3883_v1, %v3882_v0  ;;  %v1651_v35 = vrot.slane %v1582_v12, 2  ;;  %v1618_v39 = vrot.slane %v1581_v30, 1  ;;  %v1496_v0 = vld [vmem:[%s6925_s26 + $0x48] sm:$0x3] }
  0x5c   : > { %3834 = vmatmul.mubr.msk.f32.gmra.mrb[20].mxu0 %vm6408_vm3, %v6462_v40  ;;  %5033 = vmatprep.mubr.f32.mxu1 %v6689_v44  ;;  %v1564_v49 = vmax.f32 %v1544_v18, 0.0  ;;  %v1526_v59 = vmul.f32 %v6365_v52, %v1494_v24  ;;  %v5531_v1 = vpack.c.bf16 %v3885_v32, %v3884_v31  ;;  %v3855_v31 = vld [vmem:[%s8819_s5 + $0x378] sm:$0xff] }
  0x5d   : > { %5486 = vmatpush3.bf16.msra.mxu0 %v5485_v15  ;;  %1079 = vmatprep.mubr.f32.mxu0 %v6595_v45  ;;  %v3851_v15 = vld [vmem:[%s8819_s5 + $0x358] sm:$0xff] }
  0x5e   : > { %5518 = vmatpush3.bf16.msra.mxu1 %v5515_v5  ;;  %5488 = vmatprep.subr.bf16.mxu0 %v5487_v17  ;;  %v5493_v5 = vpack.c.bf16 %v3849_v46, %v3848_v47  ;;  %v1543_v17 = vadd.f32 %v6370_v53, %v1523_v3  ;;  %v5497_v47 = vpack.c.bf16 %v3851_v15, %v3850_v14  ;;  %v3871_v3 = vld [vmem:[%s8819_s5 + $0x3f8] sm:$0xff] }
  0x5f   : > { %5520 = vmatprep.subr.bf16.mxu1 %v5519_v25  ;;  %5034 = vmatmul.mubr.f32.gmra.mrb[4].mxu1 %v6715_v2  ;;  %v1546_v50 = vadd.f32 %v6370_v53, %v1526_v59  ;;  %v3887_v14 = vld [vmem:[%s8819_s5 + $0x478] sm:$0xff] }
  0x60   : > { %3835 = vmatmul.mubr.msk.f32.gmra.mrb[22].mxu0 %vm6408_vm3, %v6530_v13  ;;  %5036 = vmatprep.mubr.f32.mxu1 %v6735_v22  ;;  %v7034_v46 = vmax.f32 %v1543_v17, 0.0 }
  0x61   : > { %5490 = vmatpush3.bf16.msra.mxu0 %v5489_v34  ;;  %1084 = vmatprep.mubr.f32.mxu0 %v6652_v19  ;;  %v1650_v34 = vrot.slane %v1581_v30, 2  ;;  %v1566_v24 = vmax.f32 %v1546_v50, 0.0  ;;  %v3897_v50 = vld [vmem:[%s8819_s5 + $0x488] sm:$0xff] }
  0x62   : > { %5522 = vmatpush3.bf16.msra.mxu1 %v5519_v25  ;;  %5492 = vmatprep.subr.bf16.mxu0 %v5491_v41  ;;  %v3868_v25 = vld [vmem:[%s8819_s5 + $0x3e0] sm:$0xff]  ;;  %v1619_v41 = vrot.slane %v1582_v12, 1  ;;  %v1583_v4 = vsel %vm6956_vm8, %v7034_v46, 0.0  ;;  %v3854_v12 = vld [vmem:[%s8819_s5 + $0x370] sm:$0xff] }
  0x63   : > { %5524 = vmatprep.subr.bf16.mxu1 %v5523_v54  ;;  %5037 = vmatmul.mubr.f32.gmra.mrb[6].mxu1 %v6783_v61  ;;  %v5499_v60 = vpack.c.bf16 %v3869_v29, %v3868_v25  ;;  %v7044_v62 = vsel %vm650_vm6, %v1650_v34, %v1651_v35  ;;  %v1621_v15 = vrot.slane %v1583_v4, 1  ;;  %v1528_v25 = vmul.f32 %v6365_v52, %v1496_v0  ;;  %v1498_v29 = vld [vmem:[%s6925_s26 + $0x58] sm:$0x3]  ;;  %v3912_v35 = vld [vmem:[%s8819_s5 + $0x500] sm:$0xff] }
  0x64   : > { %3836 = vmatmul.mubr.msk.f32.gmra.mrb[24].mxu0 %vm6408_vm3, %v6590_v43  ;;  %5071 = vmatprep.mubr.f32.mxu1 %v6540_v20  ;;  %v3852_v20 = vld [vmem:[%s8819_s5 + $0x360] sm:$0xff]  ;;  %v7047_v63 = vsel %vm617_vm5, %v1618_v39, %v1619_v41  ;;  %v7091_v39 = vsel %vm6983_vm9, %v1566_v24, 0.0  ;;  %v1530_v59 = vmul.f32 %v6365_v52, %v1498_v29 }
  0x65   : > { %5494 = vmatpush3.bf16.msra.mxu0 %v5493_v5  ;;  %1089 = vmatprep.mubr.f32.mxu0 %v6680_v36  ;;  %v1584_v5 = vsel %vm6983_vm9, %v1564_v49, 0.0  ;;  %v5501_v18 = vpack.c.bf16 %v3853_v42, %v3852_v20  ;;  %v1548_v41 = vadd.f32 %v6370_v53, %v1528_v25  ;;  %v3929_v49 = vld [vmem:[%s8819_s5 + $0x588] sm:$0xff]  ;;  %v5505_v20 = vpack.c.bf16 %v3855_v31, %v3854_v12  ;;  %v7139_v25 = vld [vmem:[%s8817_s3] ss:$0 sm:$0xff]  ;;  %v3899_v12 = vld [vmem:[%s8819_s5 + $0x498] sm:$0xff] }
  0x66   : > { %5526 = vmatpush3.bf16.msra.mxu1 %v5523_v54  ;;  %5496 = vmatprep.subr.bf16.mxu0 %v5495_v8  ;;  %v3870_v54 = vld [vmem:[%s8819_s5 + $0x3f0] sm:$0xff]  ;;  %v1622_v17 = vrot.slane %v1584_v5, 1  ;;  %v1654_v0 = vrot.slane %v1584_v5, 2  ;;  %v1550_v52 = vadd.f32 %v6370_v53, %v1530_v59  ;;  %v3915_v53 = vld [vmem:[%s8819_s5 + $0x518] sm:$0xff] }
  0x67   : > { %5528 = vmatprep.subr.bf16.mxu1 %v5527_v26  ;;  %v3886_v8 = vld [vmem:[%s8819_s5 + $0x470] sm:$0xff]  ;;  %v5503_v30 = vpack.c.bf16 %v3871_v3, %v3870_v54  ;;  %v1568_v42 = vmax.f32 %v1548_v41, 0.0  ;;  %v3896_v3 = vld [vmem:[%s8819_s5 + $0x480] sm:$0xff] }
  0x68   : > { %3837 = vmatmul.mubr.msk.f32.gmra.mrb[26].mxu0 %vm6408_vm3, %v6610_v57  ;;  %v7081_v32 = vsel %vm617_vm5, %v1621_v15, %v1622_v17  ;;  %v5535_v34 = vpack.c.bf16 %v3887_v14, %v3886_v8  ;;  %v3914_v5 = vld [vmem:[%s8819_s5 + $0x510] sm:$0xff]  ;;  %v3931_v17 = vld [vmem:[%s8819_s5 + $0x598] sm:$0xff]  ;;  %v5541_v24 = vpack.c.bf16 %v3897_v50, %v3896_v3  ;;  %v3932_v41 = vld [vmem:[%s8819_s5 + $0x5a0] sm:$0xff] }
  0x69   : > { %5498 = vmatpush3.bf16.msra.mxu0 %v5497_v47  ;;  %1094 = vmatprep.mubr.f32.mxu0 %v6729_v11  ;;  %v3928_v47 = vld [vmem:[%s8819_s5 + $0x580] sm:$0xff]  ;;  %v3930_v15 = vld [vmem:[%s8819_s5 + $0x590] sm:$0xff]  ;;  %v5543_v31 = vpack.c.bf16 %v3915_v53, %v3914_v5 }
  0x6a   : > { %5530 = vmatpush3.bf16.msra.mxu1 %v5527_v26  ;;  %5500 = vmatprep.subr.bf16.mxu0 %v5499_v60  ;;  %v3913_v26 = vld [vmem:[%s8819_s5 + $0x508] sm:$0xff]  ;;  %v1653_v60 = vrot.slane %v1583_v4, 2  ;;  %v5571_v8 = vpack.c.bf16 %v3929_v49, %v3928_v47  ;;  %v7170_v49 = vld [vmem:[%s8818_s4] ss:$0 sm:$0xff] }
  0x6b   : > { %5532 = vmatprep.subr.bf16.mxu1 %v5531_v1  ;;  %v5539_v54 = vpack.c.bf16 %v3913_v26, %v3912_v35  ;;  %v1500_v4 = vld [vmem:[%s6925_s26 + $0x68] sm:$0x3]  ;;  %v5575_v35 = vpack.c.bf16 %v3931_v17, %v3930_v15  ;;  %v3903_v15 = vld [vmem:[%s8819_s5 + $0x4b8] sm:$0xff]  ;;  %v3920_v17 = vld [vmem:[%s8819_s5 + $0x540] sm:$0xff] }
  0x6c   : > { %3838 = vmatmul.mubr.msk.f32.gmra.mrb[28].mxu0 %vm6408_vm3, %v6654_v23  ;;  %v7121_v14 = vsel %vm650_vm6, %v1653_v60, %v1654_v0  ;;  %v1532_v29 = vmul.f32 %v7139_v25, %v1500_v4  ;;  %v3917_v26 = vld [vmem:[%s8819_s5 + $0x528] sm:$0xff]  ;;  %v1502_v60 = vld [vmem:[%s6925_s26 + $0x78] sm:$0x3] }
  0x6d   : > { %5502 = vmatpush3.bf16.msra.mxu0 %v5501_v18  ;;  %1099 = vmatprep.mubr.f32.mxu0 %v6775_v58  ;;  %v1570_v18 = vmax.f32 %v1550_v52, 0.0  ;;  %v3933_v47 = vld [vmem:[%s8819_s5 + $0x5a8] sm:$0xff]  ;;  %v1534_v50 = vmul.f32 %v7139_v25, %v1502_v60  ;;  %v3934_v52 = vld [vmem:[%s8819_s5 + $0x5b0] sm:$0xff]  ;;  %v3935_v4 = vld [vmem:[%s8819_s5 + $0x5b8] sm:$0xff] }
  0x6e   : > { %5534 = vmatpush3.bf16.msra.mxu1 %v5531_v1  ;;  %5504 = vmatprep.subr.bf16.mxu0 %v5503_v30  ;;  %v7118_v1 = vsel %vm6983_vm9, %v1568_v42, 0.0  ;;  %v3898_v30 = vld [vmem:[%s8819_s5 + $0x490] sm:$0xff]  ;;  %v1552_v59 = vadd.f32 %v7170_v49, %v1532_v29  ;;  %v3900_v42 = vld [vmem:[%s8819_s5 + $0x4a0] sm:$0xff]  ;;  %v3901_v0 = vld [vmem:[%s8819_s5 + $0x4a8] sm:$0xff]  ;;  %v5579_v3 = vpack.c.bf16 %v3933_v47, %v3932_v41 }
  0x6f   : > { %5536 = vmatprep.subr.bf16.mxu1 %v5535_v34  ;;  %v5549_v5 = vpack.c.bf16 %v3901_v0, %v3900_v42  ;;  %v3936_v29 = vld [vmem:[%s8819_s5 + $0x5c0] sm:$0xff]  ;;  %v3923_v41 = vld [vmem:[%s8819_s5 + $0x558] sm:$0xff]  ;;  %v3938_v47 = vld [vmem:[%s8819_s5 + $0x5d0] sm:$0xff] }
  0x70   : > { %3839 = vmatmul.mubr.msk.f32.gmra.mrb[30].mxu0 %vm6408_vm3, %v6724_v7  ;;  %v1504_v42 = vld [vmem:[%s6925_s26 + $0x88] sm:$0x3] }
  0x71   : > { %5506 = vmatpush3.bf16.msra.mxu0 %v5505_v20  ;;  %1333 = vmatprep.mubr.f32.mxu0 %v6543_v21  ;;  %v7150_v21 = vsel %vm6983_vm9, %v1570_v18, 0.0  ;;  %v3921_v18 = vld [vmem:[%s8819_s5 + $0x548] sm:$0xff] }
  0x72   : > { %5538 = vmatpush3.bf16.msra.mxu1 %v5535_v34  ;;  %5540 = vmatprep.subr.bf16.mxu0 %v5539_v54  ;;  %v3916_v34 = vld [vmem:[%s8819_s5 + $0x520] sm:$0xff]  ;;  %v1572_v54 = vmax.f32 %v1552_v59, 0.0  ;;  %v3939_v59 = vld [vmem:[%s8819_s5 + $0x5d8] sm:$0xff] }
  0x73   : > { %5572 = vmatprep.subr.bf16.mxu1 %v5571_v8  ;;  %v5547_v20 = vpack.c.bf16 %v3917_v26, %v3916_v34  ;;  %v3922_v26 = vld [vmem:[%s8819_s5 + $0x550] sm:$0xff] }
  0x74   : > { %3888 = vmatmul.mubr.msk.f32.vlgmr.msra.gmra.mrb[32].mxu0 %vm6408_vm3, %v6462_v40  ;;  %v5545_v40 = vpack.c.bf16 %v3899_v12, %v3898_v30  ;;  %v3937_v30 = vld [vmem:[%s8819_s5 + $0x5c8] sm:$0xff]  ;;  %v5559_v0 = vpack.c.bf16 %v3923_v41, %v3922_v26 }
  0x75   : > { %5072 = vmatmul.mubr.f32.vlgmr.msra.gmra.mrb[0].mxu1 %v6659_v27  ;;  %5542 = vmatpush3.bf16.msra.mxu0 %v5541_v24  ;;  %v3918_v27 = vld [vmem:[%s8819_s5 + $0x530] sm:$0xff]  ;;  %v5587_v34 = vpack.c.bf16 %v3937_v30, %v3936_v29  ;;  %v7349_v30 = vld [vmem:[%s8819_s5 + $0x4f8] sm:$0xff]  ;;  %v7378_v26 = vld [vmem:[%s8819_s5 + $0x608] sm:$0xff] }
  0x76   : > { %5574 = vmatpush3.bf16.msra.mxu1 %v5571_v8  ;;  %1338 = vmatprep.mubr.f32.mxu0 %v6595_v45  ;;  %v3919_v45 = vld [vmem:[%s8819_s5 + $0x538] sm:$0xff]  ;;  %v7201_v8 = vsel %vm6983_vm9, %v1572_v54, 0.0  ;;  %v5591_v54 = vpack.c.bf16 %v3939_v59, %v3938_v47  ;;  %v7344_v29 = vld [vmem:[%s8819_s5 + $0x4f0] sm:$0xff]  ;;  %v1499_v47 = vld [vmem:[%s6925_s26 + $0x60] sm:$0xff] }
  0x77   : > { %5544 = vmatprep.subr.bf16.mxu0 %v5543_v31  ;;  %5576 = vmatprep.subr.bf16.mxu1 %v5575_v35  ;;  %v5551_v53 = vpack.c.bf16 %v3919_v45, %v3918_v27  ;;  %v3905_v31 = vld [vmem:[%s8819_s5 + $0x4c8] sm:$0xff]  ;;  %v3940_v27 = vld [vmem:[%s8819_s5 + $0x5e0] sm:$0xff] }
  0x78   : > { %3889 = vmatmul.mubr.msk.f32.gmra.mrb[34].mxu0 %vm6408_vm3, %v6530_v13  ;;  %5074 = vmatprep.mubr.f32.mxu1 %v6689_v44  ;;  %v1554_v13 = vadd.f32 %v7170_v49, %v1534_v50  ;;  %v3902_v44 = vld [vmem:[%s8819_s5 + $0x4b0] sm:$0xff]  ;;  %v3941_v45 = vld [vmem:[%s8819_s5 + $0x5e8] sm:$0xff] }
  0x79   : > { %5546 = vmatpush3.bf16.msra.mxu0 %v5545_v40  ;;  %1343 = vmatprep.mubr.f32.mxu0 %v6652_v19  ;;  %v5583_v19 = vpack.c.bf16 %v3935_v4, %v3934_v52  ;;  %v3907_v40 = vld [vmem:[%s8819_s5 + $0x4d8] sm:$0xff]  ;;  %v7310_v4 = vld [vmem:[%s8819_s5 + $0x4e0] sm:$0xff] }
  0x7a   : > { %5578 = vmatpush3.bf16.msra.mxu1 %v5575_v35  ;;  %5548 = vmatprep.subr.bf16.mxu0 %v5547_v20  ;;  %v1574_v24 = vmax.f32 %v1554_v13, 0.0  ;;  %v1495_v35 = vld [vmem:[%s6925_s26 + $0x40] sm:$0xff]  ;;  %v1497_v13 = vld [vmem:[%s6925_s26 + $0x50] sm:$0xff] }
  0x7b   : > { %5580 = vmatprep.subr.bf16.mxu1 %v5579_v3  ;;  %5075 = vmatmul.mubr.f32.gmra.mrb[2].mxu1 %v6715_v2  ;;  %v5553_v2 = vpack.c.bf16 %v3903_v15, %v3902_v44  ;;  %v7330_v44 = vld [vmem:[%s8819_s5 + $0x578] sm:$0xff]  ;;  %v3942_v15 = vld [vmem:[%s8819_s5 + $0x5f0] sm:$0xff]  ;;  %v1529_v41 = vmul.f32 %v7139_v25, %v1497_v13 }
  0x7c   : > { %3890 = vmatmul.mubr.msk.f32.gmra.mrb[36].mxu0 %vm6408_vm3, %v6590_v43  ;;  %5077 = vmatprep.mubr.f32.mxu1 %v6735_v22  ;;  %v3904_v43 = vld [vmem:[%s8819_s5 + $0x4c0] sm:$0xff]  ;;  %v7240_v12 = vsel %vm6983_vm9, %v1574_v24, 0.0  ;;  %v5555_v22 = vpack.c.bf16 %v3921_v18, %v3920_v17  ;;  %v3943_v24 = vld [vmem:[%s8819_s5 + $0x5f8] sm:$0xff] }
  0x7d   : > { %5550 = vmatpush3.bf16.msra.mxu0 %v5549_v5  ;;  %1348 = vmatprep.mubr.f32.mxu0 %v6680_v36  ;;  %v1493_v36 = vld [vmem:[%s6925_s26 + $0x30] sm:$0xff]  ;;  %v5557_v60 = vpack.c.bf16 %v3905_v31, %v3904_v43  ;;  %v7315_v5 = vld [vmem:[%s8819_s5 + $0x4e8] sm:$0xff]  ;;  %v7352_v43 = vpack.c.bf16 %v3941_v45, %v3940_v27 }
  0x7e   : > { %5582 = vmatpush3.bf16.msra.mxu1 %v5579_v3  ;;  %5552 = vmatprep.subr.bf16.mxu0 %v5551_v53  ;;  %v1525_v20 = vmul.f32 %v7139_v25, %v1493_v36  ;;  %v3925_v3 = vld [vmem:[%s8819_s5 + $0x568] sm:$0xff]  ;;  %v1536_v53 = vmul.f32 %v7139_v25, %v1504_v42  ;;  %v3983_v36 = vld [vmem:[%s8819_s5 + $0x700] sm:$0xff]  ;;  %v7415_v42 = vpack.c.bf16 %v3943_v24, %v3942_v15 }
  0x7f   : > { %5584 = vmatprep.subr.bf16.mxu1 %v5583_v19  ;;  %5078 = vmatmul.mubr.f32.gmra.mrb[4].mxu1 %v6783_v61  ;;  %v1503_v61 = vld [vmem:[%s6925_s26 + $0x80] sm:$0xff]  ;;  %v7362_v31 = vld [vmem:[%s8819_s5 + $0x688] sm:$0xff] }
  0x80   : > { %3891 = vmatmul.mubr.msk.f32.gmra.mrb[38].mxu0 %vm6408_vm3, %v6610_v57  ;;  %5080 = vmatprep.mubr.f32.mxu1 %v6811_v10  ;;  %v3906_v57 = vld [vmem:[%s8819_s5 + $0x4d0] sm:$0xff]  ;;  %v1527_v10 = vmul.f32 %v7139_v25, %v1495_v35  ;;  %v1535_v50 = vmul.f32 %v7139_v25, %v1503_v61  ;;  %v3984_v35 = vld [vmem:[%s8819_s5 + $0x708] sm:$0xff]  ;;  %v7387_v61 = vstv %s8838_s18  ;;  %v7462_v15 = vld [vmem:[%s8819_s5 + $0x620] sm:$0xff]  ;;  %s441_s18 = scalar_select %p440_p4, %s6130_s27, 3 }
  0x81   : > { %5554 = vmatpush3.bf16.msra.mxu0 %v5553_v2  ;;  %1353 = vmatprep.mubr.f32.mxu0 %v6729_v11  ;;  %v3924_v11 = vld [vmem:[%s8819_s5 + $0x560] sm:$0xff]  ;;  %v5561_v52 = vpack.c.bf16 %v3907_v40, %v3906_v57  ;;  %v1556_v2 = vadd.f32 %v7170_v49, %v1536_v53  ;;  %v7399_v40 = vld [vmem:[%s8819_s5 + $0x690] sm:$0xff]  ;;  %vm2527_vm10 = vcmp.eq.s32.totalorder %v7387_v61, 1 }
  0x82   : > { %5586 = vmatpush3.bf16.msra.mxu1 %v5583_v19  ;;  %5556 = vmatprep.subr.bf16.mxu0 %v5555_v22  ;;  %v1545_v19 = vadd.f32 %v7170_v49, %v1525_v20  ;;  %v1547_v17 = vadd.f32 %v7170_v49, %v1527_v10  ;;  %v5563_v18 = vpack.c.bf16 %v3925_v3, %v3924_v11  ;;  %v7357_v22 = vld [vmem:[%s8819_s5 + $0x680] sm:$0xff]  ;;  %v7404_v20 = vld [vmem:[%s8819_s5 + $0x698] sm:$0xff]  ;;  %v7423_v11 = vld [vmem:[%s8819_s5 + $0x610] sm:$0xff]  ;;  %s3769_s17 = sshll.u32 %s441_s18, 3 }
  0x83   : > { %5588 = vmatprep.subr.bf16.mxu1 %v5587_v34  ;;  %5081 = vmatmul.mubr.f32.gmra.mrb[6].mxu1 %v6772_v56  ;;  %v1576_v10 = vmax.f32 %v1556_v2, 0.0  ;;  %v7428_v3 = vld [vmem:[%s8819_s5 + $0x618] sm:$0xff]  ;;  %v5603_v24 = vpack.c.bf16 %v7362_v31, %v7357_v22  ;;  %v5607_v2 = vpack.c.bf16 %v7404_v20, %v7399_v40  ;;  %vm7593_vm11 = vmand %vm466_vm0, %vm2527_vm10  ;;  %s444_s21 = sadd.s32 %s3770_s20, %s3769_s17 }
  0x84   : > { %3892 = vmatmul.mubr.msk.f32.gmra.mrb[40].mxu0 %vm6408_vm3, %v6654_v23  ;;  %5115 = vmatprep.mubr.f32.mxu1 %v6772_v56  ;;  %v7325_v23 = vld [vmem:[%s8819_s5 + $0x570] sm:$0xff]  ;;  %v7430_v27 = vmax.f32 %v1545_v19, 0.0  ;;  %v7432_v45 = vmax.f32 %v1547_v17, 0.0  ;;  %v7467_v19 = vld [vmem:[%s8819_s5 + $0x628] sm:$0xff]  ;;  %v1549_v17 = vadd.f32 %v7170_v49, %v1529_v41  ;;  %v7490_v41 = vld [vmem:[%s8819_s5 + $0x6b8] sm:$0xff] }
  0x85   : > { %5558 = vmatpush3.bf16.msra.mxu0 %v5557_v60  ;;  %1358 = vmatprep.mubr.f32.mxu0 %v6775_v58  ;;  %v1555_v58 = vadd.f32 %v7170_v49, %v1535_v50  ;;  %v5565_v60 = vpack.c.bf16 %v7315_v5, %v7310_v4  ;;  %v5567_v57 = vpack.c.bf16 %v7330_v44, %v7325_v23  ;;  %v7440_v50 = vld [vmem:[%s8819_s5 + $0x6a0] sm:$0xff]  ;;  %v1596_v13 = vsel %vm6983_vm9, %v1576_v10, 0.0  ;;  %v3990_v31 = vld [vmem:[%s8819_s5 + $0x738] sm:$0xff]  ;;  %vm7608_vm12 = vmand %vm473_vm2, %vm2527_vm10 }
  0x86   : > { %5590 = vmatpush3.bf16.msra.mxu1 %v5587_v34  ;;  %5560 = vmatprep.subr.bf16.mxu0 %v5559_v0  ;;  %v7373_v34 = vld [vmem:[%s8819_s5 + $0x600] sm:$0xff]  ;;  %v3986_v0 = vld [vmem:[%s8819_s5 + $0x718] sm:$0xff]  ;;  %v1531_v5 = vmul.f32 %v7139_v25, %v1499_v47  ;;  %v5569_v44 = vpack.c.bf16 %v7349_v30, %v7344_v29  ;;  %v7481_v29 = vpack.c.bf16 %v3984_v35, %v3983_v36  ;;  %v7506_v36 = vld [vmem:[%s8819_s5 + $0x630] sm:$0xff]  ;;  %v1663_v47 = vrot.slane %v7150_v21, 2 }
  0x87   : > { %5592 = vmatprep.subr.bf16.mxu1 %v5591_v54  ;;  %v7382_v59 = vmax.f32 %v1555_v58, 0.0  ;;  %v3987_v4 = vld [vmem:[%s8819_s5 + $0x720] sm:$0xff]  ;;  %v1949_v58 = vrot.slane %v1596_v13, 1  ;;  %v5605_v30 = vpack.c.bf16 %v7378_v26, %v7373_v34  ;;  %v7511_v35 = vld [vmem:[%s8819_s5 + $0x638] sm:$0xff] }
  0x88   : > { %3893 = vmatmul.mubr.msk.f32.gmra.mrb[42].mxu0 %vm6408_vm3, %v6724_v7  ;;  %v3985_v7 = vld [vmem:[%s8819_s5 + $0x710] sm:$0xff]  ;;  %v1551_v10 = vadd.f32 %v7170_v49, %v1531_v5  ;;  %v7551_v5 = vmax.f32 %v1549_v17, 0.0 }
  0x89   : > { %5562 = vmatpush3.bf16.msra.mxu0 %v5561_v52  ;;  %1363 = vmatprep.mubr.f32.mxu0 %v6808_v6  ;;  %v1595_v6 = vsel %vm6956_vm8, %v7382_v59, 0.0  ;;  %v7445_v52 = vld [vmem:[%s8819_s5 + $0x6a8] sm:$0xff]  ;;  %v7498_v22 = vpack.c.bf16 %v3986_v0, %v3985_v7  ;;  %v7528_v7 = vsel %vm6956_vm8, %v7432_v45, 0.0  ;;  %v7544_v0 = vld [vmem:[%s8819_s5 + $0x6c0] sm:$0xff] }
  0x8a   : > { %5594 = vmatpush3.bf16.msra.mxu1 %v5591_v54  ;;  %5564 = vmatprep.subr.bf16.mxu0 %v5563_v18  ;;  %v3988_v54 = vld [vmem:[%s8819_s5 + $0x728] sm:$0xff]  ;;  %v1948_v53 = vrot.slane %v1595_v6, 1  ;;  %v1952_v23 = vrot.slane %v1595_v6, 2  ;;  %v1953_v18 = vrot.slane %v1596_v13, 2 }
  0x8b   : > { %5596 = vmatprep.subr.bf16.mxu1 %v7352_v43  ;;  %v7549_v6 = vld [vmem:[%s8819_s5 + $0x6c8] sm:$0xff] }
  0x8c   : > { %3894 = vmatmul.mubr.msk.f32.gmra.mrb[44].mxu0 %vm6408_vm3, %v6762_v37  ;;  %v1501_v37 = vld [vmem:[%s6925_s26 + $0x70] sm:$0xff]  ;;  %v7514_v34 = vsel %vm617_vm5, %v1948_v53, %v1949_v58  ;;  %v7517_v26 = vsel %vm650_vm6, %v1952_v23, %v1953_v18  ;;  %v7559_v53 = vpack.c.bf16 %v3990_v31, %v3989_v9  ;;  %v1625_v58 = vrot.slane %v7091_v39, 1 }
  0x8d   : > { %5566 = vmatpush3.bf16.msra.mxu0 %v5565_v60  ;;  %1368 = vmatprep.mubr.f32.mxu0 %v6840_v28  ;;  %v1585_v60 = vsel %vm6956_vm8, %v7430_v27, 0.0  ;;  %v1533_v13 = vmul.f32 %v7139_v25, %v1501_v37  ;;  %v1627_v18 = vrot.slane %v7528_v7, 1  ;;  %v1657_v31 = vrot.slane %v7091_v39, 2 }
  0x8e   : > { %5598 = vmatpush3.bf16.msra.mxu1 %v7352_v43  ;;  %5568 = vmatprep.subr.bf16.mxu0 %v5567_v57  ;;  %v7539_v57 = vpack.c.bf16 %v3988_v54, %v3987_v4  ;;  %v1624_v17 = vrot.slane %v1585_v60, 1  ;;  %v1656_v37 = vrot.slane %v1585_v60, 2  ;;  %v1628_v54 = vrot.slane %v7118_v1, 1  ;;  %v2503_v4 = vld [vmem:[%s7534_s24 + $0x18] sm:$0x3] }
  0x8f   : > { %5600 = vmatprep.subr.bf16.mxu1 %v7415_v42  ;;  %v7571_v23 = vmax.f32 %v1551_v10, 0.0  ;;  %v7579_v60 = vsel %vm6956_vm8, %v7551_v5, 0.0  ;;  %v2535_v9 = vmul.f32 %v7139_v25, %v2503_v4  ;;  %v1659_v39 = vrot.slane %v7528_v7, 2 }
  0x90   : > { %1369 = vmatmul.mubr.f32.gmra.mrb[46].mxu0 %v8823_v55  ;;  %v1660_v10 = vrot.slane %v7118_v1, 2  ;;  %v1662_v43 = vrot.slane %v7579_v60, 2  ;;  %v7599_v7 = vsel %vm617_vm5, %v1624_v17, %v1625_v58  ;;  %v7618_v17 = vsel %vm650_vm6, %v1656_v37, %v1657_v31  ;;  %v2507_v31 = vld [vmem:[%s7534_s24 + $0x38] sm:$0x3] }
  0x91   : > { %5570 = vmatpush3.bf16.msra.mxu0 %v5569_v44  ;;  %1792 = vmatprep.mubr.f32.mxu0 %v6840_v28  ;;  %v2502_v44 = vld [vmem:[%s7534_s24 + $0x10] sm:$0xff]  ;;  %v2555_v4 = vadd.f32 %v7170_v49, %v2535_v9  ;;  %v7623_v61 = vsel %vm6956_vm8, %v7571_v23, 0.0  ;;  %v2537_v37 = vmul.f32 %v7139_v25, %v2505_v48 }
  0x92   : > { %5602 = vmatpush3.bf16.msra.mxu1 %v7415_v42  ;;  %5604 = vmatprep.subr.bf16.mxu0 %v5603_v24  ;;  %v1553_v42 = vadd.f32 %v7170_v49, %v1533_v13  ;;  %v2534_v24 = vmul.f32 %v7139_v25, %v2502_v44  ;;  %v2504_v44 = vld [vmem:[%s7534_s24 + $0x20] sm:$0xff]  ;;  %v7641_v9 = vsel %vm650_vm6, %v1659_v39, %v1660_v10  ;;  %v1665_v20 = vrot.slane %v7623_v61, 2 }
  0x93   : > { %5636 = vmatprep.subr.bf16.mxu1 %v7481_v29  ;;  %v2536_v58 = vmul.f32 %v7139_v25, %v2504_v44  ;;  %v7644_v40 = vsel %vm650_vm6, %v1662_v43, %v1663_v47  ;;  %v2557_v43 = vadd.f32 %v7170_v49, %v2537_v37  ;;  %v8845_v10 = vpack.c.bf16 %v7445_v52, %v7440_v50  ;;  %v3991_v52 = vld [vmem:[%s8819_s5 + $0x740] sm:$0xff] }
  0x94   : > { %1793 = vmatmul.mubr.f32.vlgmr.msra.gmra.mrb[48].mxu0 %v8823_v55  ;;  %v2554_v1 = vadd.f32 %v7170_v49, %v2534_v24  ;;  %v1666_v24 = vrot.slane %v7201_v8, 2  ;;  %v2539_v50 = vmul.f32 %v7139_v25, %v2507_v31  ;;  %v1669_v37 = vrot.slane %v7240_v12, 2 }
  0x95   : > { %5116 = vmatmul.mubr.f32.vlgmr.msra.gmra.mrb[0].mxu1 %v7044_v62  ;;  %5606 = vmatpush3.bf16.msra.mxu0 %v5605_v30  ;;  %v7615_v30 = vsel %vm617_vm5, %v1627_v18, %v1628_v54  ;;  %v2575_v18 = vmax.f32 %v2555_v4, 0.0 }
  0x96   : > { %5638 = vmatpush3.bf16.msra.mxu1 %v7481_v29  ;;  %1797 = vmatprep.mubr.f32.mxu0 %v7047_v63  ;;  %v7631_v29 = vmax.f32 %v1553_v42, 0.0  ;;  %v7633_v54 = vmax.f32 %v2554_v1, 0.0  ;;  %v8844_v42 = vpack.c.bf16 %v7428_v3, %v7423_v11 }
  0x97   : > { %5608 = vmatprep.subr.bf16.mxu0 %v5607_v2  ;;  %5640 = vmatprep.subr.bf16.mxu1 %v7498_v22  ;;  %v2556_v2 = vadd.f32 %v7170_v49, %v2536_v58  ;;  %v2595_v47 = vsel %vm7608_vm12, %v2575_v18, 0.0  ;;  %v3992_v58 = vld [vmem:[%s8819_s5 + $0x748] sm:$0xff] }
  0x98   : > { %3944 = vmatmul.mubr.msk.f32.gmra.mrb[50].mxu0 %vm6956_vm8, %v7000_v51  ;;  %5118 = vmatprep.mubr.f32.mxu1 %v7121_v14  ;;  %v2594_v39 = vsel %vm7593_vm11, %v7633_v54, 0.0  ;;  %v2664_v3 = vrot.slane %v2595_v47, 2  ;;  %v2632_v4 = vrot.slane %v2595_v47, 1  ;;  %v7669_v44 = vsel %vm6956_vm8, %v7631_v29, 0.0 }
  0x99   : > { %5610 = vmatpush3.bf16.msra.mxu0 %v8844_v42  ;;  %1802 = vmatprep.mubr.f32.mxu0 %v7081_v32  ;;  %v2663_v11 = vrot.slane %v2594_v39, 2  ;;  %v2631_v1 = vrot.slane %v2594_v39, 1  ;;  %v7671_v48 = vmax.f32 %v2556_v2, 0.0  ;;  %v1668_v18 = vrot.slane %v7669_v44, 2  ;;  %v2509_v42 = vld [vmem:[%s7534_s24 + $0x48] sm:$0x3] }
  0x9a   : > { %5642 = vmatpush3.bf16.msra.mxu1 %v7498_v22  ;;  %5612 = vmatprep.subr.bf16.mxu0 %v8845_v10  ;;  %v2577_v22 = vmax.f32 %v2557_v43, 0.0  ;;  %v8847_v39 = vpack.c.bf16 %v7467_v19, %v7462_v15  ;;  %v7698_v47 = vsel %vm650_vm6, %v1665_v20, %v1666_v24  ;;  %v8848_v15 = vpack.c.bf16 %v7490_v41, %v7472_v16  ;;  %v3959_v19 = vld [vmem:[%s8819_s5 + $0x640] sm:$0xff]  ;;  %v3960_v20 = vld [vmem:[%s8819_s5 + $0x648] sm:$0xff]  ;;  %v3977_v16 = vld [vmem:[%s8819_s5 + $0x6d0] sm:$0xff] }
  0x9b   : > { %5644 = vmatprep.subr.bf16.mxu1 %v7539_v57  ;;  %5119 = vmatmul.mubr.f32.gmra.mrb[2].mxu1 %v7618_v17  ;;  %8846 = vst [vmem:[#allocation2_spill] sm:$0xff] %v7671_v48  ;;  %v7687_v2 = vsel %vm650_vm6, %v2663_v11, %v2664_v3  ;;  %v7690_v31 = vsel %vm617_vm5, %v2631_v1, %v2632_v4  ;;  %v2596_v43 = vsel %vm7593_vm11, %v7671_v48, 0.0  ;;  %v1630_v24 = vrot.slane %v7579_v60, 1  ;;  %v3978_v41 = vld [vmem:[%s8819_s5 + $0x6d8] sm:$0xff] }
  0x9c   : > { %3945 = vmatmul.mubr.msk.f32.gmra.mrb[52].mxu0 %vm6956_vm8, %v7034_v46  ;;  %5121 = vmatprep.mubr.f32.mxu1 %v7641_v9  ;;  %v2597_v10 = vsel %vm7608_vm12, %v2577_v22, 0.0  ;;  %v2559_v11 = vadd.f32 %v7170_v49, %v2539_v50  ;;  %v1631_v3 = vrot.slane %v7150_v21, 1  ;;  %v2634_v1 = vrot.slane %v2596_v43, 1  ;;  %v3993_v21 = vld [vmem:[%s8819_s5 + $0x750] sm:$0xff]  ;;  %v3994_v50 = vld [vmem:[%s8819_s5 + $0x758] sm:$0xff] }
  0x9d   : > { %5614 = vmatpush3.bf16.msra.mxu0 %v8847_v39  ;;  %1807 = vmatprep.mubr.f32.mxu0 %v7599_v7  ;;  %v2635_v4 = vrot.slane %v2597_v10, 1  ;;  %v2541_v60 = vmul.f32 %v7139_v25, %v2509_v42  ;;  %v2511_v42 = vld [vmem:[%s7534_s24 + $0x58] sm:$0x3]  ;;  %v8849_v39 = vpack.c.bf16 %v7511_v35, %v7506_v36  ;;  %v2666_v48 = vrot.slane %v2596_v43, 2  ;;  %v3961_v35 = vld [vmem:[%s8819_s5 + $0x650] sm:$0xff] }
  0x9e   : > { %5646 = vmatpush3.bf16.msra.mxu1 %v7539_v57  ;;  %5616 = vmatprep.subr.bf16.mxu0 %v8848_v15  ;;  %v5651_v57 = vpack.c.bf16 %v3992_v58, %v3991_v52  ;;  %v2579_v22 = vmax.f32 %v2559_v11, 0.0  ;;  %v7738_v52 = vsel %vm650_vm6, %v1668_v18, %v1669_v37  ;;  %v5621_v11 = vpack.c.bf16 %v3960_v20, %v3959_v19  ;;  %v3962_v19 = vld [vmem:[%s8819_s5 + $0x658] sm:$0xff] }
  0x9f   : > { %5648 = vmatprep.subr.bf16.mxu1 %v7559_v53  ;;  %5122 = vmatmul.mubr.f32.gmra.mrb[4].mxu1 %v7644_v40  ;;  %v7741_v58 = vsel %vm617_vm5, %v2634_v1, %v2635_v4  ;;  %v2561_v55 = vadd.f32 %v7170_v49, %v2541_v60  ;;  %v8850_v18 = vpack.c.bf16 %v7549_v6, %v7544_v0  ;;  %v1633_v43 = vrot.slane %v7623_v61, 1  ;;  %v3979_v0 = vld [vmem:[%s8819_s5 + $0x6e0] sm:$0xff]  ;;  %v3980_v6 = vld [vmem:[%s8819_s5 + $0x6e8] sm:$0xff] }
  0xa0   : > { %3946 = vmatmul.mubr.msk.f32.gmra.mrb[54].mxu0 %vm6956_vm8, %v7430_v27  ;;  %5124 = vmatprep.mubr.f32.mxu1 %v7698_v47  ;;  %v7750_v15 = vsel %vm7608_vm12, %v2579_v22, 0.0  ;;  %v7758_v37 = vsel %vm617_vm5, %v1630_v24, %v1631_v3  ;;  %v5623_v36 = vpack.c.bf16 %v3978_v41, %v3977_v16  ;;  %v5655_v20 = vpack.c.bf16 %v3994_v50, %v3993_v21  ;;  %v3996_v61 = vld [vmem:[%s8819_s5 + $0x768] sm:$0xff]  ;;  %v3963_v60 = vld [vmem:[%s8819_s5 + $0x660] sm:$0xff] }
  0xa1   : > { %5618 = vmatpush3.bf16.msra.mxu0 %v8849_v39  ;;  %1812 = vmatprep.mubr.f32.mxu0 %v7615_v30  ;;  %v2581_v24 = vmax.f32 %v2561_v55, 0.0  ;;  %v2543_v3 = vmul.f32 %v7139_v25, %v2511_v42  ;;  %v2667_v1 = vrot.slane %v2597_v10, 2  ;;  %v5625_v55 = vpack.c.bf16 %v3962_v19, %v3961_v35  ;;  %v2513_v41 = vld [vmem:[%s7534_s24 + $0x68] sm:$0x3]  ;;  %v3982_v39 = vld [vmem:[%s8819_s5 + $0x6f8] sm:$0xff] }
  0xa2   : > { %5650 = vmatpush3.bf16.msra.mxu1 %v7559_v53  ;;  %5620 = vmatprep.subr.bf16.mxu0 %v8850_v18  ;;  %v1634_v53 = vrot.slane %v7201_v8, 1  ;;  %v3995_v8 = vld [vmem:[%s8819_s5 + $0x760] sm:$0xff]  ;;  %v3964_v21 = vld [vmem:[%s8819_s5 + $0x668] sm:$0xff]  ;;  %v1636_v50 = vrot.slane %v7669_v44, 1  ;;  %v3998_v44 = vld [vmem:[%s8819_s5 + $0x778] sm:$0xff]  ;;  %v2545_v18 = vmul.f32 %v7139_v25, %v2513_v41 }
  0xa3   : > { %5652 = vmatprep.subr.bf16.mxu1 %v5651_v57  ;;  %5125 = vmatmul.mubr.f32.gmra.mrb[6].mxu1 %v7738_v52  ;;  %v7789_v10 = vsel %vm7608_vm12, %v2581_v24, 0.0  ;;  %v2563_v4 = vadd.f32 %v7170_v49, %v2543_v3  ;;  %v7793_v16 = vsel %vm650_vm6, %v2666_v48, %v2667_v1  ;;  %v1637_v48 = vrot.slane %v7240_v12, 1  ;;  %v3997_v12 = vld [vmem:[%s8819_s5 + $0x770] sm:$0xff]  ;;  %v2515_v24 = vld [vmem:[%s7534_s24 + $0x78] sm:$0x3]  ;;  %v4024_v1 = vld [vmem:[%s8819_s5 + $0x808] sm:$0xff] }
  0xa4   : > { %3947 = vmatmul.mubr.msk.f32.gmra.mrb[56].mxu0 %vm6956_vm8, %v7432_v45  ;;  %5159 = vmatprep.mubr.f32.mxu1 %v7044_v62  ;;  %v7797_v22 = vsel %vm617_vm5, %v1633_v43, %v1634_v53  ;;  %v5627_v62 = vpack.c.bf16 %v3980_v6, %v3979_v0  ;;  %v5659_v42 = vpack.c.bf16 %v3996_v61, %v3995_v8  ;;  %v3965_v53 = vld [vmem:[%s8819_s5 + $0x670] sm:$0xff]  ;;  %v3966_v0 = vld [vmem:[%s8819_s5 + $0x678] sm:$0xff]  ;;  %v4039_v8 = vld [vmem:[%s8819_s5 + $0x880] sm:$0xff] }
  0xa5   : > { %5622 = vmatpush3.bf16.msra.mxu0 %v5621_v11  ;;  %1817 = vmatprep.mubr.f32.mxu0 %v7758_v37  ;;  %v2583_v11 = vmax.f32 %v2563_v4, 0.0  ;;  %v7829_v19 = vsel %vm617_vm5, %v1636_v50, %v1637_v48  ;;  %v2565_v6 = vadd.f32 %v7170_v49, %v2545_v18  ;;  %v5663_v3 = vpack.c.bf16 %v3998_v44, %v3997_v12  ;;  %v4040_v61 = vld [vmem:[%s8819_s5 + $0x888] sm:$0xff]  ;;  %v4042_v12 = vld [vmem:[%s8819_s5 + $0x898] sm:$0xff] }
  0xa6   : > { %5654 = vmatpush3.bf16.msra.mxu1 %v5651_v57  ;;  %5624 = vmatprep.subr.bf16.mxu0 %v5623_v36  ;;  %v3981_v57 = vld [vmem:[%s8819_s5 + $0x6f0] sm:$0xff]  ;;  %v5629_v36 = vpack.c.bf16 %v3964_v21, %v3963_v60  ;;  %v5633_v4 = vpack.c.bf16 %v3966_v0, %v3965_v53  ;;  %v2547_v41 = vmul.f32 %v7139_v25, %v2515_v24  ;;  %v4007_v60 = vld [vmem:[%s8819_s5 + $0x780] sm:$0xff]  ;;  %v4008_v21 = vld [vmem:[%s8819_s5 + $0x788] sm:$0xff] }
  0xa7   : > { %5656 = vmatprep.subr.bf16.mxu1 %v5655_v20  ;;  %v7826_v35 = vsel %vm7608_vm12, %v2583_v11, 0.0  ;;  %v5631_v43 = vpack.c.bf16 %v3982_v39, %v3981_v57  ;;  %v5699_v48 = vpack.c.bf16 %v4040_v61, %v4039_v8  ;;  %v4026_v39 = vld [vmem:[%s8819_s5 + $0x818] sm:$0xff]  ;;  %v4041_v11 = vld [vmem:[%s8819_s5 + $0x890] sm:$0xff]  ;;  %v5669_v44 = vpack.c.bf16 %v4008_v21, %v4007_v60  ;;  %v4012_v61 = vld [vmem:[%s8819_s5 + $0x7a8] sm:$0xff] }
  0xa8   : > { %3948 = vmatmul.mubr.msk.f32.gmra.mrb[58].mxu0 %vm6956_vm8, %v7551_v5  ;;  %v2567_v57 = vadd.f32 %v7170_v49, %v2547_v41  ;;  %v5703_v0 = vpack.c.bf16 %v4042_v12, %v4041_v11  ;;  %v4030_v41 = vld [vmem:[%s8819_s5 + $0x838] sm:$0xff]  ;;  %v2517_v60 = vld [vmem:[%s7534_s24 + $0x88] sm:$0x3]  ;;  %v4045_v21 = vld [vmem:[%s8819_s5 + $0x8b0] sm:$0xff] }
  0xa9   : > { %5626 = vmatpush3.bf16.msra.mxu0 %v5625_v55  ;;  %1822 = vmatprep.mubr.f32.mxu0 %v7797_v22  ;;  %v2585_v55 = vmax.f32 %v2565_v6, 0.0  ;;  %v4027_v6 = vld [vmem:[%s8819_s5 + $0x820] sm:$0xff]  ;;  %v4014_v11 = vld [vmem:[%s8819_s5 + $0x7b8] sm:$0xff] }
  0xaa   : > { %5658 = vmatpush3.bf16.msra.mxu1 %v5655_v20  ;;  %5628 = vmatprep.subr.bf16.mxu0 %v5627_v62  ;;  %v4023_v20 = vld [vmem:[%s8819_s5 + $0x800] sm:$0xff]  ;;  %v2587_v18 = vmax.f32 %v2567_v57, 0.0 }
  0xab   : > { %5660 = vmatprep.subr.bf16.mxu1 %v5659_v42  ;;  %v5667_v62 = vpack.c.bf16 %v4024_v1, %v4023_v20  ;;  %v7864_v50 = vsel %vm7608_vm12, %v2585_v55, 0.0  ;;  %v4044_v20 = vld [vmem:[%s8819_s5 + $0x8a8] sm:$0xff]  ;;  %v4029_v55 = vld [vmem:[%s8819_s5 + $0x830] sm:$0xff] }
  0xac   : > { %3949 = vmatmul.mubr.msk.f32.gmra.mrb[60].mxu0 %vm6956_vm8, %v7571_v23  ;;  %v7897_v24 = vsel %vm7608_vm12, %v2587_v18, 0.0  ;;  %v5679_v57 = vpack.c.bf16 %v4030_v41, %v4029_v55  ;;  %v4034_v55 = vld [vmem:[%s8819_s5 + $0x858] sm:$0xff]  ;;  %v4049_v41 = vld [vmem:[%s8819_s5 + $0x8d0] sm:$0xff] }
  0xad   : > { %5630 = vmatpush3.bf16.msra.mxu0 %v5629_v36  ;;  %1827 = vmatprep.mubr.f32.mxu0 %v7829_v19  ;;  %v4009_v36 = vld [vmem:[%s8819_s5 + $0x790] sm:$0xff] }
  0xae   : > { %5662 = vmatpush3.bf16.msra.mxu1 %v5659_v42  ;;  %5632 = vmatprep.subr.bf16.mxu0 %v5631_v43  ;;  %v4025_v42 = vld [vmem:[%s8819_s5 + $0x810] sm:$0xff]  ;;  %v4010_v43 = vld [vmem:[%s8819_s5 + $0x798] sm:$0xff] }
  0xaf   : > { %5664 = vmatprep.subr.bf16.mxu1 %v5663_v3  ;;  %v5671_v53 = vpack.c.bf16 %v4026_v39, %v4025_v42  ;;  %v5673_v1 = vpack.c.bf16 %v4010_v43, %v4009_v36  ;;  %v4013_v39 = vld [vmem:[%s8819_s5 + $0x7b0] sm:$0xff]  ;;  %v4031_v36 = vld [vmem:[%s8819_s5 + $0x840] sm:$0xff]  ;;  %v4032_v43 = vld [vmem:[%s8819_s5 + $0x848] sm:$0xff] }
  0xb0   : > { %3950 = vmatmul.mubr.msk.f32.gmra.mrb[62].mxu0 %vm6956_vm8, %v7631_v29 }
  0xb1   : > { %5634 = vmatpush3.bf16.msra.mxu0 %v5633_v4  ;;  %2069 = vmatprep.mubr.f32.mxu0 %v7047_v63  ;;  %v4028_v63 = vld [vmem:[%s8819_s5 + $0x828] sm:$0xff] }
  0xb2   : > { %5666 = vmatpush3.bf16.msra.mxu1 %v5663_v3  ;;  %5668 = vmatprep.subr.bf16.mxu0 %v5667_v62  ;;  %v4043_v3 = vld [vmem:[%s8819_s5 + $0x8a0] sm:$0xff]  ;;  %v5675_v8 = vpack.c.bf16 %v4028_v63, %v4027_v6  ;;  %v5681_v63 = vpack.c.bf16 %v4014_v11, %v4013_v39 }
  0xb3   : > { %5700 = vmatprep.subr.bf16.mxu1 %v5699_v48  ;;  %v5707_v4 = vpack.c.bf16 %v4044_v20, %v4043_v3  ;;  %v2516_v62 = vld [vmem:[%s7534_s24 + $0x80] sm:$0xff]  ;;  %v4016_v20 = vld [vmem:[%s8819_s5 + $0x7c8] sm:$0xff] }
  0xb4   : > { %3999 = vmatmul.mubr.msk.f32.vlgmr.msra.gmra.mrb[64].mxu0 %vm6956_vm8, %v7000_v51  ;;  %v4011_v51 = vld [vmem:[%s8819_s5 + $0x7a0] sm:$0xff]  ;;  %v2548_v12 = vmul.f32 %v7139_v25, %v2516_v62  ;;  %v4050_v62 = vld [vmem:[%s8819_s5 + $0x8d8] sm:$0xff] }
  0xb5   : > { %5160 = vmatmul.mubr.f32.vlgmr.msra.gmra.mrb[0].mxu1 %v7121_v14  ;;  %5670 = vmatpush3.bf16.msra.mxu0 %v5669_v44  ;;  %v5677_v42 = vpack.c.bf16 %v4012_v61, %v4011_v51  ;;  %v2549_v44 = vmul.f32 %v7139_v25, %v2517_v60  ;;  %v4047_v25 = vld [vmem:[%s8819_s5 + $0x8c0] sm:$0xff]  ;;  %v4033_v61 = vld [vmem:[%s8819_s5 + $0x850] sm:$0xff]  ;;  %v5719_v38 = vpack.c.bf16 %v4050_v62, %v4049_v41  ;;  %v4022_v62 = vld [vmem:[%s8819_s5 + $0x7f8] sm:$0xff] }
  0xb6   : > { %5702 = vmatpush3.bf16.msra.mxu1 %v5699_v48  ;;  %2074 = vmatprep.mubr.f32.mxu0 %v7081_v32  ;;  %v4046_v48 = vld [vmem:[%s8819_s5 + $0x8b8] sm:$0xff]  ;;  %v4015_v3 = vld [vmem:[%s8819_s5 + $0x7c0] sm:$0xff]  ;;  %v5687_v11 = vpack.c.bf16 %v4034_v55, %v4033_v61  ;;  %v4021_v41 = vld [vmem:[%s8819_s5 + $0x7f0] sm:$0xff] }
  0xb7   : > { %5672 = vmatprep.subr.bf16.mxu0 %v5671_v53  ;;  %5704 = vmatprep.subr.bf16.mxu1 %v5703_v0  ;;  %v5711_v18 = vpack.c.bf16 %v4046_v48, %v4045_v21  ;;  %v4048_v53 = vld [vmem:[%s8819_s5 + $0x8c8] sm:$0xff]  ;;  %v2569_v6 = vadd.f32 %v7170_v49, %v2549_v44  ;;  %v4018_v44 = vld [vmem:[%s8819_s5 + $0x7d8] sm:$0xff] }
  0xb8   : > { %4000 = vmatmul.mubr.msk.f32.gmra.mrb[66].mxu0 %vm6956_vm8, %v7034_v46  ;;  %5162 = vmatprep.mubr.f32.mxu1 %v7618_v17  ;;  %v4054_v61 = vld [vmem:[%s8819_s5 + $0x8f8] sm:$0xff] }
  0xb9   : > { %5674 = vmatpush3.bf16.msra.mxu0 %v5673_v1  ;;  %2079 = vmatprep.mubr.f32.mxu0 %v7599_v7  ;;  %v5683_v1 = vpack.c.bf16 %v4032_v43, %v4031_v36  ;;  %v2589_v51 = vmax.f32 %v2569_v6, 0.0  ;;  %v4035_v36 = vld [vmem:[%s8819_s5 + $0x860] sm:$0xff] }
  0xba   : > { %5706 = vmatpush3.bf16.msra.mxu1 %v5703_v0  ;;  %5676 = vmatprep.subr.bf16.mxu0 %v5675_v8  ;;  %v2568_v0 = vadd.f32 %v7170_v49, %v2548_v12  ;;  %v5715_v49 = vpack.c.bf16 %v4048_v53, %v4047_v25  ;;  %v4017_v12 = vld [vmem:[%s8819_s5 + $0x7d0] sm:$0xff]  ;;  %v4051_v53 = vld [vmem:[%s8819_s5 + $0x8e0] sm:$0xff] }
  0xbb   : > { %5708 = vmatprep.subr.bf16.mxu1 %v5707_v4  ;;  %5163 = vmatmul.mubr.f32.gmra.mrb[2].mxu1 %v7641_v9  ;;  %v2609_v21 = vsel %vm7608_vm12, %v2589_v51, 0.0  ;;  %v5689_v6 = vpack.c.bf16 %v4018_v44, %v4017_v12  ;;  %v4038_v51 = vld [vmem:[%s8819_s5 + $0x878] sm:$0xff]  ;;  %v4063_v12 = vld [vmem:[%s8819_s5 + $0x900] sm:$0xff]  ;;  %v4064_v44 = vld [vmem:[%s8819_s5 + $0x908] sm:$0xff] }
  0xbc   : > { %4001 = vmatmul.mubr.msk.f32.gmra.mrb[68].mxu0 %vm6956_vm8, %v7430_v27  ;;  %5165 = vmatprep.mubr.f32.mxu1 %v7644_v40  ;;  %v7969_v8 = vmax.f32 %v2568_v0, 0.0  ;;  %v2966_v39 = vrot.slane %v2609_v21, 2  ;;  %v4052_v0 = vld [vmem:[%s8819_s5 + $0x8e8] sm:$0xff] }
  0xbd   : > { %5678 = vmatpush3.bf16.msra.mxu0 %v5677_v42  ;;  %2084 = vmatprep.mubr.f32.mxu0 %v7615_v30  ;;  %v2962_v42 = vrot.slane %v2609_v21, 1  ;;  %v4079_v21 = vld [vmem:[%s8819_s5 + $0x980] sm:$0xff] }
  0xbe   : > { %5710 = vmatpush3.bf16.msra.mxu1 %v5707_v4  ;;  %5680 = vmatprep.subr.bf16.mxu0 %v5679_v57  ;;  %v5685_v4 = vpack.c.bf16 %v4016_v20, %v4015_v3  ;;  %v2608_v60 = vsel %vm7593_vm11, %v7969_v8, 0.0  ;;  %v4019_v3 = vld [vmem:[%s8819_s5 + $0x7e0] sm:$0xff]  ;;  %v4020_v20 = vld [vmem:[%s8819_s5 + $0x7e8] sm:$0xff] }
  0xbf   : > { %5712 = vmatprep.subr.bf16.mxu1 %v5711_v18  ;;  %5166 = vmatmul.mubr.f32.gmra.mrb[4].mxu1 %v7698_v47  ;;  %v2961_v48 = vrot.slane %v2608_v60, 1  ;;  %v2965_v57 = vrot.slane %v2608_v60, 2  ;;  %v5693_v55 = vpack.c.bf16 %v4020_v20, %v4019_v3  ;;  %v4066_v3 = vld [vmem:[%s8819_s5 + $0x918] sm:$0xff] }
  0xc0   : > { %4002 = vmatmul.mubr.msk.f32.gmra.mrb[70].mxu0 %vm6956_vm8, %v7432_v45  ;;  %5168 = vmatprep.mubr.f32.mxu1 %v7738_v52 }
  0xc1   : > { %5682 = vmatpush3.bf16.msra.mxu0 %v5681_v63  ;;  %2089 = vmatprep.mubr.f32.mxu0 %v7758_v37  ;;  %v8008_v43 = vsel %vm617_vm5, %v2961_v48, %v2962_v42  ;;  %v8011_v25 = vsel %vm650_vm6, %v2965_v57, %v2966_v39  ;;  %v4080_v48 = vld [vmem:[%s8819_s5 + $0x988] sm:$0xff]  ;;  %v4095_v42 = vld [vmem:[%s8819_s5 + $0xa00] sm:$0xff]  ;;  %v5697_v39 = vpack.c.bf16 %v4022_v62, %v4021_v41  ;;  %v4101_v62 = vld [vmem:[%s8819_s5 + $0xa30] sm:$0xff] }
  0xc2   : > { %5714 = vmatpush3.bf16.msra.mxu1 %v5711_v18  ;;  %5684 = vmatprep.subr.bf16.mxu0 %v5683_v1  ;;  %v4036_v18 = vld [vmem:[%s8819_s5 + $0x868] sm:$0xff]  ;;  %v5723_v1 = vpack.c.bf16 %v4052_v0, %v4051_v53  ;;  %v4097_v53 = vld [vmem:[%s8819_s5 + $0xa10] sm:$0xff]  ;;  %v4098_v0 = vld [vmem:[%s8819_s5 + $0xa18] sm:$0xff] }
  0xc3   : > { %5716 = vmatprep.subr.bf16.mxu1 %v5715_v49  ;;  %5169 = vmatmul.mubr.f32.gmra.mrb[6].mxu1 %v7517_v26  ;;  %v5691_v63 = vpack.c.bf16 %v4036_v18, %v4035_v36  ;;  %v4096_v57 = vld [vmem:[%s8819_s5 + $0xa08] sm:$0xff]  ;;  %v4081_v36 = vld [vmem:[%s8819_s5 + $0x990] sm:$0xff]  ;;  %v4082_v18 = vld [vmem:[%s8819_s5 + $0x998] sm:$0xff] }
  0xc4   : > { %4003 = vmatmul.mubr.msk.f32.gmra.mrb[72].mxu0 %vm6956_vm8, %v7551_v5  ;;  %5203 = vmatprep.mubr.f32.mxu1 %v7121_v14  ;;  %v4037_v14 = vld [vmem:[%s8819_s5 + $0x870] sm:$0xff]  ;;  %v5735_v20 = vpack.c.bf16 %v4082_v18, %v4081_v36  ;;  %v4106_v18 = vld [vmem:[%s8819_s5 + $0xa58] sm:$0xff] }
  0xc5   : > { %5686 = vmatpush3.bf16.msra.mxu0 %v5685_v4  ;;  %2094 = vmatprep.mubr.f32.mxu0 %v7797_v22  ;;  %v5695_v4 = vpack.c.bf16 %v4038_v51, %v4037_v14  ;;  %v4083_v14 = vld [vmem:[%s8819_s5 + $0x9a0] sm:$0xff]  ;;  %v4105_v36 = vld [vmem:[%s8819_s5 + $0xa50] sm:$0xff] }
  0xc6   : > { %5718 = vmatpush3.bf16.msra.mxu1 %v5715_v49  ;;  %5688 = vmatprep.subr.bf16.mxu0 %v5687_v11  ;;  %v4053_v49 = vld [vmem:[%s8819_s5 + $0x8f0] sm:$0xff]  ;;  %v5731_v11 = vpack.c.bf16 %v4080_v48, %v4079_v21  ;;  %v4099_v51 = vld [vmem:[%s8819_s5 + $0xa20] sm:$0xff] }
  0xc7   : > { %5720 = vmatprep.subr.bf16.mxu1 %v5719_v38  ;;  %v5727_v60 = vpack.c.bf16 %v4054_v61, %v4053_v49  ;;  %v4100_v49 = vld [vmem:[%s8819_s5 + $0xa28] sm:$0xff] }
  0xc8   : > { %4004 = vmatmul.mubr.msk.f32.gmra.mrb[74].mxu0 %vm6956_vm8, %v7571_v23  ;;  %v5771_v41 = vpack.c.bf16 %v4100_v49, %v4099_v51  ;;  %v4076_v51 = vld [vmem:[%s8819_s5 + $0x968] sm:$0xff] }
  0xc9   : > { %5690 = vmatpush3.bf16.msra.mxu0 %v5689_v6  ;;  %2099 = vmatprep.mubr.f32.mxu0 %v7829_v19  ;;  %v5733_v6 = vpack.c.bf16 %v4064_v44, %v4063_v12  ;;  %v4072_v44 = vld [vmem:[%s8819_s5 + $0x948] sm:$0xff] }
  0xca   : > { %5722 = vmatpush3.bf16.msra.mxu1 %v5719_v38  ;;  %5692 = vmatprep.subr.bf16.mxu0 %v5691_v63  ;;  %v5763_v38 = vpack.c.bf16 %v4096_v57, %v4095_v42  ;;  %v4065_v63 = vld [vmem:[%s8819_s5 + $0x910] sm:$0xff]  ;;  %v4070_v42 = vld [vmem:[%s8819_s5 + $0x938] sm:$0xff] }
  0xcb   : > { %5724 = vmatprep.subr.bf16.mxu1 %v5723_v1  ;;  %v5737_v61 = vpack.c.bf16 %v4066_v3, %v4065_v63  ;;  %v4107_v63 = vld [vmem:[%s8819_s5 + $0xa60] sm:$0xff]  ;;  %v4108_v3 = vld [vmem:[%s8819_s5 + $0xa68] sm:$0xff] }
  0xcc   : > { %4005 = vmatmul.mubr.msk.f32.gmra.mrb[76].mxu0 %vm6956_vm8, %v7631_v29  ;;  %v5787_v49 = vpack.c.bf16 %v4108_v3, %v4107_v63 }
  0xcd   : > { %5694 = vmatpush3.bf16.msra.mxu0 %v5693_v55  ;;  %2104 = vmatprep.mubr.f32.mxu0 %v7514_v34 }
  0xce   : > { %5726 = vmatpush3.bf16.msra.mxu1 %v5723_v1  ;;  %5696 = vmatprep.subr.bf16.mxu0 %v5695_v4  ;;  %v5767_v1 = vpack.c.bf16 %v4098_v0, %v4097_v53  ;;  %v4068_v4 = vld [vmem:[%s8819_s5 + $0x928] sm:$0xff]  ;;  %v4074_v0 = vld [vmem:[%s8819_s5 + $0x958] sm:$0xff] }
  0xcf   : > { %5728 = vmatprep.subr.bf16.mxu1 %v5727_v60 }
  0xd0   : > { %4006 = vmatmul.mubr.msk.f32.gmra.mrb[78].mxu0 %vm6956_vm8, %v7382_v59 }
  0xd1   : > { %5698 = vmatpush3.bf16.msra.mxu0 %v5697_v39  ;;  %2346 = vmatprep.mubr.f32.mxu0 %v7081_v32  ;;  %v4084_v32 = vld [vmem:[%s8819_s5 + $0x9a8] sm:$0xff]  ;;  %v4103_v39 = vld [vmem:[%s8819_s5 + $0xa40] sm:$0xff] }
  0xd2   : > { %5730 = vmatpush3.bf16.msra.mxu1 %v5727_v60  ;;  %5732 = vmatprep.subr.bf16.mxu0 %v5731_v11  ;;  %v5739_v55 = vpack.c.bf16 %v4084_v32, %v4083_v14  ;;  %v4102_v60 = vld [vmem:[%s8819_s5 + $0xa38] sm:$0xff]  ;;  %v4104_v11 = vld [vmem:[%s8819_s5 + $0xa48] sm:$0xff]  ;;  %v2508_v14 = vld [vmem:[%s7534_s24 + $0x40] sm:$0xff] }
  0xd3   : > { %5764 = vmatprep.subr.bf16.mxu1 %v5763_v38  ;;  %v5775_v57 = vpack.c.bf16 %v4102_v60, %v4101_v62  ;;  %v4075_v32 = vld [vmem:[%s8819_s5 + $0x960] sm:$0xff] }
  0xd4   : > { %4055 = vmatmul.mubr.msk.f32.vlgmr.msra.gmra.mrb[80].mxu0 %vm6956_vm8, %v7034_v46  ;;  %v4067_v46 = vld [vmem:[%s8819_s5 + $0x920] sm:$0xff]  ;;  %v5757_v62 = vpack.c.bf16 %v4076_v51, %v4075_v32  ;;  %v4139_v32 = vld [vmem:[%s8819_s5 + $0xb28] sm:$0xff] }
  0xd5   : > { %5204 = vmatmul.mubr.f32.vlgmr.msra.gmra.mrb[0].mxu1 %v7618_v17  ;;  %5734 = vmatpush3.bf16.msra.mxu0 %v5733_v6  ;;  %v4085_v17 = vld [vmem:[%s8819_s5 + $0x9b0] sm:$0xff]  ;;  %v5741_v21 = vpack.c.bf16 %v4068_v4, %v4067_v46  ;;  %v5783_v6 = vpack.c.bf16 %v4106_v18, %v4105_v36  ;;  %v2512_v60 = vld [vmem:[%s7534_s24 + $0x60] sm:$0xff]  ;;  %v4137_v36 = vld [vmem:[%s8819_s5 + $0xb18] sm:$0xff] }
  0xd6   : > { %5766 = vmatpush3.bf16.msra.mxu1 %v5763_v38  ;;  %2351 = vmatprep.mubr.f32.mxu0 %v7599_v7  ;;  %v4086_v7 = vld [vmem:[%s8819_s5 + $0x9b8] sm:$0xff]  ;;  %v5779_v38 = vpack.c.bf16 %v4104_v11, %v4103_v39  ;;  %v4109_v4 = vld [vmem:[%s8819_s5 + $0xa70] sm:$0xff]  ;;  %v4150_v39 = vld [vmem:[%s8819_s5 + $0xb80] sm:$0xff] }
  0xd7   : > { %5736 = vmatprep.subr.bf16.mxu0 %v5735_v20  ;;  %5768 = vmatprep.subr.bf16.mxu1 %v5767_v1  ;;  %v5743_v48 = vpack.c.bf16 %v4086_v7, %v4085_v17  ;;  %v2506_v20 = vld [vmem:[%s7534_s24 + $0x30] sm:$0xff]  ;;  %v4151_v11 = vld [vmem:[%s8819_s5 + $0xb88] sm:$0xff] }
  0xd8   : > { %4056 = vmatmul.mubr.msk.f32.gmra.mrb[82].mxu0 %vm6956_vm8, %v7430_v27  ;;  %5206 = vmatprep.mubr.f32.mxu1 %v7641_v9  ;;  %v4069_v27 = vld [vmem:[%s8819_s5 + $0x930] sm:$0xff]  ;;  %v4087_v9 = vld [vmem:[%s8819_s5 + $0x9c0] sm:$0xff] }
  0xd9   : > { %5738 = vmatpush3.bf16.msra.mxu0 %v5737_v61  ;;  %2356 = vmatprep.mubr.f32.mxu0 %v7615_v30  ;;  %v4088_v30 = vld [vmem:[%s8819_s5 + $0x9c8] sm:$0xff]  ;;  %v5745_v12 = vpack.c.bf16 %v4070_v42, %v4069_v27  ;;  %v4094_v61 = vld [vmem:[%s8819_s5 + $0x9f8] sm:$0xff]  ;;  %v2510_v7 = vld [vmem:[%s7534_s24 + $0x50] sm:$0xff] }
  0xda   : > { %5770 = vmatpush3.bf16.msra.mxu1 %v5767_v1  ;;  %5740 = vmatprep.subr.bf16.mxu0 %v5739_v55  ;;  %v6106_v55 = vld [vmem:[%s8817_s3] ss:$0 sm:$0xff]  ;;  %v4135_v42 = vld [vmem:[%s8819_s5 + $0xb08] sm:$0xff] }
  0xdb   : > { %5772 = vmatprep.subr.bf16.mxu1 %v5771_v41  ;;  %5207 = vmatmul.mubr.f32.gmra.mrb[2].mxu1 %v7644_v40  ;;  %v5747_v40 = vpack.c.bf16 %v4088_v30, %v4087_v9  ;;  %v2538_v46 = vmul.f32 %v6106_v55, %v2506_v20  ;;  %v2540_v17 = vmul.f32 %v6106_v55, %v2508_v14  ;;  %v4120_v20 = vld [vmem:[%s8819_s5 + $0xa90] sm:$0xff] }
  0xdc   : > { %4057 = vmatmul.mubr.msk.f32.gmra.mrb[84].mxu0 %vm6956_vm8, %v7432_v45  ;;  %5209 = vmatprep.mubr.f32.mxu1 %v7698_v47  ;;  %v4071_v45 = vld [vmem:[%s8819_s5 + $0x940] sm:$0xff]  ;;  %v4089_v47 = vld [vmem:[%s8819_s5 + $0x9d0] sm:$0xff]  ;;  %v2542_v30 = vmul.f32 %v6106_v55, %v2510_v7 }
  0xdd   : > { %5742 = vmatpush3.bf16.msra.mxu0 %v5741_v21  ;;  %2361 = vmatprep.mubr.f32.mxu0 %v7758_v37  ;;  %v4090_v37 = vld [vmem:[%s8819_s5 + $0x9d8] sm:$0xff]  ;;  %v5749_v53 = vpack.c.bf16 %v4072_v44, %v4071_v45  ;;  %v2514_v45 = vld [vmem:[%s7534_s24 + $0x70] sm:$0xff]  ;;  %s3771_s24 = sshll.u32 %s444_s21, 3 }
  0xde   : > { %5774 = vmatpush3.bf16.msra.mxu1 %v5771_v41  ;;  %5744 = vmatprep.subr.bf16.mxu0 %v5743_v48  ;;  %v4110_v41 = vld [vmem:[%s8819_s5 + $0xa78] sm:$0xff]  ;;  %s8777_s19 = scalar_lea.vmem %s8820_s6, %s3771_s24 }
  0xdf   : > { %5776 = vmatprep.subr.bf16.mxu1 %v5775_v57  ;;  %5210 = vmatmul.mubr.f32.gmra.mrb[4].mxu1 %v7738_v52  ;;  %v5751_v52 = vpack.c.bf16 %v4090_v37, %v4089_v47  ;;  %v4078_v48 = vld [vmem:[%s8819_s5 + $0x978] sm:$0xff]  ;;  %v5791_v27 = vpack.c.bf16 %v4110_v41, %v4109_v4  ;;  %v5827_v47 = vpack.c.bf16 %v4151_v11, %v4150_v39  ;;  %v4136_v37 = vld [vmem:[%s8819_s5 + $0xb10] sm:$0xff]  ;;  %v2670_v41 = vrot.slane %v7750_v15, 2 }
  0xe0   : > { %4058 = vmatmul.mubr.msk.f32.gmra.mrb[86].mxu0 %vm6956_vm8, %v7551_v5  ;;  %5212 = vmatprep.mubr.f32.mxu1 %v7517_v26  ;;  %v4073_v5 = vld [vmem:[%s8819_s5 + $0x950] sm:$0xff]  ;;  %v4091_v26 = vld [vmem:[%s8819_s5 + $0x9e0] sm:$0xff]  ;;  %v5799_v3 = vpack.c.bf16 %v4137_v36, %v4136_v37  ;;  %v4157_v11 = vld [vmem:[%s8819_s5 + $0xbb8] sm:$0xff] }
  0xe1   : > { %5746 = vmatpush3.bf16.msra.mxu0 %v5745_v12  ;;  %2366 = vmatprep.mubr.f32.mxu0 %v7797_v22  ;;  %v4092_v22 = vld [vmem:[%s8819_s5 + $0x9e8] sm:$0xff]  ;;  %v5753_v1 = vpack.c.bf16 %v4074_v0, %v4073_v5  ;;  %v8851_v5 = vmov 0.0   ;;  %v4152_v0 = vld [vmem:[%s8819_s5 + $0xb90] sm:$0xff] }
  0xe2   : > { %5778 = vmatpush3.bf16.msra.mxu1 %v5775_v57  ;;  %5748 = vmatprep.subr.bf16.mxu0 %v5747_v40  ;;  %v6107_v57 = vld [vmem:[%s8818_s4] ss:$0 sm:$0xff]  ;;  %v2544_v40 = vmul.f32 %v6106_v55, %v2512_v60  ;;  %v2673_v60 = vrot.slane %v7789_v10, 2 }
  0xe3   : > { %5780 = vmatprep.subr.bf16.mxu1 %v5779_v38  ;;  %5213 = vmatmul.mubr.f32.gmra.mrb[6].mxu1 %v6772_v56  ;;  %v2558_v9 = vadd.f32 %v6107_v57, %v2538_v46  ;;  %v2560_v12 = vadd.f32 %v6107_v57, %v2540_v17 }
  0xe4   : > { %4059 = vmatmul.mubr.msk.f32.gmra.mrb[88].mxu0 %vm6956_vm8, %v7571_v23  ;;  %5247 = vmatprep.mubr.f32.mxu1 %v6772_v56  ;;  %v5755_v23 = vpack.c.bf16 %v4092_v22, %v4091_v26  ;;  %v2564_v22 = vadd.f32 %v6107_v57, %v2544_v40 }
  0xe5   : > { %5750 = vmatpush3.bf16.msra.mxu0 %v5749_v53  ;;  %2371 = vmatprep.mubr.f32.mxu0 %v7829_v19  ;;  %v4093_v19 = vld [vmem:[%s8819_s5 + $0x9f0] sm:$0xff]  ;;  %v8275_v18 = vmax.f32 %v2558_v9, 0.0  ;;  %v2562_v53 = vadd.f32 %v6107_v57, %v2542_v30  ;;  %v8284_v26 = vmax.f32 %v2560_v12, 0.0  ;;  %v4141_v9 = vld [vmem:[%s8819_s5 + $0xb38] sm:$0xff] }
  0xe6   : > { %5782 = vmatpush3.bf16.msra.mxu1 %v5779_v38  ;;  %5752 = vmatprep.subr.bf16.mxu0 %v5751_v52  ;;  %v5759_v21 = vpack.c.bf16 %v4094_v61, %v4093_v19  ;;  %v2546_v52 = vmul.f32 %v6106_v55, %v2514_v45  ;;  %v4154_v61 = vld [vmem:[%s8819_s5 + $0xba0] sm:$0xff]  ;;  %v4155_v55 = vld [vmem:[%s8819_s5 + $0xba8] sm:$0xff]  ;;  %v8317_v17 = vmax.f32 %v2564_v22, 0.0 }
  0xe7   : > { %5784 = vmatprep.subr.bf16.mxu1 %v5783_v6  ;;  %v2598_v51 = vsel %vm7593_vm11, %v8275_v18, 0.0  ;;  %v8314_v46 = vsel %vm7593_vm11, %v8284_v26, 0.0 }
  0xe8   : > { %4060 = vmatmul.mubr.msk.f32.gmra.mrb[90].mxu0 %vm6956_vm8, %v7631_v29  ;;  %v4077_v29 = vld [vmem:[%s8819_s5 + $0x970] sm:$0xff]  ;;  %v2566_v19 = vadd.f32 %v6107_v57, %v2546_v52  ;;  %v2669_v4 = vrot.slane %v2598_v51, 2  ;;  %v8359_v40 = vsel %vm7593_vm11, %v8317_v17, 0.0  ;;  %v4125_v52 = vld [vmem:[%s8819_s5 + $0xab8] sm:$0xff] }
  0xe9   : > { %5754 = vmatpush3.bf16.msra.mxu0 %v5753_v1  ;;  %2376 = vmatprep.mubr.f32.mxu0 %v7514_v34  ;;  %v4134_v34 = vld [vmem:[%s8819_s5 + $0xb00] sm:$0xff]  ;;  %v5761_v44 = vpack.c.bf16 %v4078_v48, %v4077_v29  ;;  %v4121_v1 = vld [vmem:[%s8819_s5 + $0xa98] sm:$0xff]  ;;  %v4123_v48 = vld [vmem:[%s8819_s5 + $0xaa8] sm:$0xff] }
  0xea   : > { %5786 = vmatpush3.bf16.msra.mxu1 %v5783_v6  ;;  %5756 = vmatprep.subr.bf16.mxu0 %v5755_v23  ;;  %v5795_v38 = vpack.c.bf16 %v4135_v42, %v4134_v34  ;;  %v4153_v6 = vld [vmem:[%s8819_s5 + $0xb98] sm:$0xff]  ;;  %v4138_v23 = vld [vmem:[%s8819_s5 + $0xb20] sm:$0xff]  ;;  %v5801_v7 = vpack.c.bf16 %v4121_v1, %v4120_v20  ;;  %v2638_v34 = vrot.slane %v7750_v15, 1  ;;  %v5835_v42 = vpack.c.bf16 %v4155_v55, %v4154_v61  ;;  %v4140_v57 = vld [vmem:[%s8819_s5 + $0xb30] sm:$0xff] }
  0xeb   : > { %5788 = vmatprep.subr.bf16.mxu1 %v5787_v49  ;;  %v5831_v14 = vpack.c.bf16 %v4153_v6, %v4152_v0  ;;  %v4122_v29 = vld [vmem:[%s8819_s5 + $0xaa0] sm:$0xff]  ;;  %v8341_v39 = vmax.f32 %v2566_v19, 0.0  ;;  %v4156_v15 = vld [vmem:[%s8819_s5 + $0xbb0] sm:$0xff]  ;;  %v8354_v12 = vsel %vm650_vm6, %v2669_v4, %v2670_v41  ;;  %v5807_v36 = vpack.c.bf16 %v4141_v9, %v4140_v57  ;;  %v4127_v41 = vld [vmem:[%s8819_s5 + $0xac8] sm:$0xff] }
  0xec   : > { %4061 = vmatmul.mubr.msk.f32.gmra.mrb[92].mxu0 %vm6956_vm8, %v7382_v59  ;;  %v4119_v59 = vld [vmem:[%s8819_s5 + $0xa88] sm:$0xff]  ;;  %v2640_v0 = vrot.slane %v8314_v46, 1  ;;  %v2641_v6 = vrot.slane %v7789_v10, 1  ;;  %v5839_v22 = vpack.c.bf16 %v4157_v11, %v4156_v15  ;;  %v8852_v1 = vld [vmem:[#allocation2_spill] sm:$0xff]  ;;  %v4128_v9 = vld [vmem:[%s8819_s5 + $0xad0] sm:$0xff]  ;;  %v2646_v15 = vrot.slane %v8359_v40, 1 }
  0xed   : > { %5758 = vmatpush3.bf16.msra.mxu0 %v5757_v62  ;;  %2381 = vmatprep.mubr.f32.mxu0 %v6840_v28  ;;  %v5797_v63 = vpack.c.bf16 %v4119_v59, %v4118_v33  ;;  %v2672_v62 = vrot.slane %v8314_v46, 2  ;;  %v2678_v59 = vrot.slane %v8359_v40, 2  ;;  %v8390_v20 = vsel %vm7593_vm11, %v8341_v39, 0.0  ;;  %v4158_v10 = vld [vmem:[%s8819_s5 + $0xbc0] sm:$0xff]  ;;  %v4163_v40 = vld [vmem:[%s8819_s5 + $0xbe8] sm:$0xff] }
  0xee   : > { %5790 = vmatpush3.bf16.msra.mxu1 %v5787_v49  ;;  %5760 = vmatprep.subr.bf16.mxu0 %v5759_v21  ;;  %v8302_v49 = vmax.f32 %v2562_v53, 0.0  ;;  %v5803_v21 = vpack.c.bf16 %v4139_v32, %v4138_v23  ;;  %v4124_v53 = vld [vmem:[%s8819_s5 + $0xab0] sm:$0xff]  ;;  %v2681_v32 = vrot.slane %v8390_v20, 2  ;;  %v8412_v55 = vsel %vm617_vm5, %v2640_v0, %v2641_v6  ;;  %v4126_v4 = vld [vmem:[%s8819_s5 + $0xac0] sm:$0xff] }
  0xef   : > { %5792 = vmatprep.subr.bf16.mxu1 %v5791_v27  ;;  %v8365_v33 = vsel %vm650_vm6, %v2672_v62, %v2673_v60  ;;  %v5809_v19 = vpack.c.bf16 %v4125_v52, %v4124_v53  ;;  %v2644_v62 = vrot.slane %v7826_v35, 1  ;;  %v2647_v11 = vrot.slane %v7864_v50, 1  ;;  %v4130_v53 = vld [vmem:[%s8819_s5 + $0xae0] sm:$0xff]  ;;  %v4131_v52 = vld [vmem:[%s8819_s5 + $0xae8] sm:$0xff] }
  0xf0   : > { %2382 = vmatmul.mubr.f32.gmra.mrb[94].mxu0 %v8851_v5  ;;  %v8339_v30 = vsel %vm7593_vm11, %v8302_v49, 0.0  ;;  %v2650_v0 = vrot.slane %v7897_v24, 1 }
  0xf1   : > { %5762 = vmatpush3.bf16.msra.mxu0 %v5761_v44  ;;  %2805 = vmatprep.mubr.f32.mxu0 %v6840_v28  ;;  %v2675_v45 = vrot.slane %v8339_v30, 2  ;;  %v2676_v44 = vrot.slane %v7826_v35, 2  ;;  %v4160_v35 = vld [vmem:[%s8819_s5 + $0xbd0] sm:$0xff] }
  0xf2   : > { %5794 = vmatpush3.bf16.msra.mxu1 %v5791_v27  ;;  %5796 = vmatprep.subr.bf16.mxu0 %v5795_v38  ;;  %v2637_v27 = vrot.slane %v2598_v51, 1  ;;  %v5805_v38 = vpack.c.bf16 %v4123_v48, %v4122_v29  ;;  %v2682_v51 = vrot.slane %v7897_v24, 2  ;;  %v4145_v29 = vld [vmem:[%s8819_s5 + $0xb58] sm:$0xff]  ;;  %v4164_v24 = vld [vmem:[%s8819_s5 + $0xbf0] sm:$0xff] }
  0xf3   : > { %5828 = vmatprep.subr.bf16.mxu1 %v5827_v47  ;;  %v8403_v23 = vsel %vm650_vm6, %v2675_v45, %v2676_v44  ;;  %v4161_v48 = vld [vmem:[%s8819_s5 + $0xbd8] sm:$0xff]  ;;  %v4146_v44 = vld [vmem:[%s8819_s5 + $0xb60] sm:$0xff] }
  0xf4   : > { %2806 = vmatmul.mubr.f32.vlgmr.msra.gmra.mrb[96].mxu0 %v8851_v5  ;;  %v8370_v37 = vsel %vm617_vm5, %v2637_v27, %v2638_v34  ;;  %v8440_v27 = vsel %vm650_vm6, %v2681_v32, %v2682_v51  ;;  %v5813_v34 = vpack.c.bf16 %v4127_v41, %v4126_v4  ;;  %v5847_v45 = vpack.c.bf16 %v4161_v48, %v4160_v35  ;;  %v4133_v4 = vld [vmem:[%s8819_s5 + $0xaf8] sm:$0xff]  ;;  %v4207_v35 = vld [vmem:[%s8819_s5 + $0xd08] sm:$0xff] }
  0xf5   : > { %5248 = vmatmul.mubr.f32.vlgmr.msra.gmra.mrb[0].mxu1 %v7687_v2  ;;  %5798 = vmatpush3.bf16.msra.mxu0 %v5797_v63  ;;  %v4142_v63 = vld [vmem:[%s8819_s5 + $0xb40] sm:$0xff]  ;;  %v5821_v32 = vpack.c.bf16 %v4131_v52, %v4130_v53  ;;  %v4176_v53 = vld [vmem:[%s8819_s5 + $0xc10] sm:$0xff]  ;;  %v4177_v52 = vld [vmem:[%s8819_s5 + $0xc18] sm:$0xff] }
  0xf6   : > { %5830 = vmatpush3.bf16.msra.mxu1 %v5827_v47  ;;  %2810 = vmatprep.mubr.f32.mxu0 %v7690_v31  ;;  %v2679_v47 = vrot.slane %v7864_v50, 2  ;;  %v4162_v50 = vld [vmem:[%s8819_s5 + $0xbe0] sm:$0xff] }
  0xf7   : > { %5800 = vmatprep.subr.bf16.mxu0 %v5799_v3  ;;  %5832 = vmatprep.subr.bf16.mxu1 %v5831_v14  ;;  %v4143_v3 = vld [vmem:[%s8819_s5 + $0xb48] sm:$0xff] }
  0xf8   : > { %4111 = vmatmul.mubr.msk.f32.gmra.mrb[98].mxu0 %vm7593_vm11, %v7633_v54  ;;  %5250 = vmatprep.mubr.f32.mxu1 %v7793_v16  ;;  %v8409_v61 = vsel %vm650_vm6, %v2678_v59, %v2679_v47  ;;  %v5811_v46 = vpack.c.bf16 %v4143_v3, %v4142_v63  ;;  %v8473_v47 = vsel %vm617_vm5, %v2646_v15, %v2647_v11  ;;  %v4148_v63 = vld [vmem:[%s8819_s5 + $0xb70] sm:$0xff]  ;;  %v4149_v3 = vld [vmem:[%s8819_s5 + $0xb78] sm:$0xff] }
  0xf9   : > { %5802 = vmatpush3.bf16.msra.mxu0 %v5801_v7  ;;  %2815 = vmatprep.mubr.f32.mxu0 %v7741_v58  ;;  %v2643_v7 = vrot.slane %v8339_v30, 1  ;;  %v4129_v30 = vld [vmem:[%s8819_s5 + $0xad8] sm:$0xff] }
  0xfa   : > { %5834 = vmatpush3.bf16.msra.mxu1 %v5831_v14  ;;  %5804 = vmatprep.subr.bf16.mxu0 %v5803_v21  ;;  %v4159_v14 = vld [vmem:[%s8819_s5 + $0xbc8] sm:$0xff]  ;;  %v4144_v21 = vld [vmem:[%s8819_s5 + $0xb50] sm:$0xff]  ;;  %v5817_v59 = vpack.c.bf16 %v4129_v30, %v4128_v9  ;;  %v4174_v9 = vld [vmem:[%s8819_s5 + $0xc00] sm:$0xff] }
  0xfb   : > { %5836 = vmatprep.subr.bf16.mxu1 %v5835_v42  ;;  %5251 = vmatmul.mubr.f32.gmra.mrb[2].mxu1 %v8354_v12  ;;  %v5843_v60 = vpack.c.bf16 %v4159_v14, %v4158_v10  ;;  %v5815_v57 = vpack.c.bf16 %v4145_v29, %v4144_v21  ;;  %v4206_v29 = vld [vmem:[%s8819_s5 + $0xd00] sm:$0xff]  ;;  %v4175_v30 = vld [vmem:[%s8819_s5 + $0xc08] sm:$0xff] }
  0xfc   : > { %4112 = vmatmul.mubr.msk.f32.gmra.mrb[100].mxu0 %vm7593_vm11, %v8852_v1  ;;  %5253 = vmatprep.mubr.f32.mxu1 %v8365_v33  ;;  %v5891_v11 = vpack.c.bf16 %v4207_v35, %v4206_v29 }
  0xfd   : > { %5806 = vmatpush3.bf16.msra.mxu0 %v5805_v38  ;;  %2820 = vmatprep.mubr.f32.mxu0 %v8370_v37  ;;  %v4147_v38 = vld [vmem:[%s8819_s5 + $0xb68] sm:$0xff] }
  0xfe   : > { %5838 = vmatpush3.bf16.msra.mxu1 %v5835_v42  ;;  %5808 = vmatprep.subr.bf16.mxu0 %v5807_v36  ;;  %v8444_v42 = vsel %vm617_vm5, %v2643_v7, %v2644_v62  ;;  %v5819_v36 = vpack.c.bf16 %v4147_v38, %v4146_v44  ;;  %v4190_v62 = vld [vmem:[%s8819_s5 + $0xc80] sm:$0xff]  ;;  %v4193_v38 = vld [vmem:[%s8819_s5 + $0xc98] sm:$0xff] }
  0xff   : > { %5840 = vmatprep.subr.bf16.mxu1 %v5839_v22  ;;  %5254 = vmatmul.mubr.f32.gmra.mrb[4].mxu1 %v8403_v23 }
 0x100   : > { %4113 = vmatmul.mubr.msk.f32.gmra.mrb[102].mxu0 %vm7593_vm11, %v8275_v18  ;;  %5256 = vmatprep.mubr.f32.mxu1 %v8409_v61 }
 0x101   : > { %5810 = vmatpush3.bf16.msra.mxu0 %v5809_v19  ;;  %2825 = vmatprep.mubr.f32.mxu0 %v8412_v55  ;;  %v5823_v19 = vpack.c.bf16 %v4149_v3, %v4148_v63  ;;  %v4210_v3 = vld [vmem:[%s8819_s5 + $0xd20] sm:$0xff] }
 0x102   : > { %5842 = vmatpush3.bf16.msra.mxu1 %v5839_v22  ;;  %5812 = vmatprep.subr.bf16.mxu0 %v5811_v46  ;;  %v5851_v22 = vpack.c.bf16 %v4163_v40, %v4162_v50  ;;  %v4132_v46 = vld [vmem:[%s8819_s5 + $0xaf0] sm:$0xff]  ;;  %v4209_v40 = vld [vmem:[%s8819_s5 + $0xd18] sm:$0xff] }
 0x103   : > { %5844 = vmatprep.subr.bf16.mxu1 %v5843_v60  ;;  %5257 = vmatmul.mubr.f32.gmra.mrb[6].mxu1 %v8440_v27  ;;  %v4208_v50 = vld [vmem:[%s8819_s5 + $0xd10] sm:$0xff] }
 0x104   : > { %4114 = vmatmul.mubr.msk.f32.gmra.mrb[104].mxu0 %vm7593_vm11, %v8284_v26  ;;  %5291 = vmatprep.mubr.f32.mxu1 %v7687_v2  ;;  %v2649_v2 = vrot.slane %v8390_v20, 1  ;;  %v4165_v20 = vld [vmem:[%s8819_s5 + $0xbf8] sm:$0xff] }
 0x105   : > { %5814 = vmatpush3.bf16.msra.mxu0 %v5813_v34  ;;  %2830 = vmatprep.mubr.f32.mxu0 %v8444_v42  ;;  %v5855_v7 = vpack.c.bf16 %v4165_v20, %v4164_v24  ;;  %v5825_v34 = vpack.c.bf16 %v4133_v4, %v4132_v46  ;;  %v5865_v20 = vpack.c.bf16 %v4177_v52, %v4176_v53  ;;  %v4182_v52 = vld [vmem:[%s8819_s5 + $0xc40] sm:$0xff] }
 0x106   : > { %5846 = vmatpush3.bf16.msra.mxu1 %v5843_v60  ;;  %5816 = vmatprep.subr.bf16.mxu0 %v5815_v57  ;;  %v8502_v51 = vsel %vm617_vm5, %v2649_v2, %v2650_v0  ;;  %v4191_v60 = vld [vmem:[%s8819_s5 + $0xc88] sm:$0xff] }
 0x107   : > { %v4263_v6 = vpop.f32.mrb[0].mxu0  ;;  %5848 = vmatprep.subr.bf16.mxu1 %v5847_v45  ;;  %v5859_v57 = vpack.c.bf16 %v4191_v60, %v4190_v62  ;;  %v4212_v60 = vld [vmem:[%s8819_s5 + $0xd30] sm:$0xff] }
 0x108   : > { %v4264_v10 = vpop.f32.mrb[1].mxu0  ;;  %4115 = vmatmul.mubr.msk.f32.gmra.mrb[106].mxu0 %vm7593_vm11, %v8302_v49 }
 0x109   : > { %v8498_v14 = vadd.f32 %v4264_v10, %v4263_v6  ;;  %5818 = vmatpush3.bf16.msra.mxu0 %v5817_v59  ;;  %2835 = vmatprep.mubr.f32.mxu0 %v8473_v47  ;;  %v5895_v6 = vpack.c.bf16 %v4209_v40, %v4208_v50  ;;  %v4211_v10 = vld [vmem:[%s8819_s5 + $0xd28] sm:$0xff] }
 0x10a   : > { %5850 = vmatpush3.bf16.msra.mxu1 %v5847_v45  ;;  %5820 = vmatprep.subr.bf16.mxu0 %v5819_v36  ;;  %v4192_v45 = vld [vmem:[%s8819_s5 + $0xc90] sm:$0xff]  ;;  %v5861_v36 = vpack.c.bf16 %v4175_v30, %v4174_v9  ;;  %v5899_v4 = vpack.c.bf16 %v4211_v10, %v4210_v3  ;;  %v4181_v9 = vld [vmem:[%s8819_s5 + $0xc38] sm:$0xff]  ;;  %v4215_v50 = vld [vmem:[%s8819_s5 + $0xd48] sm:$0xff] }
 0x10b   : > { %v4266_v41 = vpop.f32.mrb[2].mxu0  ;;  %5852 = vmatprep.subr.bf16.mxu1 %v5851_v22  ;;  %v5863_v0 = vpack.c.bf16 %v4193_v38, %v4192_v45  ;;  %v4199_v45 = vld [vmem:[%s8819_s5 + $0xcc8] sm:$0xff]  ;;  %v4214_v38 = vld [vmem:[%s8819_s5 + $0xd40] sm:$0xff]  ;;  %v4216_v3 = vld [vmem:[%s8819_s5 + $0xd50] sm:$0xff] }
 0x10c   : > { %v4267_v21 = vpop.f32.mrb[3].mxu0  ;;  %4116 = vmatmul.mubr.msk.f32.gmra.mrb[108].mxu0 %vm7593_vm11, %v8317_v17  ;;  %v4217_v10 = vld [vmem:[%s8819_s5 + $0xd58] sm:$0xff] }
 0x10d   : > { %v8525_v48 = vadd.f32 %v4267_v21, %v4266_v41  ;;  %5822 = vmatpush3.bf16.msra.mxu0 %v5821_v32  ;;  %2840 = vmatprep.mubr.f32.mxu0 %v8502_v51  ;;  %v4196_v41 = vld [vmem:[%s8819_s5 + $0xcb0] sm:$0xff]  ;;  %v4213_v21 = vld [vmem:[%s8819_s5 + $0xd38] sm:$0xff] }
 0x10e   : > { %5854 = vmatpush3.bf16.msra.mxu1 %v5851_v22  ;;  %5824 = vmatprep.subr.bf16.mxu0 %v5823_v19  ;;  %v4194_v22 = vld [vmem:[%s8819_s5 + $0xca0] sm:$0xff]  ;;  %v4179_v19 = vld [vmem:[%s8819_s5 + $0xc28] sm:$0xff] }
 0x10f   : > { %v4269_v15 = vpop.f32.mrb[4].mxu0  ;;  %5856 = vmatprep.subr.bf16.mxu1 %v5855_v7 }
 0x110   : > { %v4270_v44 = vpop.f32.mrb[5].mxu0  ;;  %4117 = vmatmul.mubr.msk.f32.gmra.mrb[110].mxu0 %vm7593_vm11, %v8341_v39 }
 0x111   : > { %v8549_v59 = vadd.f32 %v4270_v44, %v4269_v15  ;;  %5826 = vmatpush3.bf16.msra.mxu0 %v5825_v34  ;;  %3082 = vmatprep.mubr.f32.mxu0 %v7690_v31  ;;  %v4195_v31 = vld [vmem:[%s8819_s5 + $0xca8] sm:$0xff]  ;;  %v5903_v15 = vpack.c.bf16 %v4213_v21, %v4212_v60  ;;  %v4218_v21 = vld [vmem:[%s8819_s5 + $0xd60] sm:$0xff] }
 0x112   : > { %5858 = vmatpush3.bf16.msra.mxu1 %v5855_v7  ;;  %5860 = vmatprep.subr.bf16.mxu0 %v5859_v57  ;;  %v5867_v32 = vpack.c.bf16 %v4195_v31, %v4194_v22  ;;  %v4197_v7 = vld [vmem:[%s8819_s5 + $0xcb8] sm:$0xff]  ;;  %v4180_v57 = vld [vmem:[%s8819_s5 + $0xc30] sm:$0xff] }
 0x113   : > { %v4272_v2 = vpop.f32.mrb[6].mxu0  ;;  %5892 = vmatprep.subr.bf16.mxu1 %v5891_v11  ;;  %v5871_v34 = vpack.c.bf16 %v4197_v7, %v4196_v41  ;;  %v4200_v22 = vld [vmem:[%s8819_s5 + $0xcd0] sm:$0xff]  ;;  %v4201_v31 = vld [vmem:[%s8819_s5 + $0xcd8] sm:$0xff]  ;;  %v5911_v41 = vpack.c.bf16 %v4217_v10, %v4216_v3  ;;  %v4202_v7 = vld [vmem:[%s8819_s5 + $0xce0] sm:$0xff] }
 0x114   : > { %v4273_v63 = vpop.f32.mrb[7].mxu0  ;;  %4166 = vmatmul.mubr.msk.f32.vlgmr.msra.gmra.mrb[112].mxu0 %vm7593_vm11, %v7633_v54  ;;  %v4178_v54 = vld [vmem:[%s8819_s5 + $0xc20] sm:$0xff] }
 0x115   : > { %v8573_v24 = vadd.f32 %v4273_v63, %v4272_v2  ;;  %5292 = vmatmul.mubr.f32.vlgmr.msra.gmra.mrb[0].mxu1 %v7793_v16  ;;  %5862 = vmatpush3.bf16.msra.mxu0 %v5861_v36  ;;  %v5869_v35 = vpack.c.bf16 %v4179_v19, %v4178_v54  ;;  %v5873_v36 = vpack.c.bf16 %v4181_v9, %v4180_v57  ;;  %v4183_v2 = vld [vmem:[%s8819_s5 + $0xc48] sm:$0xff]  ;;  %v4184_v19 = vld [vmem:[%s8819_s5 + $0xc50] sm:$0xff] }
 0x116   : > { %5894 = vmatpush3.bf16.msra.mxu1 %v5891_v11  ;;  %3087 = vmatprep.mubr.f32.mxu0 %v7741_v58  ;;  %v4198_v11 = vld [vmem:[%s8819_s5 + $0xcc0] sm:$0xff]  ;;  %v5879_v54 = vpack.c.bf16 %v4201_v31, %v4200_v22 }
 0x117   : > { %v4275_v46 = vpop.f32.mrb[8].mxu0  ;;  %5864 = vmatprep.subr.bf16.mxu0 %v5863_v0  ;;  %5896 = vmatprep.subr.bf16.mxu1 %v5895_v6  ;;  %v5875_v53 = vpack.c.bf16 %v4199_v45, %v4198_v11  ;;  %v4204_v45 = vld [vmem:[%s8819_s5 + $0xcf0] sm:$0xff] }
 0x118   : > { %v4276_v62 = vpop.f32.mrb[9].mxu0  ;;  %4167 = vmatmul.mubr.msk.f32.gmra.mrb[114].mxu0 %vm7593_vm11, %v8852_v1  ;;  %5294 = vmatprep.mubr.f32.mxu1 %v8354_v12 }
 0x119   : > { %v8599_v29 = vadd.f32 %v4276_v62, %v4275_v46  ;;  %5866 = vmatpush3.bf16.msra.mxu0 %v5865_v20  ;;  %3092 = vmatprep.mubr.f32.mxu0 %v8370_v37  ;;  %v4185_v46 = vld [vmem:[%s8819_s5 + $0xc58] sm:$0xff]  ;;  %v4203_v62 = vld [vmem:[%s8819_s5 + $0xce8] sm:$0xff] }
 0x11a   : > { %5898 = vmatpush3.bf16.msra.mxu1 %v5895_v6  ;;  %5868 = vmatprep.subr.bf16.mxu0 %v5867_v32  ;;  %v5907_v6 = vpack.c.bf16 %v4215_v50, %v4214_v38  ;;  %v5877_v32 = vpack.c.bf16 %v4183_v2, %v4182_v52  ;;  %v5881_v57 = vpack.c.bf16 %v4185_v46, %v4184_v19  ;;  %v4220_v50 = vld [vmem:[%s8819_s5 + $0xd70] sm:$0xff] }
 0x11b   : > { %v4278_v30 = vpop.f32.mrb[10].mxu0  ;;  %5900 = vmatprep.subr.bf16.mxu1 %v5899_v4  ;;  %5295 = vmatmul.mubr.f32.gmra.mrb[2].mxu1 %v8365_v33  ;;  %v5883_v9 = vpack.c.bf16 %v4203_v62, %v4202_v7 }
 0x11c   : > { %v4279_v44 = vpop.f32.mrb[11].mxu0  ;;  %4168 = vmatmul.mubr.msk.f32.gmra.mrb[116].mxu0 %vm7593_vm11, %v8275_v18  ;;  %5297 = vmatprep.mubr.f32.mxu1 %v8403_v23 }
 0x11d   : > { %v8625_v40 = vadd.f32 %v4279_v44, %v4278_v30  ;;  %5870 = vmatpush3.bf16.msra.mxu0 %v5869_v35  ;;  %3097 = vmatprep.mubr.f32.mxu0 %v8412_v55  ;;  %v4219_v35 = vld [vmem:[%s8819_s5 + $0xd68] sm:$0xff]  ;;  %v4186_v30 = vld [vmem:[%s8819_s5 + $0xc60] sm:$0xff]  ;;  %v4205_v44 = vld [vmem:[%s8819_s5 + $0xcf8] sm:$0xff] }
 0x11e   : > { %5902 = vmatpush3.bf16.msra.mxu1 %v5899_v4  ;;  %5872 = vmatprep.subr.bf16.mxu0 %v5871_v34  ;;  %v5887_v2 = vpack.c.bf16 %v4205_v44, %v4204_v45 }
 0x11f   : > { %v4281_v0 = vpop.f32.mrb[12].mxu0  ;;  %5904 = vmatprep.subr.bf16.mxu1 %v5903_v15  ;;  %5298 = vmatmul.mubr.f32.gmra.mrb[4].mxu1 %v8409_v61 }
 0x120   : > { %v4282_v63 = vpop.f32.mrb[13].mxu0  ;;  %4169 = vmatmul.mubr.msk.f32.gmra.mrb[118].mxu0 %vm7593_vm11, %v8284_v26  ;;  %5300 = vmatprep.mubr.f32.mxu1 %v8440_v27 }
 0x121   : > { %v8651_v20 = vadd.f32 %v4282_v63, %v4281_v0  ;;  %5874 = vmatpush3.bf16.msra.mxu0 %v5873_v36  ;;  %3102 = vmatprep.mubr.f32.mxu0 %v8444_v42  ;;  %v4221_v36 = vld [vmem:[%s8819_s5 + $0xd78] sm:$0xff]  ;;  %v4188_v0 = vld [vmem:[%s8819_s5 + $0xc70] sm:$0xff] }
 0x122   : > { %5906 = vmatpush3.bf16.msra.mxu1 %v5903_v15  ;;  %5876 = vmatprep.subr.bf16.mxu0 %v5875_v53  ;;  %v4187_v15 = vld [vmem:[%s8819_s5 + $0xc68] sm:$0xff]  ;;  %v5919_v63 = vpack.c.bf16 %v4221_v36, %v4220_v50 }
 0x123   : > { %v4284_v4 = vpop.f32.mrb[14].mxu0  ;;  %5908 = vmatprep.subr.bf16.mxu1 %v5907_v6  ;;  %5301 = vmatmul.mubr.f32.gmra.mrb[6].mxu1 %v8011_v25  ;;  %v5885_v52 = vpack.c.bf16 %v4187_v15, %v4186_v30 }
 0x124   : > { %v4285_v60 = vpop.f32.mrb[15].mxu0  ;;  %4170 = vmatmul.mubr.msk.f32.gmra.mrb[120].mxu0 %vm7593_vm11, %v8302_v49  ;;  %5335 = vmatprep.mubr.f32.mxu1 %v7793_v16  ;;  %v5915_v16 = vpack.c.bf16 %v4219_v35, %v4218_v21 }
 0x125   : > { %v8677_v34 = vadd.f32 %v4285_v60, %v4284_v4  ;;  %5878 = vmatpush3.bf16.msra.mxu0 %v5877_v32  ;;  %3107 = vmatprep.mubr.f32.mxu0 %v8473_v47 }
 0x126   : > { %5910 = vmatpush3.bf16.msra.mxu1 %v5907_v6  ;;  %5880 = vmatprep.subr.bf16.mxu0 %v5879_v54  ;;  %v4189_v6 = vld [vmem:[%s8819_s5 + $0xc78] sm:$0xff] }
 0x127   : > { %v4343_v11 = vpop.f32.mrb[16].mxu0  ;;  %5912 = vmatprep.subr.bf16.mxu1 %v5911_v41  ;;  %v5889_v32 = vpack.c.bf16 %v4189_v6, %v4188_v0 }
 0x128   : > { %v4344_v38 = vpop.f32.mrb[17].mxu0  ;;  %4171 = vmatmul.mubr.msk.f32.gmra.mrb[122].mxu0 %vm7593_vm11, %v8317_v17 }
 0x129   : > { %v4345_v53 = vadd.f32 %v4344_v38, %v4343_v11  ;;  %5882 = vmatpush3.bf16.msra.mxu0 %v5881_v57  ;;  %3112 = vmatprep.mubr.f32.mxu0 %v8502_v51 }
 0x12a   : > { %5914 = vmatpush3.bf16.msra.mxu1 %v5911_v41  ;;  %5884 = vmatprep.subr.bf16.mxu0 %v5883_v9 }
 0x12b   : > { %v8709_v22 = vadd.f32 %v4345_v53, %v8498_v14  ;;  %v4346_v31 = vpop.f32.mrb[18].mxu0  ;;  %5916 = vmatprep.subr.bf16.mxu1 %v5915_v16 }
 0x12c   : > { %v4347_v3 = vpop.f32.mrb[19].mxu0  ;;  %4172 = vmatmul.mubr.msk.f32.gmra.mrb[124].mxu0 %vm7593_vm11, %v8341_v39 }
 0x12d   : > { %v4348_v10 = vadd.f32 %v4347_v3, %v4346_v31  ;;  %5886 = vmatpush3.bf16.msra.mxu0 %v5885_v52  ;;  %3117 = vmatprep.mubr.f32.mxu0 %v8008_v43 }
 0x12e   : > { %5918 = vmatpush3.bf16.msra.mxu1 %v5915_v16  ;;  %5888 = vmatprep.subr.bf16.mxu0 %v5887_v2 }
 0x12f   : > { %v5923_v54 = vadd.f32 %v4348_v10, %v8525_v48  ;;  %v4349_v19 = vpop.f32.mrb[20].mxu0  ;;  %5920 = vmatprep.subr.bf16.mxu1 %v5919_v63 }
 0x130   : > { %v4350_v14 = vpop.f32.mrb[21].mxu0  ;;  %4173 = vmatmul.mubr.msk.f32.gmra.mrb[126].mxu0 %vm7593_vm11, %v7969_v8 }
 0x131   : > { %v4351_v46 = vadd.f32 %v4350_v14, %v4349_v19  ;;  %5890 = vmatpush3.bf16.msra.mxu0 %v5889_v32  ;;  %3359 = vmatprep.mubr.f32.mxu0 %v7741_v58 }
 0x132   : > { %5922 = vmatpush3.bf16.msra.mxu1 %v5919_v63 }
 0x133   : > { %v5950_v4 = vadd.f32 %v4351_v46, %v8549_v59  ;;  %v4352_v41 = vpop.f32.mrb[22].mxu0 }
 0x134   : > { %v4353_v7 = vpop.f32.mrb[23].mxu0  ;;  %4222 = vmatmul.mubr.msk.f32.vlgmr.msra.gmra.mrb[128].mxu0 %vm7593_vm11, %v8852_v1 }
 0x135   : > { %v4354_v48 = vadd.f32 %v4353_v7, %v4352_v41  ;;  %5336 = vmatmul.mubr.f32.vlgmr.msra.gmra.mrb[0].mxu1 %v8354_v12  ;;  %3364 = vmatprep.mubr.f32.mxu0 %v8370_v37 }
 0x136   : > { %5338 = vmatprep.mubr.f32.mxu1 %v8365_v33 }
 0x137   : > { %v5941_v62 = vadd.f32 %v4354_v48, %v8573_v24  ;;  %v4355_v60 = vpop.f32.mrb[24].mxu0 }
 0x138   : > { %v4356_v58 = vpop.f32.mrb[25].mxu0  ;;  %4223 = vmatmul.mubr.msk.f32.gmra.mrb[130].mxu0 %vm7593_vm11, %v8275_v18 }
 0x139   : > { %v4357_v59 = vadd.f32 %v4356_v58, %v4355_v60  ;;  %5339 = vmatmul.mubr.f32.gmra.mrb[2].mxu1 %v8403_v23  ;;  %3369 = vmatprep.mubr.f32.mxu0 %v8412_v55 }
 0x13a   : > { %5341 = vmatprep.mubr.f32.mxu1 %v8409_v61 }
 0x13b   : > { %v5968_v12 = vadd.f32 %v4357_v59, %v8599_v29  ;;  %v4358_v37 = vpop.f32.mrb[26].mxu0 }
 0x13c   : > { %v4359_v1 = vpop.f32.mrb[27].mxu0  ;;  %4224 = vmatmul.mubr.msk.f32.gmra.mrb[132].mxu0 %vm7593_vm11, %v8284_v26 }
 0x13d   : > { %v4360_v33 = vadd.f32 %v4359_v1, %v4358_v37  ;;  %5342 = vmatmul.mubr.f32.gmra.mrb[4].mxu1 %v8440_v27  ;;  %3374 = vmatprep.mubr.f32.mxu0 %v8444_v42 }
 0x13e   : > { %5344 = vmatprep.mubr.f32.mxu1 %v8011_v25 }
 0x13f   : > { %v5959_v18 = vadd.f32 %v4360_v33, %v8625_v40  ;;  %v4361_v23 = vpop.f32.mrb[28].mxu0 }
 0x140   : > { %v4362_v55 = vpop.f32.mrb[29].mxu0  ;;  %4225 = vmatmul.mubr.msk.f32.gmra.mrb[134].mxu0 %vm7593_vm11, %v8302_v49 }
 0x141   : > { %v4363_v61 = vadd.f32 %v4362_v55, %v4361_v23  ;;  %5345 = vmatmul.mubr.f32.gmra.mrb[6].mxu1 %v6772_v56  ;;  %3379 = vmatprep.mubr.f32.mxu0 %v8473_v47 }
 0x143   : > { %v5986_v26 = vadd.f32 %v4363_v61, %v8651_v20  ;;  %v4364_v27 = vpop.f32.mrb[30].mxu0 }
 0x144   : > { %v4365_v24 = vpop.f32.mrb[31].mxu0  ;;  %4226 = vmatmul.mubr.msk.f32.gmra.mrb[136].mxu0 %vm7593_vm11, %v8317_v17 }
 0x145   : > { %v4366_v25 = vadd.f32 %v4365_v24, %v4364_v27  ;;  %3384 = vmatprep.mubr.f32.mxu0 %v8502_v51 }
 0x147   : > { %v5977_v42 = vadd.f32 %v4366_v25, %v8677_v34  ;;  %v4423_v29 = vpop.f32.mrb[32].mxu0 }
 0x148   : > { %v4424_v49 = vpop.f32.mrb[33].mxu0  ;;  %4227 = vmatmul.mubr.msk.f32.gmra.mrb[138].mxu0 %vm7593_vm11, %v8341_v39 }
 0x149   : > { %v4425_v56 = vadd.f32 %v4424_v49, %v4423_v29  ;;  %3389 = vmatprep.mubr.f32.mxu0 %v8008_v43 }
 0x14b   : > { %v5933_v47 = vadd.f32 %v8709_v22, %v4425_v56  ;;  %v4426_v40 = vpop.f32.mrb[34].mxu0 }
 0x14c   : > { %v4427_v20 = vpop.f32.mrb[35].mxu0  ;;  %4228 = vmatmul.mubr.msk.f32.gmra.mrb[140].mxu0 %vm7593_vm11, %v7969_v8 }
 0x14d   : > { %v4428_v17 = vadd.f32 %v4427_v20, %v4426_v40  ;;  %3394 = vmatprep.mubr.f32.mxu0 %v6840_v28 }
 0x14f   : > { %v5924_v51 = vadd.f32 %v5923_v54, %v4428_v17  ;;  %v4429_v21 = vpop.f32.mrb[36].mxu0 }
 0x150   : > { %v4430_v35 = vpop.f32.mrb[37].mxu0  ;;  %3395 = vmatmul.mubr.f32.gmra.mrb[142].mxu0 %v8851_v5 }
 0x151   : > { %v4431_v39 = vadd.f32 %v4430_v35, %v4429_v21 }
 0x153   : > { %v5951_v34 = vadd.f32 %v5950_v4, %v4431_v39  ;;  %v4432_v57 = vpop.f32.mrb[38].mxu0 }
 0x154   : > { %v4433_v43 = vpop.f32.mrb[39].mxu0 }
 0x155   : > { %v4434_v9 = vadd.f32 %v4433_v43, %v4432_v57 }
 0x157   : > { %v5942_v30 = vadd.f32 %v5941_v62, %v4434_v9  ;;  %v4435_v15 = vpop.f32.mrb[40].mxu0 }
 0x158   : > { %v4436_v11 = vpop.f32.mrb[41].mxu0 }
 0x159   : > { %v4437_v16 = vadd.f32 %v4436_v11, %v4435_v15 }
 0x15b   : > { %v5969_v45 = vadd.f32 %v5968_v12, %v4437_v16  ;;  %v4438_v13 = vpop.f32.mrb[42].mxu0 }
 0x15c   : > { %v4439_v8 = vpop.f32.mrb[43].mxu0 }
 0x15d   : > { %v4440_v44 = vadd.f32 %v4439_v8, %v4438_v13 }
 0x15f   : > { %v5960_v38 = vadd.f32 %v5959_v18, %v4440_v44  ;;  %v4441_v28 = vpop.f32.mrb[44].mxu0 }
 0x160   : > { %v4442_v50 = vpop.f32.mrb[45].mxu0 }
 0x161   : > { %v4443_v36 = vadd.f32 %v4442_v50, %v4441_v28 }
 0x163   : > { %v5987_v53 = vadd.f32 %v5986_v26, %v4443_v36  ;;  %v4444_v52 = vpop.f32.mrb[46].mxu0 }
 0x164   : > { %v4445_v5 = vpop.f32.mrb[47].mxu0 }
 0x165   : > { %v4446_v2 = vadd.f32 %v4445_v5, %v4444_v52 }
 0x167   : > { %v5978_v0 = vadd.f32 %v5977_v42, %v4446_v2  ;;  %v4503_v6 = vpop.f32.mrb[48].mxu0 }
 0x168   : > { %v4504_v22 = vpop.f32.mrb[49].mxu0 }
 0x169   : > { %v4505_v31 = vadd.f32 %v4504_v22, %v4503_v6 }
 0x16b   : > { %v5934_v63 = vadd.f32 %v5933_v47, %v4505_v31  ;;  %v4506_v3 = vpop.f32.mrb[50].mxu0 }
 0x16c   : > { %v4507_v10 = vpop.f32.mrb[51].mxu0 }
 0x16d   : > { %v4508_v32 = vadd.f32 %v4507_v10, %v4506_v3 }
 0x16f   : > { %v5925_v54 = vadd.f32 %v5924_v51, %v4508_v32  ;;  %v4509_v19 = vpop.f32.mrb[52].mxu0 }
 0x170   : > { %v4510_v14 = vpop.f32.mrb[53].mxu0 }
 0x171   : > { %v4511_v46 = vadd.f32 %v4510_v14, %v4509_v19 }
 0x173   : > { %v5952_v4 = vadd.f32 %v5951_v34, %v4511_v46  ;;  %v4512_v41 = vpop.f32.mrb[54].mxu0 }
 0x174   : > { %v4513_v7 = vpop.f32.mrb[55].mxu0 }
 0x175   : > { %v4514_v48 = vadd.f32 %v4513_v7, %v4512_v41 }
 0x177   : > { %v5943_v62 = vadd.f32 %v5942_v30, %v4514_v48  ;;  %v4515_v60 = vpop.f32.mrb[56].mxu0 }
 0x178   : > { %v4516_v58 = vpop.f32.mrb[57].mxu0 }
 0x179   : > { %v4517_v59 = vadd.f32 %v4516_v58, %v4515_v60 }
 0x17b   : > { %v5970_v12 = vadd.f32 %v5969_v45, %v4517_v59  ;;  %v4518_v37 = vpop.f32.mrb[58].mxu0 }
 0x17c   : > { %v4519_v1 = vpop.f32.mrb[59].mxu0 }
 0x17d   : > { %v4520_v33 = vadd.f32 %v4519_v1, %v4518_v37 }
 0x17f   : > { %v5961_v18 = vadd.f32 %v5960_v38, %v4520_v33  ;;  %v4521_v23 = vpop.f32.mrb[60].mxu0 }
 0x180   : > { %v4522_v55 = vpop.f32.mrb[61].mxu0 }
 0x181   : > { %v4523_v61 = vadd.f32 %v4522_v55, %v4521_v23 }
 0x183   : > { %v5988_v26 = vadd.f32 %v5987_v53, %v4523_v61  ;;  %v4524_v27 = vpop.f32.mrb[62].mxu0 }
 0x184   : > { %v4525_v24 = vpop.f32.mrb[63].mxu0 }
 0x185   : > { %v4526_v25 = vadd.f32 %v4525_v24, %v4524_v27 }
 0x187   : > { %v5979_v42 = vadd.f32 %v5978_v0, %v4526_v25  ;;  %v4583_v29 = vpop.f32.mrb[64].mxu0 }
 0x188   : > { %v4584_v49 = vpop.f32.mrb[65].mxu0 }
 0x189   : > { %v4585_v56 = vadd.f32 %v4584_v49, %v4583_v29 }
 0x18b   : > { %v5935_v47 = vadd.f32 %v5934_v63, %v4585_v56  ;;  %v4586_v40 = vpop.f32.mrb[66].mxu0 }
 0x18c   : > { %v4587_v20 = vpop.f32.mrb[67].mxu0 }
 0x18d   : > { %v4588_v17 = vadd.f32 %v4587_v20, %v4586_v40 }
 0x18f   : > { %v5926_v51 = vadd.f32 %v5925_v54, %v4588_v17  ;;  %v4589_v21 = vpop.f32.mrb[68].mxu0 }
 0x190   : > { %v4590_v35 = vpop.f32.mrb[69].mxu0 }
 0x191   : > { %v4591_v39 = vadd.f32 %v4590_v35, %v4589_v21 }
 0x193   : > { %v5953_v34 = vadd.f32 %v5952_v4, %v4591_v39  ;;  %v4592_v57 = vpop.f32.mrb[70].mxu0 }
 0x194   : > { %v4593_v43 = vpop.f32.mrb[71].mxu0 }
 0x195   : > { %v4594_v9 = vadd.f32 %v4593_v43, %v4592_v57 }
 0x197   : > { %v5944_v30 = vadd.f32 %v5943_v62, %v4594_v9  ;;  %v4595_v15 = vpop.f32.mrb[72].mxu0 }
 0x198   : > { %v4596_v11 = vpop.f32.mrb[73].mxu0 }
 0x199   : > { %v4597_v16 = vadd.f32 %v4596_v11, %v4595_v15 }
 0x19b   : > { %v5971_v45 = vadd.f32 %v5970_v12, %v4597_v16  ;;  %v4598_v13 = vpop.f32.mrb[74].mxu0 }
 0x19c   : > { %v4599_v8 = vpop.f32.mrb[75].mxu0 }
 0x19d   : > { %v4600_v44 = vadd.f32 %v4599_v8, %v4598_v13 }
 0x19f   : > { %v5962_v38 = vadd.f32 %v5961_v18, %v4600_v44  ;;  %v4601_v28 = vpop.f32.mrb[76].mxu0 }
 0x1a0   : > { %v4602_v50 = vpop.f32.mrb[77].mxu0 }
 0x1a1   : > { %v4603_v36 = vadd.f32 %v4602_v50, %v4601_v28 }
 0x1a3   : > { %v5989_v53 = vadd.f32 %v5988_v26, %v4603_v36  ;;  %v4604_v52 = vpop.f32.mrb[78].mxu0 }
 0x1a4   : > { %v4605_v5 = vpop.f32.mrb[79].mxu0 }
 0x1a5   : > { %v4606_v2 = vadd.f32 %v4605_v5, %v4604_v52 }
 0x1a7   : > { %v5980_v0 = vadd.f32 %v5979_v42, %v4606_v2  ;;  %v4663_v6 = vpop.f32.mrb[80].mxu0 }
 0x1a8   : > { %v4664_v22 = vpop.f32.mrb[81].mxu0 }
 0x1a9   : > { %v4665_v31 = vadd.f32 %v4664_v22, %v4663_v6 }
 0x1ab   : > { %v5936_v63 = vadd.f32 %v5935_v47, %v4665_v31  ;;  %v4666_v3 = vpop.f32.mrb[82].mxu0 }
 0x1ac   : > { %v4667_v10 = vpop.f32.mrb[83].mxu0 }
 0x1ad   : > { %v4668_v32 = vadd.f32 %v4667_v10, %v4666_v3 }
 0x1af   : > { %v5927_v54 = vadd.f32 %v5926_v51, %v4668_v32  ;;  %v4669_v19 = vpop.f32.mrb[84].mxu0 }
 0x1b0   : > { %v4670_v14 = vpop.f32.mrb[85].mxu0 }
 0x1b1   : > { %v4671_v46 = vadd.f32 %v4670_v14, %v4669_v19 }
 0x1b3   : > { %v5954_v4 = vadd.f32 %v5953_v34, %v4671_v46  ;;  %v4672_v41 = vpop.f32.mrb[86].mxu0 }
 0x1b4   : > { %v4673_v7 = vpop.f32.mrb[87].mxu0 }
 0x1b5   : > { %v4674_v48 = vadd.f32 %v4673_v7, %v4672_v41 }
 0x1b7   : > { %v5945_v62 = vadd.f32 %v5944_v30, %v4674_v48  ;;  %v4675_v60 = vpop.f32.mrb[88].mxu0 }
 0x1b8   : > { %v4676_v58 = vpop.f32.mrb[89].mxu0 }
 0x1b9   : > { %v4677_v59 = vadd.f32 %v4676_v58, %v4675_v60 }
 0x1bb   : > { %v5972_v12 = vadd.f32 %v5971_v45, %v4677_v59  ;;  %v4678_v37 = vpop.f32.mrb[90].mxu0 }
 0x1bc   : > { %v4679_v1 = vpop.f32.mrb[91].mxu0 }
 0x1bd   : > { %v4680_v33 = vadd.f32 %v4679_v1, %v4678_v37 }
 0x1bf   : > { %v5963_v18 = vadd.f32 %v5962_v38, %v4680_v33  ;;  %v4681_v23 = vpop.f32.mrb[92].mxu0 }
 0x1c0   : > { %v4682_v55 = vpop.f32.mrb[93].mxu0 }
 0x1c1   : > { %v4683_v61 = vadd.f32 %v4682_v55, %v4681_v23 }
 0x1c3   : > { %v5990_v26 = vadd.f32 %v5989_v53, %v4683_v61  ;;  %v4684_v27 = vpop.f32.mrb[94].mxu0 }
 0x1c4   : > { %v4685_v24 = vpop.f32.mrb[95].mxu0 }
 0x1c5   : > { %v4686_v25 = vadd.f32 %v4685_v24, %v4684_v27 }
 0x1c7   : > { %v5981_v42 = vadd.f32 %v5980_v0, %v4686_v25  ;;  %v4743_v29 = vpop.f32.mrb[96].mxu0 }
 0x1c8   : > { %v4744_v49 = vpop.f32.mrb[97].mxu0 }
 0x1c9   : > { %v4745_v56 = vadd.f32 %v4744_v49, %v4743_v29 }
 0x1cb   : > { %v5937_v47 = vadd.f32 %v5936_v63, %v4745_v56  ;;  %v4746_v40 = vpop.f32.mrb[98].mxu0 }
 0x1cc   : > { %v4747_v20 = vpop.f32.mrb[99].mxu0 }
 0x1cd   : > { %v4748_v17 = vadd.f32 %v4747_v20, %v4746_v40 }
 0x1cf   : > { %v5928_v51 = vadd.f32 %v5927_v54, %v4748_v17  ;;  %v4749_v21 = vpop.f32.mrb[100].mxu0 }
 0x1d0   : > { %v4750_v35 = vpop.f32.mrb[101].mxu0 }
 0x1d1   : > { %v4751_v39 = vadd.f32 %v4750_v35, %v4749_v21 }
 0x1d3   : > { %v5955_v34 = vadd.f32 %v5954_v4, %v4751_v39  ;;  %v4752_v57 = vpop.f32.mrb[102].mxu0 }
 0x1d4   : > { %v4753_v43 = vpop.f32.mrb[103].mxu0 }
 0x1d5   : > { %v4754_v9 = vadd.f32 %v4753_v43, %v4752_v57 }
 0x1d7   : > { %v5946_v30 = vadd.f32 %v5945_v62, %v4754_v9  ;;  %v4755_v15 = vpop.f32.mrb[104].mxu0 }
 0x1d8   : > { %v4756_v11 = vpop.f32.mrb[105].mxu0 }
 0x1d9   : > { %v4757_v16 = vadd.f32 %v4756_v11, %v4755_v15 }
 0x1db   : > { %v5973_v45 = vadd.f32 %v5972_v12, %v4757_v16  ;;  %v4758_v13 = vpop.f32.mrb[106].mxu0 }
 0x1dc   : > { %v4759_v8 = vpop.f32.mrb[107].mxu0 }
 0x1dd   : > { %v4760_v44 = vadd.f32 %v4759_v8, %v4758_v13 }
 0x1df   : > { %v5964_v38 = vadd.f32 %v5963_v18, %v4760_v44  ;;  %v4761_v28 = vpop.f32.mrb[108].mxu0 }
 0x1e0   : > { %v4762_v50 = vpop.f32.mrb[109].mxu0 }
 0x1e1   : > { %v4763_v36 = vadd.f32 %v4762_v50, %v4761_v28 }
 0x1e3   : > { %v5991_v53 = vadd.f32 %v5990_v26, %v4763_v36  ;;  %v4764_v52 = vpop.f32.mrb[110].mxu0 }
 0x1e4   : > { %v4765_v5 = vpop.f32.mrb[111].mxu0 }
 0x1e5   : > { %v4766_v2 = vadd.f32 %v4765_v5, %v4764_v52 }
 0x1e7   : > { %v5982_v0 = vadd.f32 %v5981_v42, %v4766_v2  ;;  %v4823_v6 = vpop.f32.mrb[112].mxu0 }
 0x1e8   : > { %v4824_v22 = vpop.f32.mrb[113].mxu0 }
 0x1e9   : > { %v4825_v31 = vadd.f32 %v4824_v22, %v4823_v6 }
 0x1eb   : > { %v5938_v63 = vadd.f32 %v5937_v47, %v4825_v31  ;;  %v4826_v3 = vpop.f32.mrb[114].mxu0 }
 0x1ec   : > { %v4827_v10 = vpop.f32.mrb[115].mxu0 }
 0x1ed   : > { %v4828_v32 = vadd.f32 %v4827_v10, %v4826_v3 }
 0x1ef   : > { %v5929_v54 = vadd.f32 %v5928_v51, %v4828_v32  ;;  %v4829_v19 = vpop.f32.mrb[116].mxu0 }
 0x1f0   : > { %v4830_v14 = vpop.f32.mrb[117].mxu0 }
 0x1f1   : > { %v4831_v46 = vadd.f32 %v4830_v14, %v4829_v19 }
 0x1f3   : > { %v5956_v4 = vadd.f32 %v5955_v34, %v4831_v46  ;;  %v4832_v41 = vpop.f32.mrb[118].mxu0 }
 0x1f4   : > { %v4833_v7 = vpop.f32.mrb[119].mxu0 }
 0x1f5   : > { %v4834_v48 = vadd.f32 %v4833_v7, %v4832_v41 }
 0x1f7   : > { %v5947_v62 = vadd.f32 %v5946_v30, %v4834_v48  ;;  %v4835_v60 = vpop.f32.mrb[120].mxu0 }
 0x1f8   : > { %v4836_v58 = vpop.f32.mrb[121].mxu0 }
 0x1f9   : > { %v4837_v59 = vadd.f32 %v4836_v58, %v4835_v60 }
 0x1fb   : > { %v8763_v12 = vadd.f32 %v5973_v45, %v4837_v59  ;;  %v4838_v37 = vpop.f32.mrb[122].mxu0 }
 0x1fc   : > { %v4839_v1 = vpop.f32.mrb[123].mxu0 }
 0x1fd   : > { %v4840_v33 = vadd.f32 %v4839_v1, %v4838_v37 }
 0x1ff   : > { %v8766_v18 = vadd.f32 %v5964_v38, %v4840_v33  ;;  %v4841_v23 = vpop.f32.mrb[124].mxu0 }
 0x200   : > { %v4842_v55 = vpop.f32.mrb[125].mxu0 }
 0x201   : > { %v4843_v61 = vadd.f32 %v4842_v55, %v4841_v23 }
 0x203   : > { %v8769_v26 = vadd.f32 %v5991_v53, %v4843_v61  ;;  %v4844_v27 = vpop.f32.mrb[126].mxu0 }
 0x204   : > { %v4845_v24 = vpop.f32.mrb[127].mxu0 }
 0x205   : > { %v4846_v25 = vadd.f32 %v4845_v24, %v4844_v27 }
 0x207   : > { %v8772_v42 = vadd.f32 %v5982_v0, %v4846_v25  ;;  %v4903_v29 = vpop.f32.mrb[128].mxu0 }
 0x208   : > { %v5337_v49 = vpop.f32.mrb[0].mxu1  ;;  %v4904_v56 = vpop.f32.mrb[129].mxu0 }
 0x209   : > { %v4905_v47 = vadd.f32 %v4904_v56, %v4903_v29  ;;  %v3466_v40 = vpop.f32.mrb[1].mxu1 }
 0x20b   : > { %v5939_v20 = vadd.f32 %v5938_v63, %v4905_v47  ;;  %v4906_v17 = vpop.f32.mrb[130].mxu0 }
 0x20c   : > { %v5340_v51 = vpop.f32.mrb[2].mxu1  ;;  %v4907_v21 = vpop.f32.mrb[131].mxu0 }
 0x20d   : > { %v5940_v35 = vadd.f32 %v5939_v20, %v3466_v40  ;;  %v4908_v39 = vadd.f32 %v4907_v21, %v4906_v17  ;;  %v3476_v34 = vpop.f32.mrb[3].mxu1 }
 0x20f   : > { %3513 = vst [vmem:[%s8777_s19] sm:$0xff] %v5940_v35  ;;  %v5930_v57 = vadd.f32 %v5929_v54, %v4908_v39  ;;  %v4909_v43 = vpop.f32.mrb[132].mxu0  ;;  %v3535_v45 = vmul.f32 %v5940_v35, %v5940_v35 }
 0x210   : > { %v5343_v9 = vpop.f32.mrb[4].mxu1  ;;  %v4910_v30 = vpop.f32.mrb[133].mxu0 }
 0x211   : > { %v5931_v15 = vadd.f32 %v5930_v57, %v5337_v49  ;;  %v4911_v11 = vadd.f32 %v4910_v30, %v4909_v43  ;;  %v3486_v16 = vpop.f32.mrb[5].mxu1 }
 0x213   : > { %3514 = vst [vmem:[%s8777_s19 + $0x8] sm:$0xff] %v5931_v15  ;;  %v3521_v13 = vadd.f32 %v5940_v35, %v5931_v15  ;;  %v3536_v8 = vmul.f32 %v5931_v15, %v5931_v15  ;;  %v5957_v44 = vadd.f32 %v5956_v4, %v4911_v11  ;;  %v4912_v38 = vpop.f32.mrb[134].mxu0 }
 0x214   : > { %v5346_v28 = vpop.f32.mrb[6].mxu1  ;;  %v4913_v50 = vpop.f32.mrb[135].mxu0 }
 0x215   : > { %v3543_v36 = vadd.f32 %v3536_v8, %v3535_v45  ;;  %v5958_v53 = vadd.f32 %v5957_v44, %v3476_v34  ;;  %v4914_v52 = vadd.f32 %v4913_v50, %v4912_v38  ;;  %v3496_v5 = vpop.f32.mrb[7].mxu1 }
 0x217   : > { %3515 = vst [vmem:[%s8777_s19 + $0x10] sm:$0xff] %v5958_v53  ;;  %v3522_v2 = vadd.f32 %v5958_v53, %v3521_v13  ;;  %v3537_v0 = vmul.f32 %v5958_v53, %v5958_v53  ;;  %v5948_v6 = vadd.f32 %v5947_v62, %v4914_v52  ;;  %v4915_v22 = vpop.f32.mrb[136].mxu0 }
 0x218   : > { %v4916_v31 = vpop.f32.mrb[137].mxu0 }
 0x219   : > { %v3544_v63 = vadd.f32 %v3543_v36, %v3537_v0  ;;  %v5949_v3 = vadd.f32 %v5948_v6, %v5340_v51  ;;  %v4917_v10 = vadd.f32 %v4916_v31, %v4915_v22 }
 0x21b   : > { %3516 = vst [vmem:[%s8777_s19 + $0x18] sm:$0xff] %v5949_v3  ;;  %v3523_v32 = vadd.f32 %v5949_v3, %v3522_v2  ;;  %v3538_v54 = vmul.f32 %v5949_v3, %v5949_v3  ;;  %v5975_v19 = vadd.f32 %v8763_v12, %v4917_v10  ;;  %v4918_v14 = vpop.f32.mrb[138].mxu0 }
 0x21c   : > { %v4919_v46 = vpop.f32.mrb[139].mxu0 }
 0x21d   : > { %v3545_v4 = vadd.f32 %v3544_v63, %v3538_v54  ;;  %v5976_v41 = vadd.f32 %v5975_v19, %v3486_v16  ;;  %v4920_v7 = vadd.f32 %v4919_v46, %v4918_v14 }
 0x21f   : > { %3517 = vst [vmem:[%s8777_s19 + $0x20] sm:$0xff] %v5976_v41  ;;  %v3524_v48 = vadd.f32 %v5976_v41, %v3523_v32  ;;  %v3539_v60 = vmul.f32 %v5976_v41, %v5976_v41  ;;  %v5966_v62 = vadd.f32 %v8766_v18, %v4920_v7  ;;  %v4921_v58 = vpop.f32.mrb[140].mxu0 }
 0x220   : > { %v4922_v59 = vpop.f32.mrb[141].mxu0 }
 0x221   : > { %v3546_v37 = vadd.f32 %v3545_v4, %v3539_v60  ;;  %v5967_v1 = vadd.f32 %v5966_v62, %v5343_v9  ;;  %v4923_v33 = vadd.f32 %v4922_v59, %v4921_v58 }
 0x223   : > { %3518 = vst [vmem:[%s8777_s19 + $0x28] sm:$0xff] %v5967_v1  ;;  %v3525_v12 = vadd.f32 %v5967_v1, %v3524_v48  ;;  %v3540_v23 = vmul.f32 %v5967_v1, %v5967_v1  ;;  %v5993_v55 = vadd.f32 %v8769_v26, %v4923_v33  ;;  %v4924_v61 = vpop.f32.mrb[142].mxu0 }
 0x224   : > { %v4925_v27 = vpop.f32.mrb[143].mxu0 }
 0x225   : > { %v3547_v24 = vadd.f32 %v3546_v37, %v3540_v23  ;;  %v5994_v25 = vadd.f32 %v5993_v55, %v3496_v5  ;;  %v4926_v29 = vadd.f32 %v4925_v27, %v4924_v61 }
 0x227   : > { %3519 = vst [vmem:[%s8777_s19 + $0x30] sm:$0xff] %v5994_v25  ;;  %v3526_v18 = vadd.f32 %v5994_v25, %v3525_v12  ;;  %v3541_v49 = vmul.f32 %v5994_v25, %v5994_v25  ;;  %v5984_v56 = vadd.f32 %v8772_v42, %v4926_v29 }
 0x229   : > { %v3548_v47 = vadd.f32 %v3547_v24, %v3541_v49  ;;  %v5985_v40 = vadd.f32 %v5984_v56, %v5346_v28 }
 0x22b   : > { %3520 = vst [vmem:[%s8777_s19 + $0x38] sm:$0xff] %v5985_v40  ;;  %v3527_v20 = vadd.f32 %v5985_v40, %v3526_v18  ;;  %v3542_v17 = vmul.f32 %v5985_v40, %v5985_v40 }
 0x22d   : > { %v3528_v51 = vrot.slane %v3527_v20, 4  ;;  %v3549_v21 = vadd.f32 %v3548_v47, %v3542_v17 }
 0x22f   : > { %v3529_v26 = vadd.f32 %v3528_v51, %v3527_v20  ;;  %v3550_v35 = vrot.slane %v3549_v21, 4 }
 0x231   : > { %v3530_v39 = vrot.slane %v3529_v26, 2  ;;  %v3551_v34 = vadd.f32 %v3550_v35, %v3549_v21 }
 0x233   : > { %v3531_v57 = vadd.f32 %v3530_v39, %v3529_v26  ;;  %v3552_v43 = vrot.slane %v3551_v34, 2 }
 0x235   : > { %v3532_v9 = vrot.slane %v3531_v57, 1  ;;  %v3553_v30 = vadd.f32 %v3552_v43, %v3551_v34 }
 0x237   : > { %v3533_v42 = vadd.f32 %v3532_v9, %v3531_v57  ;;  %v3554_v15 = vrot.slane %v3553_v30, 1 }
 0x239   : > { %3534 = vst [vmem:[%s451_s23] sm:$0x1] %v3533_v42  ;;  %v3555_v11 = vadd.f32 %v3554_v15, %v3553_v30 }
 0x23b   : > { %3556 = vst [vmem:[%s458_s12] sm:$0x1] %v3555_v11 }
 0x23c PF: > { %s19_s9 = sadd.s32 1, %s6146_s9   ;;  %s8853_s27 = smov %s6138_s29 }
 0x23d   : > { %p16_p6 = scmp.ge.s32.totalorder %s19_s9, 10   ;;  %s8854_s28 = smov %s6142_s30 }
 0x23e   : > { %s8855_s29 = smov %s8858_s10  ;;  %s8856_s30 = smov %s8862_s11 }
 0x23f   :  { %18 = sbr.rel (!%p16_p6) target bundleno = 3 (0x3), region = 112 }

</bundles_post_ra>
